<compile_context>
chip_gen: v5e
topology: v5e:2x2
jax: 0.10.0
libtpu: 0.0.40
codegen_flags: <defaults>
</compile_context>

<pallas_src>
import functools

import numpy as np

import jax
import jax.numpy as jnp
from jax import lax
from jax.experimental import pallas as pl
from jax.experimental.pallas import tpu as pltpu

Z_SIZE = 100
CONV_DIM = 4
BN_EPS = 1e-5


# ------------------------------ architecture -------------------------------

def _layer_dims(conv_dim):
    # (C_in, C_out, kernel, stride, padding) for conv1..conv5
    return [(conv_dim * 4, conv_dim * 2, 1, 2, 1),
            (conv_dim * 2, conv_dim * 4, 3, 2, 1),
            (conv_dim * 4, conv_dim * 6, 3, 2, 1),
            (conv_dim * 6, conv_dim * 2, 3, 2, 1),
            (conv_dim * 2, 3,            2, 1, 1)]


def _spatial_sizes(conv_dim):
    hw = [4]
    for (_, _, k, s, p) in _layer_dims(conv_dim):
        hw.append((hw[-1] - 1) * s - 2 * p + k)
    return hw                      # [4, 5, 9, 17, 33, 32]


def _padded_batch(batch):
    # keep the batch-contraction dims of the tiny layout matmuls >= 8 sublanes
    return max(batch, 8)


def _sel(out_size, in_size, stride, padding, k):
    """0/1 scatter matrix of a transposed-conv tap: m[o, i] = 1 iff i*s-p+k == o."""
    m = np.zeros((out_size, in_size), np.float32)
    for i in range(in_size):
        o = i * stride - padding + k
        if 0 <= o < out_size:
            m[o, i] = 1.0
    return m


# ----------------------------- raw parameters ------------------------------

def init_generator_params(key, z_size=Z_SIZE, conv_dim=CONV_DIM):
    ks = jax.random.split(key, 7)
    scale = 0.05
    p = {
        "fc_w": scale * jax.random.normal(ks[0], (conv_dim * 64, z_size), jnp.float32),
        "fc_b": scale * jax.random.normal(ks[1], (conv_dim * 64,), jnp.float32),
        "conv1_w": scale * jax.random.normal(ks[2], (conv_dim * 4, conv_dim * 2, 1, 1), jnp.float32),
        "conv2_w": scale * jax.random.normal(ks[3], (conv_dim * 2, conv_dim * 4, 3, 3), jnp.float32),
        "conv3_w": scale * jax.random.normal(ks[4], (conv_dim * 4, conv_dim * 6, 3, 3), jnp.float32),
        "conv4_w": scale * jax.random.normal(ks[5], (conv_dim * 6, conv_dim * 2, 3, 3), jnp.float32),
        "conv5_w": scale * jax.random.normal(ks[6], (conv_dim * 2, 3, 2, 2), jnp.float32),
        # BatchNorm2d default init: weight=1, bias=0.
        "bn1_g": jnp.ones((conv_dim * 2,), jnp.float32), "bn1_b": jnp.zeros((conv_dim * 2,), jnp.float32),
        "bn2_g": jnp.ones((conv_dim * 4,), jnp.float32), "bn2_b": jnp.zeros((conv_dim * 4,), jnp.float32),
        "bn3_g": jnp.ones((conv_dim * 6,), jnp.float32), "bn3_b": jnp.zeros((conv_dim * 6,), jnp.float32),
        "bn4_g": jnp.ones((conv_dim * 2,), jnp.float32), "bn4_b": jnp.zeros((conv_dim * 2,), jnp.float32),
    }
    return p


# ------------------- one-time GEMM-ready constant packing ------------------

def prepare_generator_inputs(params, batch, conv_dim=CONV_DIM):
    """Precompute (host-side, once) every GEMM-ready matrix the fused kernel needs."""
    hw = _spatial_sizes(conv_dim)
    dims = _layer_dims(conv_dim)
    f32, bf16 = jnp.float32, jnp.bfloat16
    bp = _padded_batch(batch)
    npp = {k: np.asarray(v, np.float32) for k, v in params.items()}

    prep = {}
    prep["fc_wT"] = jnp.asarray(npp["fc_w"].T, bf16)                   # (z, 64*cd)
    prep["fc_b"] = jnp.asarray(npp["fc_b"].reshape(1, -1), f32)

    # view(-1, 4*cd, 4, 4) NCHW  ->  rows (b, ih), cols (iw, ci)
    h0 = hw[0]
    ci0 = conv_dim * 4
    feat = conv_dim * 64
    R = np.zeros((h0, batch * h0, bp), np.float32)
    P = np.zeros((h0, feat, h0 * ci0), np.float32)
    for h in range(h0):
        for b in range(batch):
            R[h, b * h0 + h, b] = 1.0
        for c in range(ci0):
            for w in range(h0):
                P[h, c * h0 * h0 + h * h0 + w, w * ci0 + c] = 1.0
    prep["R"] = jnp.asarray(R, f32)
    prep["P"] = jnp.asarray(P, f32)

    # ConvTranspose2d l  ->  per-kh:  A_kh (height scatter, block-diag over batch)
    #                               N_kh (width scatter kron weight, kw-summed)
    wnames = ["conv1_w", "conv2_w", "conv3_w", "conv4_w", "conv5_w"]
    eye_b = np.eye(batch, dtype=np.float32)
    for l, (name, (ci, co, k, s, p)) in enumerate(zip(wnames, dims), start=1):
        w = npp[name]                                    # (ci, co, k, k)
        ih, oh = hw[l - 1], hw[l]
        A = np.stack([np.kron(eye_b, _sel(oh, ih, s, p, kk)) for kk in range(k)])
        N = np.zeros((k, ih * ci, oh * co), np.float32)
        for k_h in range(k):
            for k_w in range(k):
                bsel = _sel(oh, ih, s, p, k_w)           # width scatter (square maps)
                N[k_h] += np.einsum("oi,cd->icod", bsel, w[:, :, k_h, k_w]
                                    ).reshape(ih * ci, oh * co)
        prep[f"A{l}"] = jnp.asarray(A, f32)
        prep[f"N{l}"] = jnp.asarray(N, bf16)

    # BatchNorm channel aggregation / broadcast matrices
    for l in range(1, 5):
        co = dims[l - 1][1]
        ow = hw[l]
        E = np.tile(np.eye(co, dtype=np.float32), (1, ow))   # (co, ow*co)
        prep[f"g{l}"] = jnp.asarray(npp[f"bn{l}_g"].reshape(1, co), f32)
        prep[f"b{l}"] = jnp.asarray(npp[f"bn{l}_b"].reshape(1, co), f32)
        prep[f"E{l}"] = jnp.asarray(E, f32)
        prep[f"ET{l}"] = jnp.asarray(E.T, f32)

    # final (b*oh, ow*c) -> NCHW column selection
    co5, ow5 = dims[4][1], hw[5]
    Q = np.zeros((co5, ow5 * co5, ow5), np.float32)
    for c in range(co5):
        for ow in range(ow5):
            Q[c, ow * co5 + c, ow] = 1.0
    prep["Q"] = jnp.asarray(Q, f32)
    return prep


# ------------------------------- fused kernel ------------------------------

def _generator_kernel(*refs, batch, h0, taps, bn_counts, out_c, out_hw, eps):
    """Entire Generator.forward on VMEM-resident data (single invocation, no grid)."""
    x_ref, fcw_ref, fcb_ref, r_ref, p_ref = refs[:5]
    conv_refs = refs[5:15]           # A1, N1, A2, N2, ..., A5, N5
    bn_refs = refs[15:31]            # (gamma, beta, E, E^T) x 4
    q_ref, o_ref = refs[31], refs[32]

    f32 = jnp.float32

    # ---- fc (nn.Linear): bf16 MXU matmul, f32 accumulate + bias ----
    fc = jnp.dot(x_ref[...].astype(jnp.bfloat16), fcw_ref[...],
                 preferred_element_type=f32) + fcb_ref[...]

    # ---- view(-1, 4*cd, 4, 4) NCHW -> rows (b, ih), cols (iw, ci) ----
    feat = None
    for h in range(h0):
        t = jnp.dot(jnp.dot(r_ref[h], fc, preferred_element_type=f32),
                    p_ref[h], preferred_element_type=f32)
        feat = t if feat is None else feat + t

    # ---- ConvTranspose2d: per-kh height-scatter x (width-scatter kron W) ----
    def convt(z, a_ref, n_ref, n_kh):
        zb = z.astype(jnp.bfloat16)
        acc = None
        for k in range(n_kh):
            y = jnp.dot(zb, n_ref[k], preferred_element_type=f32)     # width taps + weights
            y = jnp.dot(a_ref[k], y, preferred_element_type=f32)      # height scatter
            acc = y if acc is None else acc + y
        return acc

    # ---- training-mode BatchNorm (batch statistics, biased var) + ReLU ----
    def bn_relu(z, g_ref, b_ref, e_ref, et_ref, count):
        inv = 1.0 / float(count)
        mean_c = jnp.dot(jnp.sum(z, axis=0, keepdims=True), et_ref[...],
                         preferred_element_type=f32) * inv            # (1, C)
        cent = z - jnp.dot(mean_c, e_ref[...], preferred_element_type=f32)
        var_c = jnp.dot(jnp.sum(cent * cent, axis=0, keepdims=True), et_ref[...],
                        preferred_element_type=f32) * inv             # (1, C)
        scale = g_ref[...] * lax.rsqrt(var_c + eps)
        z = cent * jnp.dot(scale, e_ref[...], preferred_element_type=f32)
        z = z + jnp.dot(b_ref[...], e_ref[...], preferred_element_type=f32)
        return jnp.maximum(z, 0.0)

    z = feat
    for l in range(4):
        a_ref, n_ref = conv_refs[2 * l], conv_refs[2 * l + 1]
        g_ref, b_ref, e_ref, et_ref = bn_refs[4 * l: 4 * l + 4]
        z = bn_relu(convt(z, a_ref, n_ref, taps[l]),
                    g_ref, b_ref, e_ref, et_ref, bn_counts[l])
    y = jnp.tanh(convt(z, conv_refs[8], conv_refs[9], taps[4]))        # (B*32, 32*3)

    # ---- (b*oh, ow*c) -> NCHW (B, 3, 32, 32) via per-(b, c) column select ----
    for b in range(batch):
        rows = y[b * out_hw:(b + 1) * out_hw, :]
        for c in range(out_c):
            o_ref[b, c, :, :] = jnp.dot(rows, q_ref[c], preferred_element_type=f32)


# ------------------------------ forward wrapper ----------------------------

def generator_forward(x, prep, conv_dim=CONV_DIM):
    """x: (B, z_size) -> (B, 3, 32, 32), matching the PyTorch Generator.forward."""
    batch = x.shape[0]
    hw = _spatial_sizes(conv_dim)
    dims = _layer_dims(conv_dim)
    taps = tuple(d[2] for d in dims)
    bn_counts = tuple(batch * hw[l] * hw[l] for l in range(1, 5))
    out_c, out_hw = dims[4][1], hw[5]
    bp = _padded_batch(batch)
    assert prep["R"].shape[1] == batch * hw[0], "prep built for a different batch size"

    x_in = x.astype(jnp.float32)
    if bp > batch:                                   # keep batch contraction >= 8
        x_in = jnp.pad(x_in, ((0, bp - batch), (0, 0)))

    ops = [x_in, prep["fc_wT"], prep["fc_b"], prep["R"], prep["P"]]
    for l in range(1, 6):
        ops += [prep[f"A{l}"], prep[f"N{l}"]]
    for l in range(1, 5):
        ops += [prep[f"g{l}"], prep[f"b{l}"], prep[f"E{l}"], prep[f"ET{l}"]]
    ops.append(prep["Q"])

    kernel = functools.partial(
        _generator_kernel, batch=batch, h0=hw[0], taps=taps,
        bn_counts=bn_counts, out_c=out_c, out_hw=out_hw, eps=BN_EPS)

    vmem = pl.BlockSpec(memory_space=pltpu.MemorySpace.VMEM)
    return pl.pallas_call(
        kernel,
        out_shape=jax.ShapeDtypeStruct((batch, out_c, out_hw, out_hw), jnp.float32),
        in_specs=[vmem] * len(ops),
        out_specs=vmem,
    )(*ops)


# ------------------------- pure NumPy reference ----------------------------

def _bf16_round(a):
    return np.asarray(jnp.asarray(a, jnp.bfloat16).astype(jnp.float32))


def _np_conv_transpose(x, w, stride, padding):
    B, CI, IH, IW = x.shape
    _, CO, KH, KW = w.shape
    OH = (IH - 1) * stride - 2 * padding + KH
    OW = (IW - 1) * stride - 2 * padding + KW
    out = np.zeros((B, CO, OH, OW), np.float32)
    for kh in range(KH):
        for kw in range(KW):
            contrib = np.einsum("bcij,cd->bdij", x, w[:, :, kh, kw])
            for ih in range(IH):
                oh = ih * stride - padding + kh
                if not (0 <= oh < OH):
                    continue
                for iw in range(IW):
                    ow = iw * stride - padding + kw
                    if 0 <= ow < OW:
                        out[:, :, oh, ow] += contrib[:, :, ih, iw]
    return out


def _reference_forward(x, params, conv_dim=CONV_DIM):
    x = np.asarray(x, np.float32)
    out = x @ _bf16_round(params["fc_w"]).T + np.asarray(params["fc_b"], np.float32)
    out = out.reshape(x.shape[0], conv_dim * 4, 4, 4)
    dims = _layer_dims(conv_dim)
    wn = ["conv1_w", "conv2_w", "conv3_w", "conv4_w", "conv5_w"]
    for l, (name, (_, _, k, s, p)) in enumerate(zip(wn, dims), start=1):
        out = _np_conv_transpose(out, _bf16_round(params[name]), s, p)
        if l < 5:
            g = np.asarray(params[f"bn{l}_g"], np.float32).reshape(1, -1, 1, 1)
            b = np.asarray(params[f"bn{l}_b"], np.float32).reshape(1, -1, 1, 1)
            mean = out.mean(axis=(0, 2, 3), keepdims=True)
            var = out.var(axis=(0, 2, 3), keepdims=True)
            out = (out - mean) / np.sqrt(var + BN_EPS) * g + b
            out = np.maximum(out, 0.0)
        else:
            out = np.tanh(out)
    return out


# ----------------------------------- main -----------------------------------

if __name__ == "__main__":
    key = jax.random.PRNGKey(0)
    k_param, k_in = jax.random.split(key)

    params = init_generator_params(k_param)
    x = jax.random.normal(k_in, (2, Z_SIZE), jnp.float32)   # batch of latent vectors

    prep = prepare_generator_inputs(params, batch=x.shape[0])
    fwd = jax.jit(functools.partial(generator_forward, conv_dim=CONV_DIM))
    y = fwd(x, prep)
    jax.block_until_ready(y)

    assert y.shape == (2, 3, 32, 32), y.shape
    assert y.dtype == jnp.float32
    assert bool(jnp.all(jnp.isfinite(y)))

    y_ref = _reference_forward(np.asarray(x), {k: np.asarray(v) for k, v in params.items()})
    err = float(np.max(np.abs(np.asarray(y) - y_ref)))
    assert err < 0.1, f"max |err| vs reference = {err}"

    print("KERNEL_OK")
</pallas_src>

<mosaic_0001>
module attributes {stable_mosaic.version = 11 : i64} {
  func.func @_generator_kernel(%arg0: memref<8x100xf32, #tpu.memory_space<vmem>>, %arg1: memref<100x256xbf16, #tpu.memory_space<vmem>>, %arg2: memref<1x256xf32, #tpu.memory_space<vmem>>, %arg3: memref<4x8x8xf32, #tpu.memory_space<vmem>>, %arg4: memref<4x256x64xf32, #tpu.memory_space<vmem>>, %arg5: memref<1x10x8xf32, #tpu.memory_space<vmem>>, %arg6: memref<1x64x40xbf16, #tpu.memory_space<vmem>>, %arg7: memref<3x18x10xf32, #tpu.memory_space<vmem>>, %arg8: memref<3x40x144xbf16, #tpu.memory_space<vmem>>, %arg9: memref<3x34x18xf32, #tpu.memory_space<vmem>>, %arg10: memref<3x144x408xbf16, #tpu.memory_space<vmem>>, %arg11: memref<3x66x34xf32, #tpu.memory_space<vmem>>, %arg12: memref<3x408x264xbf16, #tpu.memory_space<vmem>>, %arg13: memref<2x64x66xf32, #tpu.memory_space<vmem>>, %arg14: memref<2x264x96xbf16, #tpu.memory_space<vmem>>, %arg15: memref<1x8xf32, #tpu.memory_space<vmem>>, %arg16: memref<1x8xf32, #tpu.memory_space<vmem>>, %arg17: memref<8x40xf32, #tpu.memory_space<vmem>>, %arg18: memref<40x8xf32, #tpu.memory_space<vmem>>, %arg19: memref<1x16xf32, #tpu.memory_space<vmem>>, %arg20: memref<1x16xf32, #tpu.memory_space<vmem>>, %arg21: memref<16x144xf32, #tpu.memory_space<vmem>>, %arg22: memref<144x16xf32, #tpu.memory_space<vmem>>, %arg23: memref<1x24xf32, #tpu.memory_space<vmem>>, %arg24: memref<1x24xf32, #tpu.memory_space<vmem>>, %arg25: memref<24x408xf32, #tpu.memory_space<vmem>>, %arg26: memref<408x24xf32, #tpu.memory_space<vmem>>, %arg27: memref<1x8xf32, #tpu.memory_space<vmem>>, %arg28: memref<1x8xf32, #tpu.memory_space<vmem>>, %arg29: memref<8x264xf32, #tpu.memory_space<vmem>>, %arg30: memref<264x8xf32, #tpu.memory_space<vmem>>, %arg31: memref<3x96x32xf32, #tpu.memory_space<vmem>>, %arg32: memref<2x3x32x32xf32, #tpu.memory_space<vmem>>) attributes {dimension_semantics = [], scalar_prefetch = 0 : i64, scratch_operands = 0 : i64, tpu.core_type = #tpu.core_type<tc>} {
    %c0 = arith.constant 0 : index
    %c0_0 = arith.constant 0 : index
    %0 = vector.load %arg0[%c0, %c0_0] : memref<8x100xf32, #tpu.memory_space<vmem>>, vector<8x100xf32>
    %1 = arith.truncf %0 : vector<8x100xf32> to vector<8x100xbf16>
    %c0_1 = arith.constant 0 : index
    %c0_2 = arith.constant 0 : index
    %2 = vector.load %arg1[%c0_1, %c0_2] : memref<100x256xbf16, #tpu.memory_space<vmem>>, vector<100x256xbf16>
    %cst = arith.constant dense<0.000000e+00> : vector<8x256xf32>
    %3 = tpu.matmul %1, %2, %cst {dimension_numbers = #tpu.dot_dimension_numbers<[1], [0], [0], [1], [0, 0, 1, 1], [], []>} : vector<8x100xbf16>, vector<100x256xbf16>, vector<8x256xf32> -> vector<8x256xf32>
    %c0_3 = arith.constant 0 : index
    %c0_4 = arith.constant 0 : index
    %4 = vector.load %arg2[%c0_3, %c0_4] : memref<1x256xf32, #tpu.memory_space<vmem>>, vector<1x256xf32>
    %5 = vector.broadcast %4 : vector<1x256xf32> to vector<8x256xf32>
    %6 = arith.addf %3, %5 : vector<8x256xf32>
    %c0_5 = arith.constant 0 : index
    %c0_6 = arith.constant 0 : index
    %c0_7 = arith.constant 0 : index
    %7 = vector.load %arg3[%c0_5, %c0_6, %c0_7] : memref<4x8x8xf32, #tpu.memory_space<vmem>>, vector<1x8x8xf32>
    %8 = vector.shape_cast %7 : vector<1x8x8xf32> to vector<8x8xf32>
    %cst_8 = arith.constant dense<0.000000e+00> : vector<8x256xf32>
    %9 = tpu.matmul %8, %6, %cst_8 {dimension_numbers = #tpu.dot_dimension_numbers<[1], [0], [0], [1], [0, 0, 1, 1], [], []>} : vector<8x8xf32>, vector<8x256xf32>, vector<8x256xf32> -> vector<8x256xf32>
    %c0_9 = arith.constant 0 : index
    %c0_10 = arith.constant 0 : index
    %c0_11 = arith.constant 0 : index
    %10 = vector.load %arg4[%c0_9, %c0_10, %c0_11] : memref<4x256x64xf32, #tpu.memory_space<vmem>>, vector<1x256x64xf32>
    %11 = vector.shape_cast %10 : vector<1x256x64xf32> to vector<256x64xf32>
    %cst_12 = arith.constant dense<0.000000e+00> : vector<8x64xf32>
    %12 = tpu.matmul %9, %11, %cst_12 {dimension_numbers = #tpu.dot_dimension_numbers<[1], [0], [0], [1], [0, 0, 1, 1], [], []>} : vector<8x256xf32>, vector<256x64xf32>, vector<8x64xf32> -> vector<8x64xf32>
    %c1 = arith.constant 1 : index
    %c0_13 = arith.constant 0 : index
    %c0_14 = arith.constant 0 : index
    %13 = vector.load %arg3[%c1, %c0_13, %c0_14] : memref<4x8x8xf32, #tpu.memory_space<vmem>>, vector<1x8x8xf32>
    %14 = vector.shape_cast %13 : vector<1x8x8xf32> to vector<8x8xf32>
    %cst_15 = arith.constant dense<0.000000e+00> : vector<8x256xf32>
    %15 = tpu.matmul %14, %6, %cst_15 {dimension_numbers = #tpu.dot_dimension_numbers<[1], [0], [0], [1], [0, 0, 1, 1], [], []>} : vector<8x8xf32>, vector<8x256xf32>, vector<8x256xf32> -> vector<8x256xf32>
    %c1_16 = arith.constant 1 : index
    %c0_17 = arith.constant 0 : index
    %c0_18 = arith.constant 0 : index
    %16 = vector.load %arg4[%c1_16, %c0_17, %c0_18] : memref<4x256x64xf32, #tpu.memory_space<vmem>>, vector<1x256x64xf32>
    %17 = vector.shape_cast %16 : vector<1x256x64xf32> to vector<256x64xf32>
    %cst_19 = arith.constant dense<0.000000e+00> : vector<8x64xf32>
    %18 = tpu.matmul %15, %17, %cst_19 {dimension_numbers = #tpu.dot_dimension_numbers<[1], [0], [0], [1], [0, 0, 1, 1], [], []>} : vector<8x256xf32>, vector<256x64xf32>, vector<8x64xf32> -> vector<8x64xf32>
    %19 = arith.addf %12, %18 : vector<8x64xf32>
    %c2 = arith.constant 2 : index
    %c0_20 = arith.constant 0 : index
    %c0_21 = arith.constant 0 : index
    %20 = vector.load %arg3[%c2, %c0_20, %c0_21] : memref<4x8x8xf32, #tpu.memory_space<vmem>>, vector<1x8x8xf32>
    %21 = vector.shape_cast %20 : vector<1x8x8xf32> to vector<8x8xf32>
    %cst_22 = arith.constant dense<0.000000e+00> : vector<8x256xf32>
    %22 = tpu.matmul %21, %6, %cst_22 {dimension_numbers = #tpu.dot_dimension_numbers<[1], [0], [0], [1], [0, 0, 1, 1], [], []>} : vector<8x8xf32>, vector<8x256xf32>, vector<8x256xf32> -> vector<8x256xf32>
    %c2_23 = arith.constant 2 : index
    %c0_24 = arith.constant 0 : index
    %c0_25 = arith.constant 0 : index
    %23 = vector.load %arg4[%c2_23, %c0_24, %c0_25] : memref<4x256x64xf32, #tpu.memory_space<vmem>>, vector<1x256x64xf32>
    %24 = vector.shape_cast %23 : vector<1x256x64xf32> to vector<256x64xf32>
    %cst_26 = arith.constant dense<0.000000e+00> : vector<8x64xf32>
    %25 = tpu.matmul %22, %24, %cst_26 {dimension_numbers = #tpu.dot_dimension_numbers<[1], [0], [0], [1], [0, 0, 1, 1], [], []>} : vector<8x256xf32>, vector<256x64xf32>, vector<8x64xf32> -> vector<8x64xf32>
    %26 = arith.addf %19, %25 : vector<8x64xf32>
    %c3 = arith.constant 3 : index
    %c0_27 = arith.constant 0 : index
    %c0_28 = arith.constant 0 : index
    %27 = vector.load %arg3[%c3, %c0_27, %c0_28] : memref<4x8x8xf32, #tpu.memory_space<vmem>>, vector<1x8x8xf32>
    %28 = vector.shape_cast %27 : vector<1x8x8xf32> to vector<8x8xf32>
    %cst_29 = arith.constant dense<0.000000e+00> : vector<8x256xf32>
    %29 = tpu.matmul %28, %6, %cst_29 {dimension_numbers = #tpu.dot_dimension_numbers<[1], [0], [0], [1], [0, 0, 1, 1], [], []>} : vector<8x8xf32>, vector<8x256xf32>, vector<8x256xf32> -> vector<8x256xf32>
    %c3_30 = arith.constant 3 : index
    %c0_31 = arith.constant 0 : index
    %c0_32 = arith.constant 0 : index
    %30 = vector.load %arg4[%c3_30, %c0_31, %c0_32] : memref<4x256x64xf32, #tpu.memory_space<vmem>>, vector<1x256x64xf32>
    %31 = vector.shape_cast %30 : vector<1x256x64xf32> to vector<256x64xf32>
    %cst_33 = arith.constant dense<0.000000e+00> : vector<8x64xf32>
    %32 = tpu.matmul %29, %31, %cst_33 {dimension_numbers = #tpu.dot_dimension_numbers<[1], [0], [0], [1], [0, 0, 1, 1], [], []>} : vector<8x256xf32>, vector<256x64xf32>, vector<8x64xf32> -> vector<8x64xf32>
    %33 = arith.addf %26, %32 : vector<8x64xf32>
    %34 = arith.truncf %33 : vector<8x64xf32> to vector<8x64xbf16>
    %c0_34 = arith.constant 0 : index
    %c0_35 = arith.constant 0 : index
    %c0_36 = arith.constant 0 : index
    %35 = vector.load %arg6[%c0_34, %c0_35, %c0_36] : memref<1x64x40xbf16, #tpu.memory_space<vmem>>, vector<1x64x40xbf16>
    %36 = vector.shape_cast %35 : vector<1x64x40xbf16> to vector<64x40xbf16>
    %cst_37 = arith.constant dense<0.000000e+00> : vector<8x40xf32>
    %37 = tpu.matmul %34, %36, %cst_37 {dimension_numbers = #tpu.dot_dimension_numbers<[1], [0], [0], [1], [0, 0, 1, 1], [], []>} : vector<8x64xbf16>, vector<64x40xbf16>, vector<8x40xf32> -> vector<8x40xf32>
    %c0_38 = arith.constant 0 : index
    %c0_39 = arith.constant 0 : index
    %c0_40 = arith.constant 0 : index
    %38 = vector.load %arg5[%c0_38, %c0_39, %c0_40] : memref<1x10x8xf32, #tpu.memory_space<vmem>>, vector<1x10x8xf32>
    %39 = vector.shape_cast %38 : vector<1x10x8xf32> to vector<10x8xf32>
    %cst_41 = arith.constant dense<0.000000e+00> : vector<10x40xf32>
    %40 = tpu.matmul %39, %37, %cst_41 {dimension_numbers = #tpu.dot_dimension_numbers<[1], [0], [0], [1], [0, 0, 1, 1], [], []>} : vector<10x8xf32>, vector<8x40xf32>, vector<10x40xf32> -> vector<10x40xf32>
    %cst_42 = arith.constant dense<0.000000e+00> : vector<40xf32>
    %41 = vector.multi_reduction <add>, %40, %cst_42 [0] : vector<10x40xf32> to vector<40xf32>
    %42 = vector.shape_cast %41 : vector<40xf32> to vector<1x40xf32>
    %c0_43 = arith.constant 0 : index
    %c0_44 = arith.constant 0 : index
    %43 = vector.load %arg18[%c0_43, %c0_44] : memref<40x8xf32, #tpu.memory_space<vmem>>, vector<40x8xf32>
    %cst_45 = arith.constant dense<0.000000e+00> : vector<1x8xf32>
    %44 = tpu.matmul %42, %43, %cst_45 {dimension_numbers = #tpu.dot_dimension_numbers<[1], [0], [0], [1], [0, 0, 1, 1], [], []>} : vector<1x40xf32>, vector<40x8xf32>, vector<1x8xf32> -> vector<1x8xf32>
    %cst_46 = arith.constant 2.000000e-02 : f32
    %45 = vector.broadcast %cst_46 : f32 to vector<1x8xf32>
    %46 = arith.mulf %44, %45 : vector<1x8xf32>
    %c0_47 = arith.constant 0 : index
    %c0_48 = arith.constant 0 : index
    %47 = vector.load %arg17[%c0_47, %c0_48] : memref<8x40xf32, #tpu.memory_space<vmem>>, vector<8x40xf32>
    %cst_49 = arith.constant dense<0.000000e+00> : vector<1x40xf32>
    %48 = tpu.matmul %46, %47, %cst_49 {dimension_numbers = #tpu.dot_dimension_numbers<[1], [0], [0], [1], [0, 0, 1, 1], [], []>} : vector<1x8xf32>, vector<8x40xf32>, vector<1x40xf32> -> vector<1x40xf32>
    %49 = vector.broadcast %48 : vector<1x40xf32> to vector<10x40xf32>
    %50 = arith.subf %40, %49 : vector<10x40xf32>
    %51 = arith.mulf %50, %50 : vector<10x40xf32>
    %cst_50 = arith.constant dense<0.000000e+00> : vector<40xf32>
    %52 = vector.multi_reduction <add>, %51, %cst_50 [0] : vector<10x40xf32> to vector<40xf32>
    %53 = vector.shape_cast %52 : vector<40xf32> to vector<1x40xf32>
    %c0_51 = arith.constant 0 : index
    %c0_52 = arith.constant 0 : index
    %54 = vector.load %arg18[%c0_51, %c0_52] : memref<40x8xf32, #tpu.memory_space<vmem>>, vector<40x8xf32>
    %cst_53 = arith.constant dense<0.000000e+00> : vector<1x8xf32>
    %55 = tpu.matmul %53, %54, %cst_53 {dimension_numbers = #tpu.dot_dimension_numbers<[1], [0], [0], [1], [0, 0, 1, 1], [], []>} : vector<1x40xf32>, vector<40x8xf32>, vector<1x8xf32> -> vector<1x8xf32>
    %cst_54 = arith.constant 2.000000e-02 : f32
    %56 = vector.broadcast %cst_54 : f32 to vector<1x8xf32>
    %57 = arith.mulf %55, %56 : vector<1x8xf32>
    %c0_55 = arith.constant 0 : index
    %c0_56 = arith.constant 0 : index
    %58 = vector.load %arg15[%c0_55, %c0_56] : memref<1x8xf32, #tpu.memory_space<vmem>>, vector<1x8xf32>
    %cst_57 = arith.constant 9.99999974E-6 : f32
    %59 = vector.broadcast %cst_57 : f32 to vector<1x8xf32>
    %60 = arith.addf %57, %59 : vector<1x8xf32>
    %61 = math.rsqrt %60 : vector<1x8xf32>
    %62 = arith.mulf %58, %61 : vector<1x8xf32>
    %c0_58 = arith.constant 0 : index
    %c0_59 = arith.constant 0 : index
    %63 = vector.load %arg17[%c0_58, %c0_59] : memref<8x40xf32, #tpu.memory_space<vmem>>, vector<8x40xf32>
    %cst_60 = arith.constant dense<0.000000e+00> : vector<1x40xf32>
    %64 = tpu.matmul %62, %63, %cst_60 {dimension_numbers = #tpu.dot_dimension_numbers<[1], [0], [0], [1], [0, 0, 1, 1], [], []>} : vector<1x8xf32>, vector<8x40xf32>, vector<1x40xf32> -> vector<1x40xf32>
    %65 = vector.broadcast %64 : vector<1x40xf32> to vector<10x40xf32>
    %66 = arith.mulf %50, %65 : vector<10x40xf32>
    %c0_61 = arith.constant 0 : index
    %c0_62 = arith.constant 0 : index
    %67 = vector.load %arg16[%c0_61, %c0_62] : memref<1x8xf32, #tpu.memory_space<vmem>>, vector<1x8xf32>
    %c0_63 = arith.constant 0 : index
    %c0_64 = arith.constant 0 : index
    %68 = vector.load %arg17[%c0_63, %c0_64] : memref<8x40xf32, #tpu.memory_space<vmem>>, vector<8x40xf32>
    %cst_65 = arith.constant dense<0.000000e+00> : vector<1x40xf32>
    %69 = tpu.matmul %67, %68, %cst_65 {dimension_numbers = #tpu.dot_dimension_numbers<[1], [0], [0], [1], [0, 0, 1, 1], [], []>} : vector<1x8xf32>, vector<8x40xf32>, vector<1x40xf32> -> vector<1x40xf32>
    %70 = vector.broadcast %69 : vector<1x40xf32> to vector<10x40xf32>
    %71 = arith.addf %66, %70 : vector<10x40xf32>
    %cst_66 = arith.constant 0.000000e+00 : f32
    %72 = vector.broadcast %cst_66 : f32 to vector<10x40xf32>
    %73 = arith.maximumf %71, %72 : vector<10x40xf32>
    %74 = arith.truncf %73 : vector<10x40xf32> to vector<10x40xbf16>
    %c0_67 = arith.constant 0 : index
    %c0_68 = arith.constant 0 : index
    %c0_69 = arith.constant 0 : index
    %75 = vector.load %arg8[%c0_67, %c0_68, %c0_69] : memref<3x40x144xbf16, #tpu.memory_space<vmem>>, vector<1x40x144xbf16>
    %76 = vector.shape_cast %75 : vector<1x40x144xbf16> to vector<40x144xbf16>
    %cst_70 = arith.constant dense<0.000000e+00> : vector<10x144xf32>
    %77 = tpu.matmul %74, %76, %cst_70 {dimension_numbers = #tpu.dot_dimension_numbers<[1], [0], [0], [1], [0, 0, 1, 1], [], []>} : vector<10x40xbf16>, vector<40x144xbf16>, vector<10x144xf32> -> vector<10x144xf32>
    %c0_71 = arith.constant 0 : index
    %c0_72 = arith.constant 0 : index
    %c0_73 = arith.constant 0 : index
    %78 = vector.load %arg7[%c0_71, %c0_72, %c0_73] : memref<3x18x10xf32, #tpu.memory_space<vmem>>, vector<1x18x10xf32>
    %79 = vector.shape_cast %78 : vector<1x18x10xf32> to vector<18x10xf32>
    %cst_74 = arith.constant dense<0.000000e+00> : vector<18x144xf32>
    %80 = tpu.matmul %79, %77, %cst_74 {dimension_numbers = #tpu.dot_dimension_numbers<[1], [0], [0], [1], [0, 0, 1, 1], [], []>} : vector<18x10xf32>, vector<10x144xf32>, vector<18x144xf32> -> vector<18x144xf32>
    %c1_75 = arith.constant 1 : index
    %c0_76 = arith.constant 0 : index
    %c0_77 = arith.constant 0 : index
    %81 = vector.load %arg8[%c1_75, %c0_76, %c0_77] : memref<3x40x144xbf16, #tpu.memory_space<vmem>>, vector<1x40x144xbf16>
    %82 = vector.shape_cast %81 : vector<1x40x144xbf16> to vector<40x144xbf16>
    %cst_78 = arith.constant dense<0.000000e+00> : vector<10x144xf32>
    %83 = tpu.matmul %74, %82, %cst_78 {dimension_numbers = #tpu.dot_dimension_numbers<[1], [0], [0], [1], [0, 0, 1, 1], [], []>} : vector<10x40xbf16>, vector<40x144xbf16>, vector<10x144xf32> -> vector<10x144xf32>
    %c1_79 = arith.constant 1 : index
    %c0_80 = arith.constant 0 : index
    %c0_81 = arith.constant 0 : index
    %84 = vector.load %arg7[%c1_79, %c0_80, %c0_81] : memref<3x18x10xf32, #tpu.memory_space<vmem>>, vector<1x18x10xf32>
    %85 = vector.shape_cast %84 : vector<1x18x10xf32> to vector<18x10xf32>
    %cst_82 = arith.constant dense<0.000000e+00> : vector<18x144xf32>
    %86 = tpu.matmul %85, %83, %cst_82 {dimension_numbers = #tpu.dot_dimension_numbers<[1], [0], [0], [1], [0, 0, 1, 1], [], []>} : vector<18x10xf32>, vector<10x144xf32>, vector<18x144xf32> -> vector<18x144xf32>
    %87 = arith.addf %80, %86 : vector<18x144xf32>
    %c2_83 = arith.constant 2 : index
    %c0_84 = arith.constant 0 : index
    %c0_85 = arith.constant 0 : index
    %88 = vector.load %arg8[%c2_83, %c0_84, %c0_85] : memref<3x40x144xbf16, #tpu.memory_space<vmem>>, vector<1x40x144xbf16>
    %89 = vector.shape_cast %88 : vector<1x40x144xbf16> to vector<40x144xbf16>
    %cst_86 = arith.constant dense<0.000000e+00> : vector<10x144xf32>
    %90 = tpu.matmul %74, %89, %cst_86 {dimension_numbers = #tpu.dot_dimension_numbers<[1], [0], [0], [1], [0, 0, 1, 1], [], []>} : vector<10x40xbf16>, vector<40x144xbf16>, vector<10x144xf32> -> vector<10x144xf32>
    %c2_87 = arith.constant 2 : index
    %c0_88 = arith.constant 0 : index
    %c0_89 = arith.constant 0 : index
    %91 = vector.load %arg7[%c2_87, %c0_88, %c0_89] : memref<3x18x10xf32, #tpu.memory_space<vmem>>, vector<1x18x10xf32>
    %92 = vector.shape_cast %91 : vector<1x18x10xf32> to vector<18x10xf32>
    %cst_90 = arith.constant dense<0.000000e+00> : vector<18x144xf32>
    %93 = tpu.matmul %92, %90, %cst_90 {dimension_numbers = #tpu.dot_dimension_numbers<[1], [0], [0], [1], [0, 0, 1, 1], [], []>} : vector<18x10xf32>, vector<10x144xf32>, vector<18x144xf32> -> vector<18x144xf32>
    %94 = arith.addf %87, %93 : vector<18x144xf32>
    %cst_91 = arith.constant dense<0.000000e+00> : vector<144xf32>
    %95 = vector.multi_reduction <add>, %94, %cst_91 [0] : vector<18x144xf32> to vector<144xf32>
    %96 = vector.shape_cast %95 : vector<144xf32> to vector<1x144xf32>
    %c0_92 = arith.constant 0 : index
    %c0_93 = arith.constant 0 : index
    %97 = vector.load %arg22[%c0_92, %c0_93] : memref<144x16xf32, #tpu.memory_space<vmem>>, vector<144x16xf32>
    %cst_94 = arith.constant dense<0.000000e+00> : vector<1x16xf32>
    %98 = tpu.matmul %96, %97, %cst_94 {dimension_numbers = #tpu.dot_dimension_numbers<[1], [0], [0], [1], [0, 0, 1, 1], [], []>} : vector<1x144xf32>, vector<144x16xf32>, vector<1x16xf32> -> vector<1x16xf32>
    %cst_95 = arith.constant 0.00617283955 : f32
    %99 = vector.broadcast %cst_95 : f32 to vector<1x16xf32>
    %100 = arith.mulf %98, %99 : vector<1x16xf32>
    %c0_96 = arith.constant 0 : index
    %c0_97 = arith.constant 0 : index
    %101 = vector.load %arg21[%c0_96, %c0_97] : memref<16x144xf32, #tpu.memory_space<vmem>>, vector<16x144xf32>
    %cst_98 = arith.constant dense<0.000000e+00> : vector<1x144xf32>
    %102 = tpu.matmul %100, %101, %cst_98 {dimension_numbers = #tpu.dot_dimension_numbers<[1], [0], [0], [1], [0, 0, 1, 1], [], []>} : vector<1x16xf32>, vector<16x144xf32>, vector<1x144xf32> -> vector<1x144xf32>
    %103 = vector.broadcast %102 : vector<1x144xf32> to vector<18x144xf32>
    %104 = arith.subf %94, %103 : vector<18x144xf32>
    %105 = arith.mulf %104, %104 : vector<18x144xf32>
    %cst_99 = arith.constant dense<0.000000e+00> : vector<144xf32>
    %106 = vector.multi_reduction <add>, %105, %cst_99 [0] : vector<18x144xf32> to vector<144xf32>
    %107 = vector.shape_cast %106 : vector<144xf32> to vector<1x144xf32>
    %c0_100 = arith.constant 0 : index
    %c0_101 = arith.constant 0 : index
    %108 = vector.load %arg22[%c0_100, %c0_101] : memref<144x16xf32, #tpu.memory_space<vmem>>, vector<144x16xf32>
    %cst_102 = arith.constant dense<0.000000e+00> : vector<1x16xf32>
    %109 = tpu.matmul %107, %108, %cst_102 {dimension_numbers = #tpu.dot_dimension_numbers<[1], [0], [0], [1], [0, 0, 1, 1], [], []>} : vector<1x144xf32>, vector<144x16xf32>, vector<1x16xf32> -> vector<1x16xf32>
    %cst_103 = arith.constant 0.00617283955 : f32
    %110 = vector.broadcast %cst_103 : f32 to vector<1x16xf32>
    %111 = arith.mulf %109, %110 : vector<1x16xf32>
    %c0_104 = arith.constant 0 : index
    %c0_105 = arith.constant 0 : index
    %112 = vector.load %arg19[%c0_104, %c0_105] : memref<1x16xf32, #tpu.memory_space<vmem>>, vector<1x16xf32>
    %cst_106 = arith.constant 9.99999974E-6 : f32
    %113 = vector.broadcast %cst_106 : f32 to vector<1x16xf32>
    %114 = arith.addf %111, %113 : vector<1x16xf32>
    %115 = math.rsqrt %114 : vector<1x16xf32>
    %116 = arith.mulf %112, %115 : vector<1x16xf32>
    %c0_107 = arith.constant 0 : index
    %c0_108 = arith.constant 0 : index
    %117 = vector.load %arg21[%c0_107, %c0_108] : memref<16x144xf32, #tpu.memory_space<vmem>>, vector<16x144xf32>
    %cst_109 = arith.constant dense<0.000000e+00> : vector<1x144xf32>
    %118 = tpu.matmul %116, %117, %cst_109 {dimension_numbers = #tpu.dot_dimension_numbers<[1], [0], [0], [1], [0, 0, 1, 1], [], []>} : vector<1x16xf32>, vector<16x144xf32>, vector<1x144xf32> -> vector<1x144xf32>
    %119 = vector.broadcast %118 : vector<1x144xf32> to vector<18x144xf32>
    %120 = arith.mulf %104, %119 : vector<18x144xf32>
    %c0_110 = arith.constant 0 : index
    %c0_111 = arith.constant 0 : index
    %121 = vector.load %arg20[%c0_110, %c0_111] : memref<1x16xf32, #tpu.memory_space<vmem>>, vector<1x16xf32>
    %c0_112 = arith.constant 0 : index
    %c0_113 = arith.constant 0 : index
    %122 = vector.load %arg21[%c0_112, %c0_113] : memref<16x144xf32, #tpu.memory_space<vmem>>, vector<16x144xf32>
    %cst_114 = arith.constant dense<0.000000e+00> : vector<1x144xf32>
    %123 = tpu.matmul %121, %122, %cst_114 {dimension_numbers = #tpu.dot_dimension_numbers<[1], [0], [0], [1], [0, 0, 1, 1], [], []>} : vector<1x16xf32>, vector<16x144xf32>, vector<1x144xf32> -> vector<1x144xf32>
    %124 = vector.broadcast %123 : vector<1x144xf32> to vector<18x144xf32>
    %125 = arith.addf %120, %124 : vector<18x144xf32>
    %cst_115 = arith.constant 0.000000e+00 : f32
    %126 = vector.broadcast %cst_115 : f32 to vector<18x144xf32>
    %127 = arith.maximumf %125, %126 : vector<18x144xf32>
    %128 = arith.truncf %127 : vector<18x144xf32> to vector<18x144xbf16>
    %c0_116 = arith.constant 0 : index
    %c0_117 = arith.constant 0 : index
    %c0_118 = arith.constant 0 : index
    %129 = vector.load %arg10[%c0_116, %c0_117, %c0_118] : memref<3x144x408xbf16, #tpu.memory_space<vmem>>, vector<1x144x408xbf16>
    %130 = vector.shape_cast %129 : vector<1x144x408xbf16> to vector<144x408xbf16>
    %cst_119 = arith.constant dense<0.000000e+00> : vector<18x408xf32>
    %131 = tpu.matmul %128, %130, %cst_119 {dimension_numbers = #tpu.dot_dimension_numbers<[1], [0], [0], [1], [0, 0, 1, 1], [], []>} : vector<18x144xbf16>, vector<144x408xbf16>, vector<18x408xf32> -> vector<18x408xf32>
    %c0_120 = arith.constant 0 : index
    %c0_121 = arith.constant 0 : index
    %c0_122 = arith.constant 0 : index
    %132 = vector.load %arg9[%c0_120, %c0_121, %c0_122] : memref<3x34x18xf32, #tpu.memory_space<vmem>>, vector<1x34x18xf32>
    %133 = vector.shape_cast %132 : vector<1x34x18xf32> to vector<34x18xf32>
    %cst_123 = arith.constant dense<0.000000e+00> : vector<34x408xf32>
    %134 = tpu.matmul %133, %131, %cst_123 {dimension_numbers = #tpu.dot_dimension_numbers<[1], [0], [0], [1], [0, 0, 1, 1], [], []>} : vector<34x18xf32>, vector<18x408xf32>, vector<34x408xf32> -> vector<34x408xf32>
    %c1_124 = arith.constant 1 : index
    %c0_125 = arith.constant 0 : index
    %c0_126 = arith.constant 0 : index
    %135 = vector.load %arg10[%c1_124, %c0_125, %c0_126] : memref<3x144x408xbf16, #tpu.memory_space<vmem>>, vector<1x144x408xbf16>
    %136 = vector.shape_cast %135 : vector<1x144x408xbf16> to vector<144x408xbf16>
    %cst_127 = arith.constant dense<0.000000e+00> : vector<18x408xf32>
    %137 = tpu.matmul %128, %136, %cst_127 {dimension_numbers = #tpu.dot_dimension_numbers<[1], [0], [0], [1], [0, 0, 1, 1], [], []>} : vector<18x144xbf16>, vector<144x408xbf16>, vector<18x408xf32> -> vector<18x408xf32>
    %c1_128 = arith.constant 1 : index
    %c0_129 = arith.constant 0 : index
    %c0_130 = arith.constant 0 : index
    %138 = vector.load %arg9[%c1_128, %c0_129, %c0_130] : memref<3x34x18xf32, #tpu.memory_space<vmem>>, vector<1x34x18xf32>
    %139 = vector.shape_cast %138 : vector<1x34x18xf32> to vector<34x18xf32>
    %cst_131 = arith.constant dense<0.000000e+00> : vector<34x408xf32>
    %140 = tpu.matmul %139, %137, %cst_131 {dimension_numbers = #tpu.dot_dimension_numbers<[1], [0], [0], [1], [0, 0, 1, 1], [], []>} : vector<34x18xf32>, vector<18x408xf32>, vector<34x408xf32> -> vector<34x408xf32>
    %141 = arith.addf %134, %140 : vector<34x408xf32>
    %c2_132 = arith.constant 2 : index
    %c0_133 = arith.constant 0 : index
    %c0_134 = arith.constant 0 : index
    %142 = vector.load %arg10[%c2_132, %c0_133, %c0_134] : memref<3x144x408xbf16, #tpu.memory_space<vmem>>, vector<1x144x408xbf16>
    %143 = vector.shape_cast %142 : vector<1x144x408xbf16> to vector<144x408xbf16>
    %cst_135 = arith.constant dense<0.000000e+00> : vector<18x408xf32>
    %144 = tpu.matmul %128, %143, %cst_135 {dimension_numbers = #tpu.dot_dimension_numbers<[1], [0], [0], [1], [0, 0, 1, 1], [], []>} : vector<18x144xbf16>, vector<144x408xbf16>, vector<18x408xf32> -> vector<18x408xf32>
    %c2_136 = arith.constant 2 : index
    %c0_137 = arith.constant 0 : index
    %c0_138 = arith.constant 0 : index
    %145 = vector.load %arg9[%c2_136, %c0_137, %c0_138] : memref<3x34x18xf32, #tpu.memory_space<vmem>>, vector<1x34x18xf32>
    %146 = vector.shape_cast %145 : vector<1x34x18xf32> to vector<34x18xf32>
    %cst_139 = arith.constant dense<0.000000e+00> : vector<34x408xf32>
    %147 = tpu.matmul %146, %144, %cst_139 {dimension_numbers = #tpu.dot_dimension_numbers<[1], [0], [0], [1], [0, 0, 1, 1], [], []>} : vector<34x18xf32>, vector<18x408xf32>, vector<34x408xf32> -> vector<34x408xf32>
    %148 = arith.addf %141, %147 : vector<34x408xf32>
    %cst_140 = arith.constant dense<0.000000e+00> : vector<408xf32>
    %149 = vector.multi_reduction <add>, %148, %cst_140 [0] : vector<34x408xf32> to vector<408xf32>
    %150 = vector.shape_cast %149 : vector<408xf32> to vector<1x408xf32>
    %c0_141 = arith.constant 0 : index
    %c0_142 = arith.constant 0 : index
    %151 = vector.load %arg26[%c0_141, %c0_142] : memref<408x24xf32, #tpu.memory_space<vmem>>, vector<408x24xf32>
    %cst_143 = arith.constant dense<0.000000e+00> : vector<1x24xf32>
    %152 = tpu.matmul %150, %151, %cst_143 {dimension_numbers = #tpu.dot_dimension_numbers<[1], [0], [0], [1], [0, 0, 1, 1], [], []>} : vector<1x408xf32>, vector<408x24xf32>, vector<1x24xf32> -> vector<1x24xf32>
    %cst_144 = arith.constant 0.00173010386 : f32
    %153 = vector.broadcast %cst_144 : f32 to vector<1x24xf32>
    %154 = arith.mulf %152, %153 : vector<1x24xf32>
    %c0_145 = arith.constant 0 : index
    %c0_146 = arith.constant 0 : index
    %155 = vector.load %arg25[%c0_145, %c0_146] : memref<24x408xf32, #tpu.memory_space<vmem>>, vector<24x408xf32>
    %cst_147 = arith.constant dense<0.000000e+00> : vector<1x408xf32>
    %156 = tpu.matmul %154, %155, %cst_147 {dimension_numbers = #tpu.dot_dimension_numbers<[1], [0], [0], [1], [0, 0, 1, 1], [], []>} : vector<1x24xf32>, vector<24x408xf32>, vector<1x408xf32> -> vector<1x408xf32>
    %157 = vector.broadcast %156 : vector<1x408xf32> to vector<34x408xf32>
    %158 = arith.subf %148, %157 : vector<34x408xf32>
    %159 = arith.mulf %158, %158 : vector<34x408xf32>
    %cst_148 = arith.constant dense<0.000000e+00> : vector<408xf32>
    %160 = vector.multi_reduction <add>, %159, %cst_148 [0] : vector<34x408xf32> to vector<408xf32>
    %161 = vector.shape_cast %160 : vector<408xf32> to vector<1x408xf32>
    %c0_149 = arith.constant 0 : index
    %c0_150 = arith.constant 0 : index
    %162 = vector.load %arg26[%c0_149, %c0_150] : memref<408x24xf32, #tpu.memory_space<vmem>>, vector<408x24xf32>
    %cst_151 = arith.constant dense<0.000000e+00> : vector<1x24xf32>
    %163 = tpu.matmul %161, %162, %cst_151 {dimension_numbers = #tpu.dot_dimension_numbers<[1], [0], [0], [1], [0, 0, 1, 1], [], []>} : vector<1x408xf32>, vector<408x24xf32>, vector<1x24xf32> -> vector<1x24xf32>
    %cst_152 = arith.constant 0.00173010386 : f32
    %164 = vector.broadcast %cst_152 : f32 to vector<1x24xf32>
    %165 = arith.mulf %163, %164 : vector<1x24xf32>
    %c0_153 = arith.constant 0 : index
    %c0_154 = arith.constant 0 : index
    %166 = vector.load %arg23[%c0_153, %c0_154] : memref<1x24xf32, #tpu.memory_space<vmem>>, vector<1x24xf32>
    %cst_155 = arith.constant 9.99999974E-6 : f32
    %167 = vector.broadcast %cst_155 : f32 to vector<1x24xf32>
    %168 = arith.addf %165, %167 : vector<1x24xf32>
    %169 = math.rsqrt %168 : vector<1x24xf32>
    %170 = arith.mulf %166, %169 : vector<1x24xf32>
    %c0_156 = arith.constant 0 : index
    %c0_157 = arith.constant 0 : index
    %171 = vector.load %arg25[%c0_156, %c0_157] : memref<24x408xf32, #tpu.memory_space<vmem>>, vector<24x408xf32>
    %cst_158 = arith.constant dense<0.000000e+00> : vector<1x408xf32>
    %172 = tpu.matmul %170, %171, %cst_158 {dimension_numbers = #tpu.dot_dimension_numbers<[1], [0], [0], [1], [0, 0, 1, 1], [], []>} : vector<1x24xf32>, vector<24x408xf32>, vector<1x408xf32> -> vector<1x408xf32>
    %173 = vector.broadcast %172 : vector<1x408xf32> to vector<34x408xf32>
    %174 = arith.mulf %158, %173 : vector<34x408xf32>
    %c0_159 = arith.constant 0 : index
    %c0_160 = arith.constant 0 : index
    %175 = vector.load %arg24[%c0_159, %c0_160] : memref<1x24xf32, #tpu.memory_space<vmem>>, vector<1x24xf32>
    %c0_161 = arith.constant 0 : index
    %c0_162 = arith.constant 0 : index
    %176 = vector.load %arg25[%c0_161, %c0_162] : memref<24x408xf32, #tpu.memory_space<vmem>>, vector<24x408xf32>
    %cst_163 = arith.constant dense<0.000000e+00> : vector<1x408xf32>
    %177 = tpu.matmul %175, %176, %cst_163 {dimension_numbers = #tpu.dot_dimension_numbers<[1], [0], [0], [1], [0, 0, 1, 1], [], []>} : vector<1x24xf32>, vector<24x408xf32>, vector<1x408xf32> -> vector<1x408xf32>
    %178 = vector.broadcast %177 : vector<1x408xf32> to vector<34x408xf32>
    %179 = arith.addf %174, %178 : vector<34x408xf32>
    %cst_164 = arith.constant 0.000000e+00 : f32
    %180 = vector.broadcast %cst_164 : f32 to vector<34x408xf32>
    %181 = arith.maximumf %179, %180 : vector<34x408xf32>
    %182 = arith.truncf %181 : vector<34x408xf32> to vector<34x408xbf16>
    %c0_165 = arith.constant 0 : index
    %c0_166 = arith.constant 0 : index
    %c0_167 = arith.constant 0 : index
    %183 = vector.load %arg12[%c0_165, %c0_166, %c0_167] : memref<3x408x264xbf16, #tpu.memory_space<vmem>>, vector<1x408x264xbf16>
    %184 = vector.shape_cast %183 : vector<1x408x264xbf16> to vector<408x264xbf16>
    %cst_168 = arith.constant dense<0.000000e+00> : vector<34x264xf32>
    %185 = tpu.matmul %182, %184, %cst_168 {dimension_numbers = #tpu.dot_dimension_numbers<[1], [0], [0], [1], [0, 0, 1, 1], [], []>} : vector<34x408xbf16>, vector<408x264xbf16>, vector<34x264xf32> -> vector<34x264xf32>
    %c0_169 = arith.constant 0 : index
    %c0_170 = arith.constant 0 : index
    %c0_171 = arith.constant 0 : index
    %186 = vector.load %arg11[%c0_169, %c0_170, %c0_171] : memref<3x66x34xf32, #tpu.memory_space<vmem>>, vector<1x66x34xf32>
    %187 = vector.shape_cast %186 : vector<1x66x34xf32> to vector<66x34xf32>
    %cst_172 = arith.constant dense<0.000000e+00> : vector<66x264xf32>
    %188 = tpu.matmul %187, %185, %cst_172 {dimension_numbers = #tpu.dot_dimension_numbers<[1], [0], [0], [1], [0, 0, 1, 1], [], []>} : vector<66x34xf32>, vector<34x264xf32>, vector<66x264xf32> -> vector<66x264xf32>
    %c1_173 = arith.constant 1 : index
    %c0_174 = arith.constant 0 : index
    %c0_175 = arith.constant 0 : index
    %189 = vector.load %arg12[%c1_173, %c0_174, %c0_175] : memref<3x408x264xbf16, #tpu.memory_space<vmem>>, vector<1x408x264xbf16>
    %190 = vector.shape_cast %189 : vector<1x408x264xbf16> to vector<408x264xbf16>
    %cst_176 = arith.constant dense<0.000000e+00> : vector<34x264xf32>
    %191 = tpu.matmul %182, %190, %cst_176 {dimension_numbers = #tpu.dot_dimension_numbers<[1], [0], [0], [1], [0, 0, 1, 1], [], []>} : vector<34x408xbf16>, vector<408x264xbf16>, vector<34x264xf32> -> vector<34x264xf32>
    %c1_177 = arith.constant 1 : index
    %c0_178 = arith.constant 0 : index
    %c0_179 = arith.constant 0 : index
    %192 = vector.load %arg11[%c1_177, %c0_178, %c0_179] : memref<3x66x34xf32, #tpu.memory_space<vmem>>, vector<1x66x34xf32>
    %193 = vector.shape_cast %192 : vector<1x66x34xf32> to vector<66x34xf32>
    %cst_180 = arith.constant dense<0.000000e+00> : vector<66x264xf32>
    %194 = tpu.matmul %193, %191, %cst_180 {dimension_numbers = #tpu.dot_dimension_numbers<[1], [0], [0], [1], [0, 0, 1, 1], [], []>} : vector<66x34xf32>, vector<34x264xf32>, vector<66x264xf32> -> vector<66x264xf32>
    %195 = arith.addf %188, %194 : vector<66x264xf32>
    %c2_181 = arith.constant 2 : index
    %c0_182 = arith.constant 0 : index
    %c0_183 = arith.constant 0 : index
    %196 = vector.load %arg12[%c2_181, %c0_182, %c0_183] : memref<3x408x264xbf16, #tpu.memory_space<vmem>>, vector<1x408x264xbf16>
    %197 = vector.shape_cast %196 : vector<1x408x264xbf16> to vector<408x264xbf16>
    %cst_184 = arith.constant dense<0.000000e+00> : vector<34x264xf32>
    %198 = tpu.matmul %182, %197, %cst_184 {dimension_numbers = #tpu.dot_dimension_numbers<[1], [0], [0], [1], [0, 0, 1, 1], [], []>} : vector<34x408xbf16>, vector<408x264xbf16>, vector<34x264xf32> -> vector<34x264xf32>
    %c2_185 = arith.constant 2 : index
    %c0_186 = arith.constant 0 : index
    %c0_187 = arith.constant 0 : index
    %199 = vector.load %arg11[%c2_185, %c0_186, %c0_187] : memref<3x66x34xf32, #tpu.memory_space<vmem>>, vector<1x66x34xf32>
    %200 = vector.shape_cast %199 : vector<1x66x34xf32> to vector<66x34xf32>
    %cst_188 = arith.constant dense<0.000000e+00> : vector<66x264xf32>
    %201 = tpu.matmul %200, %198, %cst_188 {dimension_numbers = #tpu.dot_dimension_numbers<[1], [0], [0], [1], [0, 0, 1, 1], [], []>} : vector<66x34xf32>, vector<34x264xf32>, vector<66x264xf32> -> vector<66x264xf32>
    %202 = arith.addf %195, %201 : vector<66x264xf32>
    %cst_189 = arith.constant dense<0.000000e+00> : vector<264xf32>
    %203 = vector.multi_reduction <add>, %202, %cst_189 [0] : vector<66x264xf32> to vector<264xf32>
    %204 = vector.shape_cast %203 : vector<264xf32> to vector<1x264xf32>
    %c0_190 = arith.constant 0 : index
    %c0_191 = arith.constant 0 : index
    %205 = vector.load %arg30[%c0_190, %c0_191] : memref<264x8xf32, #tpu.memory_space<vmem>>, vector<264x8xf32>
    %cst_192 = arith.constant dense<0.000000e+00> : vector<1x8xf32>
    %206 = tpu.matmul %204, %205, %cst_192 {dimension_numbers = #tpu.dot_dimension_numbers<[1], [0], [0], [1], [0, 0, 1, 1], [], []>} : vector<1x264xf32>, vector<264x8xf32>, vector<1x8xf32> -> vector<1x8xf32>
    %cst_193 = arith.constant 4.5913682E-4 : f32
    %207 = vector.broadcast %cst_193 : f32 to vector<1x8xf32>
    %208 = arith.mulf %206, %207 : vector<1x8xf32>
    %c0_194 = arith.constant 0 : index
    %c0_195 = arith.constant 0 : index
    %209 = vector.load %arg29[%c0_194, %c0_195] : memref<8x264xf32, #tpu.memory_space<vmem>>, vector<8x264xf32>
    %cst_196 = arith.constant dense<0.000000e+00> : vector<1x264xf32>
    %210 = tpu.matmul %208, %209, %cst_196 {dimension_numbers = #tpu.dot_dimension_numbers<[1], [0], [0], [1], [0, 0, 1, 1], [], []>} : vector<1x8xf32>, vector<8x264xf32>, vector<1x264xf32> -> vector<1x264xf32>
    %211 = vector.broadcast %210 : vector<1x264xf32> to vector<66x264xf32>
    %212 = arith.subf %202, %211 : vector<66x264xf32>
    %213 = arith.mulf %212, %212 : vector<66x264xf32>
    %cst_197 = arith.constant dense<0.000000e+00> : vector<264xf32>
    %214 = vector.multi_reduction <add>, %213, %cst_197 [0] : vector<66x264xf32> to vector<264xf32>
    %215 = vector.shape_cast %214 : vector<264xf32> to vector<1x264xf32>
    %c0_198 = arith.constant 0 : index
    %c0_199 = arith.constant 0 : index
    %216 = vector.load %arg30[%c0_198, %c0_199] : memref<264x8xf32, #tpu.memory_space<vmem>>, vector<264x8xf32>
    %cst_200 = arith.constant dense<0.000000e+00> : vector<1x8xf32>
    %217 = tpu.matmul %215, %216, %cst_200 {dimension_numbers = #tpu.dot_dimension_numbers<[1], [0], [0], [1], [0, 0, 1, 1], [], []>} : vector<1x264xf32>, vector<264x8xf32>, vector<1x8xf32> -> vector<1x8xf32>
    %cst_201 = arith.constant 4.5913682E-4 : f32
    %218 = vector.broadcast %cst_201 : f32 to vector<1x8xf32>
    %219 = arith.mulf %217, %218 : vector<1x8xf32>
    %c0_202 = arith.constant 0 : index
    %c0_203 = arith.constant 0 : index
    %220 = vector.load %arg27[%c0_202, %c0_203] : memref<1x8xf32, #tpu.memory_space<vmem>>, vector<1x8xf32>
    %cst_204 = arith.constant 9.99999974E-6 : f32
    %221 = vector.broadcast %cst_204 : f32 to vector<1x8xf32>
    %222 = arith.addf %219, %221 : vector<1x8xf32>
    %223 = math.rsqrt %222 : vector<1x8xf32>
    %224 = arith.mulf %220, %223 : vector<1x8xf32>
    %c0_205 = arith.constant 0 : index
    %c0_206 = arith.constant 0 : index
    %225 = vector.load %arg29[%c0_205, %c0_206] : memref<8x264xf32, #tpu.memory_space<vmem>>, vector<8x264xf32>
    %cst_207 = arith.constant dense<0.000000e+00> : vector<1x264xf32>
    %226 = tpu.matmul %224, %225, %cst_207 {dimension_numbers = #tpu.dot_dimension_numbers<[1], [0], [0], [1], [0, 0, 1, 1], [], []>} : vector<1x8xf32>, vector<8x264xf32>, vector<1x264xf32> -> vector<1x264xf32>
    %227 = vector.broadcast %226 : vector<1x264xf32> to vector<66x264xf32>
    %228 = arith.mulf %212, %227 : vector<66x264xf32>
    %c0_208 = arith.constant 0 : index
    %c0_209 = arith.constant 0 : index
    %229 = vector.load %arg28[%c0_208, %c0_209] : memref<1x8xf32, #tpu.memory_space<vmem>>, vector<1x8xf32>
    %c0_210 = arith.constant 0 : index
    %c0_211 = arith.constant 0 : index
    %230 = vector.load %arg29[%c0_210, %c0_211] : memref<8x264xf32, #tpu.memory_space<vmem>>, vector<8x264xf32>
    %cst_212 = arith.constant dense<0.000000e+00> : vector<1x264xf32>
    %231 = tpu.matmul %229, %230, %cst_212 {dimension_numbers = #tpu.dot_dimension_numbers<[1], [0], [0], [1], [0, 0, 1, 1], [], []>} : vector<1x8xf32>, vector<8x264xf32>, vector<1x264xf32> -> vector<1x264xf32>
    %232 = vector.broadcast %231 : vector<1x264xf32> to vector<66x264xf32>
    %233 = arith.addf %228, %232 : vector<66x264xf32>
    %cst_213 = arith.constant 0.000000e+00 : f32
    %234 = vector.broadcast %cst_213 : f32 to vector<66x264xf32>
    %235 = arith.maximumf %233, %234 : vector<66x264xf32>
    %236 = arith.truncf %235 : vector<66x264xf32> to vector<66x264xbf16>
    %c0_214 = arith.constant 0 : index
    %c0_215 = arith.constant 0 : index
    %c0_216 = arith.constant 0 : index
    %237 = vector.load %arg14[%c0_214, %c0_215, %c0_216] : memref<2x264x96xbf16, #tpu.memory_space<vmem>>, vector<1x264x96xbf16>
    %238 = vector.shape_cast %237 : vector<1x264x96xbf16> to vector<264x96xbf16>
    %cst_217 = arith.constant dense<0.000000e+00> : vector<66x96xf32>
    %239 = tpu.matmul %236, %238, %cst_217 {dimension_numbers = #tpu.dot_dimension_numbers<[1], [0], [0], [1], [0, 0, 1, 1], [], []>} : vector<66x264xbf16>, vector<264x96xbf16>, vector<66x96xf32> -> vector<66x96xf32>
    %c0_218 = arith.constant 0 : index
    %c0_219 = arith.constant 0 : index
    %c0_220 = arith.constant 0 : index
    %240 = vector.load %arg13[%c0_218, %c0_219, %c0_220] : memref<2x64x66xf32, #tpu.memory_space<vmem>>, vector<1x64x66xf32>
    %241 = vector.shape_cast %240 : vector<1x64x66xf32> to vector<64x66xf32>
    %cst_221 = arith.constant dense<0.000000e+00> : vector<64x96xf32>
    %242 = tpu.matmul %241, %239, %cst_221 {dimension_numbers = #tpu.dot_dimension_numbers<[1], [0], [0], [1], [0, 0, 1, 1], [], []>} : vector<64x66xf32>, vector<66x96xf32>, vector<64x96xf32> -> vector<64x96xf32>
    %c1_222 = arith.constant 1 : index
    %c0_223 = arith.constant 0 : index
    %c0_224 = arith.constant 0 : index
    %243 = vector.load %arg14[%c1_222, %c0_223, %c0_224] : memref<2x264x96xbf16, #tpu.memory_space<vmem>>, vector<1x264x96xbf16>
    %244 = vector.shape_cast %243 : vector<1x264x96xbf16> to vector<264x96xbf16>
    %cst_225 = arith.constant dense<0.000000e+00> : vector<66x96xf32>
    %245 = tpu.matmul %236, %244, %cst_225 {dimension_numbers = #tpu.dot_dimension_numbers<[1], [0], [0], [1], [0, 0, 1, 1], [], []>} : vector<66x264xbf16>, vector<264x96xbf16>, vector<66x96xf32> -> vector<66x96xf32>
    %c1_226 = arith.constant 1 : index
    %c0_227 = arith.constant 0 : index
    %c0_228 = arith.constant 0 : index
    %246 = vector.load %arg13[%c1_226, %c0_227, %c0_228] : memref<2x64x66xf32, #tpu.memory_space<vmem>>, vector<1x64x66xf32>
    %247 = vector.shape_cast %246 : vector<1x64x66xf32> to vector<64x66xf32>
    %cst_229 = arith.constant dense<0.000000e+00> : vector<64x96xf32>
    %248 = tpu.matmul %247, %245, %cst_229 {dimension_numbers = #tpu.dot_dimension_numbers<[1], [0], [0], [1], [0, 0, 1, 1], [], []>} : vector<64x66xf32>, vector<66x96xf32>, vector<64x96xf32> -> vector<64x96xf32>
    %249 = arith.addf %242, %248 : vector<64x96xf32>
    %250 = math.tanh %249 : vector<64x96xf32>
    %251 = vector.extract_strided_slice %250 {offsets = [0, 0], sizes = [32, 96], strides = [1, 1]} : vector<64x96xf32> to vector<32x96xf32>
    %c0_230 = arith.constant 0 : index
    %c0_231 = arith.constant 0 : index
    %c0_232 = arith.constant 0 : index
    %252 = vector.load %arg31[%c0_230, %c0_231, %c0_232] : memref<3x96x32xf32, #tpu.memory_space<vmem>>, vector<1x96x32xf32>
    %253 = vector.shape_cast %252 : vector<1x96x32xf32> to vector<96x32xf32>
    %cst_233 = arith.constant dense<0.000000e+00> : vector<32x32xf32>
    %254 = tpu.matmul %251, %253, %cst_233 {dimension_numbers = #tpu.dot_dimension_numbers<[1], [0], [0], [1], [0, 0, 1, 1], [], []>} : vector<32x96xf32>, vector<96x32xf32>, vector<32x32xf32> -> vector<32x32xf32>
    %c0_234 = arith.constant 0 : index
    %c0_235 = arith.constant 0 : index
    %c0_236 = arith.constant 0 : index
    %c0_237 = arith.constant 0 : index
    %255 = vector.load %arg32[%c0_234, %c0_235, %c0_236, %c0_237] : memref<2x3x32x32xf32, #tpu.memory_space<vmem>>, vector<1x1x32x32xf32>
    %256 = vector.shape_cast %255 : vector<1x1x32x32xf32> to vector<32x32xf32>
    %257 = vector.shape_cast %254 : vector<32x32xf32> to vector<1x1x32x32xf32>
    tpu.vector_store %arg32[%c0_234, %c0_235, %c0_236, %c0_237], %257 {strides = array<i32>} : memref<2x3x32x32xf32, #tpu.memory_space<vmem>>, vector<1x1x32x32xf32>,
    %c1_238 = arith.constant 1 : index
    %c0_239 = arith.constant 0 : index
    %c0_240 = arith.constant 0 : index
    %258 = vector.load %arg31[%c1_238, %c0_239, %c0_240] : memref<3x96x32xf32, #tpu.memory_space<vmem>>, vector<1x96x32xf32>
    %259 = vector.shape_cast %258 : vector<1x96x32xf32> to vector<96x32xf32>
    %cst_241 = arith.constant dense<0.000000e+00> : vector<32x32xf32>
    %260 = tpu.matmul %251, %259, %cst_241 {dimension_numbers = #tpu.dot_dimension_numbers<[1], [0], [0], [1], [0, 0, 1, 1], [], []>} : vector<32x96xf32>, vector<96x32xf32>, vector<32x32xf32> -> vector<32x32xf32>
    %c0_242 = arith.constant 0 : index
    %c1_243 = arith.constant 1 : index
    %c0_244 = arith.constant 0 : index
    %c0_245 = arith.constant 0 : index
    %261 = vector.load %arg32[%c0_242, %c1_243, %c0_244, %c0_245] : memref<2x3x32x32xf32, #tpu.memory_space<vmem>>, vector<1x1x32x32xf32>
    %262 = vector.shape_cast %261 : vector<1x1x32x32xf32> to vector<32x32xf32>
    %263 = vector.shape_cast %260 : vector<32x32xf32> to vector<1x1x32x32xf32>
    tpu.vector_store %arg32[%c0_242, %c1_243, %c0_244, %c0_245], %263 {strides = array<i32>} : memref<2x3x32x32xf32, #tpu.memory_space<vmem>>, vector<1x1x32x32xf32>,
    %c2_246 = arith.constant 2 : index
    %c0_247 = arith.constant 0 : index
    %c0_248 = arith.constant 0 : index
    %264 = vector.load %arg31[%c2_246, %c0_247, %c0_248] : memref<3x96x32xf32, #tpu.memory_space<vmem>>, vector<1x96x32xf32>
    %265 = vector.shape_cast %264 : vector<1x96x32xf32> to vector<96x32xf32>
    %cst_249 = arith.constant dense<0.000000e+00> : vector<32x32xf32>
    %266 = tpu.matmul %251, %265, %cst_249 {dimension_numbers = #tpu.dot_dimension_numbers<[1], [0], [0], [1], [0, 0, 1, 1], [], []>} : vector<32x96xf32>, vector<96x32xf32>, vector<32x32xf32> -> vector<32x32xf32>
    %c0_250 = arith.constant 0 : index
    %c2_251 = arith.constant 2 : index
    %c0_252 = arith.constant 0 : index
    %c0_253 = arith.constant 0 : index
    %267 = vector.load %arg32[%c0_250, %c2_251, %c0_252, %c0_253] : memref<2x3x32x32xf32, #tpu.memory_space<vmem>>, vector<1x1x32x32xf32>
    %268 = vector.shape_cast %267 : vector<1x1x32x32xf32> to vector<32x32xf32>
    %269 = vector.shape_cast %266 : vector<32x32xf32> to vector<1x1x32x32xf32>
    tpu.vector_store %arg32[%c0_250, %c2_251, %c0_252, %c0_253], %269 {strides = array<i32>} : memref<2x3x32x32xf32, #tpu.memory_space<vmem>>, vector<1x1x32x32xf32>,
    %270 = vector.extract_strided_slice %250 {offsets = [32, 0], sizes = [32, 96], strides = [1, 1]} : vector<64x96xf32> to vector<32x96xf32>
    %c0_254 = arith.constant 0 : index
    %c0_255 = arith.constant 0 : index
    %c0_256 = arith.constant 0 : index
    %271 = vector.load %arg31[%c0_254, %c0_255, %c0_256] : memref<3x96x32xf32, #tpu.memory_space<vmem>>, vector<1x96x32xf32>
    %272 = vector.shape_cast %271 : vector<1x96x32xf32> to vector<96x32xf32>
    %cst_257 = arith.constant dense<0.000000e+00> : vector<32x32xf32>
    %273 = tpu.matmul %270, %272, %cst_257 {dimension_numbers = #tpu.dot_dimension_numbers<[1], [0], [0], [1], [0, 0, 1, 1], [], []>} : vector<32x96xf32>, vector<96x32xf32>, vector<32x32xf32> -> vector<32x32xf32>
    %c1_258 = arith.constant 1 : index
    %c0_259 = arith.constant 0 : index
    %c0_260 = arith.constant 0 : index
    %c0_261 = arith.constant 0 : index
    %274 = vector.load %arg32[%c1_258, %c0_259, %c0_260, %c0_261] : memref<2x3x32x32xf32, #tpu.memory_space<vmem>>, vector<1x1x32x32xf32>
    %275 = vector.shape_cast %274 : vector<1x1x32x32xf32> to vector<32x32xf32>
    %276 = vector.shape_cast %273 : vector<32x32xf32> to vector<1x1x32x32xf32>
    tpu.vector_store %arg32[%c1_258, %c0_259, %c0_260, %c0_261], %276 {strides = array<i32>} : memref<2x3x32x32xf32, #tpu.memory_space<vmem>>, vector<1x1x32x32xf32>,
    %c1_262 = arith.constant 1 : index
    %c0_263 = arith.constant 0 : index
    %c0_264 = arith.constant 0 : index
    %277 = vector.load %arg31[%c1_262, %c0_263, %c0_264] : memref<3x96x32xf32, #tpu.memory_space<vmem>>, vector<1x96x32xf32>
    %278 = vector.shape_cast %277 : vector<1x96x32xf32> to vector<96x32xf32>
    %cst_265 = arith.constant dense<0.000000e+00> : vector<32x32xf32>
    %279 = tpu.matmul %270, %278, %cst_265 {dimension_numbers = #tpu.dot_dimension_numbers<[1], [0], [0], [1], [0, 0, 1, 1], [], []>} : vector<32x96xf32>, vector<96x32xf32>, vector<32x32xf32> -> vector<32x32xf32>
    %c1_266 = arith.constant 1 : index
    %c1_267 = arith.constant 1 : index
    %c0_268 = arith.constant 0 : index
    %c0_269 = arith.constant 0 : index
    %280 = vector.load %arg32[%c1_266, %c1_267, %c0_268, %c0_269] : memref<2x3x32x32xf32, #tpu.memory_space<vmem>>, vector<1x1x32x32xf32>
    %281 = vector.shape_cast %280 : vector<1x1x32x32xf32> to vector<32x32xf32>
    %282 = vector.shape_cast %279 : vector<32x32xf32> to vector<1x1x32x32xf32>
    tpu.vector_store %arg32[%c1_266, %c1_267, %c0_268, %c0_269], %282 {strides = array<i32>} : memref<2x3x32x32xf32, #tpu.memory_space<vmem>>, vector<1x1x32x32xf32>,
    %c2_270 = arith.constant 2 : index
    %c0_271 = arith.constant 0 : index
    %c0_272 = arith.constant 0 : index
    %283 = vector.load %arg31[%c2_270, %c0_271, %c0_272] : memref<3x96x32xf32, #tpu.memory_space<vmem>>, vector<1x96x32xf32>
    %284 = vector.shape_cast %283 : vector<1x96x32xf32> to vector<96x32xf32>
    %cst_273 = arith.constant dense<0.000000e+00> : vector<32x32xf32>
    %285 = tpu.matmul %270, %284, %cst_273 {dimension_numbers = #tpu.dot_dimension_numbers<[1], [0], [0], [1], [0, 0, 1, 1], [], []>} : vector<32x96xf32>, vector<96x32xf32>, vector<32x32xf32> -> vector<32x32xf32>
    %c1_274 = arith.constant 1 : index
    %c2_275 = arith.constant 2 : index
    %c0_276 = arith.constant 0 : index
    %c0_277 = arith.constant 0 : index
    %286 = vector.load %arg32[%c1_274, %c2_275, %c0_276, %c0_277] : memref<2x3x32x32xf32, #tpu.memory_space<vmem>>, vector<1x1x32x32xf32>
    %287 = vector.shape_cast %286 : vector<1x1x32x32xf32> to vector<32x32xf32>
    %288 = vector.shape_cast %285 : vector<32x32xf32> to vector<1x1x32x32xf32>
    tpu.vector_store %arg32[%c1_274, %c2_275, %c0_276, %c0_277], %288 {strides = array<i32>} : memref<2x3x32x32xf32, #tpu.memory_space<vmem>>, vector<1x1x32x32xf32>,
    return
  }
}

</mosaic_0001>

<bundles_post_ra>
// kernel: generator_forward.1
= control target key start
LH: loop header
LB: loop body
LE: loop exit
PB: predicated region body
PF: predicated region fallthrough
CT: control target
= control target key end

     0   :  { %s11536_s6 = smov 1   ;;  %s11537_s10 = smov 2   ;;  %s15219_s0 = inlined_call_operand.smem [shape: u32[33], index: -1, kind: input, shape index: {}] }
   0x1   :  { %s11579_s5 = sld [smem:[%s15219_s0]]   ;;  %s11538_s14 = smov 3  }
   0x2   :  { %s11584_s9 = sld [smem:[%s15219_s0 + %s11536_s6]]   ;;  %s11539_s18 = smov 4  }
   0x3   :  { %s11589_s13 = sld [smem:[%s15219_s0 + %s11537_s10]]   ;;  %s11540_s22 = smov 5  }
   0x4   :  { %s11594_s17 = sld [smem:[%s15219_s0 + %s11538_s14]]   ;;  %s11541_s26 = smov 6  }
   0x5   :  { %s11599_s21 = sld [smem:[%s15219_s0 + %s11539_s18]]   ;;  %s11542_s30 = smov 7  }
   0x6   :  { %s11604_s25 = sld [smem:[%s15219_s0 + %s11540_s22]]   ;;  %s11543_s4 = smov 8  }
   0x7   :  { %s11609_s29 = sld [smem:[%s15219_s0 + %s11541_s26]]   ;;  %s11544_s10 = smov 9  }
   0x8   :  { %s11614_s3 = sld [smem:[%s15219_s0 + %s11542_s30]]   ;;  %s11545_s15 = smov 10  }
   0x9   :  { %s11619_s8 = sld [smem:[%s15219_s0 + %s11543_s4]]   ;;  %s11546_s20 = smov 11  }
   0xa   :  { %s11624_s14 = sld [smem:[%s15219_s0 + %s11544_s10]]   ;;  %s11547_s26 = smov 12  }
   0xb   :  { %s11629_s19 = sld [smem:[%s15219_s0 + %s11545_s15]]   ;;  %s11548_s1 = smov 13  }
   0xc   :  { %s11634_s24 = sld [smem:[%s15219_s0 + %s11546_s20]]   ;;  %s11549_s7 = smov 14  }
   0xd   :  { %s11639_s30 = sld [smem:[%s15219_s0 + %s11547_s26]]   ;;  %s11550_s15 = smov 15  }
   0xe   :  { %s11644_s6 = sld [smem:[%s15219_s0 + %s11548_s1]]   ;;  %s11551_s22 = smov 16  }
   0xf   :  { %s11649_s12 = sld [smem:[%s15219_s0 + %s11549_s7]]   ;;  %s11552_s28 = smov 17  }
  0x10   :  { %15267 = sst [smem:[#allocation5_spill]] %s11624_s14  ;;  %s11553_s7 = smov 18  }
  0x11   :  { %15268 = sst [smem:[#allocation6_spill]] %s11629_s19 }
  0x12   :  { %15269 = sst [smem:[#allocation7_spill]] %s11634_s24 }
  0x13   :  { %15270 = sst [smem:[#allocation8_spill]] %s11639_s30 }
  0x14   :  { %15271 = sst [smem:[#allocation9_spill]] %s11644_s6 }
  0x15   :  { %15272 = sst [smem:[#allocation10_spill]] %s11649_s12 }
  0x16   :  { %s11654_s20 = sld [smem:[%s15219_s0 + %s11550_s15]]   ;;  %s11554_s15 = smov 19  }
  0x17   :  { %s11659_s27 = sld [smem:[%s15219_s0 + %s11551_s22]]   ;;  %s11555_s22 = smov 20  }
  0x18   :  { %s11664_s4 = sld [smem:[%s15219_s0 + %s11552_s28]]   ;;  %s11556_s28 = smov 21  }
  0x19   :  { %s11669_s6 = sld [smem:[%s15219_s0 + %s11553_s7]]   ;;  %s11557_s7 = smov 22  }
  0x1a   :  { %s11674_s12 = sld [smem:[%s15219_s0 + %s11554_s15]]   ;;  %s11558_s15 = smov 23  }
  0x1b   :  { %s11679_s24 = sld [smem:[%s15219_s0 + %s11555_s22]]   ;;  %s11559_s22 = smov 24  }
  0x1c   :  { %s11684_s30 = sld [smem:[%s15219_s0 + %s11556_s28]]   ;;  %s11560_s28 = smov 25  }
  0x1d   :  { %s11689_s14 = sld [smem:[%s15219_s0 + %s11557_s7]]   ;;  %s11561_s7 = smov 26  }
  0x1e   :  { %s11699_s19 = sld [smem:[%s15219_s0 + %s11559_s22]]   ;;  %s11563_s22 = smov 28  }
  0x20   :  { %15273 = sst [smem:[#allocation11_spill]] %s11674_s12 }
  0x21   :  { %15274 = sst [smem:[#allocation12_spill]] %s11679_s24 }
  0x22   :  { %15275 = sst [smem:[#allocation13_spill]] %s11684_s30 }
  0x23   :  { %s11694_s12 = sld [smem:[%s15219_s0 + %s11558_s15]]   ;;  %s11562_s15 = smov 27  }
  0x24   :  { %15277 = sst [smem:[#allocation15_spill]] %s11699_s19 }
  0x25   :  { %s11704_s24 = sld [smem:[%s15219_s0 + %s11560_s28]]   ;;  %s11564_s28 = smov 29  }
  0x26   :  { %s11709_s30 = sld [smem:[%s15219_s0 + %s11561_s7]]   ;;  %s11565_s7 = smov 30  }
  0x27   :  { %s11719_s19 = sld [smem:[%s15219_s0 + %s11563_s22]]   ;;  %s11567_s22 = smov 32  }
  0x29   :  { %15276 = sst [smem:[#allocation14_spill]] %s11694_s12 }
  0x2a   :  { %s11714_s12 = sld [smem:[%s15219_s0 + %s11562_s15]]   ;;  %s11566_s15 = smov 31  }
  0x2b   :  { %15278 = sst [smem:[#allocation16_spill]] %s11704_s24 }
  0x2c   :  { %15279 = sst [smem:[#allocation17_spill]] %s11709_s30 }
  0x2d   :  { %15281 = sst [smem:[#allocation19_spill]] %s11719_s19 }
  0x2e   :  { %s11724_s24 = sld [smem:[%s15219_s0 + %s11564_s28]]  }
  0x2f   :  { %s11729_s30 = sld [smem:[%s15219_s0 + %s11565_s7]]  }
  0x30   :  { %15280 = sst [smem:[#allocation18_spill]] %s11714_s12 }
  0x31   :  { %s11734_s12 = sld [smem:[%s15219_s0 + %s11566_s15]]  }
  0x32   :  { %s11739_s19 = sld [smem:[%s15219_s0 + %s11567_s22]]  }
  0x33   :  { %v150_v0 = vld [vmem:[%s11584_s9 + $0x60] sm:$0x33]  ;;  %vm226_vm0 = vcmask 1041408   ;;  %v8674_v3 = vld [vmem:[%s11584_s9 + $0x50] sm:$0xf] }
  0x34   :  { %v194_v1 = vunpack.c.l.b16 %v150_v0  ;;  %v195_v2 = vunpack.c.h.b16 %v150_v0  ;;  %v11069_v6 = vld [vmem:[%s11584_s9 + $0x54] sm:$0xf0]  ;;  %v11068_v7 = vld [vmem:[%s11584_s9 + $0x54] sm:$0xf]  ;;  %v8676_v8 = vld [vmem:[%s11584_s9 + $0x58] sm:$0xf0] }
  0x35   :  { %v8675_v11 = vor.u32 %v11069_v6, %v8674_v3  ;;  %v8679_v12 = vor.u32 %v11068_v7, %v8676_v8  ;;  %v8666_v13 = vld [vmem:[%s11584_s9 + $0x40] sm:$0xf]  ;;  %v11067_v14 = vld [vmem:[%s11584_s9 + $0x44] sm:$0xf0]  ;;  %v11066_v15 = vld [vmem:[%s11584_s9 + $0x44] sm:$0xf] }
  0x36   :  { %v208_v4 = vpack.c.b16 %v194_v1, %v194_v1  ;;  %v209_v5 = vpack.c.b16 %v195_v2, %v195_v2  ;;  %v8668_v16 = vld [vmem:[%s11584_s9 + $0x48] sm:$0xf0]  ;;  %v8667_v17 = vor.u32 %v11067_v14, %v8666_v13  ;;  %v8658_v19 = vld [vmem:[%s11584_s9 + $0x30] sm:$0xf]  ;;  %v11065_v20 = vld [vmem:[%s11584_s9 + $0x34] sm:$0xf0] }
  0x37   :  { %v8671_v18 = vor.u32 %v11066_v15, %v8668_v16  ;;  %v11064_v21 = vld [vmem:[%s11584_s9 + $0x34] sm:$0xf]  ;;  %v8660_v22 = vld [vmem:[%s11584_s9 + $0x38] sm:$0xf0] }
  0x38   :  { %v228_v9 = vsel %vm226_vm0, %v208_v4, 0  ;;  %v231_v10 = vsel %vm226_vm0, %v209_v5, 0 }
  0x39   :  { %234 = vmatpush.bf16.msra.mxu0 %v228_v9  ;;  %247 = vmatpush.bf16.msra.mxu1 %v231_v10 }
  0x3d   :  { %235 = vmatpush.bf16.msra.mxu0 %v8675_v11  ;;  %248 = vmatpush.bf16.msra.mxu1 %v8679_v12 }
  0x3e   :  { %70 = vsyncpa [#allocation3], 0  ;;  %v8659_v23 = vor.u32 %v11065_v20, %v8658_v19  ;;  %v8663_v24 = vor.u32 %v11064_v21, %v8660_v22  ;;  %v8650_v25 = vld [vmem:[%s11584_s9 + $0x20] sm:$0xf]  ;;  %v11063_v26 = vld [vmem:[%s11584_s9 + $0x24] sm:$0xf0] }
  0x3f   :  { %v11062_v27 = vld [vmem:[%s11584_s9 + $0x24] sm:$0xf]  ;;  %v8652_v28 = vld [vmem:[%s11584_s9 + $0x28] sm:$0xf0]  ;;  %v8651_v29 = vor.u32 %v11063_v26, %v8650_v25  ;;  %v8642_v31 = vld [vmem:[%s11584_s9 + $0x10] sm:$0xf] }
  0x40   :  { %v8655_v30 = vor.u32 %v11062_v27, %v8652_v28  ;;  %v11061_v32 = vld [vmem:[%s11584_s9 + $0x14] sm:$0xf0]  ;;  %v11060_v33 = vld [vmem:[%s11584_s9 + $0x14] sm:$0xf]  ;;  %v8644_v34 = vld [vmem:[%s11584_s9 + $0x18] sm:$0xf0] }
  0x41   :  { %236 = vmatpush.bf16.msra.mxu0 %v8667_v17  ;;  %249 = vmatpush.bf16.msra.mxu1 %v8671_v18  ;;  %v8643_v35 = vor.u32 %v11061_v32, %v8642_v31  ;;  %v8647_v36 = vor.u32 %v11060_v33, %v8644_v34  ;;  %v8634_v37 = vld [vmem:[%s11584_s9] sm:$0xf]  ;;  %v11059_v38 = vld [vmem:[%s11584_s9 + $0x4] sm:$0xf0]  ;;  %v11058_v39 = vld [vmem:[%s11584_s9 + $0x4] sm:$0xf] }
  0x42   :  { %v8636_v40 = vld [vmem:[%s11584_s9 + $0x8] sm:$0xf0]  ;;  %v8635_v41 = vor.u32 %v11059_v38, %v8634_v37  ;;  %v136_v43 = vld [vmem:[%s11579_s5] sm:$0xff]  ;;  %v335_v44 = vld [vmem:[%s11599_s21 + $0xf8] sm:$0xff]  ;;  %vm222_vm1 = vcmask 818176   ;;  %vm260_vm2 = vcmask 64512  }
  0x43   :  { %v8639_v42 = vor.u32 %v11058_v39, %v8636_v40  ;;  %v137_v45 = vpack.c.bf16 %v136_v43, %v136_v43  ;;  %v334_v46 = vld [vmem:[%s11599_s21 + $0xf0] sm:$0xff]  ;;  %v333_v47 = vld [vmem:[%s11599_s21 + $0xe8] sm:$0xff]  ;;  %v332_v48 = vld [vmem:[%s11599_s21 + $0xe0] sm:$0xff]  ;;  %vm765_vm3 = vcmask 523264   ;;  %vm813_vm4 = vcmask 326656   ;;  %s15282_s0 = sld [smem:[#allocation13_spill]] }
  0x44   :  { %v331_v49 = vld [vmem:[%s11599_s21 + $0xd8] sm:$0xff]  ;;  %v330_v50 = vld [vmem:[%s11599_s21 + $0xd0] sm:$0xff]  ;;  %v329_v51 = vld [vmem:[%s11599_s21 + $0xc8] sm:$0xff]  ;;  %vm815_vm5 = vcmask 320512   ;;  %vm1017_vm9 = vcmask 1043456   ;;  %vm1124_vm10 = vcmask 80896  }
  0x45   :  { %237 = vmatpush.bf16.msra.mxu0 %v8659_v23  ;;  %250 = vmatpush.bf16.msra.mxu1 %v8663_v24  ;;  %v328_v52 = vld [vmem:[%s11599_s21 + $0xc0] sm:$0xff]  ;;  %v327_v53 = vld [vmem:[%s11599_s21 + $0xb8] sm:$0xff]  ;;  %v326_v54 = vld [vmem:[%s11599_s21 + $0xb0] sm:$0xff]  ;;  %vm1410_vm11 = vcmask 130048   ;;  %vm1414_vm12 = vcmask 123904   ;;  %s15283_s5 = sld [smem:[#allocation12_spill]] }
  0x46   :  { %v325_v55 = vld [vmem:[%s11599_s21 + $0xa8] sm:$0xff]  ;;  %v324_v56 = vld [vmem:[%s11599_s21 + $0xa0] sm:$0xff]  ;;  %v323_v57 = vld [vmem:[%s11599_s21 + $0x98] sm:$0xff]  ;;  %s15284_s9 = sld [smem:[#allocation6_spill]]  ;;  %s11526_s2 = scalar_lea.hbm %s11739_s19, 192 }
  0x47   :  { %v322_v58 = vld [vmem:[%s11599_s21 + $0x90] sm:$0xff]  ;;  %v321_v59 = vld [vmem:[%s11599_s21 + $0x88] sm:$0xff]  ;;  %v320_v60 = vld [vmem:[%s11599_s21 + $0x80] sm:$0xff] }
  0x48   :  { %v151_v61 = vld [vmem:[%s11589_s13] sm:$0x3]  ;;  %v8702_v5 = vld [vmem:[%s11599_s21 + $0x178] sm:$0xff]  ;;  %v8701_v7 = vld [vmem:[%s11599_s21 + $0x170] sm:$0xff]  ;;  %s15285_s13 = sld [smem:[#allocation11_spill]] }
  0x49   :  { %238 = vmatpush.bf16.msra.mxu0 %v8651_v29  ;;  %251 = vmatpush.bf16.msra.mxu1 %v8655_v30  ;;  %v153_v62 = vperm.slane %v151_v61, 0  ;;  %v154_v63 = vperm.slane %v151_v61, 1  ;;  %v259_v4 = vld [vmem:[%s11594_s17] sm:$0xff]  ;;  %v8718_v6 = vld [vmem:[%s11599_s21 + $0x1f8] sm:$0xff]  ;;  %v8717_v8 = vld [vmem:[%s11599_s21 + $0x1f0] sm:$0xff] }
  0x4a   :  { %v319_v9 = vld [vmem:[%s11599_s21 + $0x78] sm:$0xff]  ;;  %v318_v10 = vld [vmem:[%s11599_s21 + $0x70] sm:$0xff]  ;;  %v8700_v11 = vld [vmem:[%s11599_s21 + $0x168] sm:$0xff] }
  0x4b   :  { %v8716_v14 = vld [vmem:[%s11599_s21 + $0x1e8] sm:$0xff]  ;;  %v8699_v16 = vld [vmem:[%s11599_s21 + $0x160] sm:$0xff]  ;;  %v8698_v19 = vld [vmem:[%s11599_s21 + $0x158] sm:$0xff] }
  0x4c   :  { %v317_v15 = vld [vmem:[%s11599_s21 + $0x68] sm:$0xff]  ;;  %v8715_v17 = vld [vmem:[%s11599_s21 + $0x1e0] sm:$0xff]  ;;  %v8714_v20 = vld [vmem:[%s11599_s21 + $0x1d8] sm:$0xff] }
  0x4d   :  { %239 = vmatpush.bf16.msra.mxu0 %v8643_v35  ;;  %252 = vmatpush.bf16.msra.mxu1 %v8647_v36  ;;  %v8684_v18 = vld [vmem:[%s11594_s17 + $0x8] sm:$0xff]  ;;  %v316_v21 = vld [vmem:[%s11599_s21 + $0x60] sm:$0xff]  ;;  %v8697_v22 = vld [vmem:[%s11599_s21 + $0x150] sm:$0xff] }
  0x4e   :  { %v8713_v23 = vld [vmem:[%s11599_s21 + $0x1d0] sm:$0xff]  ;;  %v315_v24 = vld [vmem:[%s11599_s21 + $0x58] sm:$0xff]  ;;  %v8696_v25 = vld [vmem:[%s11599_s21 + $0x148] sm:$0xff] }
  0x4f   :  { %v8712_v26 = vld [vmem:[%s11599_s21 + $0x1c8] sm:$0xff]  ;;  %v314_v27 = vld [vmem:[%s11599_s21 + $0x50] sm:$0xff]  ;;  %v8695_v28 = vld [vmem:[%s11599_s21 + $0x140] sm:$0xff] }
  0x50   :  { %v8711_v29 = vld [vmem:[%s11599_s21 + $0x1c0] sm:$0xff]  ;;  %v313_v30 = vld [vmem:[%s11599_s21 + $0x48] sm:$0xff]  ;;  %v8694_v31 = vld [vmem:[%s11599_s21 + $0x138] sm:$0xff] }
  0x51   :  { %240 = vmatpush.bf16.msra.mxu0 %v8635_v41  ;;  %253 = vmatpush.bf16.msra.mxu1 %v8639_v42  ;;  %v8710_v32 = vld [vmem:[%s11599_s21 + $0x1b8] sm:$0xff]  ;;  %v312_v33 = vld [vmem:[%s11599_s21 + $0x40] sm:$0xff]  ;;  %v8693_v34 = vld [vmem:[%s11599_s21 + $0x130] sm:$0xff] }
  0x52   :  { %v8709_v35 = vld [vmem:[%s11599_s21 + $0x1b0] sm:$0xff]  ;;  %v311_v36 = vld [vmem:[%s11599_s21 + $0x38] sm:$0xff]  ;;  %v8692_v37 = vld [vmem:[%s11599_s21 + $0x128] sm:$0xff] }
  0x53   :  { %v8708_v38 = vld [vmem:[%s11599_s21 + $0x1a8] sm:$0xff]  ;;  %v310_v39 = vld [vmem:[%s11599_s21 + $0x30] sm:$0xff]  ;;  %v8691_v40 = vld [vmem:[%s11599_s21 + $0x120] sm:$0xff] }
  0x54   :  { %8680 = vmatmul.msk.bf16.vlgmr.msra.gmra.mxu0 %vm222_vm1, %v137_v45  ;;  %8681 = vmatmul.msk.bf16.vlgmr.msra.gmra.mxu1 %vm222_vm1, %v137_v45  ;;  %v8707_v41 = vld [vmem:[%s11599_s21 + $0x1a0] sm:$0xff]  ;;  %v309_v42 = vld [vmem:[%s11599_s21 + $0x28] sm:$0xff]  ;;  %v8690_v43 = vld [vmem:[%s11599_s21 + $0x118] sm:$0xff]  ;;  %vm2474_vm1 = vcmask 146432  }
  0x55   :  { %474 = vmatpush.msrb.mxu1 %v335_v44  ;;  %454 = vmatpush.msrb.mxu0 %v319_v9  ;;  %v8706_v44 = vld [vmem:[%s11599_s21 + $0x198] sm:$0xff]  ;;  %v308_v45 = vld [vmem:[%s11599_s21 + $0x20] sm:$0xff]  ;;  %v8786_v9 = vld [vmem:[%s11599_s21 + $0x3e8] sm:$0xff] }
  0x57   :  { %475 = vmatpush.msrb.mxu1 %v334_v46  ;;  %455 = vmatpush.msrb.mxu0 %v318_v10  ;;  %v8689_v46 = vld [vmem:[%s11599_s21 + $0x110] sm:$0xff]  ;;  %v8734_v10 = vld [vmem:[%s11599_s21 + $0x260] sm:$0xff] }
  0x59   :  { %476 = vmatpush.msrb.mxu1 %v333_v47  ;;  %456 = vmatpush.msrb.mxu0 %v317_v15  ;;  %v8705_v47 = vld [vmem:[%s11599_s21 + $0x190] sm:$0xff]  ;;  %v8749_v15 = vld [vmem:[%s11599_s21 + $0x2d8] sm:$0xff] }
  0x5b   :  { %477 = vmatpush.msrb.mxu1 %v332_v48  ;;  %457 = vmatpush.msrb.mxu0 %v316_v21  ;;  %v307_v48 = vld [vmem:[%s11599_s21 + $0x18] sm:$0xff]  ;;  %v8783_v21 = vld [vmem:[%s11599_s21 + $0x3d0] sm:$0xff] }
  0x5d   :  { %478 = vmatpush.msrb.mxu1 %v331_v49  ;;  %458 = vmatpush.msrb.mxu0 %v315_v24  ;;  %v8688_v49 = vld [vmem:[%s11599_s21 + $0x108] sm:$0xff] }
  0x5e   :  { %v8766_v24 = vld [vmem:[%s11599_s21 + $0x348] sm:$0xff] }
  0x5f   :  { %479 = vmatpush.msrb.mxu1 %v330_v50  ;;  %459 = vmatpush.msrb.mxu0 %v314_v27  ;;  %v8704_v50 = vld [vmem:[%s11599_s21 + $0x188] sm:$0xff]  ;;  %v8746_v27 = vld [vmem:[%s11599_s21 + $0x2c0] sm:$0xff] }
  0x61   :  { %480 = vmatpush.msrb.mxu1 %v329_v51  ;;  %460 = vmatpush.msrb.mxu0 %v313_v30  ;;  %v306_v51 = vld [vmem:[%s11599_s21 + $0x10] sm:$0xff]  ;;  %v8729_v30 = vld [vmem:[%s11599_s21 + $0x238] sm:$0xff] }
  0x63   :  { %481 = vmatpush.msrb.mxu1 %v328_v52  ;;  %461 = vmatpush.msrb.mxu0 %v312_v33  ;;  %v8687_v52 = vld [vmem:[%s11599_s21 + $0x100] sm:$0xff]  ;;  %v8780_v33 = vld [vmem:[%s11599_s21 + $0x3b8] sm:$0xff] }
  0x65   :  { %482 = vmatpush.msrb.mxu1 %v327_v53  ;;  %462 = vmatpush.msrb.mxu0 %v311_v36  ;;  %v8703_v53 = vld [vmem:[%s11599_s21 + $0x180] sm:$0xff]  ;;  %v8763_v36 = vld [vmem:[%s11599_s21 + $0x330] sm:$0xff] }
  0x67   :  { %483 = vmatpush.msrb.mxu1 %v326_v54  ;;  %463 = vmatpush.msrb.mxu0 %v310_v39  ;;  %v305_v54 = vld [vmem:[%s11599_s21 + $0x8] sm:$0xff] }
  0x68   :  { %v8743_v39 = vld [vmem:[%s11599_s21 + $0x2a8] sm:$0xff] }
  0x69   :  { %484 = vmatpush.msrb.mxu1 %v325_v55  ;;  %464 = vmatpush.msrb.mxu0 %v309_v42  ;;  %v304_v55 = vld [vmem:[%s11599_s21] sm:$0xff] }
  0x6a   :  { %v8726_v42 = vld [vmem:[%s11599_s21 + $0x220] sm:$0xff] }
  0x6b   :  { %485 = vmatpush.msrb.mxu1 %v324_v56  ;;  %465 = vmatpush.msrb.mxu0 %v308_v45  ;;  %v8772_v56 = vld [vmem:[%s11599_s21 + $0x378] sm:$0xff]  ;;  %v8777_v45 = vld [vmem:[%s11599_s21 + $0x3a0] sm:$0xff] }
  0x6d   :  { %486 = vmatpush.msrb.mxu1 %v323_v57  ;;  %466 = vmatpush.msrb.mxu0 %v307_v48  ;;  %v8771_v57 = vld [vmem:[%s11599_s21 + $0x370] sm:$0xff]  ;;  %v8760_v48 = vld [vmem:[%s11599_s21 + $0x318] sm:$0xff] }
  0x6f   :  { %487 = vmatpush.msrb.mxu1 %v322_v58  ;;  %467 = vmatpush.msrb.mxu0 %v306_v51  ;;  %v8770_v58 = vld [vmem:[%s11599_s21 + $0x368] sm:$0xff]  ;;  %v8740_v51 = vld [vmem:[%s11599_s21 + $0x290] sm:$0xff] }
  0x71   :  { %488 = vmatpush.msrb.mxu1 %v321_v59  ;;  %468 = vmatpush.msrb.mxu0 %v305_v54  ;;  %v8769_v59 = vld [vmem:[%s11599_s21 + $0x360] sm:$0xff]  ;;  %v8723_v54 = vld [vmem:[%s11599_s21 + $0x208] sm:$0xff] }
  0x73   :  { %489 = vmatpush.msrb.mxu1 %v320_v60  ;;  %469 = vmatpush.msrb.mxu0 %v304_v55  ;;  %v8739_v55 = vld [vmem:[%s11599_s21 + $0x288] sm:$0xff] }
  0x75   :  { %691 = vmatpush.msra.mxu0 %v8772_v56  ;;  %v8758_v56 = vld [vmem:[%s11599_s21 + $0x308] sm:$0xff] }
  0x77   :  { %692 = vmatpush.msra.mxu0 %v8771_v57  ;;  %v8774_v57 = vld [vmem:[%s11599_s21 + $0x388] sm:$0xff] }
  0x79   :  { %693 = vmatpush.msra.mxu0 %v8770_v58  ;;  %v8722_v58 = vld [vmem:[%s11599_s21 + $0x200] sm:$0xff] }
  0x7b   :  { %694 = vmatpush.msra.mxu0 %v8769_v59  ;;  %v8738_v59 = vld [vmem:[%s11599_s21 + $0x280] sm:$0xff] }
  0xd1   :  { %v242_v0 = vpop.f32.mrf.mxu0  ;;  %v255_v1 = vpop.f32.mrf.mxu1 }
  0xd2   :  { %v11786_v2 = vadd.f32 %v242_v0, %v153_v62  ;;  %v11788_v3 = vadd.f32 %v255_v1, %v154_v63  ;;  %v8754_v62 = vld [vmem:[%s11594_s17 + $0x18] sm:$0xff] }
  0xd3   :  { %v8737_v63 = vld [vmem:[%s11599_s21 + $0x278] sm:$0xff] }
  0xd4   :  { %279 = vmatpush.msra.mxu2 %v11786_v2  ;;  %299 = vmatpush.msra.mxu3 %v11788_v3  ;;  %v8753_v1 = vld [vmem:[%s11599_s21 + $0x2f8] sm:$0xff] }
  0xd5   :  { %633 = vmatpush.msra.mxu1 %v11786_v2  ;;  %8682 = vmatmul.msk.f32.vlgmr.msra.gmra.mxu2 %vm260_vm2, %v259_v4 }
  0xd6   :  { %8683 = vmatmul.msk.f32.vlgmr.msra.gmra.mxu3 %vm260_vm2, %v259_v4  ;;  %356 = vmatpush.msrb.mxu2 %v11786_v2 }
  0xd7   :  { %376 = vmatpush.msrb.mxu3 %v11788_v3 }
  0xd8   :  { %414 = vmatpush.msra.mxu2 %v8702_v5  ;;  %v8736_v5 = vld [vmem:[%s11599_s21 + $0x270] sm:$0xff] }
  0xd9   :  { %434 = vmatpush.msra.mxu3 %v8718_v6  ;;  %v244_v12 = vpop.f32.mrf.mxu0  ;;  %v257_v13 = vpop.f32.mrf.mxu1  ;;  %v8752_v6 = vld [vmem:[%s11599_s21 + $0x2f0] sm:$0xff] }
  0xda   :  { %415 = vmatpush.msra.mxu2 %v8701_v7  ;;  %v8735_v7 = vld [vmem:[%s11599_s21 + $0x268] sm:$0xff]  ;;  %v8785_v12 = vld [vmem:[%s11599_s21 + $0x3e0] sm:$0xff] }
  0xdb   :  { %435 = vmatpush.msra.mxu3 %v8717_v8  ;;  %v8751_v8 = vld [vmem:[%s11599_s21 + $0x2e8] sm:$0xff]  ;;  %v8750_v13 = vld [vmem:[%s11599_s21 + $0x2e0] sm:$0xff] }
  0xdc   :  { %416 = vmatpush.msra.mxu2 %v8700_v11  ;;  %v8719_v11 = vld [vmem:[%s11594_s17 + $0x10] sm:$0xff]  ;;  %s15286_s17 = sld [smem:[#allocation5_spill]] }
  0xdd   :  { %436 = vmatpush.msra.mxu3 %v8716_v14  ;;  %8685 = vmatmul.msk.f32.vlgmr.msrb.gmra.mxu2 %vm260_vm2, %v8684_v18  ;;  %v8733_v14 = vld [vmem:[%s11599_s21 + $0x258] sm:$0xff] }
  0xde   :  { %417 = vmatpush.msra.mxu2 %v8699_v16  ;;  %8686 = vmatmul.msk.f32.vlgmr.msrb.gmra.mxu3 %vm260_vm2, %v8684_v18  ;;  %v8768_v16 = vld [vmem:[%s11599_s21 + $0x358] sm:$0xff]  ;;  %v8732_v18 = vld [vmem:[%s11599_s21 + $0x250] sm:$0xff] }
  0xdf   :  { %437 = vmatpush.msra.mxu3 %v8715_v17  ;;  %v8784_v17 = vld [vmem:[%s11599_s21 + $0x3d8] sm:$0xff]  ;;  %695 = vmatpush.msra.mxu0 %v8768_v16 }
  0xe0   :  { %418 = vmatpush.msra.mxu2 %v8698_v19  ;;  %v8748_v19 = vld [vmem:[%s11599_s21 + $0x2d0] sm:$0xff] }
  0xe1   :  { %438 = vmatpush.msra.mxu3 %v8714_v20  ;;  %v8767_v20 = vld [vmem:[%s11599_s21 + $0x350] sm:$0xff] }
  0xe2   :  { %419 = vmatpush.msra.mxu2 %v8697_v22  ;;  %v8731_v22 = vld [vmem:[%s11599_s21 + $0x248] sm:$0xff]  ;;  %696 = vmatpush.msra.mxu0 %v8767_v20 }
  0xe3   :  { %439 = vmatpush.msra.mxu3 %v8713_v23  ;;  %v8747_v23 = vld [vmem:[%s11599_s21 + $0x2c8] sm:$0xff] }
  0xe4   :  { %420 = vmatpush.msra.mxu2 %v8696_v25  ;;  %v8782_v25 = vld [vmem:[%s11599_s21 + $0x3c8] sm:$0xff]  ;;  %697 = vmatpush.msra.mxu0 %v8766_v24 }
  0xe5   :  { %440 = vmatpush.msra.mxu3 %v8712_v26  ;;  %v8730_v26 = vld [vmem:[%s11599_s21 + $0x240] sm:$0xff]  ;;  %v783_v24 = vld [vmem:[%s11604_s25 + $0x8] sm:$0x3] }
  0xe6   :  { %421 = vmatpush.msra.mxu2 %v8695_v28  ;;  %v8765_v28 = vld [vmem:[%s11599_s21 + $0x340] sm:$0xff] }
  0xe7   :  { %441 = vmatpush.msra.mxu3 %v8711_v29  ;;  %v8781_v29 = vld [vmem:[%s11599_s21 + $0x3c0] sm:$0xff]  ;;  %698 = vmatpush.msra.mxu0 %v8765_v28  ;;  %v826_v28 = vld [vmem:[%s11669_s6 + $0x10] sm:$0xff] }
  0xe8   :  { %422 = vmatpush.msra.mxu2 %v8694_v31  ;;  %v8745_v31 = vld [vmem:[%s11599_s21 + $0x2b8] sm:$0xff] }
  0xe9   :  { %442 = vmatpush.msra.mxu3 %v8710_v32  ;;  %v8764_v32 = vld [vmem:[%s11599_s21 + $0x338] sm:$0xff] }
  0xea   :  { %423 = vmatpush.msra.mxu2 %v8693_v34  ;;  %v8728_v34 = vld [vmem:[%s11599_s21 + $0x230] sm:$0xff]  ;;  %699 = vmatpush.msra.mxu0 %v8764_v32 }
  0xeb   :  { %443 = vmatpush.msra.mxu3 %v8709_v35  ;;  %v8744_v35 = vld [vmem:[%s11599_s21 + $0x2b0] sm:$0xff] }
  0xec   :  { %424 = vmatpush.msra.mxu2 %v8692_v37  ;;  %v8779_v37 = vld [vmem:[%s11599_s21 + $0x3b0] sm:$0xff]  ;;  %700 = vmatpush.msra.mxu0 %v8763_v36 }
  0xed   :  { %444 = vmatpush.msra.mxu3 %v8708_v38  ;;  %v8727_v38 = vld [vmem:[%s11599_s21 + $0x228] sm:$0xff] }
  0xee   :  { %425 = vmatpush.msra.mxu2 %v8691_v40  ;;  %v8762_v40 = vld [vmem:[%s11599_s21 + $0x328] sm:$0xff] }
  0xef   :  { %445 = vmatpush.msra.mxu3 %v8707_v41  ;;  %v8778_v41 = vld [vmem:[%s11599_s21 + $0x3a8] sm:$0xff]  ;;  %701 = vmatpush.msra.mxu0 %v8762_v40 }
  0xf0   :  { %426 = vmatpush.msra.mxu2 %v8690_v43  ;;  %v8742_v43 = vld [vmem:[%s11599_s21 + $0x2a0] sm:$0xff] }
  0xf1   :  { %446 = vmatpush.msra.mxu3 %v8706_v44  ;;  %v8761_v44 = vld [vmem:[%s11599_s21 + $0x320] sm:$0xff] }
  0xf2   :  { %427 = vmatpush.msra.mxu2 %v8689_v46  ;;  %702 = vmatpush.msra.mxu0 %v8761_v44  ;;  %v8725_v46 = vld [vmem:[%s11599_s21 + $0x218] sm:$0xff] }
  0xf3   :  { %447 = vmatpush.msra.mxu3 %v8705_v47  ;;  %v8741_v47 = vld [vmem:[%s11599_s21 + $0x298] sm:$0xff] }
  0xf4   :  { %428 = vmatpush.msra.mxu2 %v8688_v49  ;;  %v8776_v49 = vld [vmem:[%s11599_s21 + $0x398] sm:$0xff]  ;;  %703 = vmatpush.msra.mxu0 %v8760_v48 }
  0xf5   :  { %448 = vmatpush.msra.mxu3 %v8704_v50  ;;  %v8724_v50 = vld [vmem:[%s11599_s21 + $0x210] sm:$0xff] }
  0xf6   :  { %429 = vmatpush.msra.mxu2 %v8687_v52  ;;  %v8759_v52 = vld [vmem:[%s11599_s21 + $0x310] sm:$0xff] }
  0xf7   :  { %449 = vmatpush.msra.mxu3 %v8703_v53  ;;  %v8775_v53 = vld [vmem:[%s11599_s21 + $0x390] sm:$0xff]  ;;  %704 = vmatpush.msra.mxu0 %v8759_v52 }
  0xf8   :  { %514 = vmatpush.msrb.mxu2 %v11786_v2  ;;  %v8788_v2 = vld [vmem:[%s11599_s21 + $0x3f8] sm:$0xff] }
  0xf9   :  { %534 = vmatpush.msrb.mxu3 %v11788_v3  ;;  %705 = vmatpush.msra.mxu0 %v8758_v56 }
 0x158   :  { %v281_v60 = vpop.f32.mrf.mxu2 }
 0x159   :  { %v301_v61 = vpop.f32.mrf.mxu3  ;;  %470 = vmatmul.f32.vlgmr.msrb.gmra.mxu0 %v281_v60  ;;  %v8757_v60 = vld [vmem:[%s11599_s21 + $0x300] sm:$0xff] }
 0x15a   :  { %490 = vmatmul.f32.vlgmr.msrb.gmra.mxu1 %v301_v61  ;;  %v8773_v61 = vld [vmem:[%s11599_s21 + $0x380] sm:$0xff]  ;;  %706 = vmatpush.msra.mxu0 %v8757_v60 }
 0x15b   :  { %653 = vmatpush.msrb.mxu1 %v11788_v3  ;;  %v8787_v3 = vld [vmem:[%s11599_s21 + $0x3f0] sm:$0xff]  ;;  %v954_v60 = vld [vmem:[%s11659_s27] sm:$0x1]  ;;  %s15288_s21 = sld [smem:[#allocation17_spill]] }
 0x160   :  { %v358_v0 = vpop.f32.mrf.mxu2 }
 0x161   :  { %v378_v4 = vpop.f32.mrf.mxu3  ;;  %430 = vmatmul.f32.vlgmr.msra.gmra.mxu2 %v358_v0 }
 0x162   :  { %8755 = vmatmul.msk.f32.vlgmr.msra.gmra.mxu1 %vm260_vm2, %v8754_v62  ;;  %450 = vmatmul.f32.vlgmr.msra.gmra.mxu3 %v378_v4 }
 0x163   :  { %572 = vmatpush.msra.mxu2 %v8737_v63  ;;  %592 = vmatpush.msra.mxu3 %v8753_v1 }
 0x164   :  { %711 = vmatpush.msra.mxu1 %v8788_v2 }
 0x165   :  { %573 = vmatpush.msra.mxu2 %v8736_v5  ;;  %593 = vmatpush.msra.mxu3 %v8752_v6 }
 0x166   :  { %712 = vmatpush.msra.mxu1 %v8787_v3 }
 0x167   :  { %574 = vmatpush.msra.mxu2 %v8735_v7  ;;  %594 = vmatpush.msra.mxu3 %v8751_v8 }
 0x168   :  { %713 = vmatpush.msra.mxu1 %v8786_v9  ;;  %v11073_v9 = vld [vmem:[%s11609_s29 + $0x18] sm:$0xff] }
 0x169   :  { %575 = vmatpush.msra.mxu2 %v8734_v10  ;;  %595 = vmatpush.msra.mxu3 %v8750_v13  ;;  %v11072_v10 = vld [vmem:[%s11609_s29 + $0x10] sm:$0xff] }
 0x16a   :  { %8720 = vmatmul.msk.f32.vlgmr.msrb.gmra.mxu2 %vm260_vm2, %v8719_v11  ;;  %8756 = vmatmul.msk.f32.vlgmr.msrb.gmra.mxu1 %vm260_vm2, %v8754_v62 }
 0x16b   :  { %8721 = vmatmul.msk.f32.vlgmr.msrb.gmra.mxu3 %vm260_vm2, %v8719_v11  ;;  %714 = vmatpush.msra.mxu1 %v8785_v12  ;;  %v11071_v11 = vld [vmem:[%s11609_s29 + $0x8] sm:$0xff]  ;;  %v11070_v12 = vld [vmem:[%s11609_s29] sm:$0xff]  ;;  %s15315_s29 = sld [smem:[#allocation15_spill]] }
 0x16c   :  { %576 = vmatpush.msra.mxu2 %v8733_v14  ;;  %596 = vmatpush.msra.mxu3 %v8749_v15 }
 0x16d   :  { %715 = vmatpush.msra.mxu1 %v8784_v17 }
 0x16e   :  { %577 = vmatpush.msra.mxu2 %v8732_v18  ;;  %597 = vmatpush.msra.mxu3 %v8748_v19 }
 0x16f   :  { %716 = vmatpush.msra.mxu1 %v8783_v21 }
 0x170   :  { %578 = vmatpush.msra.mxu2 %v8731_v22  ;;  %598 = vmatpush.msra.mxu3 %v8747_v23  ;;  %v782_v22 = vld [vmem:[%s11604_s25] sm:$0xff]  ;;  %s15302_s25 = sld [smem:[#allocation16_spill]] }
 0x171   :  { %717 = vmatpush.msra.mxu1 %v8782_v25 }
 0x172   :  { %579 = vmatpush.msra.mxu2 %v8730_v26  ;;  %599 = vmatpush.msra.mxu3 %v8746_v27  ;;  %v828_v26 = vld [vmem:[%s11669_s6 + $0x20] sm:$0xff]  ;;  %v827_v27 = vld [vmem:[%s11669_s6 + $0x18] sm:$0xff] }
 0x173   :  { %718 = vmatpush.msra.mxu1 %v8781_v29  ;;  %v825_v29 = vld [vmem:[%s11669_s6 + $0x8] sm:$0xff] }
 0x174   :  { %580 = vmatpush.msra.mxu2 %v8729_v30  ;;  %600 = vmatpush.msra.mxu3 %v8745_v31  ;;  %v824_v30 = vld [vmem:[%s11669_s6] sm:$0xff]  ;;  %s15423_s6 = sld [smem:[#allocation18_spill]] }
 0x175   :  { %719 = vmatpush.msra.mxu1 %v8780_v33 }
 0x176   :  { %581 = vmatpush.msra.mxu2 %v8728_v34  ;;  %601 = vmatpush.msra.mxu3 %v8744_v35 }
 0x177   :  { %720 = vmatpush.msra.mxu1 %v8779_v37 }
 0x178   :  { %582 = vmatpush.msra.mxu2 %v8727_v38  ;;  %602 = vmatpush.msra.mxu3 %v8743_v39 }
 0x179   :  { %721 = vmatpush.msra.mxu1 %v8778_v41 }
 0x17a   :  { %583 = vmatpush.msra.mxu2 %v8726_v42  ;;  %603 = vmatpush.msra.mxu3 %v8742_v43  ;;  %v853_v42 = vld [vmem:[%s11664_s4] sm:$0xff]  ;;  %s8588_s4 = sshll.u32 %s11739_s19, 4  ;;  %s8589_s4 = int_to_ptr.hbm [resolvable:$true] %s8588_s4 }
 0x17b   :  { %722 = vmatpush.msra.mxu1 %v8777_v45  ;;  %s11522_s28 = sshra.s32 %s8589_s4, 4  ;;  %s11523_s28 = int_to_ptr.hbm [resolvable:$true] %s11522_s28 }
 0x17c   :  { %584 = vmatpush.msra.mxu2 %v8725_v46  ;;  %604 = vmatpush.msra.mxu3 %v8741_v47  ;;  %s11524_s1 = scalar_lea.hbm %s11523_s28, 192  ;;  %p11527_p1 = scmp.lt.s32.totalorder %s11523_s28, %s11739_s19 }
 0x17d   :  { %723 = vmatpush.msra.mxu1 %v8776_v49  ;;  %p11525_p0 = scmp.ne.s32.totalorder %s11523_s28, %s11524_s1  ;;  %p11528_p2 = scmp.lt.s32.totalorder %s11526_s2, %s11524_s1 }
 0x17e   :  { %585 = vmatpush.msra.mxu2 %v8724_v50  ;;  %605 = vmatpush.msra.mxu3 %v8740_v51 }
 0x17f   :  { %724 = vmatpush.msra.mxu1 %v8775_v53  ;;  %p11529_p3 = por %p11528_p2, %p11527_p1 }
 0x180   :  { %586 = vmatpush.msra.mxu2 %v8723_v54  ;;  %606 = vmatpush.msra.mxu3 %v8739_v55 }
 0x181   :  { %725 = vmatpush.msra.mxu1 %v8774_v57  ;;  %p11530_p4 = pnand %p11529_p3, %p11525_p0 }
 0x182   :  { %587 = vmatpush.msra.mxu2 %v8722_v58  ;;  %607 = vmatpush.msra.mxu3 %v8738_v59 }
 0x183   :  { %726 = vmatpush.msra.mxu1 %v8773_v61 }
 0x184   :  { %773 = vmatpush.bf16.msrb.mxu2 %v11073_v9  ;;  %v988_v9 = vld [vmem:[%s11619_s8 + $0x20] sm:$0xff] }
 0x185   :  { %905 = vmatpush.msrb.mxu1 %v828_v26 }
 0x187   :  { %906 = vmatpush.msrb.mxu1 %v827_v27 }
 0x188   :  { %774 = vmatpush.bf16.msrb.mxu2 %v11072_v10  ;;  %v8835_v10 = vld [vmem:[%s11619_s8 + $0x48] sm:$0xff] }
 0x189   :  { %907 = vmatpush.msrb.mxu1 %v826_v28 }
 0x18b   :  { %908 = vmatpush.msrb.mxu1 %v825_v29 }
 0x18c   :  { %775 = vmatpush.bf16.msrb.mxu2 %v11071_v11  ;;  %v1002_v11 = vunpack.c.l.b16 %v988_v9 }
 0x18d   :  { %909 = vmatpush.msrb.mxu1 %v824_v30 }
 0x190   :  { %776 = vmatpush.bf16.msrb.mxu2 %v11070_v12  ;;  %v1003_v12 = vunpack.c.h.b16 %v988_v9 }
 0x1d6   :  { %v471_v5 = vpop.f32.mrf.mxu0 }
 0x1d7   :  { %v491_v62 = vpop.f32.mrf.mxu1 }
 0x1df   :  { %v635_v63 = vpop.f32.mrf.mxu1 }
 0x1e0   :  { %707 = vmatmul.f32.vlgmr.msra.gmra.mxu0 %v635_v63 }
 0x1e4   :  { %v431_v0 = vpop.f32.mrf.mxu2 }
 0x1e5   :  { %v451_v1 = vpop.f32.mrf.mxu3 }
 0x1e6   :  { %v452_v2 = vadd.f32 %v451_v1, %v431_v0 }
 0x1e7   :  { %v655_v4 = vpop.f32.mrf.mxu1 }
 0x1e8   :  { %727 = vmatmul.f32.vlgmr.msra.gmra.mxu1 %v655_v4  ;;  %v472_v6 = vadd.f32 %v471_v5, %v452_v2 }
 0x1ea   :  { %v492_v3 = vadd.f32 %v491_v62, %v472_v6  ;;  %v915_v6 = vld [vmem:[%s11654_s20] sm:$0x1]  ;;  %s15424_s20 = sld [smem:[#allocation9_spill]] }
 0x1ed   :  { %v516_v7 = vpop.f32.mrf.mxu2 }
 0x1ee   :  { %v536_v8 = vpop.f32.mrf.mxu3  ;;  %588 = vmatmul.f32.vlgmr.msra.gmra.mxu2 %v516_v7 }
 0x1ef   :  { %608 = vmatmul.f32.vlgmr.msra.gmra.mxu3 %v536_v8  ;;  %872 = vmatpush.msra.mxu2 %v853_v42 }
 0x25d   :  { %v708_v13 = vpop.f32.mrf.mxu0 }
 0x265   :  { %v728_v15 = vpop.f32.mrf.mxu1 }
 0x266   :  { %v729_v18 = vadd.f32 %v728_v15, %v708_v13  ;;  %v1074_v13 = vunpack.c.l.b16 %v8835_v10  ;;  %v1009_v15 = vpack.c.b16 %v1003_v12, %v1003_v12 }
 0x271   :  { %v589_v14 = vpop.f32.mrf.mxu2 }
 0x272   :  { %v609_v16 = vpop.f32.mrf.mxu3 }
 0x273   :  { %v610_v17 = vadd.f32 %v609_v16, %v589_v14  ;;  %v1008_v14 = vpack.c.b16 %v1002_v11, %v1002_v11  ;;  %v1080_v16 = vpack.c.b16 %v1074_v13, %v1074_v13  ;;  %v11083_v11 = vld [vmem:[%s11619_s8 + $0x54] sm:$0xf0]  ;;  %v8855_v13 = vld [vmem:[%s11614_s3 + $0x20] sm:$0xff] }
 0x275   :  { %v612_v19 = vadd.f32 %v610_v17, %v492_v3  ;;  %v1019_v17 = vsel %vm1017_vm9, %v1008_v14, 0 }
 0x276   :  { %1029 = vmatpush.bf16.msrb.mxu0 %v1019_v17 }
 0x277   :  { %v731_v20 = vadd.f32 %v729_v18, %v612_v19  ;;  %v1022_v18 = vsel %vm1017_vm9, %v1009_v15, 0  ;;  %v1087_v19 = vsel %vm1017_vm9, %v1080_v16, 0  ;;  %v1054_v16 = vld [vmem:[%s11614_s3 + $0x10] sm:$0x3] }
 0x279   :  { %v732_v21 = vpack.c.bf16 %v731_v20, %v731_v20  ;;  %v8823_v20 = vld [vmem:[%s11619_s8 + $0x10] sm:$0xf] }
 0x27b   :  { %8805 = vmatmul.msk.bf16.vlgmr.msrb.gmra.mxu2 %vm765_vm3, %v732_v21  ;;  %v11077_v21 = vld [vmem:[%s11619_s8 + $0x14] sm:$0xf0]  ;;  %vm3360_vm3 = vcmask 195584  }
 0x27c   :  { %946 = vmatpush.msrb.mxu2 %v853_v42 }
 0x2fe   :  { %v778_v23 = vpop.f32.mrf.mxu2 }
 0x2ff   :  { %805 = vmatpush.msrb.mxu3 %v778_v23  ;;  %v8824_v23 = vor.u32 %v11077_v21, %v8823_v20  ;;  %v11084_v21 = vld [vmem:[%s11619_s8 + $0x64] sm:$0xf] }
 0x300   :  { %8806 = vmatmul.msk.f32.vlgmr.msrb.gmra.mxu3 %vm260_vm2, %v782_v22  ;;  %v11076_v22 = vld [vmem:[%s11619_s8 + $0x14] sm:$0xf] }
 0x301   :  { %843 = vmatpush.msra.mxu3 %v828_v26  ;;  %v11081_v26 = vld [vmem:[%s11619_s8 + $0x3c] sm:$0xf0]  ;;  %1030 = vmatpush.bf16.msrb.mxu0 %v8824_v23 }
 0x303   :  { %844 = vmatpush.msra.mxu3 %v827_v27 }
 0x305   :  { %845 = vmatpush.msra.mxu3 %v826_v28 }
 0x306   :  { %v780_v25 = vpop.f32.mrf.mxu2 }
 0x307   :  { %846 = vmatpush.msra.mxu3 %v825_v29  ;;  %v8846_v25 = vld [vmem:[%s11619_s8 + $0x38] sm:$0xf]  ;;  %v8815_v29 = vld [vmem:[%s11619_s8] sm:$0xf] }
 0x308   :  { %8807 = vmatmul.msk.f32.gmra.mxu3 %vm260_vm2, %v783_v24  ;;  %v8825_v24 = vld [vmem:[%s11619_s8 + $0x18] sm:$0xf0]  ;;  %v8847_v28 = vor.u32 %v11081_v26, %v8846_v25 }
 0x309   :  { %847 = vmatpush.msra.mxu3 %v824_v30  ;;  %v8828_v27 = vor.u32 %v11076_v22, %v8825_v24  ;;  %v11075_v30 = vld [vmem:[%s11619_s8 + $0x4] sm:$0xf0]  ;;  %v8890_v22 = vld [vmem:[%s11619_s8 + $0x68] sm:$0xf0]  ;;  %v11082_v24 = vld [vmem:[%s11619_s8 + $0x54] sm:$0xf] }
 0x30a   :  { %v8893_v23 = vor.u32 %v11084_v21, %v8890_v22  ;;  %v8882_v25 = vld [vmem:[%s11619_s8 + $0x58] sm:$0xf0] }
 0x30b   :  { %973 = vmatpush.msrb.mxu3 %v853_v42  ;;  %v8885_v26 = vor.u32 %v11082_v24, %v8882_v25 }
 0x383   :  { %v807_v31 = vpop.f32.mrf.mxu3 }
 0x384   :  { %v814_v33 = vsel %vm813_vm4, %v807_v31, 0.0 }
 0x38b   :  { %v810_v32 = vpop.f32.mrf.mxu3 }
 0x38c   :  { %v816_v34 = vsel %vm815_vm5, %v810_v32, 0.0 }
 0x38d   :  { %v817_v35 = vadd.f32 %v816_v34, %v814_v33  ;;  %v8817_v33 = vld [vmem:[%s11619_s8 + $0x8] sm:$0xf0]  ;;  %v8838_v34 = vld [vmem:[%s11619_s8 + $0x28] sm:$0xf] }
 0x38f   :  { %v818_v36 = vrot.slane %v817_v35, 4 }
 0x391   :  { %v819_v37 = vadd.f32 %v818_v36, %v817_v35  ;;  %v11079_v35 = vld [vmem:[%s11619_s8 + $0x2c] sm:$0xf0] }
 0x393   :  { %v820_v38 = vrot.slane %v819_v37, 2 }
 0x395   :  { %v821_v39 = vadd.f32 %v820_v38, %v819_v37  ;;  %v8839_v37 = vor.u32 %v11079_v35, %v8838_v34  ;;  %v1075_v38 = vunpack.c.h.b16 %v8835_v10  ;;  %v8880_v10 = vld [vmem:[%s11619_s8 + $0x50] sm:$0xf] }
 0x396   :  { %v8881_v14 = vor.u32 %v11083_v11, %v8880_v10  ;;  %v8896_v35 = vld [vmem:[%s11614_s3 + $0x30] sm:$0xff] }
 0x397   :  { %v822_v40 = vrot.slane %v821_v39, 1 }
 0x399   :  { %v823_v41 = vadd.f32 %v822_v40, %v821_v39  ;;  %v1081_v39 = vpack.c.b16 %v1075_v38, %v1075_v38  ;;  %v11080_v40 = vld [vmem:[%s11619_s8 + $0x3c] sm:$0xf] }
 0x39b   :  { %8808 = vmatmul.msk.f32.vlgmr.msra.gmra.mxu3 %vm813_vm4, %v823_v41  ;;  %v8848_v41 = vld [vmem:[%s11619_s8 + $0x40] sm:$0xf0]  ;;  %v1090_v42 = vsel %vm1017_vm9, %v1081_v39, 0  ;;  %v8898_v39 = vld [vmem:[%s11614_s3 + $0x40] sm:$0x3] }
 0x39c   :  { %1043 = vmatpush.bf16.msra.mxu3 %v1022_v18 }
 0x3a0   :  { %1044 = vmatpush.bf16.msra.mxu3 %v8828_v27 }
 0x3a3   :  { %8812 = vmatmul.msk.f32.vlgmr.msrb.gmra.mxu3 %vm260_vm2, %v954_v60  ;;  %v8877_v60 = vld [vmem:[%s11619_s8 + $0x70] sm:$0xff] }
 0x3a4   :  { %v1279_v15 = vunpack.c.h.b16 %v8877_v60 }
 0x3a6   :  { %v1285_v17 = vpack.c.b16 %v1279_v15, %v1279_v15 }
 0x3a8   :  { %v1294_v20 = vsel %vm1017_vm9, %v1285_v17, 0 }
 0x41e   :  { %v849_v43 = vpop.f32.mrf.mxu3 }
 0x41f   :  { %v852_v44 = vmul.f32 0.02, %v849_v43  ;;  %v8851_v43 = vor.u32 %v11080_v40, %v8848_v41  ;;  %v1438_v40 = vld [vmem:[%s11689_s14 + $0x78] sm:$0xff]  ;;  %v1437_v41 = vld [vmem:[%s11689_s14 + $0x70] sm:$0xff] }
 0x421   :  { %8809 = vmatmul.msk.f32.vlgmr.msra.gmra.mxu2 %vm260_vm2, %v852_v44  ;;  %v11078_v44 = vld [vmem:[%s11619_s8 + $0x2c] sm:$0xf] }
 0x422   :  { %1097 = vmatpush.bf16.msra.mxu2 %v1087_v19  ;;  %v8856_v19 = vld [vmem:[%s11614_s3 + $0x28] sm:$0x3] }
 0x426   :  { %1098 = vmatpush.bf16.msra.mxu2 %v8847_v28 }
 0x42a   :  { %1099 = vmatpush.bf16.msra.mxu2 %v8839_v37  ;;  %v8897_v37 = vld [vmem:[%s11614_s3 + $0x38] sm:$0xff] }
 0x4a4   :  { %v874_v45 = vpop.f32.mrf.mxu2 }
 0x4a5   :  { %v877_v46 = vperm.slane %v874_v45, 0  ;;  %v8840_v45 = vld [vmem:[%s11619_s8 + $0x30] sm:$0xf0] }
 0x4a7   :  { %v11940_v47 = vsub.f32 %v807_v31, %v877_v46  ;;  %v11942_v48 = vsub.f32 %v810_v32, %v877_v46  ;;  %v11074_v31 = vld [vmem:[%s11619_s8 + $0x4] sm:$0xf]  ;;  %v8816_v32 = vor.u32 %v11075_v30, %v8815_v29  ;;  %v8843_v46 = vor.u32 %v11078_v44, %v8840_v45  ;;  %v1434_v45 = vld [vmem:[%s11689_s14 + $0x58] sm:$0xff] }
 0x4a8   :  { %v8820_v36 = vor.u32 %v11074_v31, %v8817_v33  ;;  %v1435_v44 = vld [vmem:[%s11689_s14 + $0x60] sm:$0xff] }
 0x4a9   :  { %v880_v49 = vmul.f32 %v11940_v47, %v11940_v47  ;;  %v881_v50 = vmul.f32 %v11942_v48, %v11942_v48  ;;  %1031 = vmatpush.bf16.msrb.mxu0 %v8816_v32 }
 0x4aa   :  { %1045 = vmatpush.bf16.msra.mxu3 %v8820_v36 }
 0x4ab   :  { %v882_v51 = vsel %vm813_vm4, %v880_v49, 0.0  ;;  %v883_v52 = vsel %vm815_vm5, %v881_v50, 0.0  ;;  %v975_v49 = vpop.f32.mrf.mxu3 }
 0x4ac   :  { %v884_v53 = vadd.f32 %v883_v52, %v882_v51  ;;  %v978_v52 = vperm.slane %v975_v49, 0  ;;  %v1432_v49 = vld [vmem:[%s11689_s14 + $0x48] sm:$0xff] }
 0x4ae   :  { %v885_v54 = vrot.slane %v884_v53, 4  ;;  %1111 = vmatpush.bf16.msrb.mxu3 %v1090_v42  ;;  %v1436_v42 = vld [vmem:[%s11689_s14 + $0x68] sm:$0xff] }
 0x4b0   :  { %v886_v55 = vadd.f32 %v885_v54, %v884_v53 }
 0x4b2   :  { %v887_v56 = vrot.slane %v886_v55, 2  ;;  %1112 = vmatpush.bf16.msrb.mxu3 %v8851_v43 }
 0x4b4   :  { %v888_v57 = vadd.f32 %v887_v56, %v886_v55 }
 0x4b6   :  { %v889_v58 = vrot.slane %v888_v57, 1  ;;  %1113 = vmatpush.bf16.msrb.mxu3 %v8843_v46  ;;  %v1433_v46 = vld [vmem:[%s11689_s14 + $0x50] sm:$0xff] }
 0x4b8   :  { %v890_v59 = vadd.f32 %v889_v58, %v888_v57 }
 0x4ba   :  { %8810 = vmatmul.msk.f32.vlgmr.msrb.gmra.mxu1 %vm813_vm4, %v890_v59 }
 0x537   :  { %v911_v61 = vpop.f32.mrf.mxu1 }
 0x538   :  { %v914_v62 = vmul.f32 0.02, %v911_v61 }
 0x53a   :  { %v916_v63 = vadd.f32 1e-05, %v914_v62 }
 0x53c   :  { %11486 = vrsqrt.f32 %v916_v63  ;;  %vm923_vm7 = vweird.f32 %v916_v63 }
 0x542   :  { %v11487_v0 = vpop.eup %11486 }
 0x543   :  { %v918_v1 = vmul.f32 %v11487_v0, %v916_v63  ;;  %vm924_vm6 = vweird.f32 %v11487_v0  ;;  %v1052_v63 = vld [vmem:[%s11614_s3] sm:$0xff] }
 0x544   :  { %vm925_vm8 = vmor %vm923_vm7, %vm924_vm6 }
 0x545   :  { %v919_v2 = vmul.f32 %v11487_v0, %v918_v1 }
 0x547   :  { %v920_v4 = vmul.f32 0.5, %v919_v2 }
 0x549   :  { %v921_v5 = vsub.f32 1.5, %v920_v4 }
 0x54b   :  { %v922_v3 = vmul.f32 %v11487_v0, %v921_v5  ;;  %v8854_v5 = vld [vmem:[%s11614_s3 + $0x18] sm:$0xff] }
 0x54d   :  { %v926_v7 = vsel %vm925_vm8, %v11487_v0, %v922_v3  ;;  %v1278_v0 = vunpack.c.l.b16 %v8877_v60  ;;  %v8888_v3 = vld [vmem:[%s11619_s8 + $0x60] sm:$0xf]  ;;  %vm5662_vm8 = vcmask 277504  }
 0x54e   :  { %v927_v8 = vmul.f32 %v926_v7, %v915_v6  ;;  %v11085_v7 = vld [vmem:[%s11619_s8 + $0x64] sm:$0xf0]  ;;  %s15317_s8 = sld [smem:[#allocation14_spill]] }
 0x54f   :  { %v1284_v1 = vpack.c.b16 %v1278_v0, %v1278_v0  ;;  %v8889_v9 = vor.u32 %v11085_v7, %v8888_v3  ;;  %v1439_v3 = vld [vmem:[%s11689_s14 + $0x80] sm:$0xff] }
 0x550   :  { %8811 = vmatmul.msk.f32.vlgmr.msrb.gmra.mxu2 %vm260_vm2, %v927_v8  ;;  %v1053_v8 = vld [vmem:[%s11614_s3 + $0x8] sm:$0xff]  ;;  %s15316_s3 = sld [smem:[#allocation8_spill]] }
 0x551   :  { %v1291_v6 = vsel %vm1017_vm9, %v1284_v1, 0 }
 0x5d3   :  { %v948_v50 = vpop.f32.mrf.mxu2 }
 0x5d4   :  { %v951_v51 = vperm.slane %v948_v50, 0 }
 0x5d6   :  { %v952_v53 = vmul.f32 %v951_v51, %v11940_v47  ;;  %v953_v54 = vmul.f32 %v951_v51, %v11942_v48  ;;  %v1431_v51 = vld [vmem:[%s11689_s14 + $0x40] sm:$0xff] }
 0x5d8   :  { %v979_v55 = vadd.f32 %v978_v52, %v952_v53  ;;  %v980_v56 = vadd.f32 %v978_v52, %v953_v54  ;;  %v1430_v52 = vld [vmem:[%s11689_s14 + $0x38] sm:$0xff]  ;;  %v1429_v54 = vld [vmem:[%s11689_s14 + $0x30] sm:$0xff] }
 0x5da   :  { %v981_v57 = vmax.f32 %v979_v55, 0.0  ;;  %v982_v58 = vmax.f32 %v980_v56, 0.0  ;;  %v1428_v55 = vld [vmem:[%s11689_s14 + $0x28] sm:$0xff] }
 0x5dc   :  { %v11979_v59 = vpack.c.bf16 %v982_v58, %v981_v57  ;;  %v1427_v57 = vld [vmem:[%s11689_s14 + $0x20] sm:$0xff]  ;;  %v1426_v58 = vld [vmem:[%s11689_s14 + $0x18] sm:$0xff] }
 0x5de   :  { %8829 = vmatmul.msk.bf16.vlgmr.msrb.gmra.mxu0 %vm813_vm4, %v11979_v59  ;;  %8830 = vmatmul.msk.bf16.vlgmr.msra.gmra.mxu3 %vm813_vm4, %v11979_v59 }
 0x5df   :  { %8852 = vmatmul.msk.bf16.vlgmr.msra.gmra.mxu2 %vm813_vm4, %v11979_v59 }
 0x5ee   :  { %8853 = vmatmul.msk.bf16.vlgmr.msrb.gmra.mxu3 %vm813_vm4, %v11979_v59 }
 0x65b   :  { %v1033_v47 = vpop.f32.mrf.mxu0 }
 0x661   :  { %v1047_v48 = vpop.f32.mrf.mxu3 }
 0x662   :  { %v1101_v61 = vpop.f32.mrf.mxu2 }
 0x663   :  { %v1035_v62 = vpop.f32.mrf.mxu0 }
 0x664   :  { %8865 = vmatpush.msk.msrb.mxu2 %vm226_vm0, %v1035_v62 }
 0x666   :  { %1222 = vmatpush.msrb.mxu2 %v1033_v47  ;;  %v1424_v47 = vld [vmem:[%s11689_s14 + $0x8] sm:$0xff] }
 0x667   :  { %8866 = vmatmul.msk.f32.vlgmr.msrb.gmra.mxu2 %vm1124_vm10, %v1052_v63 }
 0x669   :  { %v1049_v2 = vpop.f32.mrf.mxu3 }
 0x66a   :  { %v1103_v4 = vpop.f32.mrf.mxu2  ;;  %8869 = vmatpush.msk.msra.mxu3 %vm226_vm0, %v1049_v2 }
 0x66b   :  { %8857 = vmatpush.msk.msra.mxu0 %vm226_vm0, %v1103_v4  ;;  %v1440_v4 = vld [vmem:[%s11689_s14 + $0x88] sm:$0xff] }
 0x66c   :  { %1248 = vmatpush.msra.mxu3 %v1047_v48 }
 0x66d   :  { %1155 = vmatpush.msra.mxu0 %v1101_v61  ;;  %8870 = vmatmul.msk.f32.vlgmr.msra.gmra.mxu3 %vm1124_vm10, %v1052_v63  ;;  %v1423_v61 = vld [vmem:[%s11689_s14] sm:$0xff] }
 0x66e   :  { %8858 = vmatmul.msk.f32.vlgmr.msra.gmra.mxu0 %vm1124_vm10, %v8854_v5 }
 0x66f   :  { %1301 = vmatpush.bf16.msrb.mxu0 %v1291_v6  ;;  %8867 = vmatmul.msk.f32.gmra.mxu2 %vm1124_vm10, %v1053_v8 }
 0x671   :  { %v1115_v12 = vpop.f32.mrf.mxu3 }
 0x673   :  { %1302 = vmatpush.bf16.msrb.mxu0 %v8889_v9 }
 0x675   :  { %8871 = vmatmul.msk.f32.gmra.mxu3 %vm1124_vm10, %v1053_v8 }
 0x676   :  { %8859 = vmatmul.msk.f32.gmra.mxu0 %vm1124_vm10, %v8855_v13 }
 0x677   :  { %1303 = vmatpush.bf16.msrb.mxu0 %v8881_v14  ;;  %8868 = vmatmul.msk.f32.gmra.mxu2 %vm1124_vm10, %v1054_v16 }
 0x679   :  { %v1117_v18 = vpop.f32.mrf.mxu3 }
 0x67a   :  { %8861 = vmatpush.msk.msra.mxu1 %vm226_vm0, %v1117_v18 }
 0x67b   :  { %1444 = vmatpush.msra.mxu0 %v1438_v40 }
 0x67c   :  { %1181 = vmatpush.msra.mxu1 %v1115_v12 }
 0x67d   :  { %8862 = vmatmul.msk.f32.vlgmr.msra.gmra.mxu1 %vm1124_vm10, %v8854_v5  ;;  %8872 = vmatmul.msk.f32.gmra.mxu3 %vm1124_vm10, %v1054_v16 }
 0x67e   :  { %8860 = vmatmul.msk.f32.gmra.mxu0 %vm1124_vm10, %v8856_v19  ;;  %1315 = vmatpush.bf16.msrb.mxu1 %v1294_v20 }
 0x67f   :  { %1445 = vmatpush.msra.mxu0 %v1437_v41 }
 0x681   :  { %1446 = vmatpush.msra.mxu0 %v1436_v42 }
 0x682   :  { %1316 = vmatpush.bf16.msrb.mxu1 %v8893_v23 }
 0x683   :  { %1447 = vmatpush.msra.mxu0 %v1435_v44 }
 0x685   :  { %8863 = vmatmul.msk.f32.gmra.mxu1 %vm1124_vm10, %v8855_v13  ;;  %1448 = vmatpush.msra.mxu0 %v1434_v45 }
 0x686   :  { %8894 = vmatmul.msk.bf16.vlgmr.msrb.gmra.mxu0 %vm813_vm4, %v11979_v59  ;;  %1317 = vmatpush.bf16.msrb.mxu1 %v8885_v26 }
 0x687   :  { %1449 = vmatpush.msra.mxu0 %v1433_v46 }
 0x689   :  { %1450 = vmatpush.msra.mxu0 %v1432_v49 }
 0x68a   :  { %1478 = vmatpush.msra.mxu1 %v1440_v4 }
 0x68b   :  { %1451 = vmatpush.msra.mxu0 %v1431_v51 }
 0x68c   :  { %1479 = vmatpush.msra.mxu1 %v1439_v3 }
 0x68d   :  { %8864 = vmatmul.msk.f32.gmra.mxu1 %vm1124_vm10, %v8856_v19  ;;  %1452 = vmatpush.msra.mxu0 %v1430_v52 }
 0x68f   :  { %1453 = vmatpush.msra.mxu0 %v1429_v54 }
 0x691   :  { %1454 = vmatpush.msra.mxu0 %v1428_v55 }
 0x693   :  { %1455 = vmatpush.msra.mxu0 %v1427_v57 }
 0x695   :  { %8895 = vmatmul.msk.bf16.vlgmr.msrb.gmra.mxu1 %vm813_vm4, %v11979_v59  ;;  %1456 = vmatpush.msra.mxu0 %v1426_v58  ;;  %v1425_v59 = vld [vmem:[%s11689_s14 + $0x10] sm:$0xff]  ;;  %vm3368_vm4 = vcmask 189440   ;;  %s15328_s14 = sld [smem:[#allocation7_spill]] }
 0x697   :  { %1457 = vmatpush.msra.mxu0 %v1425_v59 }
 0x699   :  { %1458 = vmatpush.msra.mxu0 %v1424_v47 }
 0x69b   :  { %1459 = vmatpush.msra.mxu0 %v1423_v61 }
 0x6ea   :  { %v1224_v43 = vpop.f32.mrf.mxu2 }
 0x6eb   :  { %v12026_v27 = vpop.f32.mrf.mxu0 }
 0x6ec   :  { %v1225_v1 = vadd.f32 %v1224_v43, %v12026_v27 }
 0x6f0   :  { %v1250_v53 = vpop.f32.mrf.mxu3 }
 0x6f2   :  { %v1227_v50 = vpop.f32.mrf.mxu2 }
 0x6f3   :  { %v12028_v28 = vpop.f32.mrf.mxu0 }
 0x6f4   :  { %v1228_v0 = vadd.f32 %v1227_v50, %v12028_v28 }
 0x6f8   :  { %v1253_v48 = vpop.f32.mrf.mxu3 }
 0x6fa   :  { %v12030_v29 = vpop.f32.mrf.mxu1  ;;  %v1230_v56 = vpop.f32.mrf.mxu2 }
 0x6fb   :  { %v12032_v30 = vpop.f32.mrf.mxu0  ;;  %v1251_v17 = vadd.f32 %v1250_v53, %v12030_v29 }
 0x6fc   :  { %v1231_v5 = vadd.f32 %v1230_v56, %v12032_v30 }
 0x700   :  { %v1256_v62 = vpop.f32.mrf.mxu3 }
 0x702   :  { %v12034_v31 = vpop.f32.mrf.mxu1 }
 0x703   :  { %v1305_v32 = vpop.f32.mrf.mxu0  ;;  %v1254_v15 = vadd.f32 %v1253_v48, %v12034_v31 }
 0x70a   :  { %v12036_v33 = vpop.f32.mrf.mxu1 }
 0x70b   :  { %v1307_v34 = vpop.f32.mrf.mxu0  ;;  %v1257_v22 = vadd.f32 %v1256_v62, %v12036_v33 }
 0x70c   :  { %8899 = vmatpush.msk.msra.mxu2 %vm226_vm0, %v1307_v34 }
 0x70e   :  { %1358 = vmatpush.msra.mxu2 %v1305_v32 }
 0x70f   :  { %8900 = vmatmul.msk.f32.vlgmr.msra.gmra.mxu2 %vm1124_vm10, %v8896_v35 }
 0x712   :  { %v1319_v36 = vpop.f32.mrf.mxu1 }
 0x717   :  { %8901 = vmatmul.msk.f32.gmra.mxu2 %vm1124_vm10, %v8897_v37 }
 0x71a   :  { %v1321_v38 = vpop.f32.mrf.mxu1 }
 0x71b   :  { %8903 = vmatpush.msk.msrb.mxu3 %vm226_vm0, %v1321_v38  ;;  %v1487_v38 = vld [vmem:[%s15282_s0 + $0x10] sm:$0xff] }
 0x71c   :  { %1506 = vmatpush.msrb.mxu1 %v1487_v38 }
 0x71d   :  { %1384 = vmatpush.msrb.mxu3 %v1319_v36 }
 0x71e   :  { %8904 = vmatmul.msk.f32.vlgmr.msrb.gmra.mxu3 %vm1124_vm10, %v8896_v35 }
 0x71f   :  { %8902 = vmatmul.msk.f32.gmra.mxu2 %vm1124_vm10, %v8898_v39  ;;  %1569 = vmatpush.msra.mxu3 %v1438_v40  ;;  %v1485_v40 = vld [vmem:[%s15282_s0] sm:$0xff] }
 0x720   :  { %1507 = vmatpush.msrb.mxu1 %v1485_v40 }
 0x721   :  { %1570 = vmatpush.msra.mxu3 %v1437_v41  ;;  %v1486_v41 = vld [vmem:[%s15282_s0 + $0x8] sm:$0xff] }
 0x723   :  { %1571 = vmatpush.msra.mxu3 %v1436_v42 }
 0x725   :  { %1572 = vmatpush.msra.mxu3 %v1435_v44 }
 0x726   :  { %8905 = vmatmul.msk.f32.gmra.mxu3 %vm1124_vm10, %v8897_v37 }
 0x727   :  { %1573 = vmatpush.msra.mxu3 %v1434_v45 }
 0x729   :  { %1574 = vmatpush.msra.mxu3 %v1433_v46 }
 0x72b   :  { %1575 = vmatpush.msra.mxu3 %v1432_v49 }
 0x72d   :  { %1576 = vmatpush.msra.mxu3 %v1431_v51 }
 0x72e   :  { %8906 = vmatmul.msk.f32.gmra.mxu3 %vm1124_vm10, %v8898_v39  ;;  %v1488_v39 = vld [vmem:[%s15282_s0 + $0x18] sm:$0xff]  ;;  %vm7045_vm10 = vcmask 58368  }
 0x72f   :  { %1577 = vmatpush.msra.mxu3 %v1430_v52  ;;  %1526 = vmatpush.msrb.mxu2 %v1488_v39 }
 0x730   :  { %1660 = vmatpush.msrb.mxu0 %v1488_v39 }
 0x731   :  { %1578 = vmatpush.msra.mxu3 %v1429_v54  ;;  %1527 = vmatpush.msrb.mxu2 %v1486_v41 }
 0x732   :  { %1661 = vmatpush.msrb.mxu0 %v1486_v41 }
 0x733   :  { %1579 = vmatpush.msra.mxu3 %v1428_v55  ;;  %1640 = vmatpush.msra.mxu2 %v1487_v38 }
 0x735   :  { %1580 = vmatpush.msra.mxu3 %v1427_v57  ;;  %1641 = vmatpush.msra.mxu2 %v1485_v40 }
 0x737   :  { %1581 = vmatpush.msra.mxu3 %v1426_v58 }
 0x739   :  { %1582 = vmatpush.msra.mxu3 %v1425_v59 }
 0x73b   :  { %1583 = vmatpush.msra.mxu3 %v1424_v47 }
 0x73d   :  { %1584 = vmatpush.msra.mxu3 %v1423_v61 }
 0x792   :  { %v1360_v60 = vpop.f32.mrf.mxu2 }
 0x793   :  { %v1395_v7 = vadd.f32 %v1360_v60, %v1225_v1 }
 0x79a   :  { %v1363_v63 = vpop.f32.mrf.mxu2 }
 0x79b   :  { %v12067_v2 = vadd.f32 %v1363_v63, %v1228_v0 }
 0x79d   :  { %v1401_v10 = vadd.f32 %v12067_v2, %v1395_v7 }
 0x7a1   :  { %v1386_v6 = vpop.f32.mrf.mxu3 }
 0x7a2   :  { %v1366_v8 = vpop.f32.mrf.mxu2  ;;  %v1396_v21 = vadd.f32 %v1386_v6, %v1251_v17 }
 0x7a3   :  { %v1399_v9 = vadd.f32 %v1366_v8, %v1231_v5 }
 0x7a4   :  { %v1411_v26 = vsel %vm1410_vm11, %v1396_v21, 0.0 }
 0x7a5   :  { %v1402_v11 = vsel %vm226_vm0, %v1399_v9, 0.0 }
 0x7a6   :  { %v1403_v12 = vadd.f32 %v1402_v11, %v1401_v10 }
 0x7a8   :  { %v1404_v13 = vrot.slane %v1403_v12, 4 }
 0x7a9   :  { %v1389_v14 = vpop.f32.mrf.mxu3 }
 0x7aa   :  { %v1405_v16 = vadd.f32 %v1404_v13, %v1403_v12  ;;  %v1398_v19 = vadd.f32 %v1389_v14, %v1254_v15 }
 0x7ac   :  { %v1406_v18 = vrot.slane %v1405_v16, 2  ;;  %v1412_v23 = vsel %vm1410_vm11, %v1398_v19, 0.0 }
 0x7ad   :  { %v1413_v29 = vadd.f32 %v1412_v23, %v1411_v26  ;;  %v9029_v23 = vld [vmem:[%s15284_s9 + $0xe0] sm:$0xf]  ;;  %v11114_v26 = vld [vmem:[%s15284_s9 + $0xe4] sm:$0xf] }
 0x7ae   :  { %v1407_v20 = vadd.f32 %v1406_v18, %v1405_v16  ;;  %v1674_v18 = vld [vmem:[%s15283_s5] sm:$0x1] }
 0x7b0   :  { %v1408_v24 = vrot.slane %v1407_v20, 1 }
 0x7b1   :  { %v1392_v25 = vpop.f32.mrf.mxu3 }
 0x7b2   :  { %v1400_v27 = vadd.f32 %v1392_v25, %v1257_v22  ;;  %v1409_v28 = vadd.f32 %v1408_v24, %v1407_v20  ;;  %v11116_v24 = vld [vmem:[%s15284_s9 + $0xec] sm:$0xf0] }
 0x7b3   :  { %v9030_v25 = vor.u32 %v11116_v24, %v9029_v23  ;;  %v11115_v23 = vld [vmem:[%s15284_s9 + $0xec] sm:$0xf]  ;;  %v9039_v24 = vld [vmem:[%s15284_s9 + $0xf8] sm:$0xf0] }
 0x7b4   :  { %v1415_v30 = vsel %vm1414_vm12, %v1400_v27, 0.0  ;;  %1460 = vmatmul.f32.vlgmr.msra.gmra.mxu0 %v1409_v28  ;;  %v9013_v28 = vld [vmem:[%s15284_s9 + $0xc0] sm:$0xf] }
 0x7b5   :  { %v1416_v31 = vadd.f32 %v1415_v30, %v1413_v29  ;;  %1958 = vmatpush.bf16.msrb.mxu3 %v9030_v25  ;;  %v9042_v25 = vor.u32 %v11115_v23, %v9039_v24 }
 0x7b7   :  { %v1417_v32 = vrot.slane %v1416_v31, 4 }
 0x7b9   :  { %v1418_v33 = vadd.f32 %v1417_v32, %v1416_v31  ;;  %v11112_v31 = vld [vmem:[%s15284_s9 + $0xcc] sm:$0xf0]  ;;  %v11110_v32 = vld [vmem:[%s15284_s9 + $0xc4] sm:$0xf] }
 0x7bb   :  { %v1419_v34 = vrot.slane %v1418_v33, 2 }
 0x7bd   :  { %v1420_v35 = vadd.f32 %v1419_v34, %v1418_v33  ;;  %v9014_v33 = vor.u32 %v11112_v31, %v9013_v28  ;;  %v9015_v34 = vld [vmem:[%s15284_s9 + $0xd0] sm:$0xf0]  ;;  %v11118_v28 = vld [vmem:[%s15284_s9 + $0x104] sm:$0xf] }
 0x7bf   :  { %v1421_v36 = vrot.slane %v1420_v35, 1  ;;  %1959 = vmatpush.bf16.msrb.mxu3 %v9014_v33  ;;  %v9023_v33 = vld [vmem:[%s15284_s9 + $0xd8] sm:$0xf0] }
 0x7c1   :  { %v1422_v37 = vadd.f32 %v1421_v36, %v1420_v35  ;;  %v9018_v35 = vor.u32 %v11110_v32, %v9015_v34  ;;  %v8997_v36 = vld [vmem:[%s15284_s9 + $0xa0] sm:$0xf]  ;;  %v11111_v32 = vld [vmem:[%s15284_s9 + $0xcc] sm:$0xf] }
 0x7c2   :  { %v9026_v34 = vor.u32 %v11111_v32, %v9023_v33 }
 0x7c3   :  { %8907 = vmatmul.msk.f32.vlgmr.msra.gmra.mxu1 %vm1410_vm11, %v1422_v37  ;;  %v11108_v37 = vld [vmem:[%s15284_s9 + $0xac] sm:$0xf0] }
 0x7c4   :  { %1603 = vmatpush.msra.mxu1 %v1440_v4 }
 0x7c6   :  { %1604 = vmatpush.msra.mxu1 %v1439_v3 }
 0x831   :  { %v1461_v42 = vpop.f32.mrf.mxu0 }
 0x840   :  { %v1481_v43 = vpop.f32.mrf.mxu1 }
 0x841   :  { %v1482_v44 = vadd.f32 %v1481_v43, %v1461_v42  ;;  %v8981_v42 = vld [vmem:[%s15284_s9 + $0x80] sm:$0xf]  ;;  %v11104_v43 = vld [vmem:[%s15284_s9 + $0x8c] sm:$0xf0] }
 0x843   :  { %v1484_v45 = vmul.f32 0.0061728396, %v1482_v44  ;;  %v11102_v44 = vld [vmem:[%s15284_s9 + $0x84] sm:$0xf] }
 0x845   :  { %8908 = vmatmul.msk.f32.vlgmr.msrb.gmra.mxu1 %vm1410_vm11, %v1484_v45  ;;  %8909 = vmatmul.msk.f32.vlgmr.msrb.gmra.mxu2 %vm1410_vm11, %v1484_v45  ;;  %v8983_v45 = vld [vmem:[%s15284_s9 + $0x90] sm:$0xf0] }
 0x846   :  { %1692 = vmatpush.msrb.mxu1 %v1487_v38  ;;  %1712 = vmatpush.msrb.mxu2 %v1488_v39  ;;  %v11106_v38 = vld [vmem:[%s15284_s9 + $0xa4] sm:$0xf]  ;;  %v8999_v39 = vld [vmem:[%s15284_s9 + $0xb0] sm:$0xf0] }
 0x848   :  { %1693 = vmatpush.msrb.mxu1 %v1485_v40  ;;  %1713 = vmatpush.msrb.mxu2 %v1486_v41  ;;  %v8998_v40 = vor.u32 %v11108_v37, %v8997_v36  ;;  %v9002_v41 = vor.u32 %v11106_v38, %v8999_v39  ;;  %v11117_v36 = vld [vmem:[%s15284_s9 + $0xf4] sm:$0xf0]  ;;  %v11107_v38 = vld [vmem:[%s15284_s9 + $0xac] sm:$0xf]  ;;  %v9007_v39 = vld [vmem:[%s15284_s9 + $0xb8] sm:$0xf0] }
 0x84a   :  { %1960 = vmatpush.bf16.msrb.mxu3 %v8998_v40  ;;  %v9021_v40 = vld [vmem:[%s15284_s9 + $0xc8] sm:$0xf] }
 0x8c2   :  { %v1509_v46 = vpop.f32.mrf.mxu1 }
 0x8c3   :  { %v1532_v49 = vperm.slane %v1509_v46, 0 }
 0x8c5   :  { %v12087_v50 = vsub.f32 %v1395_v7, %v1532_v49  ;;  %v12090_v51 = vsub.f32 %v12067_v2, %v1532_v49  ;;  %v12092_v52 = vsub.f32 %v1399_v9, %v1532_v49 }
 0x8c7   :  { %v1540_v53 = vmul.f32 %v12087_v50, %v12087_v50  ;;  %v1542_v54 = vmul.f32 %v12090_v51, %v12090_v51  ;;  %v1544_v55 = vmul.f32 %v12092_v52, %v12092_v52 }
 0x8c8   :  { %v1529_v56 = vpop.f32.mrf.mxu2 }
 0x8c9   :  { %v1546_v57 = vadd.f32 %v1542_v54, %v1540_v53  ;;  %v1547_v58 = vsel %vm226_vm0, %v1544_v55, 0.0  ;;  %v1533_v59 = vperm.slane %v1529_v56, 0  ;;  %v8982_v53 = vor.u32 %v11104_v43, %v8981_v42  ;;  %v11113_v42 = vld [vmem:[%s15284_s9 + $0xd4] sm:$0xf0]  ;;  %v11103_v43 = vld [vmem:[%s15284_s9 + $0x8c] sm:$0xf] }
 0x8ca   :  { %v8986_v54 = vor.u32 %v11102_v44, %v8983_v45  ;;  %v8991_v44 = vld [vmem:[%s15284_s9 + $0x98] sm:$0xf0]  ;;  %v9022_v45 = vor.u32 %v11113_v42, %v9021_v40  ;;  %v11146_v42 = vld [vmem:[%s15284_s9 + $0x1e4] sm:$0xf] }
 0x8cb   :  { %v1548_v47 = vadd.f32 %v1547_v58, %v1546_v57  ;;  %v12101_v48 = vsub.f32 %v1396_v21, %v1533_v59  ;;  %v12103_v60 = vsub.f32 %v1398_v19, %v1533_v59  ;;  %v12105_v61 = vsub.f32 %v1400_v27, %v1533_v59  ;;  %v9031_v27 = vld [vmem:[%s15284_s9 + $0xf0] sm:$0xf0]  ;;  %1961 = vmatpush.bf16.msrb.mxu3 %v8982_v53  ;;  %v1610_v58 = vld [vmem:[%s15285_s13] sm:$0x1] }
 0x8cc   :  { %v9034_v30 = vor.u32 %v11114_v26, %v9031_v27  ;;  %v9045_v26 = vld [vmem:[%s15284_s9 + $0x100] sm:$0xf]  ;;  %v11120_v27 = vld [vmem:[%s15284_s9 + $0x10c] sm:$0xf0]  ;;  %v8994_v53 = vor.u32 %v11103_v43, %v8991_v44  ;;  %v9203_v43 = vld [vmem:[%s15284_s9 + $0x1f0] sm:$0xf0] }
 0x8cd   :  { %v1549_v62 = vrot.slane %v1548_v47, 4  ;;  %v1541_v63 = vmul.f32 %v12101_v48, %v12101_v48  ;;  %v1543_v0 = vmul.f32 %v12103_v60, %v12103_v60  ;;  %v1545_v1 = vmul.f32 %v12105_v61, %v12105_v61 }
 0x8cf   :  { %v1555_v2 = vsel %vm1410_vm11, %v1541_v63, 0.0  ;;  %v1556_v4 = vsel %vm1410_vm11, %v1543_v0, 0.0  ;;  %v1550_v5 = vadd.f32 %v1549_v62, %v1548_v47  ;;  %v1558_v3 = vsel %vm1414_vm12, %v1545_v1, 0.0  ;;  %v8965_v63 = vld [vmem:[%s15284_s9 + $0x60] sm:$0xf] }
 0x8d0   :  { %v1557_v6 = vadd.f32 %v1556_v4, %v1555_v2  ;;  %v11100_v0 = vld [vmem:[%s15284_s9 + $0x6c] sm:$0xf0]  ;;  %v11098_v1 = vld [vmem:[%s15284_s9 + $0x64] sm:$0xf]  ;;  %v8967_v4 = vld [vmem:[%s15284_s9 + $0x70] sm:$0xf0] }
 0x8d1   :  { %v1551_v7 = vrot.slane %v1550_v5, 2  ;;  %v8966_v2 = vor.u32 %v11100_v0, %v8965_v63  ;;  %v8959_v63 = vld [vmem:[%s15284_s9 + $0x58] sm:$0xf0] }
 0x8d2   :  { %v1559_v8 = vadd.f32 %v1558_v3, %v1557_v6  ;;  %v8949_v6 = vld [vmem:[%s15284_s9 + $0x40] sm:$0xf]  ;;  %v11096_v3 = vld [vmem:[%s15284_s9 + $0x4c] sm:$0xf0] }
 0x8d3   :  { %v1552_v9 = vadd.f32 %v1551_v7, %v1550_v5  ;;  %v8970_v5 = vor.u32 %v11098_v1, %v8967_v4  ;;  %1962 = vmatpush.bf16.msrb.mxu3 %v8966_v2  ;;  %v11094_v7 = vld [vmem:[%s15284_s9 + $0x44] sm:$0xf]  ;;  %v8973_v4 = vld [vmem:[%s15284_s9 + $0x68] sm:$0xf] }
 0x8d4   :  { %v1560_v10 = vrot.slane %v1559_v8, 4 }
 0x8d5   :  { %v1553_v11 = vrot.slane %v1552_v9, 1 }
 0x8d6   :  { %v1561_v12 = vadd.f32 %v1560_v10, %v1559_v8  ;;  %v8950_v8 = vor.u32 %v11096_v3, %v8949_v6 }
 0x8d7   :  { %v1554_v13 = vadd.f32 %v1553_v11, %v1552_v9  ;;  %v8951_v9 = vld [vmem:[%s15284_s9 + $0x50] sm:$0xf0]  ;;  %v8933_v11 = vld [vmem:[%s15284_s9 + $0x20] sm:$0xf] }
 0x8d8   :  { %v1562_v14 = vrot.slane %v1561_v12, 2  ;;  %v8954_v10 = vor.u32 %v11094_v7, %v8951_v9  ;;  %1963 = vmatpush.bf16.msrb.mxu3 %v8950_v8  ;;  %v11091_v8 = vld [vmem:[%s15284_s9 + $0x2c] sm:$0xf]  ;;  %v8943_v9 = vld [vmem:[%s15284_s9 + $0x38] sm:$0xf0] }
 0x8d9   :  { %1585 = vmatmul.f32.vlgmr.msra.gmra.mxu3 %v1554_v13  ;;  %v11090_v13 = vld [vmem:[%s15284_s9 + $0x24] sm:$0xf] }
 0x8da   :  { %v1563_v15 = vadd.f32 %v1562_v14, %v1561_v12  ;;  %v11092_v12 = vld [vmem:[%s15284_s9 + $0x2c] sm:$0xf0] }
 0x8db   :  { %v8934_v14 = vor.u32 %v11092_v12, %v8933_v11  ;;  %v8946_v11 = vor.u32 %v11091_v8, %v8943_v9  ;;  %v8957_v12 = vld [vmem:[%s15284_s9 + $0x48] sm:$0xf] }
 0x8dc   :  { %v1564_v16 = vrot.slane %v1563_v15, 1 }
 0x8dd   :  { %1964 = vmatpush.bf16.msrb.mxu3 %v8934_v14  ;;  %v11087_v14 = vld [vmem:[%s15284_s9 + $0xc] sm:$0xf] }
 0x8de   :  { %v1565_v17 = vadd.f32 %v1564_v16, %v1563_v15  ;;  %v8935_v15 = vld [vmem:[%s15284_s9 + $0x30] sm:$0xf0] }
 0x8df   :  { %v8938_v16 = vor.u32 %v11090_v13, %v8935_v15  ;;  %v11097_v13 = vld [vmem:[%s15284_s9 + $0x54] sm:$0xf0] }
 0x8e0   :  { %8910 = vmatmul.msk.f32.vlgmr.msra.gmra.mxu1 %vm1410_vm11, %v1565_v17  ;;  %v8917_v17 = vld [vmem:[%s15284_s9] sm:$0xf] }
 0x8e1   :  { %1994 = vmatpush.bf16.msra.mxu1 %v9034_v30  ;;  %v9047_v30 = vld [vmem:[%s15284_s9 + $0x110] sm:$0xf0] }
 0x8e2   :  { %v9050_v31 = vor.u32 %v11118_v28, %v9047_v30 }
 0x8e5   :  { %1995 = vmatpush.bf16.msra.mxu1 %v9018_v35  ;;  %v9037_v35 = vld [vmem:[%s15284_s9 + $0xe8] sm:$0xf] }
 0x8e6   :  { %v9038_v37 = vor.u32 %v11117_v36, %v9037_v35  ;;  %v9219_v35 = vld [vmem:[%s15284_s9 + $0x210] sm:$0xf0] }
 0x8e8   :  { %8913 = vmatmul.msk.f32.vlgmr.msrb.gmra.mxu1 %vm1410_vm11, %v1674_v18 }
 0x8e9   :  { %1996 = vmatpush.bf16.msra.mxu1 %v9002_v41  ;;  %v9010_v41 = vor.u32 %v11107_v38, %v9007_v39  ;;  %v8925_v38 = vld [vmem:[%s15284_s9 + $0x8] sm:$0xf]  ;;  %v11089_v39 = vld [vmem:[%s15284_s9 + $0x14] sm:$0xf0] }
 0x8ea   :  { %v8926_v40 = vor.u32 %v11089_v39, %v8925_v38  ;;  %v11151_v38 = vld [vmem:[%s15284_s9 + $0x20c] sm:$0xf]  ;;  %v9227_v39 = vld [vmem:[%s15284_s9 + $0x218] sm:$0xf0] }
 0x8ed   :  { %1997 = vmatpush.bf16.msra.mxu1 %v8986_v54 }
 0x8f1   :  { %1998 = vmatpush.bf16.msra.mxu1 %v8970_v5  ;;  %v11101_v5 = vld [vmem:[%s15284_s9 + $0x74] sm:$0xf0] }
 0x8f2   :  { %v8974_v7 = vor.u32 %v11101_v5, %v8973_v4 }
 0x8f5   :  { %1999 = vmatpush.bf16.msra.mxu1 %v8954_v10 }
 0x8f9   :  { %2000 = vmatpush.bf16.msra.mxu1 %v8938_v16 }
 0x95c   :  { %v1586_v19 = vpop.f32.mrf.mxu3 }
 0x95d   :  { %v1606_v20 = vpop.f32.mrf.mxu1 }
 0x95e   :  { %v1607_v21 = vadd.f32 %v1606_v20, %v1586_v19  ;;  %v11086_v19 = vld [vmem:[%s15284_s9 + $0x4] sm:$0xf] }
 0x960   :  { %v1609_v22 = vmul.f32 0.0061728396, %v1607_v21  ;;  %v8919_v21 = vld [vmem:[%s15284_s9 + $0x10] sm:$0xf0] }
 0x962   :  { %v1611_v29 = vadd.f32 1e-05, %v1609_v22  ;;  %v8922_v22 = vor.u32 %v11086_v19, %v8919_v21  ;;  %v11119_v19 = vld [vmem:[%s15284_s9 + $0x10c] sm:$0xf] }
 0x964   :  { %11488 = vrsqrt.f32 %v1611_v29  ;;  %vm1618_vm14 = vweird.f32 %v1611_v29  ;;  %2001 = vmatpush.bf16.msra.mxu1 %v8922_v22 }
 0x965   :  { %v1695_v1 = vpop.f32.mrf.mxu1 }
 0x966   :  { %v1718_v3 = vperm.slane %v1695_v1, 0  ;;  %v11138_v1 = vld [vmem:[%s15284_s9 + $0x1a4] sm:$0xf] }
 0x96a   :  { %v11489_v46 = vpop.eup %11488 }
 0x96b   :  { %v1613_v49 = vmul.f32 %v11489_v46, %v1611_v29  ;;  %vm1619_vm13 = vweird.f32 %v11489_v46  ;;  %v9046_v29 = vor.u32 %v11120_v27, %v9045_v26  ;;  %v8941_v26 = vld [vmem:[%s15284_s9 + $0x28] sm:$0xf]  ;;  %v11093_v27 = vld [vmem:[%s15284_s9 + $0x34] sm:$0xf0] }
 0x96c   :  { %vm1620_vm15 = vmor %vm1618_vm14, %vm1619_vm13 }
 0x96d   :  { %v1614_v55 = vmul.f32 %v11489_v46, %v1613_v49  ;;  %1983 = vmatpush.bf16.msra.mxu0 %v9046_v29  ;;  %v11109_v49 = vld [vmem:[%s15284_s9 + $0xb4] sm:$0xf0]  ;;  %v8942_v29 = vor.u32 %v11093_v27, %v8941_v26  ;;  %v9137_v26 = vld [vmem:[%s15284_s9 + $0x160] sm:$0xf] }
 0x96f   :  { %v1615_v56 = vmul.f32 0.5, %v1614_v55  ;;  %v11099_v55 = vld [vmem:[%s15284_s9 + $0x6c] sm:$0xf] }
 0x971   :  { %v1616_v57 = vsub.f32 1.5, %v1615_v56  ;;  %v8975_v56 = vld [vmem:[%s15284_s9 + $0x78] sm:$0xf0] }
 0x973   :  { %v1617_v59 = vmul.f32 %v11489_v46, %v1616_v57  ;;  %v8978_v57 = vor.u32 %v11099_v55, %v8975_v56  ;;  %v9217_v55 = vld [vmem:[%s15284_s9 + $0x200] sm:$0xf]  ;;  %v11152_v56 = vld [vmem:[%s15284_s9 + $0x20c] sm:$0xf0] }
 0x975   :  { %v1621_v47 = vsel %vm1620_vm15, %v11489_v46, %v1617_v59  ;;  %v9005_v46 = vld [vmem:[%s15284_s9 + $0xa8] sm:$0xf]  ;;  %v11105_v59 = vld [vmem:[%s15284_s9 + $0x94] sm:$0xf0] }
 0x976   :  { %v1622_v62 = vmul.f32 %v1621_v47, %v1610_v58  ;;  %v9006_v54 = vor.u32 %v11109_v49, %v9005_v46  ;;  %v8989_v58 = vld [vmem:[%s15284_s9 + $0x88] sm:$0xf] }
 0x977   :  { %v8990_v47 = vor.u32 %v11105_v59, %v8989_v58  ;;  %v11142_v58 = vld [vmem:[%s15284_s9 + $0x1c4] sm:$0xf]  ;;  %v9187_v59 = vld [vmem:[%s15284_s9 + $0x1d0] sm:$0xf0] }
 0x978   :  { %8911 = vmatmul.msk.f32.vlgmr.msra.gmra.mxu2 %vm1410_vm11, %v1622_v62  ;;  %8912 = vmatmul.msk.f32.vlgmr.msrb.gmra.mxu0 %vm1410_vm11, %v1622_v62  ;;  %v11095_v62 = vld [vmem:[%s15284_s9 + $0x4c] sm:$0xf] }
 0x979   :  { %2019 = vmatpush.bf16.msra.mxu2 %v9050_v31  ;;  %2030 = vmatpush.bf16.msrb.mxu0 %v9038_v37  ;;  %v8962_v0 = vor.u32 %v11095_v62, %v8959_v63  ;;  %v9190_v62 = vor.u32 %v11142_v58, %v9187_v59  ;;  %v11148_v63 = vld [vmem:[%s15284_s9 + $0x1ec] sm:$0xf0]  ;;  %v9209_v58 = vld [vmem:[%s15284_s9 + $0x1e8] sm:$0xf] }
 0x97d   :  { %2031 = vmatpush.bf16.msrb.mxu0 %v9022_v45 }
 0x980   :  { %8914 = vmatmul.msk.f32.vlgmr.msrb.gmra.mxu2 %vm1410_vm11, %v1674_v18  ;;  %v11088_v18 = vld [vmem:[%s15284_s9 + $0xc] sm:$0xf0] }
 0x981   :  { %v8918_v20 = vor.u32 %v11088_v18, %v8917_v17  ;;  %2032 = vmatpush.bf16.msrb.mxu0 %v9006_v54  ;;  %v8958_v17 = vor.u32 %v11097_v13, %v8957_v12  ;;  %v8927_v18 = vld [vmem:[%s15284_s9 + $0x18] sm:$0xf0]  ;;  %v11134_v12 = vld [vmem:[%s15284_s9 + $0x184] sm:$0xf] }
 0x983   :  { %1965 = vmatpush.bf16.msrb.mxu3 %v8918_v20  ;;  %v9055_v20 = vld [vmem:[%s15284_s9 + $0x118] sm:$0xf0] }
 0x984   :  { %v9058_v21 = vor.u32 %v11119_v19, %v9055_v20 }
 0x985   :  { %2033 = vmatpush.bf16.msrb.mxu0 %v8990_v47  ;;  %v9201_v47 = vld [vmem:[%s15284_s9 + $0x1e0] sm:$0xf] }
 0x986   :  { %2091 = vmatpush.bf16.msrb.mxu1 %v9058_v21  ;;  %v9153_v21 = vld [vmem:[%s15284_s9 + $0x180] sm:$0xf] }
 0x987   :  { %2066 = vmatpush.bf16.msra.mxu3 %v9042_v25  ;;  %v8930_v25 = vor.u32 %v11087_v14, %v8927_v18  ;;  %v9169_v14 = vld [vmem:[%s15284_s9 + $0x1a0] sm:$0xf]  ;;  %v9139_v18 = vld [vmem:[%s15284_s9 + $0x170] sm:$0xf0] }
 0x989   :  { %2034 = vmatpush.bf16.msrb.mxu0 %v8974_v7 }
 0x98b   :  { %2067 = vmatpush.bf16.msra.mxu3 %v9026_v34  ;;  %v11150_v34 = vld [vmem:[%s15284_s9 + $0x204] sm:$0xf] }
 0x98d   :  { %2035 = vmatpush.bf16.msrb.mxu0 %v8958_v17 }
 0x98f   :  { %2068 = vmatpush.bf16.msra.mxu3 %v9010_v41  ;;  %v11121_v41 = vld [vmem:[%s15284_s9 + $0x114] sm:$0xf0] }
 0x991   :  { %2036 = vmatpush.bf16.msrb.mxu0 %v8942_v29  ;;  %v11154_v29 = vld [vmem:[%s15284_s9 + $0x224] sm:$0xf] }
 0x993   :  { %2069 = vmatpush.bf16.msra.mxu3 %v8994_v53  ;;  %v9206_v53 = vor.u32 %v11146_v42, %v9203_v43  ;;  %v11156_v43 = vld [vmem:[%s15284_s9 + $0x22c] sm:$0xf0] }
 0x995   :  { %2037 = vmatpush.bf16.msrb.mxu0 %v8926_v40  ;;  %v11124_v40 = vld [vmem:[%s15284_s9 + $0x12c] sm:$0xf0] }
 0x997   :  { %2070 = vmatpush.bf16.msra.mxu3 %v8978_v57 }
 0x99b   :  { %2071 = vmatpush.bf16.msra.mxu3 %v8962_v0  ;;  %v9202_v0 = vor.u32 %v11148_v63, %v9201_v47  ;;  %v11149_v47 = vld [vmem:[%s15284_s9 + $0x1f4] sm:$0xf0]  ;;  %v11139_v63 = vld [vmem:[%s15284_s9 + $0x1ac] sm:$0xf] }
 0x99f   :  { %2072 = vmatpush.bf16.msra.mxu3 %v8946_v11 }
 0x9a3   :  { %2073 = vmatpush.bf16.msra.mxu3 %v8930_v25  ;;  %v9123_v25 = vld [vmem:[%s15284_s9 + $0x150] sm:$0xf0] }
 0x9f5   :  { %v1663_v10 = vpop.f32.mrf.mxu0 }
 0x9f6   :  { %v1667_v22 = vperm.slane %v1663_v10, 0 }
 0x9f8   :  { %v1669_v30 = vmul.f32 %v1667_v22, %v12101_v48  ;;  %v1671_v31 = vmul.f32 %v1667_v22, %v12103_v60  ;;  %v9053_v48 = vld [vmem:[%s15284_s9 + $0x108] sm:$0xf]  ;;  %v9222_v60 = vor.u32 %v11150_v34, %v9219_v35  ;;  %v1673_v4 = vmul.f32 %v1667_v22, %v12105_v61  ;;  %v9155_v61 = vld [vmem:[%s15284_s9 + $0x190] sm:$0xf0]  ;;  %v11136_v22 = vld [vmem:[%s15284_s9 + $0x18c] sm:$0xf0] }
 0x9f9   :  { %v9054_v49 = vor.u32 %v11121_v41, %v9053_v48  ;;  %v9158_v13 = vor.u32 %v11134_v12, %v9155_v61  ;;  %v9121_v34 = vld [vmem:[%s15284_s9 + $0x140] sm:$0xf]  ;;  %v11128_v35 = vld [vmem:[%s15284_s9 + $0x14c] sm:$0xf0]  ;;  %v9230_v48 = vor.u32 %v11151_v38, %v9227_v39  ;;  %v9147_v61 = vld [vmem:[%s15284_s9 + $0x178] sm:$0xf0] }
 0x9fa   :  { %v9233_v41 = vld [vmem:[%s15284_s9 + $0x220] sm:$0xf] }
 0x9fb   :  { %v1643_v2 = vpop.f32.mrf.mxu2  ;;  %2055 = vmatpush.bf16.msrb.mxu2 %v9054_v49 }
 0x9fc   :  { %v1666_v6 = vperm.slane %v1643_v2, 0  ;;  %v9171_v2 = vld [vmem:[%s15284_s9 + $0x1b0] sm:$0xf0] }
 0x9fd   :  { %v9174_v8 = vor.u32 %v11138_v1, %v9171_v2  ;;  %v9193_v1 = vld [vmem:[%s15284_s9 + $0x1c8] sm:$0xf]  ;;  %v11145_v2 = vld [vmem:[%s15284_s9 + $0x1d4] sm:$0xf0] }
 0x9fe   :  { %v1668_v15 = vmul.f32 %v1666_v6, %v12087_v50  ;;  %v1670_v16 = vmul.f32 %v1666_v6, %v12090_v51  ;;  %v1672_v44 = vmul.f32 %v1666_v6, %v12092_v52  ;;  %v9218_v52 = vor.u32 %v11152_v56, %v9217_v55  ;;  %v9185_v6 = vld [vmem:[%s15284_s9 + $0x1c0] sm:$0xf]  ;;  %v11153_v55 = vld [vmem:[%s15284_s9 + $0x214] sm:$0xf0] }
 0xa00   :  { %v1720_v23 = vadd.f32 %v1718_v3, %v1668_v15  ;;  %v1722_v24 = vadd.f32 %v1718_v3, %v1670_v16  ;;  %v1724_v57 = vadd.f32 %v1718_v3, %v1672_v44  ;;  %v11144_v3 = vld [vmem:[%s15284_s9 + $0x1cc] sm:$0xf0]  ;;  %v11130_v16 = vld [vmem:[%s15284_s9 + $0x164] sm:$0xf]  ;;  %v11147_v44 = vld [vmem:[%s15284_s9 + $0x1ec] sm:$0xf] }
 0xa01   :  { %v9186_v9 = vor.u32 %v11144_v3, %v9185_v6  ;;  %v11140_v15 = vld [vmem:[%s15284_s9 + $0x1ac] sm:$0xf0]  ;;  %v9142_v19 = vor.u32 %v11130_v16, %v9139_v18  ;;  %v11135_v6 = vld [vmem:[%s15284_s9 + $0x18c] sm:$0xf]  ;;  %v9163_v3 = vld [vmem:[%s15284_s9 + $0x198] sm:$0xf0] }
 0xa02   :  { %v1726_v28 = vmax.f32 %v1720_v23, 0.0  ;;  %v1728_v50 = vmax.f32 %v1722_v24, 0.0  ;;  %v1730_v5 = vmax.f32 %v1724_v57, 0.0  ;;  %v9170_v17 = vor.u32 %v11140_v15, %v9169_v14  ;;  %v11126_v24 = vld [vmem:[%s15284_s9 + $0x144] sm:$0xf] }
 0xa03   :  { %v1715_v51 = vpop.f32.mrf.mxu2  ;;  %v9154_v23 = vor.u32 %v11136_v22, %v9153_v21  ;;  %v9126_v27 = vor.u32 %v11126_v24, %v9123_v25  ;;  %v11143_v57 = vld [vmem:[%s15284_s9 + $0x1cc] sm:$0xf]  ;;  %v9161_v14 = vld [vmem:[%s15284_s9 + $0x188] sm:$0xf]  ;;  %v11137_v15 = vld [vmem:[%s15284_s9 + $0x194] sm:$0xf0] }
 0xa04   :  { %v12195_v32 = vpack.c.bf16 %v1728_v50, %v1726_v28  ;;  %v1719_v33 = vperm.slane %v1715_v51, 0  ;;  %v12225_v10 = vpack.c.bf16 %v1730_v5, %v1730_v5  ;;  %v11132_v28 = vld [vmem:[%s15284_s9 + $0x16c] sm:$0xf0]  ;;  %v11122_v50 = vld [vmem:[%s15284_s9 + $0x124] sm:$0xf]  ;;  %v9194_v5 = vor.u32 %v11145_v2, %v9193_v1 }
 0xa05   :  { %v9107_v51 = vld [vmem:[%s15284_s9 + $0x130] sm:$0xf0]  ;;  %v9162_v16 = vor.u32 %v11137_v15, %v9161_v14  ;;  %v9131_v18 = vld [vmem:[%s15284_s9 + $0x158] sm:$0xf0]  ;;  %v11133_v22 = vld [vmem:[%s15284_s9 + $0x174] sm:$0xf0] }
 0xa06   :  { %v1721_v36 = vadd.f32 %v1719_v33, %v1669_v30  ;;  %v1723_v37 = vadd.f32 %v1719_v33, %v1671_v31  ;;  %1966 = vmatmul.bf16.vlgmr.msrb.gmra.mxu3 %v12195_v32  ;;  %2002 = vmatmul.bf16.vlgmr.msra.gmra.mxu1 %v12195_v32  ;;  %v1725_v7 = vadd.f32 %v1719_v33, %v1673_v4  ;;  %v9235_v30 = vld [vmem:[%s15284_s9 + $0x230] sm:$0xf0]  ;;  %v9115_v24 = vld [vmem:[%s15284_s9 + $0x138] sm:$0xf0]  ;;  %v11155_v25 = vld [vmem:[%s15284_s9 + $0x22c] sm:$0xf] }
 0xa07   :  { %2360 = vmatpush.bf16.msrb.mxu3 %v9222_v60  ;;  %v9138_v31 = vor.u32 %v11132_v28, %v9137_v26  ;;  %v9238_v33 = vor.u32 %v11154_v29, %v9235_v30  ;;  %v9105_v60 = vld [vmem:[%s15284_s9 + $0x120] sm:$0xf]  ;;  %v9243_v26 = vld [vmem:[%s15284_s9 + $0x238] sm:$0xf0] }
 0xa08   :  { %v1727_v45 = vmax.f32 %v1721_v36, 0.0  ;;  %v1729_v46 = vmax.f32 %v1723_v37, 0.0  ;;  %v1731_v11 = vmax.f32 %v1725_v7, 0.0  ;;  %v9110_v36 = vor.u32 %v11122_v50, %v9107_v51  ;;  %v9129_v50 = vld [vmem:[%s15284_s9 + $0x148] sm:$0xf] }
 0xa09   :  { %2385 = vmatpush.bf16.msra.mxu1 %v9238_v33  ;;  %v9122_v37 = vor.u32 %v11128_v35, %v9121_v34  ;;  %v9106_v42 = vor.u32 %v11124_v40, %v9105_v60  ;;  %v9166_v7 = vor.u32 %v11135_v6, %v9163_v3  ;;  %v9246_v28 = vor.u32 %v11155_v25, %v9243_v26  ;;  %v11129_v51 = vld [vmem:[%s15284_s9 + $0x154] sm:$0xf0]  ;;  %v9241_v34 = vld [vmem:[%s15284_s9 + $0x228] sm:$0xf] }
 0xa0a   :  { %v12208_v54 = vpack.c.bf16 %v1729_v46, %v1727_v45  ;;  %v12235_v20 = vpack.c.bf16 %v1731_v11, %v1731_v11  ;;  %v9211_v45 = vld [vmem:[%s15284_s9 + $0x1f8] sm:$0xf0]  ;;  %v9234_v46 = vor.u32 %v11156_v43, %v9233_v41  ;;  %v11131_v11 = vld [vmem:[%s15284_s9 + $0x16c] sm:$0xf]  ;;  %v9130_v30 = vor.u32 %v11129_v51, %v9129_v50  ;;  %v11125_v33 = vld [vmem:[%s15284_s9 + $0x134] sm:$0xf0] }
 0xa0b   :  { %2361 = vmatpush.bf16.msrb.mxu3 %v9206_v53  ;;  %v9214_v49 = vor.u32 %v11147_v44, %v9211_v45  ;;  %v9225_v53 = vld [vmem:[%s15284_s9 + $0x208] sm:$0xf] }
 0xa0c   :  { %9059 = vmatmul.msk.bf16.vlgmr.msra.gmra.mxu0 %vm1410_vm11, %v12208_v54  ;;  %9061 = vmatmul.msk.bf16.vlgmr.msra.gmra.mxu2 %vm1410_vm11, %v12208_v54  ;;  %v9226_v56 = vor.u32 %v11153_v55, %v9225_v53 }
 0xa0d   :  { %2324 = vmatpush.bf16.msra.mxu0 %v9218_v52  ;;  %2349 = vmatpush.bf16.msra.mxu2 %v9234_v46  ;;  %v9195_v52 = vld [vmem:[%s15284_s9 + $0x1d8] sm:$0xf0] }
 0xa0e   :  { %v9198_v59 = vor.u32 %v11143_v57, %v9195_v52 }
 0xa0f   :  { %2362 = vmatpush.bf16.msrb.mxu3 %v9190_v62  ;;  %v9210_v62 = vor.u32 %v11149_v47, %v9209_v58 }
 0xa11   :  { %2325 = vmatpush.bf16.msra.mxu0 %v9202_v0  ;;  %v9179_v0 = vld [vmem:[%s15284_s9 + $0x1b8] sm:$0xf0] }
 0xa12   :  { %v9182_v4 = vor.u32 %v11139_v63, %v9179_v0 }
 0xa13   :  { %2363 = vmatpush.bf16.msrb.mxu3 %v9174_v8  ;;  %v9177_v8 = vld [vmem:[%s15284_s9 + $0x1a8] sm:$0xf] }
 0xa15   :  { %2326 = vmatpush.bf16.msra.mxu0 %v9186_v9  ;;  %v11141_v9 = vld [vmem:[%s15284_s9 + $0x1b4] sm:$0xf0] }
 0xa16   :  { %1971 = vmatmul.bf16.gmra.mxu3 %v12225_v10  ;;  %2007 = vmatmul.bf16.gmra.mxu1 %v12225_v10  ;;  %v9178_v12 = vor.u32 %v11141_v9, %v9177_v8 }
 0xa17   :  { %2364 = vmatpush.bf16.msrb.mxu3 %v9158_v13  ;;  %v9150_v13 = vor.u32 %v11131_v11, %v9147_v61 }
 0xa19   :  { %2327 = vmatpush.bf16.msra.mxu0 %v9170_v17  ;;  %v11127_v17 = vld [vmem:[%s15284_s9 + $0x14c] sm:$0xf] }
 0xa1a   :  { %v9134_v21 = vor.u32 %v11127_v17, %v9131_v18 }
 0xa1b   :  { %2365 = vmatpush.bf16.msrb.mxu3 %v9142_v19  ;;  %v9145_v19 = vld [vmem:[%s15284_s9 + $0x168] sm:$0xf] }
 0xa1c   :  { %9060 = vmatmul.msk.bf16.gmra.mxu0 %vm1410_vm11, %v12235_v20  ;;  %9062 = vmatmul.msk.bf16.gmra.mxu2 %vm1410_vm11, %v12235_v20 }
 0xa1d   :  { %2328 = vmatpush.bf16.msra.mxu0 %v9154_v23  ;;  %v11123_v23 = vld [vmem:[%s15284_s9 + $0x12c] sm:$0xf] }
 0xa1e   :  { %v9118_v29 = vor.u32 %v11123_v23, %v9115_v24 }
 0xa1f   :  { %2366 = vmatpush.bf16.msrb.mxu3 %v9126_v27  ;;  %v9146_v27 = vor.u32 %v11133_v22, %v9145_v19 }
 0xa21   :  { %2329 = vmatpush.bf16.msra.mxu0 %v9138_v31  ;;  %v9113_v31 = vld [vmem:[%s15284_s9 + $0x128] sm:$0xf] }
 0xa22   :  { %v9114_v35 = vor.u32 %v11125_v33, %v9113_v31 }
 0xa23   :  { %2367 = vmatpush.bf16.msrb.mxu3 %v9110_v36  ;;  %v11157_v36 = vld [vmem:[%s15284_s9 + $0x234] sm:$0xf0] }
 0xa25   :  { %2330 = vmatpush.bf16.msra.mxu0 %v9122_v37  ;;  %v9242_v37 = vor.u32 %v11157_v36, %v9241_v34 }
 0xa26   :  { %2074 = vmatmul.bf16.vlgmr.msra.gmra.mxu3 %v12195_v32  ;;  %9065 = vmatmul.msk.bf16.vlgmr.msrb.gmra.mxu1 %vm1410_vm11, %v12208_v54 }
 0xa27   :  { %2432 = vmatpush.bf16.msra.mxu3 %v9230_v48  ;;  %2457 = vmatpush.bf16.msrb.mxu1 %v9246_v28 }
 0xa29   :  { %2331 = vmatpush.bf16.msra.mxu0 %v9106_v42 }
 0xa2b   :  { %2433 = vmatpush.bf16.msra.mxu3 %v9214_v49 }
 0xa2c   :  { %2038 = vmatmul.bf16.vlgmr.msrb.gmra.mxu0 %v12195_v32  ;;  %9063 = vmatmul.msk.bf16.vlgmr.msrb.gmra.mxu2 %vm1410_vm11, %v12208_v54 }
 0xa2d   :  { %2396 = vmatpush.bf16.msrb.mxu0 %v9226_v56  ;;  %2421 = vmatpush.bf16.msrb.mxu2 %v9242_v37 }
 0xa2f   :  { %2434 = vmatpush.bf16.msra.mxu3 %v9198_v59 }
 0xa31   :  { %2397 = vmatpush.bf16.msrb.mxu0 %v9210_v62 }
 0xa33   :  { %2435 = vmatpush.bf16.msra.mxu3 %v9182_v4 }
 0xa35   :  { %2398 = vmatpush.bf16.msrb.mxu0 %v9194_v5 }
 0xa36   :  { %2079 = vmatmul.bf16.gmra.mxu3 %v12225_v10  ;;  %9066 = vmatmul.msk.bf16.gmra.mxu1 %vm1410_vm11, %v12235_v20 }
 0xa37   :  { %2436 = vmatpush.bf16.msra.mxu3 %v9166_v7 }
 0xa39   :  { %2399 = vmatpush.bf16.msrb.mxu0 %v9178_v12 }
 0xa3b   :  { %2437 = vmatpush.bf16.msra.mxu3 %v9150_v13 }
 0xa3c   :  { %2043 = vmatmul.bf16.gmra.mxu0 %v12225_v10  ;;  %9064 = vmatmul.msk.bf16.gmra.mxu2 %vm1410_vm11, %v12235_v20 }
 0xa3d   :  { %2400 = vmatpush.bf16.msrb.mxu0 %v9162_v16 }
 0xa3f   :  { %2438 = vmatpush.bf16.msra.mxu3 %v9134_v21 }
 0xa41   :  { %2401 = vmatpush.bf16.msrb.mxu0 %v9146_v27 }
 0xa43   :  { %2439 = vmatpush.bf16.msra.mxu3 %v9118_v29 }
 0xa45   :  { %2402 = vmatpush.bf16.msrb.mxu0 %v9130_v30  ;;  %v12361_v30 = vld [vmem:[%s15286_s17 + $0x28] sm:$0xff] }
 0xa46   :  { %2368 = vmatmul.bf16.vlgmr.msrb.gmra.mxu3 %v12195_v32  ;;  %9249 = vmatmul.msk.bf16.vlgmr.msra.gmra.mxu1 %vm1410_vm11, %v12208_v54 }
 0xa49   :  { %2403 = vmatpush.bf16.msrb.mxu0 %v9114_v35 }
 0xa4c   :  { %2332 = vmatmul.bf16.vlgmr.msra.gmra.mxu0 %v12195_v32  ;;  %9247 = vmatmul.msk.bf16.vlgmr.msra.gmra.mxu2 %vm1410_vm11, %v12208_v54 }
 0xa56   :  { %2373 = vmatmul.bf16.gmra.mxu3 %v12225_v10  ;;  %9250 = vmatmul.msk.bf16.gmra.mxu1 %vm1410_vm11, %v12235_v20 }
 0xa5c   :  { %2337 = vmatmul.bf16.gmra.mxu0 %v12225_v10  ;;  %9248 = vmatmul.msk.bf16.gmra.mxu2 %vm1410_vm11, %v12235_v20 }
 0xa66   :  { %2440 = vmatmul.bf16.vlgmr.msra.gmra.mxu3 %v12195_v32  ;;  %9253 = vmatmul.msk.bf16.vlgmr.msrb.gmra.mxu1 %vm1410_vm11, %v12208_v54 }
 0xa6c   :  { %2404 = vmatmul.bf16.vlgmr.msrb.gmra.mxu0 %v12195_v32  ;;  %9251 = vmatmul.msk.bf16.vlgmr.msrb.gmra.mxu2 %vm1410_vm11, %v12208_v54 }
 0xa76   :  { %2445 = vmatmul.bf16.gmra.mxu3 %v12225_v10  ;;  %9254 = vmatmul.msk.bf16.gmra.mxu1 %vm1410_vm11, %v12235_v20 }
 0xa7c   :  { %2409 = vmatmul.bf16.gmra.mxu0 %v12225_v10  ;;  %9252 = vmatmul.msk.bf16.gmra.mxu2 %vm1410_vm11, %v12235_v20 }
 0xa83   :  { %v12329_v38 = vpop.f32.mrf.mxu1 }
 0xa89   :  { %v12331_v39 = vpop.f32.mrf.mxu3  ;;  %v12333_v48 = vpop.f32.mrf.mxu0 }
 0xa8b   :  { %v2005_v60 = vpop.f32.mrf.mxu1 }
 0xa8f   :  { %v12335_v40 = vpop.f32.mrf.mxu2 }
 0xa91   :  { %v12337_v41 = vpop.f32.mrf.mxu3  ;;  %v12339_v42 = vpop.f32.mrf.mxu0 }
 0xa93   :  { %v2008_v43 = vpop.f32.mrf.mxu1 }
 0xa97   :  { %v2023_v44 = vpop.f32.mrf.mxu2 }
 0xa98   :  { %v2024_v36 = vadd.f32 %v2023_v44, %v2005_v60  ;;  %v1988_v60 = vadd.f32 %v12339_v42, %v12337_v41  ;;  %v1986_v44 = vadd.f32 %v12333_v48, %v12331_v39  ;;  %v9458_v39 = vld [vmem:[%s15284_s9 + $0x320] sm:$0xf]  ;;  %v11188_v48 = vld [vmem:[%s15284_s9 + $0x32c] sm:$0xf0] }
 0xa99   :  { %v1972_v45 = vpop.f32.mrf.mxu3  ;;  %v1990_v46 = vpop.f32.mrf.mxu0 }
 0xa9a   :  { %v12341_v49 = vadd.f32 %v1990_v46, %v1972_v45  ;;  %v2022_v45 = vadd.f32 %v12335_v40, %v12329_v38 }
 0xa9b   :  { %v2010_v53 = vpop.f32.mrf.mxu1 }
 0xa9c   :  { %v12370_v53 = vld [vmem:[%s15286_s17 + $0x30] sm:$0xff] }
 0xa9f   :  { %v2026_v55 = vpop.f32.mrf.mxu2 }
 0xaa0   :  { %v2027_v56 = vadd.f32 %v2026_v55, %v2008_v43 }
 0xaa1   :  { %v1974_v57 = vpop.f32.mrf.mxu3  ;;  %v1992_v52 = vpop.f32.mrf.mxu0 }
 0xaa2   :  { %v12383_v57 = vld [vmem:[%s15286_s17 + $0x38] sm:$0xff] }
 0xaa3   :  { %v2093_v58 = vpop.f32.mrf.mxu1 }
 0xaa7   :  { %v2028_v59 = vpop.f32.mrf.mxu2 }
 0xaa9   :  { %v2039_v47 = vpop.f32.mrf.mxu0  ;;  %v2075_v62 = vpop.f32.mrf.mxu3 }
 0xaaa   :  { %v12343_v63 = vadd.f32 %v2093_v58, %v2075_v62  ;;  %v12390_v58 = vld [vmem:[%s15286_s17 + $0x40] sm:$0xff] }
 0xaab   :  { %v12345_v0 = vpop.f32.mrf.mxu1 }
 0xaaf   :  { %v2057_v1 = vpop.f32.mrf.mxu2 }
 0xab0   :  { %v12347_v2 = vadd.f32 %v2057_v1, %v2039_v47  ;;  %v9459_v47 = vor.u32 %v11188_v48, %v9458_v39  ;;  %v12477_v39 = vld [vmem:[%s15286_s17 + $0x18] sm:$0xff]  ;;  %v11178_v48 = vld [vmem:[%s15284_s9 + $0x2e4] sm:$0xf] }
 0xab1   :  { %v12349_v4 = vpop.f32.mrf.mxu0  ;;  %v12351_v5 = vpop.f32.mrf.mxu3 }
 0xab3   :  { %v2098_v6 = vpop.f32.mrf.mxu1 }
 0xab7   :  { %v12353_v3 = vpop.f32.mrf.mxu2 }
 0xab9   :  { %v2044_v7 = vpop.f32.mrf.mxu0  ;;  %v2080_v8 = vpop.f32.mrf.mxu3 }
 0xaba   :  { %v12355_v9 = vadd.f32 %v2098_v6, %v2080_v8  ;;  %v9442_v6 = vld [vmem:[%s15284_s9 + $0x300] sm:$0xf] }
 0xabb   :  { %v2100_v11 = vpop.f32.mrf.mxu1 }
 0xabf   :  { %v2062_v12 = vpop.f32.mrf.mxu2 }
 0xac0   :  { %v12357_v61 = vadd.f32 %v2062_v12, %v2044_v7  ;;  %v11184_v7 = vld [vmem:[%s15284_s9 + $0x30c] sm:$0xf0] }
 0xac1   :  { %v2046_v13 = vpop.f32.mrf.mxu0  ;;  %v2082_v14 = vpop.f32.mrf.mxu3  ;;  %v9443_v11 = vor.u32 %v11184_v7, %v9442_v6  ;;  %v11174_v7 = vld [vmem:[%s15284_s9 + $0x2c4] sm:$0xf] }
 0xac3   :  { %v2387_v15 = vpop.f32.mrf.mxu1 }
 0xac7   :  { %v2064_v16 = vpop.f32.mrf.mxu2 }
 0xac8   :  { %v9426_v16 = vld [vmem:[%s15284_s9 + $0x2e0] sm:$0xf] }
 0xac9   :  { %v2333_v17 = vpop.f32.mrf.mxu0  ;;  %v2369_v18 = vpop.f32.mrf.mxu3 }
 0xaca   :  { %v2388_v29 = vadd.f32 %v2387_v15, %v2369_v18  ;;  %v12402_v15 = vld [vmem:[%s15286_s17 + $0x48] sm:$0x3] }
 0xacb   :  { %v2389_v19 = vpop.f32.mrf.mxu1 }
 0xacf   :  { %v2351_v21 = vpop.f32.mrf.mxu2 }
 0xad0   :  { %v2352_v46 = vadd.f32 %v2351_v21, %v2333_v17  ;;  %v11180_v17 = vld [vmem:[%s15284_s9 + $0x2ec] sm:$0xf0] }
 0xad1   :  { %v2335_v22 = vpop.f32.mrf.mxu0  ;;  %v2371_v23 = vpop.f32.mrf.mxu3 }
 0xad2   :  { %v2390_v51 = vadd.f32 %v2389_v19, %v2371_v23  ;;  %v9427_v19 = vor.u32 %v11180_v17, %v9426_v16  ;;  %v11170_v16 = vld [vmem:[%s15284_s9 + $0x2a4] sm:$0xf]  ;;  %v9396_v17 = vld [vmem:[%s15284_s9 + $0x2b0] sm:$0xf0] }
 0xad3   :  { %v2392_v24 = vpop.f32.mrf.mxu1 }
 0xad7   :  { %v2353_v25 = vpop.f32.mrf.mxu2 }
 0xad8   :  { %v2354_v37 = vadd.f32 %v2353_v25, %v2335_v22  ;;  %v11176_v25 = vld [vmem:[%s15284_s9 + $0x2cc] sm:$0xf0] }
 0xad9   :  { %v2338_v26 = vpop.f32.mrf.mxu0  ;;  %v2374_v27 = vpop.f32.mrf.mxu3 }
 0xada   :  { %v2393_v28 = vadd.f32 %v2392_v24, %v2374_v27  ;;  %v9410_v24 = vld [vmem:[%s15284_s9 + $0x2c0] sm:$0xf] }
 0xadb   :  { %v2394_v50 = vpop.f32.mrf.mxu1 }
 0xadc   :  { %9266 = vmatpush.msk.msra.mxu2 %vm226_vm0, %v2393_v28  ;;  %v9411_v50 = vor.u32 %v11176_v25, %v9410_v24  ;;  %v9380_v24 = vld [vmem:[%s15284_s9 + $0x290] sm:$0xf0]  ;;  %v9386_v25 = vld [vmem:[%s15284_s9 + $0x288] sm:$0xf] }
 0xade   :  { %2548 = vmatpush.msra.mxu2 %v2390_v51  ;;  %v12421_v51 = vld [vmem:[%s15286_s17] sm:$0xff] }
 0xadf   :  { %v2356_v31 = vpop.f32.mrf.mxu2 }
 0xae0   :  { %v2357_v33 = vadd.f32 %v2356_v31, %v2338_v26  ;;  %2549 = vmatpush.msra.mxu2 %v2388_v29  ;;  %v2096_v26 = vadd.f32 %v12345_v0, %v12351_v5  ;;  %v9394_v0 = vld [vmem:[%s15284_s9 + $0x2a0] sm:$0xf]  ;;  %v11172_v5 = vld [vmem:[%s15284_s9 + $0x2ac] sm:$0xf0] }
 0xae1   :  { %v2340_v34 = vpop.f32.mrf.mxu0  ;;  %v2376_v35 = vpop.f32.mrf.mxu3  ;;  %9267 = vmatmul.msk.f32.vlgmr.msra.gmra.mxu2 %vm2474_vm1, %v12361_v30  ;;  %v9378_v31 = vld [vmem:[%s15284_s9 + $0x280] sm:$0xf] }
 0xae2   :  { %9290 = vmatpush.msk.msrb.mxu2 %vm226_vm0, %v2027_v56  ;;  %9260 = vmatpush.msk.msra.mxu0 %vm226_vm0, %v2357_v33  ;;  %v11168_v33 = vld [vmem:[%s15284_s9 + $0x28c] sm:$0xf0]  ;;  %v12443_v34 = vld [vmem:[%s15286_s17 + $0x8] sm:$0xff]  ;;  %v9362_v35 = vld [vmem:[%s15284_s9 + $0x260] sm:$0xf] }
 0xae3   :  { %v2459_v43 = vpop.f32.mrf.mxu1 }
 0xae4   :  { %2703 = vmatpush.msrb.mxu2 %v2024_v36  ;;  %2516 = vmatpush.msra.mxu0 %v2354_v37  ;;  %v11164_v36 = vld [vmem:[%s15284_s9 + $0x26c] sm:$0xf0]  ;;  %v9346_v37 = vld [vmem:[%s15284_s9 + $0x240] sm:$0xf] }
 0xae6   :  { %2704 = vmatpush.msrb.mxu2 %v2022_v45  ;;  %2517 = vmatpush.msra.mxu0 %v2352_v46  ;;  %v12458_v46 = vld [vmem:[%s15286_s17 + $0x10] sm:$0xff] }
 0xae7   :  { %v2358_v55 = vpop.f32.mrf.mxu2  ;;  %9261 = vmatmul.msk.f32.vlgmr.msra.gmra.mxu0 %vm2474_vm1, %v12361_v30 }
 0xae8   :  { %9284 = vmatpush.msk.msrb.mxu0 %vm226_vm0, %v12341_v49  ;;  %v9460_v55 = vld [vmem:[%s15284_s9 + $0x330] sm:$0xf0] }
 0xae9   :  { %v2405_v38 = vpop.f32.mrf.mxu0  ;;  %v2441_v40 = vpop.f32.mrf.mxu3  ;;  %9268 = vmatmul.msk.f32.gmra.mxu2 %vm2474_vm1, %v12370_v53 }
 0xaea   :  { %2671 = vmatpush.msrb.mxu0 %v1988_v60  ;;  %v2460_v14 = vadd.f32 %v2459_v43, %v2441_v40  ;;  %v11160_v43 = vld [vmem:[%s15284_s9 + $0x24c] sm:$0xf0]  ;;  %v9466_v60 = vld [vmem:[%s15284_s9 + $0x328] sm:$0xf]  ;;  %v11189_v40 = vld [vmem:[%s15284_s9 + $0x334] sm:$0xf0] }
 0xaeb   :  { %v2461_v56 = vpop.f32.mrf.mxu1  ;;  %v9347_v45 = vor.u32 %v11160_v43, %v9346_v37  ;;  %v11187_v43 = vld [vmem:[%s15284_s9 + $0x32c] sm:$0xf] }
 0xaec   :  { %2672 = vmatpush.msrb.mxu0 %v1986_v44  ;;  %v9467_v44 = vor.u32 %v11189_v40, %v9466_v60  ;;  %v9452_v60 = vld [vmem:[%s15284_s9 + $0x318] sm:$0xf0]  ;;  %v11179_v40 = vld [vmem:[%s15284_s9 + $0x2ec] sm:$0xf] }
 0xaee   :  { %3002 = vmatpush.bf16.msra.mxu0 %v9459_v47  ;;  %v9434_v47 = vld [vmem:[%s15284_s9 + $0x2e8] sm:$0xf] }
 0xaef   :  { %v2423_v41 = vpop.f32.mrf.mxu2  ;;  %9262 = vmatmul.msk.f32.gmra.mxu0 %vm2474_vm1, %v12370_v53 }
 0xaf0   :  { %v2424_v28 = vadd.f32 %v2423_v41, %v2405_v38  ;;  %v9444_v41 = vld [vmem:[%s15284_s9 + $0x310] sm:$0xf0] }
 0xaf1   :  { %v2407_v42 = vpop.f32.mrf.mxu0  ;;  %v2443_v49 = vpop.f32.mrf.mxu3  ;;  %9269 = vmatmul.msk.f32.gmra.mxu2 %vm2474_vm1, %v12383_v57 }
 0xaf2   :  { %v2462_v13 = vadd.f32 %v2461_v56, %v2443_v49  ;;  %3003 = vmatpush.bf16.msra.mxu0 %v9443_v11  ;;  %v11182_v56 = vld [vmem:[%s15284_s9 + $0x304] sm:$0xf]  ;;  %v11185_v49 = vld [vmem:[%s15284_s9 + $0x314] sm:$0xf0]  ;;  %v9418_v11 = vld [vmem:[%s15284_s9 + $0x2c8] sm:$0xf] }
 0xaf3   :  { %v2464_v52 = vpop.f32.mrf.mxu1 }
 0xaf6   :  { %3004 = vmatpush.bf16.msra.mxu0 %v9427_v19  ;;  %v9399_v19 = vor.u32 %v11170_v16, %v9396_v17 }
 0xaf7   :  { %v2425_v59 = vpop.f32.mrf.mxu2  ;;  %9263 = vmatmul.msk.f32.gmra.mxu0 %vm2474_vm1, %v12383_v57 }
 0xaf8   :  { %v2426_v27 = vadd.f32 %v2425_v59, %v2407_v42  ;;  %v9447_v42 = vor.u32 %v11182_v56, %v9444_v41  ;;  %v9428_v59 = vld [vmem:[%s15284_s9 + $0x2f0] sm:$0xf0]  ;;  %v9420_v41 = vld [vmem:[%s15284_s9 + $0x2d8] sm:$0xf0] }
 0xaf9   :  { %v2410_v62 = vpop.f32.mrf.mxu0  ;;  %v2446_v1 = vpop.f32.mrf.mxu3  ;;  %9270 = vmatmul.msk.f32.gmra.mxu2 %vm2474_vm1, %v12390_v58 }
 0xafa   :  { %v2465_v8 = vadd.f32 %v2464_v52, %v2446_v1  ;;  %3005 = vmatpush.bf16.msra.mxu0 %v9411_v50  ;;  %v11181_v1 = vld [vmem:[%s15284_s9 + $0x2f4] sm:$0xf0] }
 0xafb   :  { %v2466_v12 = vpop.f32.mrf.mxu1  ;;  %v9435_v6 = vor.u32 %v11181_v1, %v9434_v47  ;;  %v11191_v47 = vld [vmem:[%s15284_s9 + $0x34c] sm:$0xf] }
 0xafc   :  { %9278 = vmatpush.msk.msra.mxu1 %vm226_vm0, %v2465_v8  ;;  %v9412_v8 = vld [vmem:[%s15284_s9 + $0x2d0] sm:$0xf0]  ;;  %v11177_v12 = vld [vmem:[%s15284_s9 + $0x2d4] sm:$0xf0]  ;;  %v11163_v1 = vld [vmem:[%s15284_s9 + $0x26c] sm:$0xf] }
 0xafe   :  { %2612 = vmatpush.msra.mxu1 %v2462_v13  ;;  %v9419_v13 = vor.u32 %v11177_v12, %v9418_v11  ;;  %v9356_v11 = vld [vmem:[%s15284_s9 + $0x258] sm:$0xf0] }
 0xaff   :  { %v2428_v18 = vpop.f32.mrf.mxu2  ;;  %9264 = vmatmul.msk.f32.gmra.mxu0 %vm2474_vm1, %v12390_v58 }
 0xb00   :  { %v2429_v21 = vadd.f32 %v2428_v18, %v2410_v62  ;;  %2613 = vmatpush.msra.mxu1 %v2460_v14  ;;  %v9431_v62 = vor.u32 %v11178_v48, %v9428_v59  ;;  %v12496_v14 = vld [vmem:[%s15286_s17 + $0x20] sm:$0x3]  ;;  %v9402_v18 = vld [vmem:[%s15284_s9 + $0x2a8] sm:$0xf]  ;;  %v9388_v48 = vld [vmem:[%s15284_s9 + $0x298] sm:$0xf0] }
 0xb01   :  { %v2412_v22 = vpop.f32.mrf.mxu0  ;;  %v2448_v23 = vpop.f32.mrf.mxu3  ;;  %9271 = vmatmul.msk.f32.gmra.mxu2 %vm2474_vm1, %v12402_v15  ;;  %9279 = vmatmul.msk.f32.vlgmr.msra.gmra.mxu1 %vm2474_vm1, %v12361_v30 }
 0xb02   :  { %9302 = vmatpush.msk.msrb.mxu1 %vm226_vm0, %v12355_v9  ;;  %9272 = vmatpush.msk.msrb.mxu3 %vm226_vm0, %v2429_v21  ;;  %v2060_v9 = vadd.f32 %v12353_v3, %v12349_v4  ;;  %v11192_v4 = vld [vmem:[%s15284_s9 + $0x34c] sm:$0xf0]  ;;  %v11173_v21 = vld [vmem:[%s15284_s9 + $0x2b4] sm:$0xf0]  ;;  %v11166_v23 = vld [vmem:[%s15284_s9 + $0x284] sm:$0xf] }
 0xb03   :  { %v9403_v22 = vor.u32 %v11173_v21, %v9402_v18 }
 0xb04   :  { %2767 = vmatpush.msrb.mxu1 %v2096_v26  ;;  %2580 = vmatpush.msrb.mxu3 %v2426_v27  ;;  %v11169_v26 = vld [vmem:[%s15284_s9 + $0x294] sm:$0xf0]  ;;  %v11190_v27 = vld [vmem:[%s15284_s9 + $0x344] sm:$0xf] }
 0xb05   :  { %v9387_v50 = vor.u32 %v11169_v26, %v9386_v25 }
 0xb06   :  { %2768 = vmatpush.msrb.mxu1 %v12343_v63  ;;  %2581 = vmatpush.msrb.mxu3 %v2424_v28  ;;  %v9395_v63 = vor.u32 %v11172_v5, %v9394_v0  ;;  %v9476_v28 = vld [vmem:[%s15284_s9 + $0x350] sm:$0xf0]  ;;  %v9482_v5 = vld [vmem:[%s15284_s9 + $0x348] sm:$0xf] }
 0xb07   :  { %v2430_v29 = vpop.f32.mrf.mxu2  ;;  %9265 = vmatmul.msk.f32.gmra.mxu0 %vm2474_vm1, %v12402_v15  ;;  %9273 = vmatmul.msk.f32.vlgmr.msrb.gmra.mxu3 %vm2474_vm1, %v12361_v30  ;;  %v9474_v30 = vld [vmem:[%s15284_s9 + $0x340] sm:$0xf]  ;;  %v9479_v0 = vor.u32 %v11190_v27, %v9476_v28 }
 0xb08   :  { %9296 = vmatpush.msk.msra.mxu3 %vm226_vm0, %v12357_v61  ;;  %v9475_v3 = vor.u32 %v11192_v4, %v9474_v30  ;;  %3006 = vmatpush.bf16.msra.mxu0 %v9395_v63  ;;  %v9379_v61 = vor.u32 %v11168_v33, %v9378_v31  ;;  %v11193_v29 = vld [vmem:[%s15284_s9 + $0x354] sm:$0xf0]  ;;  %v11162_v63 = vld [vmem:[%s15284_s9 + $0x264] sm:$0xf]  ;;  %v9364_v31 = vld [vmem:[%s15284_s9 + $0x270] sm:$0xf0] }
 0xb09   :  { %9280 = vmatmul.msk.f32.gmra.mxu1 %vm2474_vm1, %v12370_v53  ;;  %9291 = vmatmul.msk.f32.vlgmr.msrb.gmra.mxu2 %vm2474_vm1, %v12421_v51  ;;  %v9370_v33 = vld [vmem:[%s15284_s9 + $0x268] sm:$0xf]  ;;  %v9367_v30 = vor.u32 %v11162_v63, %v9364_v31  ;;  %v11165_v4 = vld [vmem:[%s15284_s9 + $0x274] sm:$0xf0] }
 0xb0a   :  { %2735 = vmatpush.msra.mxu3 %v2060_v9  ;;  %3027 = vmatpush.bf16.msra.mxu2 %v9475_v3  ;;  %v9483_v9 = vor.u32 %v11193_v29, %v9482_v5  ;;  %v9371_v3 = vor.u32 %v11165_v4, %v9370_v33 }
 0xb0b   :  { %3063 = vmatpush.bf16.msra.mxu1 %v9479_v0 }
 0xb0c   :  { %2736 = vmatpush.msra.mxu3 %v12347_v2  ;;  %3007 = vmatpush.bf16.msra.mxu0 %v9379_v61  ;;  %v9363_v2 = vor.u32 %v11164_v36, %v9362_v35  ;;  %v11158_v61 = vld [vmem:[%s15284_s9 + $0x244] sm:$0xf]  ;;  %v9348_v35 = vld [vmem:[%s15284_s9 + $0x250] sm:$0xf0]  ;;  %v9354_v36 = vld [vmem:[%s15284_s9 + $0x248] sm:$0xf] }
 0xb0e   :  { %3099 = vmatpush.bf16.msrb.mxu2 %v9483_v9 }
 0xb0f   :  { %9274 = vmatmul.msk.f32.gmra.mxu3 %vm2474_vm1, %v12370_v53  ;;  %9285 = vmatmul.msk.f32.vlgmr.msrb.gmra.mxu0 %vm2474_vm1, %v12421_v51  ;;  %v11186_v53 = vld [vmem:[%s15284_s9 + $0x324] sm:$0xf] }
 0xb10   :  { %3008 = vmatpush.bf16.msra.mxu0 %v9363_v2  ;;  %v9463_v38 = vor.u32 %v11186_v53, %v9460_v55  ;;  %v11161_v2 = vld [vmem:[%s15284_s9 + $0x254] sm:$0xf0]  ;;  %v11183_v55 = vld [vmem:[%s15284_s9 + $0x30c] sm:$0xf] }
 0xb11   :  { %9281 = vmatmul.msk.f32.gmra.mxu1 %vm2474_vm1, %v12383_v57  ;;  %9292 = vmatmul.msk.f32.gmra.mxu2 %vm2474_vm1, %v12443_v34  ;;  %v9355_v37 = vor.u32 %v11161_v2, %v9354_v36 }
 0xb12   :  { %3038 = vmatpush.bf16.msrb.mxu3 %v9463_v38  ;;  %v9455_v38 = vor.u32 %v11183_v55, %v9452_v60 }
 0xb14   :  { %3009 = vmatpush.bf16.msra.mxu0 %v9347_v45  ;;  %v9468_v45 = vld [vmem:[%s15284_s9 + $0x338] sm:$0xf0] }
 0xb15   :  { %v9471_v53 = vor.u32 %v11187_v43, %v9468_v45 }
 0xb16   :  { %3039 = vmatpush.bf16.msrb.mxu3 %v9447_v42  ;;  %v11171_v42 = vld [vmem:[%s15284_s9 + $0x2ac] sm:$0xf] }
 0xb17   :  { %9275 = vmatmul.msk.f32.gmra.mxu3 %vm2474_vm1, %v12383_v57  ;;  %9286 = vmatmul.msk.f32.gmra.mxu0 %vm2474_vm1, %v12443_v34  ;;  %v9450_v57 = vld [vmem:[%s15284_s9 + $0x308] sm:$0xf] }
 0xb18   :  { %3074 = vmatpush.bf16.msrb.mxu0 %v9467_v44  ;;  %v9451_v52 = vor.u32 %v11185_v49, %v9450_v57  ;;  %v9436_v44 = vld [vmem:[%s15284_s9 + $0x2f8] sm:$0xf0] }
 0xb19   :  { %9282 = vmatmul.msk.f32.gmra.mxu1 %vm2474_vm1, %v12390_v58  ;;  %9293 = vmatmul.msk.f32.gmra.mxu2 %vm2474_vm1, %v12458_v46  ;;  %v9439_v56 = vor.u32 %v11179_v40, %v9436_v44  ;;  %v9404_v49 = vld [vmem:[%s15284_s9 + $0x2b8] sm:$0xf0] }
 0xb1a   :  { %3040 = vmatpush.bf16.msrb.mxu3 %v9431_v62  ;;  %v9484_v62 = vld [vmem:[%s15284_s9 + $0x358] sm:$0xf0] }
 0xb1c   :  { %3075 = vmatpush.bf16.msrb.mxu0 %v9451_v52  ;;  %v11167_v52 = vld [vmem:[%s15284_s9 + $0x28c] sm:$0xf] }
 0xb1d   :  { %v9391_v59 = vor.u32 %v11167_v52, %v9388_v48  ;;  %v9497_v52 = vld [vmem:[%s15286_s17 + $0x58] sm:$0xff] }
 0xb1f   :  { %9276 = vmatmul.msk.f32.gmra.mxu3 %vm2474_vm1, %v12390_v58  ;;  %9287 = vmatmul.msk.f32.gmra.mxu0 %vm2474_vm1, %v12458_v46  ;;  %v9415_v58 = vor.u32 %v11174_v7, %v9412_v8  ;;  %v9372_v7 = vld [vmem:[%s15284_s9 + $0x278] sm:$0xf0] }
 0xb20   :  { %3076 = vmatpush.bf16.msrb.mxu0 %v9435_v6  ;;  %v9487_v6 = vor.u32 %v11191_v47, %v9484_v62  ;;  %v9375_v8 = vor.u32 %v11163_v1, %v9372_v7  ;;  %v9498_v1 = vld [vmem:[%s15286_s17 + $0x60] sm:$0xff] }
 0xb21   :  { %9283 = vmatmul.msk.f32.gmra.mxu1 %vm2474_vm1, %v12402_v15  ;;  %9294 = vmatmul.msk.f32.gmra.mxu2 %vm2474_vm1, %v12477_v39 }
 0xb22   :  { %3041 = vmatpush.bf16.msrb.mxu3 %v9415_v58 }
 0xb24   :  { %3077 = vmatpush.bf16.msrb.mxu0 %v9419_v13 }
 0xb26   :  { %3042 = vmatpush.bf16.msrb.mxu3 %v9399_v19 }
 0xb27   :  { %9277 = vmatmul.msk.f32.gmra.mxu3 %vm2474_vm1, %v12402_v15  ;;  %9288 = vmatmul.msk.f32.gmra.mxu0 %vm2474_vm1, %v12477_v39  ;;  %v9383_v15 = vor.u32 %v11166_v23, %v9380_v24 }
 0xb28   :  { %3078 = vmatpush.bf16.msrb.mxu0 %v9403_v22 }
 0xb29   :  { %9295 = vmatmul.msk.f32.gmra.mxu2 %vm2474_vm1, %v12496_v14  ;;  %9303 = vmatmul.msk.f32.vlgmr.msrb.gmra.mxu1 %vm2474_vm1, %v12421_v51 }
 0xb2a   :  { %3043 = vmatpush.bf16.msrb.mxu3 %v9383_v15  ;;  %3135 = vmatpush.bf16.msrb.mxu1 %v9487_v6 }
 0xb2c   :  { %3079 = vmatpush.bf16.msrb.mxu0 %v9387_v50 }
 0xb2e   :  { %3044 = vmatpush.bf16.msrb.mxu3 %v9367_v30 }
 0xb2f   :  { %9289 = vmatmul.msk.f32.gmra.mxu0 %vm2474_vm1, %v12496_v14  ;;  %9297 = vmatmul.msk.f32.vlgmr.msra.gmra.mxu3 %vm2474_vm1, %v12421_v51  ;;  %v9351_v51 = vor.u32 %v11158_v61, %v9348_v35 }
 0xb30   :  { %3080 = vmatpush.bf16.msrb.mxu0 %v9371_v3 }
 0xb31   :  { %9304 = vmatmul.msk.f32.gmra.mxu1 %vm2474_vm1, %v12443_v34  ;;  %9488 = vmatmul.msk.bf16.vlgmr.msra.gmra.mxu2 %vm1410_vm11, %v12208_v54 }
 0xb32   :  { %3045 = vmatpush.bf16.msrb.mxu3 %v9351_v51 }
 0xb34   :  { %3081 = vmatpush.bf16.msrb.mxu0 %v9355_v37 }
 0xb36   :  { %3110 = vmatpush.bf16.msra.mxu3 %v9471_v53 }
 0xb37   :  { %9298 = vmatmul.msk.f32.gmra.mxu3 %vm2474_vm1, %v12443_v34  ;;  %3010 = vmatmul.bf16.vlgmr.msra.gmra.mxu0 %v12195_v32  ;;  %v11175_v34 = vld [vmem:[%s15284_s9 + $0x2cc] sm:$0xf] }
 0xb38   :  { %v9423_v57 = vor.u32 %v11175_v34, %v9420_v41  ;;  %v12666_v41 = vld [vmem:[%s15286_s17 + $0x50] sm:$0xff] }
 0xb39   :  { %9305 = vmatmul.msk.f32.gmra.mxu1 %vm2474_vm1, %v12458_v46 }
 0xb3a   :  { %3111 = vmatpush.bf16.msra.mxu3 %v9455_v38 }
 0xb3e   :  { %3112 = vmatpush.bf16.msra.mxu3 %v9439_v56 }
 0xb3f   :  { %9299 = vmatmul.msk.f32.gmra.mxu3 %vm2474_vm1, %v12458_v46  ;;  %v9407_v46 = vor.u32 %v11171_v42, %v9404_v49 }
 0xb41   :  { %9306 = vmatmul.msk.f32.gmra.mxu1 %vm2474_vm1, %v12477_v39  ;;  %9489 = vmatmul.msk.bf16.gmra.mxu2 %vm1410_vm11, %v12235_v20 }
 0xb42   :  { %3113 = vmatpush.bf16.msra.mxu3 %v9423_v57 }
 0xb46   :  { %3114 = vmatpush.bf16.msra.mxu3 %v9407_v46 }
 0xb47   :  { %9300 = vmatmul.msk.f32.gmra.mxu3 %vm2474_vm1, %v12477_v39  ;;  %3015 = vmatmul.bf16.gmra.mxu0 %v12225_v10  ;;  %v11159_v39 = vld [vmem:[%s15284_s9 + $0x24c] sm:$0xf] }
 0xb48   :  { %v9359_v58 = vor.u32 %v11159_v39, %v9356_v11  ;;  %v9499_v11 = vld [vmem:[%s15286_s17 + $0x68] sm:$0xff] }
 0xb49   :  { %9307 = vmatmul.msk.f32.gmra.mxu1 %vm2474_vm1, %v12496_v14 }
 0xb4a   :  { %3115 = vmatpush.bf16.msra.mxu3 %v9391_v59 }
 0xb4e   :  { %3116 = vmatpush.bf16.msra.mxu3 %v9375_v8 }
 0xb4f   :  { %9301 = vmatmul.msk.f32.gmra.mxu3 %vm2474_vm1, %v12496_v14 }
 0xb51   :  { %9490 = vmatmul.msk.bf16.vlgmr.msra.gmra.mxu1 %vm1410_vm11, %v12208_v54  ;;  %9492 = vmatmul.msk.bf16.vlgmr.msrb.gmra.mxu2 %vm1410_vm11, %v12208_v54 }
 0xb52   :  { %3117 = vmatpush.bf16.msra.mxu3 %v9359_v58 }
 0xb57   :  { %3046 = vmatmul.bf16.vlgmr.msrb.gmra.mxu3 %v12195_v32  ;;  %3082 = vmatmul.bf16.vlgmr.msrb.gmra.mxu0 %v12195_v32 }
 0xb61   :  { %9491 = vmatmul.msk.bf16.gmra.mxu1 %vm1410_vm11, %v12235_v20  ;;  %9493 = vmatmul.msk.bf16.gmra.mxu2 %vm1410_vm11, %v12235_v20 }
 0xb64   :  { %v12580_v12 = vpop.f32.mrf.mxu0  ;;  %v12582_v13 = vpop.f32.mrf.mxu2 }
 0xb67   :  { %3051 = vmatmul.bf16.gmra.mxu3 %v12225_v10  ;;  %3087 = vmatmul.bf16.gmra.mxu0 %v12225_v10 }
 0xb6c   :  { %v12586_v14 = vpop.f32.mrf.mxu0  ;;  %v12588_v16 = vpop.f32.mrf.mxu2 }
 0xb71   :  { %9494 = vmatmul.msk.bf16.vlgmr.msrb.gmra.mxu1 %vm1410_vm11, %v12208_v54 }
 0xb74   :  { %v12592_v17 = vpop.f32.mrf.mxu0  ;;  %v12594_v18 = vpop.f32.mrf.mxu2 }
 0xb77   :  { %3118 = vmatmul.bf16.vlgmr.msra.gmra.mxu3 %v12195_v32 }
 0xb7c   :  { %v12597_v19 = vpop.f32.mrf.mxu0  ;;  %v12599_v21 = vpop.f32.mrf.mxu2 }
 0xb7e   :  { %v12601_v22 = vpop.f32.mrf.mxu1 }
 0xb81   :  { %9495 = vmatmul.msk.bf16.gmra.mxu1 %vm1410_vm11, %v12235_v20 }
 0xb84   :  { %v12605_v23 = vpop.f32.mrf.mxu0  ;;  %v12607_v24 = vpop.f32.mrf.mxu2 }
 0xb86   :  { %v12609_v54 = vpop.f32.mrf.mxu1 }
 0xb87   :  { %3123 = vmatmul.bf16.gmra.mxu3 %v12225_v10 }
 0xb8a   :  { %v12612_v25 = vpop.f32.mrf.mxu3 }
 0xb8c   :  { %v12614_v32 = vpop.f32.mrf.mxu0  ;;  %v12616_v15 = vpop.f32.mrf.mxu2 }
 0xb8e   :  { %v12618_v26 = vpop.f32.mrf.mxu1 }
 0xb92   :  { %v12620_v27 = vpop.f32.mrf.mxu3 }
 0xb94   :  { %v12622_v28 = vpop.f32.mrf.mxu0  ;;  %v12624_v20 = vpop.f32.mrf.mxu2 }
 0xb96   :  { %v12626_v50 = vpop.f32.mrf.mxu1 }
 0xb9a   :  { %v12628_v0 = vpop.f32.mrf.mxu3 }
 0xb9c   :  { %v12630_v5 = vpop.f32.mrf.mxu0  ;;  %v12632_v10 = vpop.f32.mrf.mxu2 }
 0xb9e   :  { %v12634_v29 = vpop.f32.mrf.mxu1 }
 0xba2   :  { %v12636_v9 = vpop.f32.mrf.mxu3 }
 0xba4   :  { %v12638_v63 = vpop.f32.mrf.mxu0  ;;  %v12640_v31 = vpop.f32.mrf.mxu2 }
 0xba6   :  { %v12642_v33 = vpop.f32.mrf.mxu1 }
 0xbaa   :  { %v12644_v30 = vpop.f32.mrf.mxu3 }
 0xbac   :  { %v12646_v4 = vpop.f32.mrf.mxu0  ;;  %v12648_v3 = vpop.f32.mrf.mxu2 }
 0xbae   :  { %v12650_v61 = vpop.f32.mrf.mxu1 }
 0xbb2   :  { %v12652_v35 = vpop.f32.mrf.mxu3 }
 0xbb4   :  { %v3011_v36 = vpop.f32.mrf.mxu0  ;;  %v3029_v51 = vpop.f32.mrf.mxu2 }
 0xbb5   :  { %v3030_v34 = vadd.f32 %v3029_v51, %v3011_v36 }
 0xbb6   :  { %v12654_v2 = vpop.f32.mrf.mxu1 }
 0xbba   :  { %v12656_v37 = vpop.f32.mrf.mxu3 }
 0xbbc   :  { %v3013_v43 = vpop.f32.mrf.mxu0  ;;  %v3031_v45 = vpop.f32.mrf.mxu2 }
 0xbbd   :  { %v3032_v56 = vadd.f32 %v3031_v45, %v3013_v43 }
 0xbbe   :  { %v12658_v53 = vpop.f32.mrf.mxu1 }
 0xbc2   :  { %v12660_v55 = vpop.f32.mrf.mxu3 }
 0xbc4   :  { %v3016_v60 = vpop.f32.mrf.mxu0  ;;  %v3034_v38 = vpop.f32.mrf.mxu2 }
 0xbc5   :  { %v3035_v40 = vadd.f32 %v3034_v38, %v3016_v60 }
 0xbc6   :  { %v12662_v44 = vpop.f32.mrf.mxu1 }
 0xbc7   :  { %15287 = vst [vmem:[#allocation20_spill] sm:$0xff] %v12662_v44  ;;  %9501 = vmatpush.msk.msra.mxu0 %vm226_vm0, %v3035_v40  ;;  %v9500_v40 = vld [vmem:[%s15286_s17 + $0x70] sm:$0x3] }
 0xbc9   :  { %3193 = vmatpush.msra.mxu0 %v3032_v56 }
 0xbca   :  { %v12668_v57 = vpop.f32.mrf.mxu3 }
 0xbcb   :  { %3194 = vmatpush.msra.mxu0 %v3030_v34 }
 0xbcc   :  { %v3018_v42 = vpop.f32.mrf.mxu0  ;;  %v3036_v49 = vpop.f32.mrf.mxu2  ;;  %9502 = vmatmul.msk.f32.vlgmr.msra.gmra.mxu0 %vm2474_vm1, %v12666_v41 }
 0xbce   :  { %v3065_v46 = vpop.f32.mrf.mxu1 }
 0xbd2   :  { %v12673_v48 = vpop.f32.mrf.mxu3 }
 0xbd4   :  { %v3083_v59 = vpop.f32.mrf.mxu0  ;;  %v3101_v47 = vpop.f32.mrf.mxu2  ;;  %9503 = vmatmul.msk.f32.gmra.mxu0 %vm2474_vm1, %v9497_v52 }
 0xbd5   :  { %v3102_v38 = vadd.f32 %v3101_v47, %v3083_v59 }
 0xbd6   :  { %v3067_v62 = vpop.f32.mrf.mxu1 }
 0xbda   :  { %v3047_v6 = vpop.f32.mrf.mxu3 }
 0xbdc   :  { %v3085_v7 = vpop.f32.mrf.mxu0  ;;  %v3103_v8 = vpop.f32.mrf.mxu2  ;;  %9504 = vmatmul.msk.f32.gmra.mxu0 %vm2474_vm1, %v9498_v1 }
 0xbdd   :  { %v3104_v60 = vadd.f32 %v3103_v8, %v3085_v7  ;;  %v3066_v7 = vadd.f32 %v3065_v46, %v3047_v6 }
 0xbde   :  { %v3070_v39 = vpop.f32.mrf.mxu1 }
 0xbe2   :  { %v3049_v58 = vpop.f32.mrf.mxu3 }
 0xbe3   :  { %v3068_v44 = vadd.f32 %v3067_v62, %v3049_v58 }
 0xbe4   :  { %v3088_v36 = vpop.f32.mrf.mxu0  ;;  %v3106_v51 = vpop.f32.mrf.mxu2  ;;  %9505 = vmatmul.msk.f32.gmra.mxu0 %vm2474_vm1, %v9499_v11 }
 0xbe5   :  { %v3107_v43 = vadd.f32 %v3106_v51, %v3088_v36 }
 0xbe6   :  { %v3072_v45 = vpop.f32.mrf.mxu1 }
 0xbe7   :  { %9513 = vmatpush.msk.msrb.mxu3 %vm226_vm0, %v3107_v43  ;;  %v3392_v45 = vld [vmem:[%s15288_s21 + $0x78] sm:$0xff] }
 0xbe8   :  { %3431 = vmatpush.msrb.mxu0 %v3392_v45 }
 0xbe9   :  { %3257 = vmatpush.msrb.mxu3 %v3104_v60  ;;  %v3391_v60 = vld [vmem:[%s15288_s21 + $0x70] sm:$0xff] }
 0xbea   :  { %v3052_v56 = vpop.f32.mrf.mxu3  ;;  %3432 = vmatpush.msrb.mxu0 %v3391_v60 }
 0xbeb   :  { %v3071_v34 = vadd.f32 %v3070_v39, %v3052_v56  ;;  %3258 = vmatpush.msrb.mxu3 %v3102_v38  ;;  %v3390_v38 = vld [vmem:[%s15288_s21 + $0x68] sm:$0xff]  ;;  %v3385_v56 = vld [vmem:[%s15288_s21 + $0x40] sm:$0xff] }
 0xbec   :  { %v3090_v42 = vpop.f32.mrf.mxu0  ;;  %v3108_v49 = vpop.f32.mrf.mxu2  ;;  %9506 = vmatmul.msk.f32.gmra.mxu0 %vm2474_vm1, %v9500_v40  ;;  %9514 = vmatmul.msk.f32.vlgmr.msrb.gmra.mxu3 %vm2474_vm1, %v12666_v41 }
 0xbed   :  { %9507 = vmatpush.msk.msra.mxu2 %vm226_vm0, %v3071_v34  ;;  %3433 = vmatpush.msrb.mxu0 %v3390_v38  ;;  %v3384_v34 = vld [vmem:[%s15288_s21 + $0x38] sm:$0xff]  ;;  %v3383_v42 = vld [vmem:[%s15288_s21 + $0x30] sm:$0xff]  ;;  %v3382_v49 = vld [vmem:[%s15288_s21 + $0x28] sm:$0xff] }
 0xbee   :  { %v3137_v36 = vpop.f32.mrf.mxu1 }
 0xbef   :  { %3225 = vmatpush.msra.mxu2 %v3068_v44 }
 0xbf1   :  { %3226 = vmatpush.msra.mxu2 %v3066_v7  ;;  %v3381_v7 = vld [vmem:[%s15288_s21 + $0x20] sm:$0xff] }
 0xbf2   :  { %v3054_v59 = vpop.f32.mrf.mxu3  ;;  %9508 = vmatmul.msk.f32.vlgmr.msra.gmra.mxu2 %vm2474_vm1, %v12666_v41 }
 0xbf3   :  { %v3380_v59 = vld [vmem:[%s15288_s21 + $0x18] sm:$0xff] }
 0xbf4   :  { %9515 = vmatmul.msk.f32.gmra.mxu3 %vm2474_vm1, %v9497_v52 }
 0xbf6   :  { %v3139_v47 = vpop.f32.mrf.mxu1 }
 0xbfa   :  { %v3119_v8 = vpop.f32.mrf.mxu3  ;;  %9509 = vmatmul.msk.f32.gmra.mxu2 %vm2474_vm1, %v9497_v52 }
 0xbfb   :  { %v3138_v51 = vadd.f32 %v3137_v36, %v3119_v8  ;;  %v3378_v8 = vld [vmem:[%s15288_s21 + $0x8] sm:$0xff] }
 0xbfc   :  { %9516 = vmatmul.msk.f32.gmra.mxu3 %vm2474_vm1, %v9498_v1 }
 0xbfe   :  { %v3142_v39 = vpop.f32.mrf.mxu1 }
 0xc02   :  { %v3121_v62 = vpop.f32.mrf.mxu3  ;;  %9510 = vmatmul.msk.f32.gmra.mxu2 %vm2474_vm1, %v9498_v1 }
 0xc03   :  { %v3140_v58 = vadd.f32 %v3139_v47, %v3121_v62  ;;  %v3379_v47 = vld [vmem:[%s15288_s21 + $0x10] sm:$0xff]  ;;  %v3377_v62 = vld [vmem:[%s15288_s21] sm:$0xff] }
 0xc04   :  { %9517 = vmatmul.msk.f32.gmra.mxu3 %vm2474_vm1, %v9499_v11 }
 0xc06   :  { %v3144_v44 = vpop.f32.mrf.mxu1 }
 0xc07   :  { %v2678_v44 = vadd.f32 %v12622_v28, %v12586_v14  ;;  %v2684_v14 = vadd.f32 %v12638_v63, %v12597_v19  ;;  %v2687_v19 = vadd.f32 %v12646_v4, %v12605_v23  ;;  %v12755_v63 = vld [vmem:[%s15288_s21 + $0x160] sm:$0xff]  ;;  %v12769_v23 = vld [vmem:[%s15288_s21 + $0xe8] sm:$0xff] }
 0xc0a   :  { %v3124_v46 = vpop.f32.mrf.mxu3  ;;  %9511 = vmatmul.msk.f32.gmra.mxu2 %vm2474_vm1, %v9499_v11 }
 0xc0b   :  { %v3143_v6 = vadd.f32 %v3142_v39, %v3124_v46 }
 0xc0c   :  { %9518 = vmatmul.msk.f32.gmra.mxu3 %vm2474_vm1, %v9500_v40 }
 0xc0d   :  { %9519 = vmatpush.msk.msra.mxu1 %vm226_vm0, %v3143_v6  ;;  %v12722_v6 = vld [vmem:[%s15288_s21 + $0x178] sm:$0xff] }
 0xc0e   :  { %3471 = vmatpush.msra.mxu3 %v12722_v6 }
 0xc0f   :  { %3289 = vmatpush.msra.mxu1 %v3140_v58  ;;  %v12725_v58 = vld [vmem:[%s15288_s21 + $0x170] sm:$0xff] }
 0xc10   :  { %3472 = vmatpush.msra.mxu3 %v12725_v58 }
 0xc11   :  { %3290 = vmatpush.msra.mxu1 %v3138_v51  ;;  %v2675_v51 = vadd.f32 %v12614_v32, %v12580_v12  ;;  %v12742_v12 = vld [vmem:[%s15288_s21 + $0x168] sm:$0xff] }
 0xc12   :  { %v3126_v43 = vpop.f32.mrf.mxu3  ;;  %9512 = vmatmul.msk.f32.gmra.mxu2 %vm2474_vm1, %v9500_v40  ;;  %9520 = vmatmul.msk.f32.vlgmr.msra.gmra.mxu1 %vm2474_vm1, %v12666_v41  ;;  %v3389_v41 = vld [vmem:[%s15288_s21 + $0x60] sm:$0xff] }
 0xc13   :  { %3702 = vmatpush.msrb.mxu1 %v3392_v45  ;;  %3434 = vmatpush.msrb.mxu0 %v3389_v41  ;;  %v2681_v43 = vadd.f32 %v12630_v5, %v12592_v17  ;;  %v12752_v5 = vld [vmem:[%s15288_s21 + $0xf8] sm:$0xff] }
 0xc14   :  { %3473 = vmatpush.msra.mxu3 %v12742_v12  ;;  %3451 = vmatpush.msrb.mxu2 %v12752_v5 }
 0xc15   :  { %3703 = vmatpush.msrb.mxu1 %v3391_v60 }
 0xc16   :  { %3474 = vmatpush.msra.mxu3 %v12755_v63 }
 0xc17   :  { %3704 = vmatpush.msrb.mxu1 %v3390_v38 }
 0xc19   :  { %3705 = vmatpush.msrb.mxu1 %v3389_v41 }
 0xc1a   :  { %9521 = vmatmul.msk.f32.gmra.mxu1 %vm2474_vm1, %v9497_v52  ;;  %v3388_v52 = vld [vmem:[%s15288_s21 + $0x58] sm:$0xff] }
 0xc1b   :  { %3435 = vmatpush.msrb.mxu0 %v3388_v52  ;;  %3706 = vmatpush.msrb.mxu1 %v3388_v52 }
 0xc22   :  { %9522 = vmatmul.msk.f32.gmra.mxu1 %vm2474_vm1, %v9498_v1  ;;  %v3387_v1 = vld [vmem:[%s15288_s21 + $0x50] sm:$0xff] }
 0xc23   :  { %3436 = vmatpush.msrb.mxu0 %v3387_v1  ;;  %3707 = vmatpush.msrb.mxu1 %v3387_v1  ;;  %v12763_v1 = vld [vmem:[%s15288_s21 + $0xf0] sm:$0xff] }
 0xc24   :  { %3452 = vmatpush.msrb.mxu2 %v12763_v1 }
 0xc26   :  { %3453 = vmatpush.msrb.mxu2 %v12769_v23 }
 0xc2a   :  { %9523 = vmatmul.msk.f32.gmra.mxu1 %vm2474_vm1, %v9499_v11  ;;  %v3386_v11 = vld [vmem:[%s15288_s21 + $0x48] sm:$0xff] }
 0xc2b   :  { %3437 = vmatpush.msrb.mxu0 %v3386_v11  ;;  %3708 = vmatpush.msrb.mxu1 %v3386_v11  ;;  %v12766_v11 = vld [vmem:[%s15288_s21 + $0x158] sm:$0xff] }
 0xc2c   :  { %3475 = vmatpush.msra.mxu3 %v12766_v11 }
 0xc2d   :  { %3438 = vmatpush.msrb.mxu0 %v3385_v56  ;;  %3709 = vmatpush.msrb.mxu1 %v3385_v56 }
 0xc2f   :  { %3439 = vmatpush.msrb.mxu0 %v3384_v34  ;;  %3710 = vmatpush.msrb.mxu1 %v3384_v34 }
 0xc31   :  { %3440 = vmatpush.msrb.mxu0 %v3383_v42  ;;  %3711 = vmatpush.msrb.mxu1 %v3383_v42  ;;  %v12782_v42 = vld [vmem:[%s15288_s21 + $0xe0] sm:$0xff] }
 0xc32   :  { %9524 = vmatmul.msk.f32.gmra.mxu1 %vm2474_vm1, %v9500_v40  ;;  %3454 = vmatpush.msrb.mxu2 %v12782_v42 }
 0xc33   :  { %3441 = vmatpush.msrb.mxu0 %v3382_v49  ;;  %3712 = vmatpush.msrb.mxu1 %v3382_v49  ;;  %v12785_v49 = vld [vmem:[%s15288_s21 + $0x148] sm:$0xff] }
 0xc35   :  { %3442 = vmatpush.msrb.mxu0 %v3381_v7  ;;  %3713 = vmatpush.msrb.mxu1 %v3381_v7 }
 0xc37   :  { %3443 = vmatpush.msrb.mxu0 %v3380_v59  ;;  %3714 = vmatpush.msrb.mxu1 %v3380_v59  ;;  %v12792_v59 = vld [vmem:[%s15288_s21 + $0xd8] sm:$0xff] }
 0xc38   :  { %3455 = vmatpush.msrb.mxu2 %v12792_v59 }
 0xc39   :  { %3444 = vmatpush.msrb.mxu0 %v3379_v47  ;;  %3715 = vmatpush.msrb.mxu1 %v3379_v47  ;;  %v12795_v47 = vld [vmem:[%s15288_s21 + $0x140] sm:$0xff] }
 0xc3b   :  { %3445 = vmatpush.msrb.mxu0 %v3378_v8  ;;  %3716 = vmatpush.msrb.mxu1 %v3378_v8 }
 0xc3d   :  { %3446 = vmatpush.msrb.mxu0 %v3377_v62  ;;  %3717 = vmatpush.msrb.mxu1 %v3377_v62  ;;  %v12803_v62 = vld [vmem:[%s15288_s21 + $0x138] sm:$0xff] }
 0xc49   :  { %v3196_v40 = vpop.f32.mrf.mxu0 }
 0xc4a   :  { %v12736_v28 = vadd.f32 %v3196_v40, %v2675_v51  ;;  %v12775_v40 = vld [vmem:[%s15288_s21 + $0x150] sm:$0xff] }
 0xc4b   :  { %3476 = vmatpush.msra.mxu3 %v12775_v40  ;;  %v12811_v51 = vld [vmem:[%s15288_s21 + $0x130] sm:$0xff] }
 0xc4c   :  { %15290 = vst [vmem:[#allocation22_spill] sm:$0xff] %v12736_v28 }
 0xc4d   :  { %3477 = vmatpush.msra.mxu3 %v12785_v49 }
 0xc4f   :  { %3478 = vmatpush.msra.mxu3 %v12795_v47 }
 0xc51   :  { %v3199_v36 = vpop.f32.mrf.mxu0  ;;  %3479 = vmatpush.msra.mxu3 %v12803_v62 }
 0xc52   :  { %v12731_v45 = vadd.f32 %v3199_v36, %v2678_v44 }
 0xc53   :  { %3480 = vmatpush.msra.mxu3 %v12811_v51 }
 0xc54   :  { %15289 = vst [vmem:[#allocation21_spill] sm:$0xff] %v12731_v45  ;;  %v3327_v17 = vadd.f32 %v12731_v45, %v12736_v28  ;;  %v12861_v45 = vld [vmem:[%s15288_s21 + $0x100] sm:$0xff]  ;;  %v12866_v28 = vld [vmem:[%s15288_s21 + $0x90] sm:$0xff] }
 0xc55   :  { %15300 = vst [vmem:[#allocation32_spill] sm:$0xff] %v12866_v28 }
 0xc59   :  { %v3202_v39 = vpop.f32.mrf.mxu0 }
 0xc5a   :  { %v12738_v60 = vadd.f32 %v3202_v39, %v2681_v43  ;;  %v12800_v39 = vld [vmem:[%s15288_s21 + $0xd0] sm:$0xff] }
 0xc5b   :  { %3456 = vmatpush.msrb.mxu2 %v12800_v39 }
 0xc5c   :  { %15291 = vst [vmem:[#allocation23_spill] sm:$0xff] %v12738_v60  ;;  %v3328_v38 = vadd.f32 %v3327_v17, %v12738_v60  ;;  %v12818_v17 = vld [vmem:[%s15288_s21 + $0xc0] sm:$0xff]  ;;  %v12858_v60 = vld [vmem:[%s15288_s21 + $0x98] sm:$0xff] }
 0xc5d   :  { %15294 = vst [vmem:[#allocation26_spill] sm:$0xff] %v12818_v17 }
 0xc5e   :  { %15299 = vst [vmem:[#allocation31_spill] sm:$0xff] %v12858_v60 }
 0xc61   :  { %v3205_v46 = vpop.f32.mrf.mxu0 }
 0xc62   :  { %v12746_v32 = vadd.f32 %v3205_v46, %v2684_v14  ;;  %v12808_v46 = vld [vmem:[%s15288_s21 + $0xc8] sm:$0xff] }
 0xc63   :  { %3457 = vmatpush.msrb.mxu2 %v12808_v46 }
 0xc64   :  { %15292 = vst [vmem:[#allocation24_spill] sm:$0xff] %v12746_v32  ;;  %v3329_v4 = vadd.f32 %v3328_v38, %v12746_v32  ;;  %v12845_v32 = vld [vmem:[%s15288_s21 + $0x110] sm:$0xff] }
 0xc65   :  { %3458 = vmatpush.msrb.mxu2 %v12818_v17 }
 0xc69   :  { %v3208_v41 = vpop.f32.mrf.mxu0 }
 0xc6a   :  { %v12760_v52 = vadd.f32 %v3208_v41, %v2687_v19  ;;  %v12821_v19 = vld [vmem:[%s15288_s21 + $0x128] sm:$0xff] }
 0xc6b   :  { %3481 = vmatpush.msra.mxu3 %v12821_v19 }
 0xc6c   :  { %15293 = vst [vmem:[#allocation25_spill] sm:$0xff] %v12760_v52  ;;  %v3330_v56 = vsel %vm226_vm0, %v12760_v52, 0.0  ;;  %v12853_v52 = vld [vmem:[%s15288_s21 + $0x108] sm:$0xff] }
 0xc6d   :  { %v3331_v34 = vadd.f32 %v3330_v56, %v3329_v4  ;;  %v12826_v4 = vld [vmem:[%s15288_s21 + $0xb8] sm:$0xff]  ;;  %v12829_v56 = vld [vmem:[%s15288_s21 + $0x120] sm:$0xff] }
 0xc6e   :  { %15295 = vst [vmem:[#allocation27_spill] sm:$0xff] %v12826_v4  ;;  %3459 = vmatpush.msrb.mxu2 %v12826_v4  ;;  %3482 = vmatpush.msra.mxu3 %v12829_v56 }
 0xc6f   :  { %v3332_v36 = vrot.slane %v3331_v34, 4  ;;  %v12787_v7 = vpop.f32.mrf.mxu3 }
 0xc71   :  { %v3333_v8 = vadd.f32 %v3332_v36, %v3331_v34  ;;  %v12834_v36 = vld [vmem:[%s15288_s21 + $0xb0] sm:$0xff] }
 0xc72   :  { %15296 = vst [vmem:[#allocation28_spill] sm:$0xff] %v12834_v36  ;;  %3460 = vmatpush.msrb.mxu2 %v12834_v36 }
 0xc73   :  { %v3334_v44 = vrot.slane %v3333_v8, 2 }
 0xc75   :  { %v3335_v43 = vadd.f32 %v3334_v44, %v3333_v8  ;;  %v12813_v14 = vpop.f32.mrf.mxu2  ;;  %v12837_v8 = vld [vmem:[%s15288_s21 + $0x118] sm:$0xff]  ;;  %v12842_v44 = vld [vmem:[%s15288_s21 + $0xa8] sm:$0xff] }
 0xc76   :  { %3483 = vmatpush.msra.mxu3 %v12837_v8  ;;  %15297 = vst [vmem:[#allocation29_spill] sm:$0xff] %v12842_v44  ;;  %3461 = vmatpush.msrb.mxu2 %v12842_v44  ;;  %v12871_v44 = vld [vmem:[%s15288_s21 + $0x88] sm:$0xff] }
 0xc77   :  { %v3336_v38 = vrot.slane %v3335_v43, 1  ;;  %v3263_v41 = vpop.f32.mrf.mxu3 }
 0xc78   :  { %3484 = vmatpush.msra.mxu3 %v12845_v32 }
 0xc79   :  { %v3337_v34 = vadd.f32 %v3336_v38, %v3335_v43  ;;  %v12850_v38 = vld [vmem:[%s15288_s21 + $0xa0] sm:$0xff] }
 0xc7a   :  { %15298 = vst [vmem:[#allocation30_spill] sm:$0xff] %v12850_v38  ;;  %3462 = vmatpush.msrb.mxu2 %v12850_v38  ;;  %3485 = vmatpush.msra.mxu3 %v12853_v52  ;;  %v12875_v38 = vld [vmem:[%s15288_s21 + $0x80] sm:$0xff] }
 0xc7b   :  { %3447 = vmatmul.f32.vlgmr.msrb.gmra.mxu0 %v3337_v34 }
 0xc7c   :  { %3463 = vmatpush.msrb.mxu2 %v12858_v60  ;;  %3486 = vmatpush.msra.mxu3 %v12861_v45  ;;  %v2742_v60 = vadd.f32 %v12656_v37, %v12620_v27 }
 0xc7d   :  { %v3231_v43 = vpop.f32.mrf.mxu2 }
 0xc7e   :  { %3464 = vmatpush.msrb.mxu2 %v12866_v28  ;;  %3742 = vmatpush.msrb.mxu3 %v12722_v6  ;;  %v2739_v6 = vadd.f32 %v12652_v35, %v12612_v25  ;;  %v2745_v28 = vadd.f32 %v12660_v55, %v12628_v0  ;;  %v12886_v17 = vadd.f32 %v3263_v41, %v2742_v60 }
 0xc7f   :  { %v3266_v34 = vpop.f32.mrf.mxu3  ;;  %v2710_v25 = vadd.f32 %v12624_v20, %v12588_v16 }
 0xc80   :  { %3465 = vmatpush.msrb.mxu2 %v12871_v44  ;;  %3743 = vmatpush.msrb.mxu3 %v12725_v58  ;;  %v2748_v58 = vadd.f32 %v12668_v57, %v12636_v9  ;;  %v12892_v27 = vadd.f32 %v12787_v7, %v2739_v6  ;;  %v12894_v37 = vadd.f32 %v3266_v34, %v2745_v28 }
 0xc81   :  { %v2751_v9 = vadd.f32 %v12673_v48, %v12644_v30  ;;  %v2707_v57 = vadd.f32 %v12616_v15, %v12582_v13  ;;  %v2713_v28 = vadd.f32 %v12632_v10, %v12594_v18  ;;  %v12910_v60 = vadd.f32 %v3231_v43, %v2710_v25 }
 0xc82   :  { %3466 = vmatpush.msrb.mxu2 %v12875_v38  ;;  %3744 = vmatpush.msrb.mxu3 %v12742_v12  ;;  %v3349_v0 = vadd.f32 %v12886_v17, %v12892_v27 }
 0xc83   :  { %v12919_v30 = vadd.f32 %v12813_v14, %v2707_v57  ;;  %v2771_v57 = vadd.f32 %v12642_v33, %v12601_v22 }
 0xc84   :  { %3745 = vmatpush.msrb.mxu3 %v12755_v63  ;;  %v3350_v16 = vadd.f32 %v3349_v0, %v12894_v37 }
 0xc85   :  { %v3234_v36 = vpop.f32.mrf.mxu2  ;;  %v3338_v10 = vadd.f32 %v12910_v60, %v12919_v30 }
 0xc86   :  { %3746 = vmatpush.msrb.mxu3 %v12766_v11  ;;  %v2716_v11 = vadd.f32 %v12640_v31, %v12599_v21  ;;  %v12921_v13 = vadd.f32 %v3234_v36, %v2713_v28  ;;  %v2719_v21 = vadd.f32 %v12648_v3, %v12607_v24  ;;  %v2777_v28 = vadd.f32 %v12654_v2, %v12618_v26  ;;  %v15301_v2 = vld [vmem:[#allocation20_spill] sm:$0xff] }
 0xc87   :  { %v3269_v4 = vpop.f32.mrf.mxu3 }
 0xc88   :  { %v12901_v35 = vadd.f32 %v3269_v4, %v2748_v58  ;;  %3747 = vmatpush.msrb.mxu3 %v12775_v40  ;;  %v3339_v31 = vadd.f32 %v3338_v10, %v12921_v13 }
 0xc8a   :  { %3748 = vmatpush.msrb.mxu3 %v12785_v49  ;;  %v3351_v18 = vadd.f32 %v3350_v16, %v12901_v35 }
 0xc8c   :  { %3749 = vmatpush.msrb.mxu3 %v12795_v47 }
 0xc8d   :  { %v3237_v55 = vpop.f32.mrf.mxu2 }
 0xc8e   :  { %v12929_v48 = vadd.f32 %v3237_v55, %v2716_v11  ;;  %3750 = vmatpush.msrb.mxu3 %v12803_v62 }
 0xc8f   :  { %v3272_v20 = vpop.f32.mrf.mxu3  ;;  %v3292_v12 = vpop.f32.mrf.mxu1 }
 0xc90   :  { %v12914_v63 = vadd.f32 %v3272_v20, %v2751_v9  ;;  %3751 = vmatpush.msrb.mxu3 %v12811_v51  ;;  %v3340_v14 = vadd.f32 %v3339_v31, %v12929_v48  ;;  %v12945_v51 = vld [vmem:[%s15288_s21 + $0x190] sm:$0xff]  ;;  %v2780_v20 = vadd.f32 %v12658_v53, %v12626_v50  ;;  %v12969_v11 = vadd.f32 %v3292_v12, %v2771_v57 }
 0xc91   :  { %3504 = vmatpush.msra.mxu0 %v12945_v51  ;;  %v2783_v50 = vadd.f32 %v15301_v2, %v12634_v29 }
 0xc92   :  { %v3352_v15 = vsel %vm226_vm0, %v12914_v63, 0.0  ;;  %3752 = vmatpush.msrb.mxu3 %v12821_v19  ;;  %v12950_v19 = vld [vmem:[%s15288_s21 + $0x188] sm:$0xff]  ;;  %v3361_v22 = vsel %vm3360_vm3, %v12969_v11, 0.0 }
 0xc93   :  { %v3353_v40 = vadd.f32 %v3352_v15, %v3351_v18  ;;  %3505 = vmatpush.msra.mxu0 %v12950_v19 }
 0xc94   :  { %3753 = vmatpush.msrb.mxu3 %v12829_v56  ;;  %v12954_v56 = vld [vmem:[%s15288_s21 + $0x180] sm:$0xff] }
 0xc95   :  { %v3354_v49 = vrot.slane %v3353_v40, 4  ;;  %v3240_v7 = vpop.f32.mrf.mxu2  ;;  %3506 = vmatpush.msra.mxu0 %v12954_v56 }
 0xc96   :  { %v12936_v47 = vadd.f32 %v3240_v7, %v2719_v21  ;;  %3754 = vmatpush.msrb.mxu3 %v12837_v8 }
 0xc97   :  { %v3355_v41 = vadd.f32 %v3354_v49, %v3353_v40  ;;  %v3295_v4 = vpop.f32.mrf.mxu1 }
 0xc98   :  { %v3341_v62 = vsel %vm226_vm0, %v12936_v47, 0.0  ;;  %3755 = vmatpush.msrb.mxu3 %v12845_v32  ;;  %v2774_v32 = vadd.f32 %v12650_v61, %v12609_v54 }
 0xc99   :  { %v3356_v24 = vrot.slane %v3355_v41, 2  ;;  %v3342_v3 = vadd.f32 %v3341_v62, %v3340_v14  ;;  %v12994_v62 = vld [vmem:[%s15302_s25 + $0x48] sm:$0xff] }
 0xc9a   :  { %3756 = vmatpush.msrb.mxu3 %v12853_v52  ;;  %v12965_v16 = vadd.f32 %v3295_v4, %v2774_v32  ;;  %v12991_v4 = vld [vmem:[%s15302_s25 + $0x40] sm:$0xff]  ;;  %3560 = vmatpush.msrb.mxu0 %v12994_v62 }
 0xc9b   :  { %v3357_v36 = vadd.f32 %v3356_v24, %v3355_v41  ;;  %v3343_v43 = vrot.slane %v3342_v3, 4  ;;  %3540 = vmatpush.msra.mxu2 %v12991_v4  ;;  %v12999_v24 = vld [vmem:[%s15302_s25 + $0x20] sm:$0xff]  ;;  %3812 = vmatpush.msra.mxu1 %v12991_v4 }
 0xc9c   :  { %3757 = vmatpush.msrb.mxu3 %v12861_v45  ;;  %v3362_v54 = vsel %vm3360_vm3, %v12965_v16, 0.0 }
 0xc9d   :  { %v3358_v34 = vrot.slane %v3357_v36, 1  ;;  %v3344_v6 = vadd.f32 %v3343_v43, %v3342_v3  ;;  %v3363_v33 = vadd.f32 %v3362_v54, %v3361_v22  ;;  %v13002_v3 = vld [vmem:[%s15302_s25 + $0x28] sm:$0xff]  ;;  %3541 = vmatpush.msra.mxu2 %v12999_v24  ;;  %3813 = vmatpush.msra.mxu1 %v12999_v24 }
 0xc9e   :  { %3561 = vmatpush.msrb.mxu0 %v13002_v3  ;;  %v13011_v43 = vld [vmem:[%s15302_s25 + $0x8] sm:$0xff] }
 0xc9f   :  { %v3359_v58 = vadd.f32 %v3358_v34, %v3357_v36  ;;  %v3345_v25 = vrot.slane %v3344_v6, 2  ;;  %v3298_v0 = vpop.f32.mrf.mxu1  ;;  %v13008_v36 = vld [vmem:[%s15302_s25] sm:$0xff]  ;;  %v13017_v34 = vld [vmem:[%s15302_s25 + $0x50] sm:$0xff] }
 0xca0   :  { %v12971_v45 = vadd.f32 %v3298_v0, %v2777_v28  ;;  %3542 = vmatpush.msra.mxu2 %v13008_v36  ;;  %3562 = vmatpush.msrb.mxu0 %v13011_v43  ;;  %v13031_v0 = vld [vmem:[%s15302_s25 + $0x10] sm:$0xff] }
 0xca1   :  { %v3346_v8 = vadd.f32 %v3345_v25, %v3344_v6  ;;  %3487 = vmatmul.f32.vlgmr.msra.gmra.mxu3 %v3359_v58  ;;  %v13020_v6 = vld [vmem:[%s15302_s25 + $0x58] sm:$0xff]  ;;  %v13023_v58 = vld [vmem:[%s15302_s25 + $0x30] sm:$0xff]  ;;  %3814 = vmatpush.msra.mxu1 %v13008_v36 }
 0xca2   :  { %v3364_v26 = vsel %vm3360_vm3, %v12971_v45, 0.0  ;;  %v13028_v25 = vld [vmem:[%s15302_s25 + $0x38] sm:$0xff] }
 0xca3   :  { %v3347_v55 = vrot.slane %v3346_v8, 1  ;;  %v3365_v12 = vadd.f32 %v3364_v26, %v3363_v33 }
 0xca5   :  { %v3348_v9 = vadd.f32 %v3347_v55, %v3346_v8  ;;  %v13034_v8 = vld [vmem:[%s15302_s25 + $0x18] sm:$0xff] }
 0xca7   :  { %v3301_v52 = vpop.f32.mrf.mxu1  ;;  %3467 = vmatmul.f32.vlgmr.msrb.gmra.mxu2 %v3348_v9 }
 0xca8   :  { %v12975_v61 = vadd.f32 %v3301_v52, %v2780_v20  ;;  %3580 = vmatpush.msrb.mxu2 %v13017_v34 }
 0xcaa   :  { %v3366_v53 = vsel %vm3360_vm3, %v12975_v61, 0.0  ;;  %3581 = vmatpush.msrb.mxu2 %v13023_v58 }
 0xcab   :  { %v3367_v10 = vadd.f32 %v3366_v53, %v3365_v12 }
 0xcac   :  { %3582 = vmatpush.msrb.mxu2 %v13031_v0 }
 0xcaf   :  { %v3304_v18 = vpop.f32.mrf.mxu1 }
 0xcb0   :  { %v12985_v15 = vadd.f32 %v3304_v18, %v2783_v50  ;;  %v15310_v18 = vld [vmem:[#allocation22_spill] sm:$0xff] }
 0xcb2   :  { %v3369_v40 = vsel %vm3368_vm4, %v12985_v15, 0.0 }
 0xcb3   :  { %v3370_v21 = vadd.f32 %v3369_v40, %v3367_v10  ;;  %v15311_v40 = vld [vmem:[#allocation21_spill] sm:$0xff] }
 0xcb5   :  { %v3371_v31 = vrot.slane %v3370_v21, 4 }
 0xcb7   :  { %v3372_v29 = vadd.f32 %v3371_v31, %v3370_v21  ;;  %v15312_v31 = vld [vmem:[#allocation23_spill] sm:$0xff] }
 0xcb9   :  { %v3373_v49 = vrot.slane %v3372_v29, 2 }
 0xcbb   :  { %v3374_v7 = vadd.f32 %v3373_v49, %v3372_v29 }
 0xcbd   :  { %v3375_v14 = vrot.slane %v3374_v7, 1 }
 0xcbf   :  { %v3376_v41 = vadd.f32 %v3375_v14, %v3374_v7  ;;  %v15313_v7 = vld [vmem:[#allocation25_spill] sm:$0xff] }
 0xcc1   :  { %9525 = vmatmul.msk.f32.vlgmr.msra.gmra.mxu0 %vm3360_vm3, %v3376_v41 }
 0xcc2   :  { %3600 = vmatpush.msra.mxu0 %v13020_v6 }
 0xcc4   :  { %3601 = vmatpush.msra.mxu0 %v13028_v25 }
 0xcc6   :  { %3602 = vmatpush.msra.mxu0 %v13034_v8 }
 0xcf8   :  { %v3448_v55 = vpop.f32.mrf.mxu0 }
 0xd24   :  { %v3488_v57 = vpop.f32.mrf.mxu3 }
 0xd2a   :  { %v3468_v32 = vpop.f32.mrf.mxu2 }
 0xd2b   :  { %v3469_v9 = vadd.f32 %v3468_v32, %v3448_v55  ;;  %v15314_v32 = vld [vmem:[#allocation24_spill] sm:$0xff] }
 0xd2d   :  { %v3489_v28 = vadd.f32 %v3488_v57, %v3469_v9 }
 0xd3e   :  { %v3508_v52 = vpop.f32.mrf.mxu0 }
 0xd3f   :  { %v3509_v20 = vadd.f32 %v3508_v52, %v3489_v28 }
 0xd41   :  { %v3511_v54 = vmul.f32 0.0017301039, %v3509_v20 }
 0xd43   :  { %9526 = vmatmul.msk.f32.vlgmr.msra.gmra.mxu2 %vm3360_vm3, %v3511_v54  ;;  %9527 = vmatmul.msk.f32.vlgmr.msrb.gmra.mxu0 %vm3360_vm3, %v3511_v54 }
 0xd44   :  { %3722 = vmatpush.msra.mxu2 %v12752_v5  ;;  %3775 = vmatpush.msrb.mxu0 %v12945_v51  ;;  %v15303_v5 = vld [vmem:[#allocation26_spill] sm:$0xff] }
 0xd45   :  { %v15307_v51 = vld [vmem:[#allocation30_spill] sm:$0xff] }
 0xd46   :  { %3723 = vmatpush.msra.mxu2 %v12763_v1  ;;  %3776 = vmatpush.msrb.mxu0 %v12950_v19  ;;  %v15304_v1 = vld [vmem:[#allocation27_spill] sm:$0xff]  ;;  %v15309_v19 = vld [vmem:[#allocation32_spill] sm:$0xff] }
 0xd48   :  { %3724 = vmatpush.msra.mxu2 %v12769_v23  ;;  %3777 = vmatpush.msrb.mxu0 %v12954_v56  ;;  %v15305_v23 = vld [vmem:[#allocation28_spill] sm:$0xff] }
 0xd4a   :  { %3725 = vmatpush.msra.mxu2 %v12782_v42  ;;  %v15306_v42 = vld [vmem:[#allocation29_spill] sm:$0xff] }
 0xd4b   :  { %9528 = vmatmul.msk.f32.vlgmr.msrb.gmra.mxu2 %vm3360_vm3, %v3511_v54  ;;  %9529 = vmatmul.msk.f32.vlgmr.msra.gmra.mxu0 %vm3360_vm3, %v3511_v54 }
 0xd4c   :  { %3726 = vmatpush.msra.mxu2 %v12792_v59  ;;  %3832 = vmatpush.msra.mxu0 %v12994_v62  ;;  %v15308_v59 = vld [vmem:[#allocation31_spill] sm:$0xff] }
 0xd4e   :  { %3727 = vmatpush.msra.mxu2 %v12800_v39  ;;  %3833 = vmatpush.msra.mxu0 %v13002_v3 }
 0xd50   :  { %3728 = vmatpush.msra.mxu2 %v12808_v46  ;;  %3834 = vmatpush.msra.mxu0 %v13011_v43 }
 0xd52   :  { %3729 = vmatpush.msra.mxu2 %v15303_v5 }
 0xd54   :  { %3730 = vmatpush.msra.mxu2 %v15304_v1 }
 0xd56   :  { %3731 = vmatpush.msra.mxu2 %v15305_v23 }
 0xd58   :  { %3732 = vmatpush.msra.mxu2 %v15306_v42 }
 0xd5a   :  { %3733 = vmatpush.msra.mxu2 %v15307_v51 }
 0xd5c   :  { %3734 = vmatpush.msra.mxu2 %v15308_v59 }
 0xd5e   :  { %3735 = vmatpush.msra.mxu2 %v15309_v19 }
 0xd60   :  { %3736 = vmatpush.msra.mxu2 %v12871_v44 }
 0xd62   :  { %3737 = vmatpush.msra.mxu2 %v12875_v38 }
 0xd64   :  { %3980 = vmatpush.msrb.mxu2 %v13020_v6 }
 0xd66   :  { %3981 = vmatpush.msrb.mxu2 %v13028_v25 }
 0xd68   :  { %3982 = vmatpush.msrb.mxu2 %v13034_v8 }
 0xdc0   :  { %v3564_v39 = vpop.f32.mrf.mxu0 }
 0xdc1   :  { %v3608_v46 = vperm.slane %v3564_v39, 0 }
 0xdc3   :  { %v13071_v56 = vsub.f32 %v12919_v30, %v3608_v46  ;;  %v13074_v22 = vsub.f32 %v12910_v60, %v3608_v46  ;;  %v13077_v26 = vsub.f32 %v12921_v13, %v3608_v46  ;;  %v13080_v44 = vsub.f32 %v12929_v48, %v3608_v46 }
 0xdc4   :  { %v13083_v38 = vsub.f32 %v12936_v47, %v3608_v46 }
 0xdc5   :  { %v3632_v33 = vmul.f32 %v13071_v56, %v13071_v56  ;;  %v3636_v2 = vmul.f32 %v13074_v22, %v13074_v22  ;;  %v3640_v13 = vmul.f32 %v13077_v26, %v13077_v26  ;;  %v3644_v48 = vmul.f32 %v13080_v44, %v13080_v44 }
 0xdc6   :  { %v3648_v30 = vmul.f32 %v13083_v38, %v13083_v38  ;;  %v3544_v60 = vpop.f32.mrf.mxu2 }
 0xdc7   :  { %v3662_v50 = vadd.f32 %v3636_v2, %v3632_v33  ;;  %v3607_v53 = vperm.slane %v3544_v60, 0 }
 0xdc8   :  { %v3604_v47 = vpop.f32.mrf.mxu0  ;;  %v3665_v49 = vsel %vm226_vm0, %v3648_v30, 0.0 }
 0xdc9   :  { %v3663_v12 = vadd.f32 %v3662_v50, %v3640_v13  ;;  %v13096_v10 = vsub.f32 %v15310_v18, %v3607_v53  ;;  %v13099_v21 = vsub.f32 %v15311_v40, %v3607_v53  ;;  %v13102_v29 = vsub.f32 %v15312_v31, %v3607_v53 }
 0xdca   :  { %v13106_v14 = vsub.f32 %v15313_v7, %v3607_v53  ;;  %v3610_v41 = vperm.slane %v3604_v47, 0  ;;  %v13109_v9 = vsub.f32 %v15314_v32, %v3607_v53 }
 0xdcb   :  { %v3664_v55 = vadd.f32 %v3663_v12, %v3644_v48  ;;  %v3631_v57 = vmul.f32 %v13096_v10, %v13096_v10  ;;  %v3635_v28 = vmul.f32 %v13099_v21, %v13099_v21  ;;  %v3639_v52 = vmul.f32 %v13102_v29, %v13102_v29 }
 0xdcc   :  { %v3647_v20 = vmul.f32 %v13106_v14, %v13106_v14  ;;  %v13120_v54 = vsub.f32 %v12969_v11, %v3610_v41  ;;  %v13123_v5 = vsub.f32 %v12965_v16, %v3610_v41  ;;  %v13126_v23 = vsub.f32 %v12971_v45, %v3610_v41 }
 0xdcd   :  { %v3651_v1 = vadd.f32 %v3635_v28, %v3631_v57  ;;  %v13129_v42 = vsub.f32 %v12975_v61, %v3610_v41  ;;  %v13132_v51 = vsub.f32 %v12985_v15, %v3610_v41  ;;  %v3666_v39 = vadd.f32 %v3665_v49, %v3664_v55 }
 0xdce   :  { %v3634_v59 = vmul.f32 %v13120_v54, %v13120_v54  ;;  %v3638_v11 = vmul.f32 %v13123_v5, %v13123_v5  ;;  %v3584_v19 = vpop.f32.mrf.mxu2  ;;  %v3643_v16 = vmul.f32 %v13109_v9, %v13109_v9  ;;  %v3642_v45 = vmul.f32 %v13126_v23, %v13126_v23 }
 0xdcf   :  { %v3652_v46 = vadd.f32 %v3651_v1, %v3639_v52  ;;  %v3646_v61 = vmul.f32 %v13129_v42, %v13129_v42  ;;  %v3609_v2 = vperm.slane %v3584_v19, 0  ;;  %v3667_v30 = vrot.slane %v3666_v39, 4 }
 0xdd0   :  { %v3684_v15 = vsel %vm3360_vm3, %v3634_v59, 0.0  ;;  %v3685_v33 = vsel %vm3360_vm3, %v3638_v11, 0.0  ;;  %v3654_v13 = vsel %vm226_vm0, %v3647_v20, 0.0  ;;  %v3650_v50 = vmul.f32 %v13132_v51, %v13132_v51 }
 0xdd1   :  { %v3653_v60 = vadd.f32 %v3652_v46, %v3643_v16  ;;  %v3686_v53 = vadd.f32 %v3685_v33, %v3684_v15  ;;  %v3687_v48 = vsel %vm3360_vm3, %v3642_v45, 0.0  ;;  %v13151_v47 = vsub.f32 %v12892_v27, %v3609_v2 }
 0xdd2   :  { %v13154_v12 = vsub.f32 %v12886_v17, %v3609_v2  ;;  %v13157_v18 = vsub.f32 %v12894_v37, %v3609_v2  ;;  %v3689_v31 = vsel %vm3360_vm3, %v3646_v61, 0.0  ;;  %v13161_v49 = vsub.f32 %v12914_v63, %v3609_v2 }
 0xdd3   :  { %v3688_v40 = vadd.f32 %v3687_v48, %v3686_v53  ;;  %v3668_v7 = vadd.f32 %v3667_v30, %v3666_v39  ;;  %v13164_v41 = vsub.f32 %v12901_v35, %v3609_v2  ;;  %v3633_v27 = vmul.f32 %v13151_v47, %v13151_v47 }
 0xdd4   :  { %v3637_v17 = vmul.f32 %v13154_v12, %v13154_v12  ;;  %v3655_v55 = vadd.f32 %v3654_v13, %v3653_v60  ;;  %v3691_v57 = vsel %vm3368_vm4, %v3650_v50, 0.0  ;;  %v3641_v28 = vmul.f32 %v13157_v18, %v13157_v18 }
 0xdd5   :  { %v3690_v32 = vadd.f32 %v3689_v31, %v3688_v40  ;;  %v3669_v37 = vrot.slane %v3668_v7, 2  ;;  %v3649_v35 = vmul.f32 %v13161_v49, %v13161_v49  ;;  %v3645_v59 = vmul.f32 %v13164_v41, %v13164_v41 }
 0xdd6   :  { %v3673_v63 = vadd.f32 %v3637_v17, %v3633_v27  ;;  %v3656_v52 = vrot.slane %v3655_v55, 4 }
 0xdd7   :  { %v3692_v20 = vadd.f32 %v3691_v57, %v3690_v32  ;;  %v3670_v1 = vadd.f32 %v3669_v37, %v3668_v7  ;;  %v3676_v15 = vsel %vm226_vm0, %v3649_v35, 0.0 }
 0xdd8   :  { %v3674_v11 = vadd.f32 %v3673_v63, %v3641_v28  ;;  %v3657_v19 = vadd.f32 %v3656_v52, %v3655_v55  ;;  %v3903_v28 = vld [vmem:[%s15315_s29] sm:$0x1] }
 0xdd9   :  { %v3693_v39 = vrot.slane %v3692_v20, 4  ;;  %v3671_v16 = vrot.slane %v3670_v1, 1 }
 0xdda   :  { %v3675_v46 = vadd.f32 %v3674_v11, %v3645_v59  ;;  %v3658_v45 = vrot.slane %v3657_v19, 2 }
 0xddb   :  { %v3694_v61 = vadd.f32 %v3693_v39, %v3692_v20  ;;  %v3672_v33 = vadd.f32 %v3671_v16, %v3670_v1  ;;  %v9625_v39 = vld [vmem:[%s15316_s3 + $0xa8] sm:$0xf]  ;;  %v11216_v16 = vld [vmem:[%s15316_s3 + $0xb0] sm:$0xf0] }
 0xddc   :  { %v3659_v2 = vadd.f32 %v3658_v45, %v3657_v19  ;;  %v3677_v30 = vadd.f32 %v3676_v15, %v3675_v46  ;;  %v9626_v45 = vor.u32 %v11216_v16, %v9625_v39  ;;  %v11213_v15 = vld [vmem:[%s15316_s3 + $0x98] sm:$0xf0] }
 0xddd   :  { %3738 = vmatmul.f32.vlgmr.msra.gmra.mxu2 %v3672_v33  ;;  %v3695_v60 = vrot.slane %v3694_v61, 2  ;;  %v3783_v33 = vld [vmem:[%s15317_s8] sm:$0x1] }
 0xdde   :  { %v3660_v13 = vrot.slane %v3659_v2, 1  ;;  %v3678_v50 = vrot.slane %v3677_v30, 4  ;;  %4571 = vmatpush.bf16.msra.mxu3 %v9626_v45 }
 0xddf   :  { %v3696_v53 = vadd.f32 %v3695_v60, %v3694_v61  ;;  %v9613_v61 = vld [vmem:[%s15316_s3 + $0x90] sm:$0xf] }
 0xde0   :  { %v3661_v48 = vadd.f32 %v3660_v13, %v3659_v2  ;;  %v3679_v40 = vadd.f32 %v3678_v50, %v3677_v30  ;;  %v9614_v30 = vor.u32 %v11213_v15, %v9613_v61  ;;  %v9721_v50 = vld [vmem:[%s15316_s3 + $0x168] sm:$0xf]  ;;  %v9565_v61 = vld [vmem:[%s15316_s3 + $0x30] sm:$0xf]  ;;  %v11201_v15 = vld [vmem:[%s15316_s3 + $0x38] sm:$0xf0] }
 0xde1   :  { %v3697_v31 = vrot.slane %v3696_v53, 1 }
 0xde2   :  { %3718 = vmatmul.f32.vlgmr.msrb.gmra.mxu1 %v3661_v48  ;;  %v3680_v7 = vrot.slane %v3679_v40, 2  ;;  %4572 = vmatpush.bf16.msra.mxu3 %v9614_v30  ;;  %v11225_v30 = vld [vmem:[%s15316_s3 + $0xf8] sm:$0xf0] }
 0xde3   :  { %v3698_v27 = vadd.f32 %v3697_v31, %v3696_v53  ;;  %3852 = vmatpush.msrb.mxu1 %v13017_v34  ;;  %v11240_v53 = vld [vmem:[%s15316_s3 + $0x170] sm:$0xf0]  ;;  %v11237_v31 = vld [vmem:[%s15316_s3 + $0x158] sm:$0xf0] }
 0xde4   :  { %v3681_v17 = vadd.f32 %v3680_v7, %v3679_v40  ;;  %v9722_v48 = vor.u32 %v11240_v53, %v9721_v50  ;;  %v9709_v40 = vld [vmem:[%s15316_s3 + $0x150] sm:$0xf]  ;;  %v11255_v50 = vld [vmem:[%s15316_s3 + $0x1e8] sm:$0xf0] }
 0xde5   :  { %9530 = vmatmul.msk.f32.vlgmr.msrb.gmra.mxu0 %vm3360_vm3, %v3698_v27  ;;  %3853 = vmatpush.msrb.mxu1 %v13023_v58  ;;  %v9589_v27 = vld [vmem:[%s15316_s3 + $0x60] sm:$0xf] }
 0xde6   :  { %v3682_v55 = vrot.slane %v3681_v17, 1  ;;  %3872 = vmatpush.msrb.mxu0 %v13020_v6  ;;  %9538 = vmatmul.msk.f32.vlgmr.msrb.gmra.mxu2 %vm3360_vm3, %v3903_v28 }
 0xde7   :  { %3854 = vmatpush.msrb.mxu1 %v13031_v0 }
 0xde8   :  { %v3683_v32 = vadd.f32 %v3682_v55, %v3681_v17  ;;  %3873 = vmatpush.msrb.mxu0 %v13028_v25  ;;  %v11207_v17 = vld [vmem:[%s15316_s3 + $0x68] sm:$0xf0]  ;;  %v9685_v55 = vld [vmem:[%s15316_s3 + $0x120] sm:$0xf] }
 0xdea   :  { %3758 = vmatmul.f32.vlgmr.msrb.gmra.mxu3 %v3683_v32  ;;  %3874 = vmatpush.msrb.mxu0 %v13034_v8  ;;  %v9590_v32 = vor.u32 %v11207_v17, %v9589_v27  ;;  %v11195_v27 = vld [vmem:[%s15316_s3 + $0x8] sm:$0xf0]  ;;  %v9637_v17 = vld [vmem:[%s15316_s3 + $0xc0] sm:$0xf] }
 0xe5f   :  { %v3719_v37 = vpop.f32.mrf.mxu1 }
 0xe60   :  { %v3739_v57 = vpop.f32.mrf.mxu2 }
 0xe61   :  { %v3740_v63 = vadd.f32 %v3739_v57, %v3719_v37  ;;  %v11231_v37 = vld [vmem:[%s15316_s3 + $0x128] sm:$0xf0]  ;;  %v9805_v57 = vld [vmem:[%s15316_s3 + $0x210] sm:$0xf] }
 0xe62   :  { %v3779_v6 = vpop.f32.mrf.mxu0 }
 0xe6d   :  { %v3759_v52 = vpop.f32.mrf.mxu3 }
 0xe6e   :  { %v3760_v20 = vadd.f32 %v3759_v52, %v3740_v63  ;;  %v9686_v63 = vor.u32 %v11231_v37, %v9685_v55  ;;  %v9757_v37 = vld [vmem:[%s15316_s3 + $0x1b0] sm:$0xf] }
 0xe70   :  { %v3780_v35 = vadd.f32 %v3779_v6, %v3760_v20  ;;  %v13225_v20 = vld [vmem:[%s15316_s3 + $0x258] sm:$0xff]  ;;  %v9577_v6 = vld [vmem:[%s15316_s3 + $0x48] sm:$0xf] }
 0xe72   :  { %v3782_v1 = vmul.f32 0.0017301039, %v3780_v35  ;;  %v11204_v35 = vld [vmem:[%s15316_s3 + $0x50] sm:$0xf0] }
 0xe74   :  { %v3784_v25 = vadd.f32 1e-05, %v3782_v1  ;;  %v9673_v1 = vld [vmem:[%s15316_s3 + $0x108] sm:$0xf] }
 0xe76   :  { %11490 = vrsqrt.f32 %v3784_v25  ;;  %vm3791_vm6 = vweird.f32 %v3784_v25 }
 0xe7c   :  { %v11491_v59 = vpop.eup %11490 }
 0xe7d   :  { %v3786_v8 = vmul.f32 %v11491_v59, %v3784_v25  ;;  %vm3792_vm5 = vweird.f32 %v11491_v59  ;;  %v4397_v25 = vunpack.c.l.b16 %v13225_v20 }
 0xe7e   :  { %vm3793_vm7 = vmor %vm3791_vm6, %vm3792_vm5 }
 0xe7f   :  { %v3787_v11 = vmul.f32 %v11491_v59, %v3786_v8  ;;  %v11228_v8 = vld [vmem:[%s15316_s3 + $0x110] sm:$0xf0] }
 0xe80   :  { %v9674_v39 = vor.u32 %v11228_v8, %v9673_v1  ;;  %v9733_v1 = vld [vmem:[%s15316_s3 + $0x180] sm:$0xf] }
 0xe81   :  { %v3788_v19 = vmul.f32 0.5, %v3787_v11  ;;  %v9793_v11 = vld [vmem:[%s15316_s3 + $0x1f8] sm:$0xf] }
 0xe83   :  { %v3789_v46 = vsub.f32 1.5, %v3788_v19  ;;  %v11258_v19 = vld [vmem:[%s15316_s3 + $0x200] sm:$0xf0] }
 0xe84   :  { %v9794_v16 = vor.u32 %v11258_v19, %v9793_v11  ;;  %v11215_v19 = vld [vmem:[%s15316_s3 + $0xac] sm:$0xf] }
 0xe85   :  { %v3790_v2 = vmul.f32 %v11491_v59, %v3789_v46  ;;  %v4475_v46 = vpack.c.b16 %v4397_v25, %v4397_v25  ;;  %v11243_v25 = vld [vmem:[%s15316_s3 + $0x188] sm:$0xf0] }
 0xe86   :  { %v9734_v11 = vor.u32 %v11243_v25, %v9733_v1 }
 0xe87   :  { %v3794_v60 = vsel %vm3793_vm7, %v11491_v59, %v3790_v2  ;;  %v9578_v59 = vor.u32 %v11204_v35, %v9577_v6  ;;  %v4563_v45 = vsel %vm1017_vm9, %v4475_v46, 0  ;;  %v9661_v2 = vld [vmem:[%s15316_s3 + $0xf0] sm:$0xf]  ;;  %v11246_v6 = vld [vmem:[%s15316_s3 + $0x1a0] sm:$0xf0] }
 0xe88   :  { %v3795_v13 = vmul.f32 %v3794_v60, %v3783_v33  ;;  %4646 = vmatpush.bf16.msra.mxu2 %v4563_v45  ;;  %v9566_v33 = vor.u32 %v11201_v15, %v9565_v61  ;;  %v9781_v60 = vld [vmem:[%s15316_s3 + $0x1e0] sm:$0xf]  ;;  %v3984_v61 = vpop.f32.mrf.mxu2 }
 0xe89   :  { %v9782_v53 = vor.u32 %v11255_v50, %v9781_v60  ;;  %v9615_v45 = vld [vmem:[%s15316_s3 + $0x9c] sm:$0xf0]  ;;  %v11239_v50 = vld [vmem:[%s15316_s3 + $0x16c] sm:$0xf] }
 0xe8a   :  { %9531 = vmatmul.msk.f32.vlgmr.msra.gmra.mxu1 %vm3360_vm3, %v3795_v13  ;;  %9532 = vmatmul.msk.f32.vlgmr.msra.gmra.mxu0 %vm3360_vm3, %v3795_v13 }
 0xe8b   :  { %3920 = vmatpush.msra.mxu1 %v12991_v4  ;;  %3940 = vmatpush.msra.mxu0 %v12994_v62  ;;  %v9710_v4 = vor.u32 %v11237_v31, %v9709_v40  ;;  %v9601_v62 = vld [vmem:[%s15316_s3 + $0x78] sm:$0xf]  ;;  %v11267_v40 = vld [vmem:[%s15316_s3 + $0x248] sm:$0xf0] }
 0xe8d   :  { %3921 = vmatpush.msra.mxu1 %v12999_v24  ;;  %3941 = vmatpush.msra.mxu0 %v13002_v3  ;;  %v11210_v24 = vld [vmem:[%s15316_s3 + $0x80] sm:$0xf0]  ;;  %v9697_v3 = vld [vmem:[%s15316_s3 + $0x138] sm:$0xf] }
 0xe8f   :  { %3922 = vmatpush.msra.mxu1 %v13008_v36  ;;  %3942 = vmatpush.msra.mxu0 %v13011_v43  ;;  %v9602_v36 = vor.u32 %v11210_v24, %v9601_v62  ;;  %v11234_v43 = vld [vmem:[%s15316_s3 + $0x140] sm:$0xf0]  ;;  %v9649_v24 = vld [vmem:[%s15316_s3 + $0xd8] sm:$0xf] }
 0xe90   :  { %v11198_v62 = vld [vmem:[%s15316_s3 + $0x20] sm:$0xf0] }
 0xe91   :  { %4573 = vmatpush.bf16.msra.mxu3 %v9602_v36  ;;  %v11222_v36 = vld [vmem:[%s15316_s3 + $0xe0] sm:$0xf0] }
 0xe92   :  { %9533 = vmatmul.msk.f32.vlgmr.msrb.gmra.mxu1 %vm3360_vm3, %v3795_v13  ;;  %9534 = vmatmul.msk.f32.vlgmr.msrb.gmra.mxu0 %vm3360_vm3, %v3795_v13  ;;  %v9662_v13 = vor.u32 %v11225_v30, %v9661_v2 }
 0xe93   :  { %3960 = vmatpush.msrb.mxu1 %v13017_v34  ;;  %4594 = vmatpush.bf16.msrb.mxu0 %v9722_v48  ;;  %v9817_v34 = vld [vmem:[%s15316_s3 + $0x228] sm:$0xf]  ;;  %v9829_v48 = vld [vmem:[%s15316_s3 + $0x240] sm:$0xf] }
 0xe94   :  { %v9830_v31 = vor.u32 %v11267_v40, %v9829_v48  ;;  %v11263_v48 = vld [vmem:[%s15316_s3 + $0x22c] sm:$0xf] }
 0xe95   :  { %3961 = vmatpush.msrb.mxu1 %v13023_v58  ;;  %v11264_v58 = vld [vmem:[%s15316_s3 + $0x230] sm:$0xf0]  ;;  %4574 = vmatpush.bf16.msra.mxu3 %v9590_v32  ;;  %v11219_v32 = vld [vmem:[%s15316_s3 + $0xc8] sm:$0xf0] }
 0xe96   :  { %v9818_v7 = vor.u32 %v11264_v58, %v9817_v34  ;;  %4647 = vmatpush.bf16.msra.mxu2 %v9830_v31  ;;  %v11252_v34 = vld [vmem:[%s15316_s3 + $0x1d0] sm:$0xf0]  ;;  %v9650_v58 = vor.u32 %v11222_v36, %v9649_v24  ;;  %v9603_v24 = vld [vmem:[%s15316_s3 + $0x84] sm:$0xf0] }
 0xe97   :  { %3962 = vmatpush.msrb.mxu1 %v13031_v0  ;;  %4595 = vmatpush.bf16.msrb.mxu0 %v9710_v4  ;;  %v9698_v0 = vor.u32 %v11234_v43, %v9697_v3  ;;  %v9553_v4 = vld [vmem:[%s15316_s3 + $0x18] sm:$0xf]  ;;  %v9769_v43 = vld [vmem:[%s15316_s3 + $0x1c8] sm:$0xf] }
 0xe98   :  { %v9554_v3 = vor.u32 %v11198_v62, %v9553_v4  ;;  %v9819_v4 = vld [vmem:[%s15316_s3 + $0x234] sm:$0xf0]  ;;  %v11209_v62 = vld [vmem:[%s15316_s3 + $0x7c] sm:$0xf] }
 0xe99   :  { %4575 = vmatpush.bf16.msra.mxu3 %v9578_v59  ;;  %v9822_v36 = vor.u32 %v11263_v48, %v9819_v4  ;;  %v11203_v48 = vld [vmem:[%s15316_s3 + $0x4c] sm:$0xf] }
 0xe9a   :  { %9535 = vmatmul.msk.f32.vlgmr.msra.gmra.mxu1 %vm3360_vm3, %v3903_v28  ;;  %9536 = vmatmul.msk.f32.vlgmr.msra.gmra.mxu0 %vm3360_vm3, %v3903_v28 }
 0xe9b   :  { %4596 = vmatpush.bf16.msrb.mxu0 %v9698_v0  ;;  %4617 = vmatpush.bf16.msra.mxu1 %v9818_v7  ;;  %v9770_v0 = vor.u32 %v11252_v34, %v9769_v43  ;;  %v9541_v7 = vld [vmem:[%s15316_s3] sm:$0xf]  ;;  %v11236_v43 = vld [vmem:[%s15316_s3 + $0x154] sm:$0xf] }
 0xe9c   :  { %v9542_v55 = vor.u32 %v11195_v27, %v9541_v7  ;;  %v9711_v34 = vld [vmem:[%s15316_s3 + $0x15c] sm:$0xf0]  ;;  %v9606_v27 = vor.u32 %v11209_v62, %v9603_v24 }
 0xe9d   :  { %4576 = vmatpush.bf16.msra.mxu3 %v9566_v33 }
 0xe9f   :  { %4597 = vmatpush.bf16.msrb.mxu0 %v9686_v63 }
 0xea1   :  { %4577 = vmatpush.bf16.msra.mxu3 %v9554_v3 }
 0xea2   :  { %9537 = vmatmul.msk.f32.vlgmr.msrb.gmra.mxu1 %vm3360_vm3, %v3903_v28  ;;  %v11261_v28 = vld [vmem:[%s15316_s3 + $0x218] sm:$0xf0] }
 0xea3   :  { %v9806_v52 = vor.u32 %v11261_v28, %v9805_v57  ;;  %4598 = vmatpush.bf16.msrb.mxu0 %v9674_v39  ;;  %v11249_v57 = vld [vmem:[%s15316_s3 + $0x1b8] sm:$0xf0]  ;;  %v9638_v28 = vor.u32 %v11219_v32, %v9637_v17  ;;  %v9627_v39 = vld [vmem:[%s15316_s3 + $0xb4] sm:$0xf0]  ;;  %v9807_v17 = vld [vmem:[%s15316_s3 + $0x21c] sm:$0xf0] }
 0xea4   :  { %v9758_v63 = vor.u32 %v11249_v57, %v9757_v37  ;;  %v9630_v46 = vor.u32 %v11215_v19, %v9627_v39  ;;  %v9591_v32 = vld [vmem:[%s15316_s3 + $0x6c] sm:$0xf0] }
 0xea5   :  { %4618 = vmatpush.bf16.msra.mxu1 %v9806_v52  ;;  %4578 = vmatpush.bf16.msra.mxu3 %v9542_v55  ;;  %v9745_v52 = vld [vmem:[%s15316_s3 + $0x198] sm:$0xf]  ;;  %v11206_v55 = vld [vmem:[%s15316_s3 + $0x64] sm:$0xf] }
 0xea6   :  { %v9746_v35 = vor.u32 %v11246_v6, %v9745_v52  ;;  %4663 = vmatpush.bf16.msrb.mxu2 %v9630_v46 }
 0xea7   :  { %4599 = vmatpush.bf16.msrb.mxu0 %v9662_v13  ;;  %v13267_v13 = vperm.slane %v3984_v61, 0 }
 0xea9   :  { %4619 = vmatpush.bf16.msra.mxu1 %v9794_v16  ;;  %v11212_v16 = vld [vmem:[%s15316_s3 + $0x94] sm:$0xf] }
 0xeaa   :  { %v9618_v15 = vor.u32 %v11212_v16, %v9615_v45 }
 0xeab   :  { %4600 = vmatpush.bf16.msrb.mxu0 %v9650_v58 }
 0xeac   :  { %4664 = vmatpush.bf16.msrb.mxu2 %v9618_v15  ;;  %v11233_v15 = vld [vmem:[%s15316_s3 + $0x13c] sm:$0xf] }
 0xead   :  { %4620 = vmatpush.bf16.msra.mxu1 %v9782_v53  ;;  %v9723_v53 = vld [vmem:[%s15316_s3 + $0x174] sm:$0xf0] }
 0xeae   :  { %v9726_v3 = vor.u32 %v11239_v50, %v9723_v53 }
 0xeaf   :  { %4601 = vmatpush.bf16.msrb.mxu0 %v9638_v28 }
 0xeb0   :  { %4686 = vmatpush.bf16.msrb.mxu3 %v9726_v3  ;;  %4665 = vmatpush.bf16.msrb.mxu2 %v9606_v27  ;;  %v11230_v3 = vld [vmem:[%s15316_s3 + $0x124] sm:$0xf] }
 0xeb1   :  { %4621 = vmatpush.bf16.msra.mxu1 %v9770_v0  ;;  %v11254_v27 = vld [vmem:[%s15316_s3 + $0x1e4] sm:$0xf] }
 0xeb3   :  { %4709 = vmatpush.bf16.msra.mxu0 %v9822_v36  ;;  %v9687_v36 = vld [vmem:[%s15316_s3 + $0x12c] sm:$0xf0] }
 0xeb5   :  { %4622 = vmatpush.bf16.msra.mxu1 %v9758_v63 }
 0xeb9   :  { %4623 = vmatpush.bf16.msra.mxu1 %v9746_v35 }
 0xebd   :  { %4624 = vmatpush.bf16.msra.mxu1 %v9734_v11 }
 0xf07   :  { %v3816_v59 = vpop.f32.mrf.mxu1  ;;  %v3836_v8 = vpop.f32.mrf.mxu0 }
 0xf08   :  { %v13265_v60 = vperm.slane %v3816_v59, 0  ;;  %v13281_v58 = vperm.slane %v3836_v8, 0 }
 0xf0a   :  { %v3883_v37 = vmul.f32 %v13265_v60, %v13096_v10  ;;  %v3887_v6 = vmul.f32 %v13265_v60, %v13099_v21  ;;  %v3884_v59 = vmul.f32 %v13281_v58, %v13071_v56  ;;  %v9594_v10 = vor.u32 %v11206_v55, %v9591_v32  ;;  %v9567_v55 = vld [vmem:[%s15316_s3 + $0x3c] sm:$0xf0] }
 0xf0b   :  { %v3888_v11 = vmul.f32 %v13281_v58, %v13074_v22  ;;  %v3891_v32 = vmul.f32 %v13265_v60, %v13102_v29  ;;  %v3895_v29 = vmul.f32 %v13265_v60, %v13109_v9 }
 0xf0c   :  { %4666 = vmatpush.bf16.msrb.mxu2 %v9594_v10 }
 0xf0f   :  { %v3856_v33 = vpop.f32.mrf.mxu1  ;;  %v3876_v2 = vpop.f32.mrf.mxu0 }
 0xf10   :  { %v13263_v30 = vperm.slane %v3876_v2, 0  ;;  %v13305_v39 = vperm.slane %v3856_v33, 0  ;;  %v11257_v33 = vld [vmem:[%s15316_s3 + $0x1fc] sm:$0xf]  ;;  %v9795_v2 = vld [vmem:[%s15316_s3 + $0x204] sm:$0xf0] }
 0xf12   :  { %v3886_v40 = vmul.f32 %v13263_v30, %v13120_v54  ;;  %v3890_v31 = vmul.f32 %v13263_v30, %v13123_v5  ;;  %v11260_v54 = vld [vmem:[%s15316_s3 + $0x214] sm:$0xf]  ;;  %v9714_v5 = vor.u32 %v11236_v43, %v9711_v34  ;;  %v3894_v56 = vmul.f32 %v13263_v30, %v13126_v23  ;;  %v9699_v23 = vld [vmem:[%s15316_s3 + $0x144] sm:$0xf0] }
 0xf13   :  { %v9810_v25 = vor.u32 %v11260_v54, %v9807_v17  ;;  %v3898_v16 = vmul.f32 %v13263_v30, %v13129_v42  ;;  %v3889_v43 = vmul.f32 %v13305_v39, %v13154_v12  ;;  %v9798_v54 = vor.u32 %v11257_v33, %v9795_v2  ;;  %v11224_v2 = vld [vmem:[%s15316_s3 + $0xf4] sm:$0xf] }
 0xf14   :  { %v3994_v0 = vadd.f32 %v13267_v13, %v3886_v40  ;;  %v3998_v7 = vadd.f32 %v13267_v13, %v3890_v31  ;;  %4687 = vmatpush.bf16.msrb.mxu3 %v9714_v5  ;;  %v9579_v40 = vld [vmem:[%s15316_s3 + $0x54] sm:$0xf0]  ;;  %v3885_v31 = vmul.f32 %v13305_v39, %v13151_v47  ;;  %v4002_v4 = vadd.f32 %v13267_v13, %v3894_v56  ;;  %v9783_v47 = vld [vmem:[%s15316_s3 + $0x1ec] sm:$0xf0]  ;;  %v11200_v5 = vld [vmem:[%s15316_s3 + $0x34] sm:$0xf] }
 0xf15   :  { %4710 = vmatpush.bf16.msra.mxu0 %v9810_v25  ;;  %v4006_v62 = vadd.f32 %v13267_v13, %v3898_v16  ;;  %v9582_v17 = vor.u32 %v11203_v48, %v9579_v40  ;;  %v9570_v10 = vor.u32 %v11200_v5, %v9567_v55  ;;  %v9771_v56 = vld [vmem:[%s15316_s3 + $0x1d4] sm:$0xf0]  ;;  %v11197_v16 = vld [vmem:[%s15316_s3 + $0x1c] sm:$0xf]  ;;  %v11248_v48 = vld [vmem:[%s15316_s3 + $0x1b4] sm:$0xf] }
 0xf16   :  { %v4014_v57 = vmax.f32 %v3994_v0, 0.0  ;;  %v4018_v28 = vmax.f32 %v3998_v7, 0.0  ;;  %v9702_v7 = vor.u32 %v11233_v15, %v9699_v23  ;;  %v9759_v40 = vld [vmem:[%s15316_s3 + $0x1bc] sm:$0xf0]  ;;  %v11245_v55 = vld [vmem:[%s15316_s3 + $0x19c] sm:$0xf] }
 0xf17   :  { %v3924_v63 = vpop.f32.mrf.mxu1  ;;  %v3944_v52 = vpop.f32.mrf.mxu0  ;;  %4667 = vmatpush.bf16.msrb.mxu2 %v9582_v17  ;;  %v9651_v17 = vld [vmem:[%s15316_s3 + $0xe4] sm:$0xf0] }
 0xf18   :  { %v13293_v35 = vperm.slane %v3924_v63, 0  ;;  %v13295_v1 = vperm.slane %v3944_v52, 0  ;;  %v13299_v8 = vpack.c.bf16 %v4018_v28, %v4014_v57  ;;  %v4022_v57 = vmax.f32 %v4002_v4, 0.0  ;;  %4688 = vmatpush.bf16.msrb.mxu3 %v9702_v7 }
 0xf19   :  { %v4026_v28 = vmax.f32 %v4006_v62, 0.0  ;;  %4711 = vmatpush.bf16.msra.mxu0 %v9798_v54  ;;  %v9690_v63 = vor.u32 %v11230_v3, %v9687_v36  ;;  %v9786_v52 = vor.u32 %v11254_v27, %v9783_v47  ;;  %v11194_v62 = vld [vmem:[%s15316_s3 + $0x4] sm:$0xf]  ;;  %v3893_v3 = vmul.f32 %v13305_v39, %v13157_v18  ;;  %v11221_v54 = vld [vmem:[%s15316_s3 + $0xdc] sm:$0xf] }
 0xf1a   :  { %15318 = vst [vmem:[#allocation20_spill] sm:$0xff] %v13299_v8  ;;  %v3991_v19 = vadd.f32 %v13293_v35, %v3883_v37  ;;  %v3995_v21 = vadd.f32 %v13293_v35, %v3887_v6  ;;  %v3992_v46 = vadd.f32 %v13295_v1, %v3884_v59  ;;  %9839 = vmatmul.msk.bf16.vlgmr.msra.gmra.mxu2 %vm3360_vm3, %v13299_v8  ;;  %v11227_v6 = vld [vmem:[%s15316_s3 + $0x10c] sm:$0xf] }
 0xf1b   :  { %v3996_v61 = vadd.f32 %v13295_v1, %v3888_v11  ;;  %v9675_v11 = vld [vmem:[%s15316_s3 + $0x114] sm:$0xf0]  ;;  %v3999_v9 = vadd.f32 %v13293_v35, %v3891_v32  ;;  %4668 = vmatpush.bf16.msrb.mxu2 %v9570_v10  ;;  %v9762_v47 = vor.u32 %v11248_v48, %v9759_v40  ;;  %v3902_v18 = vmul.f32 %v13263_v30, %v13132_v51  ;;  %v9747_v32 = vld [vmem:[%s15316_s3 + $0x1a4] sm:$0xf0]  ;;  %v11218_v30 = vld [vmem:[%s15316_s3 + $0xc4] sm:$0xf] }
 0xf1c   :  { %v4011_v22 = vmax.f32 %v3991_v19, 0.0  ;;  %v4015_v45 = vmax.f32 %v3995_v21, 0.0  ;;  %v4012_v42 = vmax.f32 %v3992_v46, 0.0  ;;  %v11251_v19 = vld [vmem:[%s15316_s3 + $0x1cc] sm:$0xf]  ;;  %v3892_v21 = vmul.f32 %v13281_v58, %v13077_v26  ;;  %4689 = vmatpush.bf16.msrb.mxu3 %v9690_v63 }
 0xf1d   :  { %v4016_v53 = vmax.f32 %v3996_v61, 0.0  ;;  %v9555_v46 = vld [vmem:[%s15316_s3 + $0x24] sm:$0xf0]  ;;  %4712 = vmatpush.bf16.msra.mxu0 %v9786_v52  ;;  %v9678_v26 = vor.u32 %v11227_v6, %v9675_v11  ;;  %v9750_v51 = vor.u32 %v11245_v55, %v9747_v32  ;;  %v9639_v63 = vld [vmem:[%s15316_s3 + $0xcc] sm:$0xf0]  ;;  %v4398_v52 = vunpack.c.h.b16 %v13225_v20 }
 0xf1e   :  { %v13319_v50 = vpack.c.bf16 %v4015_v45, %v4011_v22  ;;  %v3896_v22 = vmul.f32 %v13281_v58, %v13080_v44  ;;  %v4003_v45 = vadd.f32 %v13293_v35, %v3895_v29  ;;  %v4000_v15 = vadd.f32 %v13295_v1, %v3892_v21  ;;  %v11242_v29 = vld [vmem:[%s15316_s3 + $0x184] sm:$0xf]  ;;  %v9831_v21 = vld [vmem:[%s15316_s3 + $0x24c] sm:$0xf0] }
 0xf1f   :  { %v3964_v24 = vpop.f32.mrf.mxu1  ;;  %v13331_v34 = vpack.c.bf16 %v4016_v53, %v4012_v42  ;;  %v9774_v44 = vor.u32 %v11251_v19, %v9771_v56  ;;  %v9558_v33 = vor.u32 %v11197_v16, %v9555_v46  ;;  %v9663_v42 = vld [vmem:[%s15316_s3 + $0xfc] sm:$0xf0]  ;;  %v13366_v53 = vpack.c.bf16 %v4026_v28, %v4022_v57  ;;  %v11266_v19 = vld [vmem:[%s15316_s3 + $0x244] sm:$0xf]  ;;  %v9729_v40 = vld [vmem:[%s15316_s3 + $0x170] sm:$0xf] }
 0xf20   :  { %15319 = vst [vmem:[#allocation26_spill] sm:$0xff] %v13319_v50  ;;  %v13333_v0 = vperm.slane %v3964_v24, 0  ;;  %4579 = vmatmul.bf16.vlgmr.msra.gmra.mxu3 %v13319_v50  ;;  %v4004_v23 = vadd.f32 %v13295_v1, %v3896_v22  ;;  %v4023_v4 = vmax.f32 %v4003_v45, 0.0  ;;  %v9543_v24 = vld [vmem:[%s15316_s3 + $0xc] sm:$0xf0]  ;;  %v9666_v36 = vor.u32 %v11224_v2, %v9663_v42 }
 0xf21   :  { %4602 = vmatmul.bf16.vlgmr.msrb.gmra.mxu0 %v13331_v34  ;;  %15321 = vst [vmem:[#allocation28_spill] sm:$0xff] %v13366_v53  ;;  %4690 = vmatpush.bf16.msrb.mxu3 %v9678_v26  ;;  %v4020_v7 = vmax.f32 %v4000_v15, 0.0  ;;  %v9546_v5 = vor.u32 %v11194_v62, %v9543_v24  ;;  %v9654_v57 = vor.u32 %v11221_v54, %v9651_v17  ;;  %v11265_v62 = vld [vmem:[%s15316_s3 + $0x238] sm:$0xf0]  ;;  %v9609_v24 = vld [vmem:[%s15316_s3 + $0x80] sm:$0xf] }
 0xf22   :  { %v3993_v12 = vadd.f32 %v13333_v0, %v3885_v31  ;;  %v3997_v37 = vadd.f32 %v13333_v0, %v3889_v43  ;;  %v4019_v31 = vmax.f32 %v3999_v9, 0.0  ;;  %v3897_v43 = vmul.f32 %v13305_v39, %v13164_v41  ;;  %4713 = vmatpush.bf16.msra.mxu0 %v9774_v44  ;;  %4669 = vmatpush.bf16.msrb.mxu2 %v9558_v33  ;;  %v11214_v33 = vld [vmem:[%s15316_s3 + $0xa0] sm:$0xf0] }
 0xf23   :  { %v4024_v27 = vmax.f32 %v4004_v23, 0.0  ;;  %v4001_v41 = vadd.f32 %v13333_v0, %v3893_v3  ;;  %v4010_v6 = vadd.f32 %v13267_v13, %v3902_v18  ;;  %v4476_v11 = vpack.c.b16 %v4398_v52, %v4398_v52  ;;  %v11211_v3 = vld [vmem:[%s15316_s3 + $0x88] sm:$0xf0]  ;;  %v11262_v17 = vld [vmem:[%s15316_s3 + $0x220] sm:$0xf0] }
 0xf24   :  { %v4013_v25 = vmax.f32 %v3993_v12, 0.0  ;;  %v4017_v59 = vmax.f32 %v3997_v37, 0.0  ;;  %v13384_v12 = vpack.c.bf16 %v4023_v4, %v4019_v31  ;;  %v4005_v37 = vadd.f32 %v13333_v0, %v3897_v43  ;;  %v9825_v31 = vld [vmem:[%s15316_s3 + $0x230] sm:$0xf]  ;;  %v9597_v18 = vld [vmem:[%s15316_s3 + $0x68] sm:$0xf] }
 0xf25   :  { %4691 = vmatpush.bf16.msrb.mxu3 %v9666_v36  ;;  %v13388_v28 = vpack.c.bf16 %v4024_v27, %v4020_v7  ;;  %v9642_v56 = vor.u32 %v11218_v30, %v9639_v63  ;;  %v3899_v16 = vmul.f32 %v13265_v60, %v13106_v14  ;;  %v4566_v20 = vsel %vm1017_vm9, %v4476_v11, 0  ;;  %v9717_v7 = vld [vmem:[%s15316_s3 + $0x158] sm:$0xf]  ;;  %v11238_v27 = vld [vmem:[%s15316_s3 + $0x160] sm:$0xf0] }
 0xf26   :  { %v13359_v61 = vpack.c.bf16 %v4017_v59, %v4013_v25  ;;  %15322 = vst [vmem:[#allocation29_spill] sm:$0xff] %v13384_v12  ;;  %4714 = vmatpush.bf16.msra.mxu0 %v9762_v47  ;;  %4670 = vmatpush.bf16.msrb.mxu2 %v9546_v5  ;;  %v9735_v25 = vld [vmem:[%s15316_s3 + $0x18c] sm:$0xf0]  ;;  %v4021_v59 = vmax.f32 %v4001_v41, 0.0  ;;  %v4025_v10 = vmax.f32 %v4005_v37, 0.0  ;;  %v4030_v13 = vmax.f32 %v4010_v6, 0.0 }
 0xf27   :  { %v9738_v46 = vor.u32 %v11242_v29, %v9735_v25  ;;  %4738 = vmatpush.bf16.msrb.mxu1 %v4566_v20  ;;  %v9834_v22 = vor.u32 %v11266_v19, %v9831_v21  ;;  %v3900_v9 = vmul.f32 %v13281_v58, %v13083_v38  ;;  %v4007_v45 = vadd.f32 %v13293_v35, %v3899_v16  ;;  %v9633_v38 = vld [vmem:[%s15316_s3 + $0xb0] sm:$0xf]  ;;  %v11217_v58 = vld [vmem:[%s15316_s3 + $0xb8] sm:$0xf0]  ;;  %v9621_v35 = vld [vmem:[%s15316_s3 + $0x98] sm:$0xf] }
 0xf28   :  { %15320 = vst [vmem:[#allocation27_spill] sm:$0xff] %v13359_v61  ;;  %4625 = vmatmul.bf16.vlgmr.msra.gmra.mxu1 %v13359_v61  ;;  %v13406_v15 = vpack.c.bf16 %v4025_v10, %v4021_v59  ;;  %v13410_v60 = vpack.c.bf16 %v4030_v13, %v4030_v13  ;;  %v3901_v23 = vmul.f32 %v13305_v39, %v13161_v49  ;;  %v9813_v47 = vld [vmem:[%s15316_s3 + $0x218] sm:$0xf]  ;;  %v11208_v5 = vld [vmem:[%s15316_s3 + $0x70] sm:$0xf0] }
 0xf29   :  { %4692 = vmatpush.bf16.msrb.mxu3 %v9654_v57  ;;  %v4008_v14 = vadd.f32 %v13295_v1, %v3900_v9  ;;  %v4027_v26 = vmax.f32 %v4007_v45, 0.0  ;;  %v9634_v44 = vor.u32 %v11217_v58, %v9633_v38  ;;  %v9622_v49 = vor.u32 %v11214_v33, %v9621_v35  ;;  %v9705_v37 = vld [vmem:[%s15316_s3 + $0x140] sm:$0xf]  ;;  %v11235_v57 = vld [vmem:[%s15316_s3 + $0x148] sm:$0xf0] }
 0xf2a   :  { %9840 = vmatmul.msk.bf16.gmra.mxu2 %vm3360_vm3, %v13366_v53  ;;  %4715 = vmatpush.bf16.msra.mxu0 %v9750_v51  ;;  %15323 = vst [vmem:[#allocation30_spill] sm:$0xff] %v13406_v15  ;;  %v4009_v2 = vadd.f32 %v13333_v0, %v3901_v23  ;;  %v11241_v0 = vld [vmem:[%s15316_s3 + $0x178] sm:$0xf0]  ;;  %v9826_v36 = vor.u32 %v11265_v62, %v9825_v31  ;;  %v9801_v51 = vld [vmem:[%s15316_s3 + $0x200] sm:$0xf] }
 0xf2b   :  { %15324 = vst [vmem:[#allocation31_spill] sm:$0xff] %v13410_v60  ;;  %4739 = vmatpush.bf16.msrb.mxu1 %v9834_v22  ;;  %v4028_v1 = vmax.f32 %v4008_v14, 0.0  ;;  %v13421_v42 = vpack.c.bf16 %v4027_v26, %v4027_v26  ;;  %4755 = vmatpush.bf16.msra.mxu2 %v9634_v44  ;;  %v9730_v4 = vor.u32 %v11241_v0, %v9729_v40  ;;  %v11259_v63 = vld [vmem:[%s15316_s3 + $0x208] sm:$0xf0]  ;;  %v9585_v6 = vld [vmem:[%s15316_s3 + $0x50] sm:$0xf] }
 0xf2c   :  { %v4029_v48 = vmax.f32 %v4009_v2, 0.0  ;;  %v9610_v43 = vor.u32 %v11211_v3, %v9609_v24  ;;  %v9718_v54 = vor.u32 %v11238_v27, %v9717_v7  ;;  %v9814_v32 = vor.u32 %v11262_v17, %v9813_v47  ;;  %v11205_v29 = vld [vmem:[%s15316_s3 + $0x58] sm:$0xf0]  ;;  %v9693_v25 = vld [vmem:[%s15316_s3 + $0x128] sm:$0xf] }
 0xf2d   :  { %4693 = vmatpush.bf16.msrb.mxu3 %v9642_v56  ;;  %15325 = vst [vmem:[#allocation32_spill] sm:$0xff] %v13421_v42  ;;  %v13423_v39 = vpack.c.bf16 %v4028_v1, %v4028_v1  ;;  %v9598_v41 = vor.u32 %v11208_v5, %v9597_v18  ;;  %v9706_v30 = vor.u32 %v11235_v57, %v9705_v37  ;;  %v11232_v10 = vld [vmem:[%s15316_s3 + $0x130] sm:$0xf0]  ;;  %v9789_v11 = vld [vmem:[%s15316_s3 + $0x1e8] sm:$0xf] }
 0xf2e   :  { %4716 = vmatpush.bf16.msra.mxu0 %v9738_v46  ;;  %v13439_v55 = vpack.c.bf16 %v4029_v48, %v4029_v48  ;;  %v9802_v52 = vor.u32 %v11259_v63, %v9801_v51  ;;  %v9586_v59 = vor.u32 %v11205_v29, %v9585_v6  ;;  %v11256_v19 = vld [vmem:[%s15316_s3 + $0x1f0] sm:$0xf0]  ;;  %v9694_v21 = vor.u32 %v11232_v10, %v9693_v25  ;;  %v9573_v56 = vld [vmem:[%s15316_s3 + $0x38] sm:$0xf]  ;;  %v11202_v16 = vld [vmem:[%s15316_s3 + $0x40] sm:$0xf0] }
 0xf2f   :  { %15326 = vst [vmem:[#allocation22_spill] sm:$0xff] %v13423_v39  ;;  %4756 = vmatpush.bf16.msra.mxu2 %v9622_v49  ;;  %v9574_v46 = vor.u32 %v11202_v16, %v9573_v56  ;;  %v9790_v20 = vor.u32 %v11256_v19, %v9789_v11  ;;  %v9681_v13 = vld [vmem:[%s15316_s3 + $0x110] sm:$0xf]  ;;  %v11229_v22 = vld [vmem:[%s15316_s3 + $0x118] sm:$0xf0] }
 0xf30   :  { %4584 = vmatmul.bf16.gmra.mxu3 %v13384_v12  ;;  %15327 = vst [vmem:[#allocation21_spill] sm:$0xff] %v13439_v55  ;;  %v9777_v9 = vld [vmem:[%s15316_s3 + $0x1d0] sm:$0xf]  ;;  %v9682_v45 = vor.u32 %v11229_v22, %v9681_v13  ;;  %v11253_v14 = vld [vmem:[%s15316_s3 + $0x1d8] sm:$0xf0] }
 0xf31   :  { %4607 = vmatmul.bf16.gmra.mxu0 %v13388_v28  ;;  %4778 = vmatpush.bf16.msra.mxu3 %v9730_v4  ;;  %v9561_v26 = vld [vmem:[%s15316_s3 + $0x20] sm:$0xf]  ;;  %v11199_v23 = vld [vmem:[%s15316_s3 + $0x28] sm:$0xf0]  ;;  %v9778_v38 = vor.u32 %v11253_v14, %v9777_v9  ;;  %v9669_v35 = vld [vmem:[%s15316_s3 + $0xf8] sm:$0xf] }
 0xf32   :  { %4801 = vmatpush.bf16.msrb.mxu0 %v9826_v36  ;;  %v9562_v58 = vor.u32 %v11199_v23, %v9561_v26  ;;  %v11226_v1 = vld [vmem:[%s15316_s3 + $0x100] sm:$0xf0]  ;;  %v9765_v44 = vld [vmem:[%s15316_s3 + $0x1b8] sm:$0xf]  ;;  %v9549_v49 = vld [vmem:[%s15316_s3 + $0x8] sm:$0xf] }
 0xf33   :  { %4757 = vmatpush.bf16.msra.mxu2 %v9610_v43  ;;  %v9670_v33 = vor.u32 %v11226_v1, %v9669_v35  ;;  %v11250_v2 = vld [vmem:[%s15316_s3 + $0x1c0] sm:$0xf0]  ;;  %v11196_v48 = vld [vmem:[%s15316_s3 + $0x10] sm:$0xf0]  ;;  %v9657_v31 = vld [vmem:[%s15316_s3 + $0xe0] sm:$0xf] }
 0xf34   :  { %v9550_v40 = vor.u32 %v11196_v48, %v9549_v49  ;;  %v9766_v0 = vor.u32 %v11250_v2, %v9765_v44  ;;  %v11223_v4 = vld [vmem:[%s15316_s3 + $0xe8] sm:$0xf0]  ;;  %v9753_v62 = vld [vmem:[%s15316_s3 + $0x1a0] sm:$0xf]  ;;  %v9645_v43 = vld [vmem:[%s15316_s3 + $0xc8] sm:$0xf] }
 0xf35   :  { %4779 = vmatpush.bf16.msra.mxu3 %v9718_v54  ;;  %v9658_v24 = vor.u32 %v11223_v4, %v9657_v31  ;;  %v11247_v3 = vld [vmem:[%s15316_s3 + $0x1a8] sm:$0xf0]  ;;  %v11220_v7 = vld [vmem:[%s15316_s3 + $0xd0] sm:$0xf0]  ;;  %v9741_v27 = vld [vmem:[%s15316_s3 + $0x188] sm:$0xf] }
 0xf36   :  { %4802 = vmatpush.bf16.msrb.mxu0 %v9814_v32  ;;  %v9754_v36 = vor.u32 %v11247_v3, %v9753_v62  ;;  %v11244_v47 = vld [vmem:[%s15316_s3 + $0x190] sm:$0xf0]  ;;  %v9646_v54 = vor.u32 %v11220_v7, %v9645_v43  ;;  %v4144_v18 = vld [vmem:[%s15316_s3 + $0x260] sm:$0xf]  ;;  %v11291_v63 = vld [vmem:[%s15316_s3 + $0x314] sm:$0xf0] }
 0xf37   :  { %4758 = vmatpush.bf16.msra.mxu2 %v9598_v41  ;;  %v9742_v17 = vor.u32 %v11244_v47, %v9741_v27  ;;  %v4399_v5 = vunpack.c.l.b16 %v4144_v18  ;;  %v9837_v41 = vld [vmem:[%s15316_s3 + $0x248] sm:$0xf]  ;;  %v11268_v37 = vld [vmem:[%s15316_s3 + $0x250] sm:$0xf0]  ;;  %v11288_v29 = vld [vmem:[%s15316_s3 + $0x2fc] sm:$0xf0] }
 0xf38   :  { %4630 = vmatmul.bf16.gmra.mxu1 %v13406_v15  ;;  %v9838_v51 = vor.u32 %v11268_v37, %v9837_v41  ;;  %v11315_v10 = vld [vmem:[%s15316_s3 + $0x3d4] sm:$0xf0]  ;;  %v10228_v11 = vld [vmem:[%s15316_s3 + $0x48c] sm:$0xf]  ;;  %v10012_v56 = vld [vmem:[%s15316_s3 + $0x2dc] sm:$0xf] }
 0xf39   :  { %4780 = vmatpush.bf16.msra.mxu3 %v9706_v30  ;;  %v4477_v32 = vpack.c.b16 %v4399_v5, %v4399_v5  ;;  %v10036_v30 = vld [vmem:[%s15316_s3 + $0x30c] sm:$0xf]  ;;  %v11285_v16 = vld [vmem:[%s15316_s3 + $0x2e4] sm:$0xf0]  ;;  %v10120_v13 = vld [vmem:[%s15316_s3 + $0x3b4] sm:$0xf] }
 0xf3a   :  { %9841 = vmatmul.msk.bf16.gmra.mxu2 %vm3360_vm3, %v13410_v60  ;;  %4803 = vmatpush.bf16.msrb.mxu0 %v9802_v52  ;;  %v10024_v52 = vld [vmem:[%s15316_s3 + $0x2f4] sm:$0xf]  ;;  %v10037_v6 = vor.u32 %v11291_v63, %v10036_v30  ;;  %v11312_v22 = vld [vmem:[%s15316_s3 + $0x3bc] sm:$0xf0]  ;;  %v10000_v26 = vld [vmem:[%s15316_s3 + $0x2c4] sm:$0xf] }
 0xf3b   :  { %4759 = vmatpush.bf16.msra.mxu2 %v9586_v59  ;;  %v4569_v57 = vsel %vm1017_vm9, %v4477_v32, 0  ;;  %v10025_v25 = vor.u32 %v11288_v29, %v10024_v52  ;;  %v10132_v59 = vld [vmem:[%s15316_s3 + $0x3cc] sm:$0xf]  ;;  %v10216_v9 = vld [vmem:[%s15316_s3 + $0x474] sm:$0xf] }
 0xf3c   :  { %4830 = vmatpush.bf16.msra.mxu1 %v4569_v57  ;;  %v10133_v19 = vor.u32 %v11315_v10, %v10132_v59  ;;  %v11336_v14 = vld [vmem:[%s15316_s3 + $0x47c] sm:$0xf0]  ;;  %v11282_v23 = vld [vmem:[%s15316_s3 + $0x2cc] sm:$0xf0]  ;;  %v10108_v35 = vld [vmem:[%s15316_s3 + $0x39c] sm:$0xf] }
 0xf3d   :  { %4781 = vmatpush.bf16.msra.mxu3 %v9694_v21  ;;  %v11339_v21 = vld [vmem:[%s15316_s3 + $0x494] sm:$0xf0]  ;;  %v11309_v1 = vld [vmem:[%s15316_s3 + $0x3a4] sm:$0xf0]  ;;  %v10204_v44 = vld [vmem:[%s15316_s3 + $0x45c] sm:$0xf] }
 0xf3e   :  { %4804 = vmatpush.bf16.msrb.mxu0 %v9790_v20  ;;  %v10013_v20 = vor.u32 %v11285_v16, %v10012_v56  ;;  %v11333_v2 = vld [vmem:[%s15316_s3 + $0x464] sm:$0xf0]  ;;  %v9988_v48 = vld [vmem:[%s15316_s3 + $0x2ac] sm:$0xf]  ;;  %v10096_v31 = vld [vmem:[%s15316_s3 + $0x384] sm:$0xf] }
 0xf3f   :  { %4760 = vmatpush.bf16.msra.mxu2 %v9574_v46  ;;  %v10229_v46 = vor.u32 %v11339_v21, %v10228_v11  ;;  %v10205_v49 = vor.u32 %v11333_v2, %v10204_v44  ;;  %v11306_v4 = vld [vmem:[%s15316_s3 + $0x38c] sm:$0xf0]  ;;  %v10192_v62 = vld [vmem:[%s15316_s3 + $0x444] sm:$0xf]  ;;  %v11276_v43 = vld [vmem:[%s15316_s3 + $0x29c] sm:$0xf0] }
 0xf40   :  { %4589 = vmatmul.bf16.gmra.mxu3 %v13421_v42  ;;  %4831 = vmatpush.bf16.msra.mxu1 %v9838_v51  ;;  %v11330_v3 = vld [vmem:[%s15316_s3 + $0x44c] sm:$0xf0]  ;;  %v10084_v47 = vld [vmem:[%s15316_s3 + $0x36c] sm:$0xf]  ;;  %v11327_v5 = vld [vmem:[%s15316_s3 + $0x434] sm:$0xf0] }
 0xf41   :  { %4612 = vmatmul.bf16.gmra.mxu0 %v13423_v39  ;;  %4782 = vmatpush.bf16.msra.mxu3 %v9682_v45  ;;  %v10121_v45 = vor.u32 %v11312_v22, %v10120_v13  ;;  %v10193_v7 = vor.u32 %v11330_v3, %v10192_v62  ;;  %v9964_v41 = vld [vmem:[%s15316_s3 + $0x27c] sm:$0xf]  ;;  %v11273_v37 = vld [vmem:[%s15316_s3 + $0x284] sm:$0xf0]  ;;  %v10072_v51 = vld [vmem:[%s15316_s3 + $0x354] sm:$0xf] }
 0xf42   :  { %4805 = vmatpush.bf16.msrb.mxu0 %v9778_v38  ;;  %v10217_v38 = vor.u32 %v11336_v14, %v10216_v9  ;;  %v9965_v57 = vor.u32 %v11273_v37, %v9964_v41  ;;  %v11300_v30 = vld [vmem:[%s15316_s3 + $0x35c] sm:$0xf0]  ;;  %v10168_v63 = vld [vmem:[%s15316_s3 + $0x414] sm:$0xf]  ;;  %v11270_v59 = vld [vmem:[%s15316_s3 + $0x26c] sm:$0xf0] }
 0xf43   :  { %4761 = vmatpush.bf16.msra.mxu2 %v9562_v58  ;;  %v10001_v58 = vor.u32 %v11282_v23, %v10000_v26  ;;  %v10073_v52 = vor.u32 %v11300_v30, %v10072_v51  ;;  %v10060_v10 = vld [vmem:[%s15316_s3 + $0x33c] sm:$0xf]  ;;  %v11321_v56 = vld [vmem:[%s15316_s3 + $0x404] sm:$0xf0]  ;;  %v11294_v13 = vld [vmem:[%s15316_s3 + $0x32c] sm:$0xf0] }
 0xf44   :  { %v10156_v21 = vld [vmem:[%s15316_s3 + $0x3fc] sm:$0xf]  ;;  %v10144_v22 = vld [vmem:[%s15316_s3 + $0x3e4] sm:$0xf]  ;;  %v11314_v62 = vld [vmem:[%s15316_s3 + $0x3d0] sm:$0xf] }
 0xf45   :  { %4783 = vmatpush.bf16.msra.mxu3 %v9670_v33  ;;  %v10109_v33 = vor.u32 %v11309_v1, %v10108_v35  ;;  %v13548_v14 = vld [vmem:[%s15316_s3 + $0x4bc] sm:$0xff]  ;;  %v10240_v35 = vld [vmem:[%s15316_s3 + $0x4a4] sm:$0xf]  ;;  %v11342_v1 = vld [vmem:[%s15316_s3 + $0x4ac] sm:$0xf0] }
 0xf46   :  { %4806 = vmatpush.bf16.msrb.mxu0 %v9766_v0  ;;  %v5211_v23 = vunpack.c.l.b16 %v13548_v14  ;;  %v10241_v44 = vor.u32 %v11342_v1, %v10240_v35  ;;  %v10038_v2 = vld [vmem:[%s15316_s3 + $0x318] sm:$0xf0]  ;;  %v11338_v3 = vld [vmem:[%s15316_s3 + $0x490] sm:$0xf]  ;;  %v11311_v37 = vld [vmem:[%s15316_s3 + $0x3b8] sm:$0xf] }
 0xf47   :  { %4762 = vmatpush.bf16.msra.mxu2 %v9550_v40  ;;  %v11279_v40 = vld [vmem:[%s15316_s3 + $0x2b4] sm:$0xf0]  ;;  %v10098_v35 = vld [vmem:[%s15316_s3 + $0x390] sm:$0xf0]  ;;  %v11329_v1 = vld [vmem:[%s15316_s3 + $0x448] sm:$0xf] }
 0xf48   :  { %4635 = vmatmul.bf16.gmra.mxu1 %v13439_v55  ;;  %v9989_v0 = vor.u32 %v11279_v40, %v9988_v48  ;;  %v11335_v51 = vld [vmem:[%s15316_s3 + $0x478] sm:$0xf] }
 0xf49   :  { %4784 = vmatpush.bf16.msra.mxu3 %v9658_v24  ;;  %v10097_v24 = vor.u32 %v11306_v4, %v10096_v31  ;;  %v10026_v31 = vld [vmem:[%s15316_s3 + $0x300] sm:$0xf0] }
 0xf4a   :  { %4671 = vmatmul.bf16.vlgmr.msrb.gmra.mxu2 %v13319_v50  ;;  %4807 = vmatpush.bf16.msrb.mxu0 %v9754_v36  ;;  %v9976_v36 = vld [vmem:[%s15316_s3 + $0x294] sm:$0xf] }
 0xf4b   :  { %5376 = vmatpush.bf16.msrb.mxu2 %v10037_v6  ;;  %v9977_v27 = vor.u32 %v11276_v43, %v9976_v36  ;;  %v11324_v6 = vld [vmem:[%s15316_s3 + $0x41c] sm:$0xf0] }
 0xf4c   :  { %v10169_v29 = vor.u32 %v11324_v6, %v10168_v63 }
 0xf4d   :  { %4785 = vmatpush.bf16.msra.mxu3 %v9646_v54  ;;  %v11303_v54 = vld [vmem:[%s15316_s3 + $0x374] sm:$0xf0] }
 0xf4e   :  { %4808 = vmatpush.bf16.msrb.mxu0 %v9742_v17  ;;  %v10180_v17 = vld [vmem:[%s15316_s3 + $0x42c] sm:$0xf]  ;;  %v10085_v18 = vor.u32 %v11303_v54, %v10084_v47  ;;  %v11284_v54 = vld [vmem:[%s15316_s3 + $0x2e0] sm:$0xf] }
 0xf4f   :  { %5377 = vmatpush.bf16.msrb.mxu2 %v10025_v25  ;;  %v10181_v32 = vor.u32 %v11327_v5, %v10180_v17  ;;  %v9952_v25 = vld [vmem:[%s15316_s3 + $0x264] sm:$0xf]  ;;  %v10014_v17 = vld [vmem:[%s15316_s3 + $0x2e8] sm:$0xf0] }
 0xf50   :  { %4694 = vmatmul.bf16.vlgmr.msrb.gmra.mxu3 %v13331_v34  ;;  %v9953_v11 = vor.u32 %v11270_v59, %v9952_v25  ;;  %v10017_v5 = vor.u32 %v11284_v54, %v10014_v17  ;;  %v11281_v25 = vld [vmem:[%s15316_s3 + $0x2c8] sm:$0xf]  ;;  %v10002_v59 = vld [vmem:[%s15316_s3 + $0x2d0] sm:$0xf0] }
 0xf51   :  { %4717 = vmatmul.bf16.vlgmr.msra.gmra.mxu0 %v13359_v61  ;;  %5399 = vmatpush.bf16.msrb.mxu3 %v10133_v19  ;;  %v11297_v19 = vld [vmem:[%s15316_s3 + $0x344] sm:$0xf0] }
 0xf52   :  { %5422 = vmatpush.bf16.msra.mxu0 %v10229_v46  ;;  %v10061_v16 = vor.u32 %v11297_v19, %v10060_v10  ;;  %v10157_v46 = vor.u32 %v11321_v56, %v10156_v21  ;;  %v11308_v10 = vld [vmem:[%s15316_s3 + $0x3a0] sm:$0xf]  ;;  %v10110_v19 = vld [vmem:[%s15316_s3 + $0x3a8] sm:$0xf0] }
 0xf53   :  { %5378 = vmatpush.bf16.msrb.mxu2 %v10013_v20  ;;  %v10048_v20 = vld [vmem:[%s15316_s3 + $0x324] sm:$0xf]  ;;  %v11332_v21 = vld [vmem:[%s15316_s3 + $0x460] sm:$0xf]  ;;  %v10206_v56 = vld [vmem:[%s15316_s3 + $0x468] sm:$0xf0] }
 0xf54   :  { %v10049_v9 = vor.u32 %v11294_v13, %v10048_v20  ;;  %v11278_v13 = vld [vmem:[%s15316_s3 + $0x2b0] sm:$0xf] }
 0xf55   :  { %5400 = vmatpush.bf16.msrb.mxu3 %v10121_v45  ;;  %v11318_v45 = vld [vmem:[%s15316_s3 + $0x3ec] sm:$0xf0] }
 0xf56   :  { %5423 = vmatpush.bf16.msra.mxu0 %v10217_v38  ;;  %v10145_v26 = vor.u32 %v11318_v45, %v10144_v22  ;;  %v5289_v38 = vpack.c.b16 %v5211_v23, %v5211_v23  ;;  %v9990_v22 = vld [vmem:[%s15316_s3 + $0x2b8] sm:$0xf0] }
 0xf57   :  { %5379 = vmatpush.bf16.msrb.mxu2 %v10001_v58  ;;  %v9993_v45 = vor.u32 %v11278_v13, %v9990_v22  ;;  %v11293_v13 = vld [vmem:[%s15316_s3 + $0x328] sm:$0xf]  ;;  %v10050_v22 = vld [vmem:[%s15316_s3 + $0x330] sm:$0xf0] }
 0xf58   :  { %9842 = vmatmul.msk.bf16.vlgmr.msrb.gmra.mxu1 %vm3360_vm3, %v13299_v8  ;;  %v5368_v58 = vsel %vm1017_vm9, %v5289_v38, 0 }
 0xf59   :  { %5401 = vmatpush.bf16.msrb.mxu3 %v10109_v33  ;;  %5451 = vmatpush.bf16.msrb.mxu1 %v5368_v58  ;;  %v11290_v33 = vld [vmem:[%s15316_s3 + $0x310] sm:$0xf]  ;;  %v11305_v58 = vld [vmem:[%s15316_s3 + $0x388] sm:$0xf] }
 0xf5a   :  { %4676 = vmatmul.bf16.gmra.mxu2 %v13384_v12  ;;  %5424 = vmatpush.bf16.msra.mxu0 %v10205_v49  ;;  %v10041_v49 = vor.u32 %v11290_v33, %v10038_v2  ;;  %v10101_v33 = vor.u32 %v11305_v58, %v10098_v35  ;;  %v10194_v2 = vld [vmem:[%s15316_s3 + $0x450] sm:$0xf0] }
 0xf5b   :  { %5380 = vmatpush.bf16.msrb.mxu2 %v9989_v0  ;;  %v11287_v0 = vld [vmem:[%s15316_s3 + $0x2f8] sm:$0xf] }
 0xf5c   :  { %v10029_v4 = vor.u32 %v11287_v0, %v10026_v31  ;;  %v10197_v0 = vor.u32 %v11329_v1, %v10194_v2  ;;  %v10242_v2 = vld [vmem:[%s15316_s3 + $0x4b0] sm:$0xf0] }
 0xf5d   :  { %5402 = vmatpush.bf16.msrb.mxu3 %v10097_v24  ;;  %5452 = vmatpush.bf16.msrb.mxu1 %v10241_v44  ;;  %v10134_v24 = vld [vmem:[%s15316_s3 + $0x3d8] sm:$0xf0] }
 0xf5e   :  { %5425 = vmatpush.bf16.msra.mxu0 %v10193_v7  ;;  %v10137_v43 = vor.u32 %v11314_v62, %v10134_v24  ;;  %v10230_v7 = vld [vmem:[%s15316_s3 + $0x498] sm:$0xf0]  ;;  %v11326_v24 = vld [vmem:[%s15316_s3 + $0x430] sm:$0xf] }
 0xf5f   :  { %5381 = vmatpush.bf16.msrb.mxu2 %v9977_v27  ;;  %v10233_v47 = vor.u32 %v11338_v3, %v10230_v7  ;;  %v10086_v62 = vld [vmem:[%s15316_s3 + $0x378] sm:$0xf0] }
 0xf60   :  { %4699 = vmatmul.bf16.gmra.mxu3 %v13388_v28 }
 0xf61   :  { %4722 = vmatmul.bf16.gmra.mxu0 %v13406_v15  ;;  %5403 = vmatpush.bf16.msrb.mxu3 %v10085_v18 }
 0xf62   :  { %5426 = vmatpush.bf16.msra.mxu0 %v10181_v32 }
 0xf63   :  { %5382 = vmatpush.bf16.msrb.mxu2 %v9965_v57  ;;  %v10122_v57 = vld [vmem:[%s15316_s3 + $0x3c0] sm:$0xf0] }
 0xf64   :  { %v10125_v63 = vor.u32 %v11311_v37, %v10122_v57 }
 0xf65   :  { %5404 = vmatpush.bf16.msrb.mxu3 %v10073_v52  ;;  %v10218_v52 = vld [vmem:[%s15316_s3 + $0x480] sm:$0xf0] }
 0xf66   :  { %5427 = vmatpush.bf16.msra.mxu0 %v10169_v29  ;;  %v10221_v29 = vor.u32 %v11335_v51, %v10218_v52  ;;  %v10170_v51 = vld [vmem:[%s15316_s3 + $0x420] sm:$0xf0]  ;;  %v9954_v52 = vld [vmem:[%s15316_s3 + $0x270] sm:$0xf0] }
 0xf67   :  { %5383 = vmatpush.bf16.msrb.mxu2 %v9953_v11  ;;  %v10005_v11 = vor.u32 %v11281_v25, %v10002_v59  ;;  %v10062_v59 = vld [vmem:[%s15316_s3 + $0x348] sm:$0xf0] }
 0xf68   :  { %9843 = vmatmul.msk.bf16.gmra.mxu1 %vm3360_vm3, %v13366_v53 }
 0xf69   :  { %5405 = vmatpush.bf16.msrb.mxu3 %v10061_v16  ;;  %v10113_v16 = vor.u32 %v11308_v10, %v10110_v19  ;;  %v11320_v10 = vld [vmem:[%s15316_s3 + $0x400] sm:$0xf] }
 0xf6a   :  { %4681 = vmatmul.bf16.gmra.mxu2 %v13421_v42  ;;  %5428 = vmatpush.bf16.msra.mxu0 %v10157_v46  ;;  %v10209_v46 = vor.u32 %v11332_v21, %v10206_v56 }
 0xf6d   :  { %5406 = vmatpush.bf16.msrb.mxu3 %v10049_v9 }
 0xf6e   :  { %5429 = vmatpush.bf16.msra.mxu0 %v10145_v26 }
 0xf70   :  { %4704 = vmatmul.bf16.gmra.mxu3 %v13423_v39 }
 0xf71   :  { %4727 = vmatmul.bf16.gmra.mxu0 %v13439_v55 }
 0xf78   :  { %9844 = vmatmul.msk.bf16.gmra.mxu1 %vm3360_vm3, %v13410_v60 }
 0xf7a   :  { %4763 = vmatmul.bf16.vlgmr.msra.gmra.mxu2 %v13319_v50 }
 0xf7b   :  { %5468 = vmatpush.bf16.msra.mxu2 %v10041_v49  ;;  %v11275_v49 = vld [vmem:[%s15316_s3 + $0x298] sm:$0xf] }
 0xf7f   :  { %5469 = vmatpush.bf16.msra.mxu2 %v10029_v4  ;;  %v11302_v4 = vld [vmem:[%s15316_s3 + $0x370] sm:$0xf] }
 0xf80   :  { %4786 = vmatmul.bf16.vlgmr.msra.gmra.mxu3 %v13331_v34 }
 0xf81   :  { %4809 = vmatmul.bf16.vlgmr.msrb.gmra.mxu0 %v13359_v61  ;;  %5491 = vmatpush.bf16.msra.mxu3 %v10137_v43  ;;  %v10182_v43 = vld [vmem:[%s15316_s3 + $0x438] sm:$0xf0] }
 0xf82   :  { %5514 = vmatpush.bf16.msrb.mxu0 %v10233_v47  ;;  %v10185_v7 = vor.u32 %v11326_v24, %v10182_v43  ;;  %v9966_v47 = vld [vmem:[%s15316_s3 + $0x288] sm:$0xf0] }
 0xf83   :  { %5470 = vmatpush.bf16.msra.mxu2 %v10017_v5  ;;  %v11299_v5 = vld [vmem:[%s15316_s3 + $0x358] sm:$0xf]  ;;  %v10248_v43 = vld [vmem:[%s15316_s3 + $0x4ac] sm:$0xf] }
 0xf85   :  { %5492 = vmatpush.bf16.msra.mxu3 %v10125_v63  ;;  %v11269_v63 = vld [vmem:[%s15316_s3 + $0x268] sm:$0xf] }
 0xf86   :  { %5515 = vmatpush.bf16.msrb.mxu0 %v10221_v29  ;;  %v11296_v29 = vld [vmem:[%s15316_s3 + $0x340] sm:$0xf]  ;;  %v9957_v25 = vor.u32 %v11269_v63, %v9954_v52  ;;  %v11289_v63 = vld [vmem:[%s15316_s3 + $0x304] sm:$0xf0] }
 0xf87   :  { %5471 = vmatpush.bf16.msra.mxu2 %v10005_v11  ;;  %v10158_v11 = vld [vmem:[%s15316_s3 + $0x408] sm:$0xf0]  ;;  %v10065_v19 = vor.u32 %v11296_v29, %v10062_v59  ;;  %v10140_v29 = vld [vmem:[%s15316_s3 + $0x3d4] sm:$0xf] }
 0xf88   :  { %9845 = vmatmul.msk.bf16.vlgmr.msra.gmra.mxu1 %vm3360_vm3, %v13299_v8  ;;  %v10161_v56 = vor.u32 %v11320_v10, %v10158_v11  ;;  %v10236_v59 = vld [vmem:[%s15316_s3 + $0x494] sm:$0xf] }
 0xf89   :  { %5493 = vmatpush.bf16.msra.mxu3 %v10113_v16 }
 0xf8a   :  { %4768 = vmatmul.bf16.gmra.mxu2 %v13384_v12  ;;  %5516 = vmatpush.bf16.msrb.mxu0 %v10209_v46  ;;  %v5212_v46 = vunpack.c.h.b16 %v13548_v14  ;;  %v9949_v14 = vld [vmem:[%s15316_s3 + $0x4c4] sm:$0xf] }
 0xf8b   :  { %5472 = vmatpush.bf16.msra.mxu2 %v9993_v45 }
 0xf8c   :  { %v5290_v58 = vpack.c.b16 %v5212_v46, %v5212_v46 }
 0xf8d   :  { %5494 = vmatpush.bf16.msra.mxu3 %v10101_v33  ;;  %v11341_v33 = vld [vmem:[%s15316_s3 + $0x4a8] sm:$0xf] }
 0xf8e   :  { %5517 = vmatpush.bf16.msrb.mxu0 %v10197_v0  ;;  %v5371_v1 = vsel %vm1017_vm9, %v5290_v58, 0  ;;  %v10245_v0 = vor.u32 %v11341_v33, %v10242_v2 }
 0xf8f   :  { %5543 = vmatpush.bf16.msra.mxu1 %v5371_v1  ;;  %v11313_v1 = vld [vmem:[%s15316_s3 + $0x3c4] sm:$0xf0] }
 0xf90   :  { %4791 = vmatmul.bf16.gmra.mxu3 %v13388_v28 }
 0xf91   :  { %4814 = vmatmul.bf16.gmra.mxu0 %v13406_v15 }
 0xf92   :  { %5518 = vmatpush.bf16.msrb.mxu0 %v10185_v7  ;;  %v11343_v7 = vld [vmem:[%s15316_s3 + $0x4b4] sm:$0xf0] }
 0xf93   :  { %5544 = vmatpush.bf16.msra.mxu1 %v10245_v0 }
 0xf98   :  { %9846 = vmatmul.msk.bf16.gmra.mxu1 %vm3360_vm3, %v13366_v53 }
 0xf9a   :  { %4773 = vmatmul.bf16.gmra.mxu2 %v13421_v42 }
 0xf9d   :  { %v4649_v48 = vpop.f32.mrf.mxu2 }
 0xf9e   :  { %v4603_v40 = vpop.f32.mrf.mxu0 }
 0xfa0   :  { %4796 = vmatmul.bf16.gmra.mxu3 %v13423_v39 }
 0xfa1   :  { %4819 = vmatmul.bf16.gmra.mxu0 %v13439_v55 }
 0xfa3   :  { %v4580_v36 = vpop.f32.mrf.mxu3 }
 0xfa4   :  { %v4604_v27 = vadd.f32 %v4603_v40, %v4580_v36  ;;  %v10089_v36 = vor.u32 %v11302_v4, %v10086_v62 }
 0xfa5   :  { %v4626_v18 = vpop.f32.mrf.mxu1  ;;  %v4651_v41 = vpop.f32.mrf.mxu2 }
 0xfa6   :  { %v4627_v32 = vadd.f32 %v4626_v18, %v4604_v27  ;;  %v4605_v30 = vpop.f32.mrf.mxu0  ;;  %v11272_v27 = vld [vmem:[%s15316_s3 + $0x280] sm:$0xf]  ;;  %5495 = vmatpush.bf16.msra.mxu3 %v10089_v36 }
 0xfa7   :  { %v9969_v17 = vor.u32 %v11272_v27, %v9966_v47  ;;  %v10249_v27 = vor.u32 %v11343_v7, %v10248_v43  ;;  %v11310_v7 = vld [vmem:[%s15316_s3 + $0x3ac] sm:$0xf0] }
 0xfa8   :  { %v13575_v6 = vadd.f32 %v4649_v48, %v4627_v32  ;;  %9847 = vmatmul.msk.bf16.gmra.mxu1 %vm3360_vm3, %v13410_v60  ;;  %v9978_v48 = vld [vmem:[%s15316_s3 + $0x2a0] sm:$0xf0] }
 0xfa9   :  { %v9981_v31 = vor.u32 %v11275_v49, %v9978_v48  ;;  %v10074_v32 = vld [vmem:[%s15316_s3 + $0x360] sm:$0xf0]  ;;  %v5213_v49 = vunpack.c.l.b16 %v9949_v14  ;;  %v10224_v14 = vld [vmem:[%s15316_s3 + $0x47c] sm:$0xf] }
 0xfaa   :  { %5384 = vmatmul.bf16.vlgmr.msrb.gmra.mxu2 %v13319_v50  ;;  %v10077_v57 = vor.u32 %v11299_v5, %v10074_v32  ;;  %v11292_v5 = vld [vmem:[%s15316_s3 + $0x31c] sm:$0xf0] }
 0xfab   :  { %v4582_v20 = vpop.f32.mrf.mxu3  ;;  %5473 = vmatpush.bf16.msra.mxu2 %v9981_v31  ;;  %v5291_v31 = vpack.c.b16 %v5213_v49, %v5213_v49  ;;  %v11337_v49 = vld [vmem:[%s15316_s3 + $0x484] sm:$0xf0] }
 0xfac   :  { %v4606_v9 = vadd.f32 %v4605_v30, %v4582_v20  ;;  %5496 = vmatpush.bf16.msra.mxu3 %v10077_v57 }
 0xfad   :  { %v4628_v26 = vpop.f32.mrf.mxu1  ;;  %v13588_v38 = vpop.f32.mrf.mxu2  ;;  %v5374_v24 = vsel %vm1017_vm9, %v5291_v31, 0  ;;  %v10225_v31 = vor.u32 %v11337_v49, %v10224_v14  ;;  %v11328_v49 = vld [vmem:[%s15316_s3 + $0x43c] sm:$0xf0] }
 0xfae   :  { %v4629_v23 = vadd.f32 %v4628_v26, %v4606_v9  ;;  %v13593_v44 = vpop.f32.mrf.mxu0  ;;  %v11317_v9 = vld [vmem:[%s15316_s3 + $0x3e8] sm:$0xf]  ;;  %v10053_v26 = vor.u32 %v11293_v13, %v10050_v22  ;;  %v10020_v13 = vld [vmem:[%s15316_s3 + $0x2e4] sm:$0xf]  ;;  %v11286_v22 = vld [vmem:[%s15316_s3 + $0x2ec] sm:$0xf0] }
 0xfaf   :  { %5474 = vmatpush.bf16.msra.mxu2 %v9969_v17  ;;  %v10044_v17 = vld [vmem:[%s15316_s3 + $0x314] sm:$0xf] }
 0xfb0   :  { %v13598_v40 = vadd.f32 %v4651_v41, %v4629_v23  ;;  %5407 = vmatmul.bf16.vlgmr.msrb.gmra.mxu3 %v13331_v34  ;;  %v11323_v41 = vld [vmem:[%s15316_s3 + $0x418] sm:$0xf]  ;;  %v10146_v23 = vld [vmem:[%s15316_s3 + $0x3f0] sm:$0xf0] }
 0xfb1   :  { %5430 = vmatmul.bf16.vlgmr.msra.gmra.mxu0 %v13359_v61  ;;  %v10173_v30 = vor.u32 %v11323_v41, %v10170_v51  ;;  %5497 = vmatpush.bf16.msra.mxu3 %v10065_v19  ;;  %v10149_v35 = vor.u32 %v11317_v9, %v10146_v23  ;;  %v10045_v41 = vor.u32 %v11292_v5, %v10044_v17  ;;  %v11340_v19 = vld [vmem:[%s15316_s3 + $0x49c] sm:$0xf0] }
 0xfb2   :  { %v10237_v46 = vor.u32 %v11340_v19, %v10236_v59  ;;  %v11307_v59 = vld [vmem:[%s15316_s3 + $0x394] sm:$0xf0] }
 0xfb3   :  { %v13605_v3 = vpop.f32.mrf.mxu3  ;;  %5519 = vmatpush.bf16.msrb.mxu0 %v10173_v30  ;;  %5475 = vmatpush.bf16.msra.mxu2 %v9957_v25  ;;  %v10032_v30 = vld [vmem:[%s15316_s3 + $0x2fc] sm:$0xf]  ;;  %v11316_v25 = vld [vmem:[%s15316_s3 + $0x3dc] sm:$0xf0] }
 0xfb4   :  { %v10033_v52 = vor.u32 %v11289_v63, %v10032_v30  ;;  %v10141_v11 = vor.u32 %v11316_v25, %v10140_v29  ;;  %v10104_v25 = vld [vmem:[%s15316_s3 + $0x38c] sm:$0xf] }
 0xfb5   :  { %v13610_v54 = vpop.f32.mrf.mxu1  ;;  %v13612_v18 = vpop.f32.mrf.mxu2  ;;  %5498 = vmatpush.bf16.msra.mxu3 %v10053_v26  ;;  %v10021_v26 = vor.u32 %v11286_v22, %v10020_v13  ;;  %v9984_v13 = vld [vmem:[%s15316_s3 + $0x29c] sm:$0xf]  ;;  %v11277_v22 = vld [vmem:[%s15316_s3 + $0x2a4] sm:$0xf0] }
 0xfb6   :  { %v13617_v37 = vpop.f32.mrf.mxu0 }
 0xfb7   :  { %5520 = vmatpush.bf16.msrb.mxu0 %v10161_v56  ;;  %5560 = vmatpush.bf16.msrb.mxu2 %v10045_v41  ;;  %v9996_v41 = vld [vmem:[%s15316_s3 + $0x2b4] sm:$0xf] }
 0xfb8   :  { %10250 = vmatmul.msk.bf16.vlgmr.msrb.gmra.mxu1 %vm3360_vm3, %v13299_v8 }
 0xfb9   :  { %5635 = vmatpush.bf16.msrb.mxu1 %v5374_v24  ;;  %5583 = vmatpush.bf16.msrb.mxu3 %v10141_v11  ;;  %v11283_v24 = vld [vmem:[%s15316_s3 + $0x2d4] sm:$0xf0] }
 0xfba   :  { %5389 = vmatmul.bf16.gmra.mxu2 %v13384_v12 }
 0xfbb   :  { %v13629_v21 = vpop.f32.mrf.mxu3  ;;  %5521 = vmatpush.bf16.msrb.mxu0 %v10149_v35  ;;  %5561 = vmatpush.bf16.msrb.mxu2 %v10033_v52  ;;  %v10128_v35 = vld [vmem:[%s15316_s3 + $0x3bc] sm:$0xf] }
 0xfbc   :  { %v10129_v2 = vor.u32 %v11313_v1, %v10128_v35  ;;  %v10188_v35 = vld [vmem:[%s15316_s3 + $0x434] sm:$0xf]  ;;  %v4609_v1 = vadd.f32 %v13593_v44, %v13605_v3 }
 0xfbd   :  { %v13631_v16 = vpop.f32.mrf.mxu1  ;;  %v13634_v20 = vpop.f32.mrf.mxu2  ;;  %5636 = vmatpush.bf16.msrb.mxu1 %v10249_v27  ;;  %v10212_v27 = vld [vmem:[%s15316_s3 + $0x464] sm:$0xf] }
 0xfbe   :  { %v13639_v45 = vpop.f32.mrf.mxu0  ;;  %5584 = vmatpush.bf16.msrb.mxu3 %v10129_v2 }
 0xfbf   :  { %5606 = vmatpush.bf16.msra.mxu0 %v10237_v46  ;;  %5562 = vmatpush.bf16.msrb.mxu2 %v10021_v26  ;;  %v11331_v46 = vld [vmem:[%s15316_s3 + $0x454] sm:$0xf0] }
 0xfc0   :  { %5412 = vmatmul.bf16.gmra.mxu3 %v13388_v28 }
 0xfc1   :  { %5435 = vmatmul.bf16.gmra.mxu0 %v13406_v15 }
 0xfc3   :  { %v13648_v48 = vpop.f32.mrf.mxu3  ;;  %5607 = vmatpush.bf16.msra.mxu0 %v10225_v31  ;;  %v9972_v31 = vld [vmem:[%s15316_s3 + $0x284] sm:$0xf] }
 0xfc4   :  { %v4614_v11 = vadd.f32 %v13639_v45, %v13648_v48  ;;  %v10092_v45 = vld [vmem:[%s15316_s3 + $0x374] sm:$0xf]  ;;  %v11304_v48 = vld [vmem:[%s15316_s3 + $0x37c] sm:$0xf0] }
 0xfc5   :  { %v13650_v4 = vpop.f32.mrf.mxu1  ;;  %v4661_v62 = vpop.f32.mrf.mxu2  ;;  %v10093_v2 = vor.u32 %v11304_v48, %v10092_v45  ;;  %v11319_v45 = vld [vmem:[%s15316_s3 + $0x3f4] sm:$0xf0] }
 0xfc6   :  { %v4615_v36 = vpop.f32.mrf.mxu0  ;;  %v10008_v62 = vld [vmem:[%s15316_s3 + $0x2cc] sm:$0xf]  ;;  %v4637_v14 = vadd.f32 %v13650_v4, %v4614_v11 }
 0xfc7   :  { %v10116_v36 = vld [vmem:[%s15316_s3 + $0x3a4] sm:$0xf]  ;;  %v10009_v43 = vor.u32 %v11283_v24, %v10008_v62  ;;  %v11274_v62 = vld [vmem:[%s15316_s3 + $0x28c] sm:$0xf0] }
 0xfc8   :  { %10251 = vmatmul.msk.bf16.gmra.mxu1 %vm3360_vm3, %v13366_v53  ;;  %v10117_v17 = vor.u32 %v11310_v7, %v10116_v36  ;;  %v9973_v44 = vor.u32 %v11274_v62, %v9972_v31  ;;  %v11301_v7 = vld [vmem:[%s15316_s3 + $0x364] sm:$0xf0] }
 0xfc9   :  { %5563 = vmatpush.bf16.msrb.mxu2 %v10009_v43  ;;  %v10080_v43 = vld [vmem:[%s15316_s3 + $0x35c] sm:$0xf] }
 0xfca   :  { %5394 = vmatmul.bf16.gmra.mxu2 %v13421_v42  ;;  %5585 = vmatpush.bf16.msrb.mxu3 %v10117_v17  ;;  %v4660_v17 = vadd.f32 %v13634_v20, %v4637_v14 }
 0xfcb   :  { %v4592_v47 = vpop.f32.mrf.mxu3 }
 0xfcc   :  { %v11334_v47 = vld [vmem:[%s15316_s3 + $0x46c] sm:$0xf0] }
 0xfcd   :  { %v4638_v32 = vpop.f32.mrf.mxu1  ;;  %v4672_v57 = vpop.f32.mrf.mxu2  ;;  %v10213_v5 = vor.u32 %v11334_v47, %v10212_v27  ;;  %v10176_v27 = vld [vmem:[%s15316_s3 + $0x41c] sm:$0xf]  ;;  %v4632_v47 = vadd.f32 %v13610_v54, %v4609_v1 }
 0xfce   :  { %v4718_v51 = vpop.f32.mrf.mxu0 }
 0xfcf   :  { %5608 = vmatpush.bf16.msra.mxu0 %v10213_v5 }
 0xfd0   :  { %5417 = vmatmul.bf16.gmra.mxu3 %v13423_v39 }
 0xfd1   :  { %5440 = vmatmul.bf16.gmra.mxu0 %v13439_v55 }
 0xfd3   :  { %v4695_v10 = vpop.f32.mrf.mxu3 }
 0xfd4   :  { %v4696_v56 = vadd.f32 %v4695_v10, %v4672_v57  ;;  %v11280_v57 = vld [vmem:[%s15316_s3 + $0x2bc] sm:$0xf0]  ;;  %v10200_v10 = vld [vmem:[%s15316_s3 + $0x44c] sm:$0xf] }
 0xfd5   :  { %v4741_v9 = vpop.f32.mrf.mxu1  ;;  %v4674_v23 = vpop.f32.mrf.mxu2  ;;  %v9997_v30 = vor.u32 %v11280_v57, %v9996_v41  ;;  %v10201_v26 = vor.u32 %v11331_v46, %v10200_v10  ;;  %v4655_v10 = vadd.f32 %v13588_v38, %v4632_v47 }
 0xfd6   :  { %v4719_v58 = vadd.f32 %v4718_v51, %v4696_v56  ;;  %v4720_v33 = vpop.f32.mrf.mxu0  ;;  %v10105_v56 = vor.u32 %v11307_v59, %v10104_v25  ;;  %v11322_v25 = vld [vmem:[%s15316_s3 + $0x40c] sm:$0xf0] }
 0xfd7   :  { %5564 = vmatpush.bf16.msrb.mxu2 %v9997_v30  ;;  %5609 = vmatpush.bf16.msra.mxu0 %v10201_v26  ;;  %v11271_v30 = vld [vmem:[%s15316_s3 + $0x274] sm:$0xf0] }
 0xfd8   :  { %v13674_v0 = vadd.f32 %v4741_v9, %v4719_v58  ;;  %10252 = vmatmul.msk.bf16.gmra.mxu1 %vm3360_vm3, %v13410_v60  ;;  %v4611_v58 = vadd.f32 %v13617_v37, %v13629_v21  ;;  %5586 = vmatpush.bf16.msrb.mxu3 %v10105_v56  ;;  %v10189_v21 = vor.u32 %v11328_v49, %v10188_v35  ;;  %v11295_v26 = vld [vmem:[%s15316_s3 + $0x334] sm:$0xf0] }
 0xfda   :  { %5476 = vmatmul.bf16.vlgmr.msra.gmra.mxu2 %v13319_v50  ;;  %v4634_v24 = vadd.f32 %v13631_v16, %v4611_v58  ;;  %v10081_v16 = vor.u32 %v11301_v7, %v10080_v43 }
 0xfdb   :  { %v4697_v32 = vpop.f32.mrf.mxu3  ;;  %5610 = vmatpush.bf16.msra.mxu0 %v10189_v21 }
 0xfdc   :  { %v4698_v51 = vadd.f32 %v4697_v32, %v4674_v23  ;;  %v9985_v23 = vor.u32 %v11277_v22, %v9984_v13  ;;  %5587 = vmatpush.bf16.msrb.mxu3 %v10093_v2  ;;  %v11325_v32 = vld [vmem:[%s15316_s3 + $0x424] sm:$0xf0]  ;;  %v4657_v54 = vadd.f32 %v13612_v18, %v4634_v24  ;;  %v10056_v22 = vld [vmem:[%s15316_s3 + $0x32c] sm:$0xf] }
 0xfdd   :  { %v4743_v63 = vpop.f32.mrf.mxu1  ;;  %v4677_v52 = vpop.f32.mrf.mxu2  ;;  %v10177_v57 = vor.u32 %v11325_v32, %v10176_v27  ;;  %v10057_v38 = vor.u32 %v11295_v26, %v10056_v22 }
 0xfde   :  { %v4721_v29 = vadd.f32 %v4720_v33, %v4698_v51  ;;  %v4723_v19 = vpop.f32.mrf.mxu0  ;;  %5565 = vmatpush.bf16.msrb.mxu2 %v9985_v23  ;;  %v9960_v51 = vld [vmem:[%s15316_s3 + $0x26c] sm:$0xf] }
 0xfdf   :  { %v9961_v20 = vor.u32 %v11271_v30, %v9960_v51  ;;  %5611 = vmatpush.bf16.msra.mxu0 %v10177_v57  ;;  %v10152_v23 = vld [vmem:[%s15316_s3 + $0x3ec] sm:$0xf] }
 0xfe0   :  { %v13695_v9 = vadd.f32 %v4743_v63, %v4721_v29  ;;  %5499 = vmatmul.bf16.vlgmr.msra.gmra.mxu3 %v13331_v34  ;;  %v10068_v63 = vld [vmem:[%s15316_s3 + $0x344] sm:$0xf]  ;;  %v10153_v35 = vor.u32 %v11319_v45, %v10152_v23 }
 0xfe1   :  { %5522 = vmatmul.bf16.vlgmr.msrb.gmra.mxu0 %v13359_v61  ;;  %5588 = vmatpush.bf16.msrb.mxu3 %v10081_v16  ;;  %v10164_v29 = vld [vmem:[%s15316_s3 + $0x404] sm:$0xf] }
 0xfe2   :  { %5566 = vmatpush.bf16.msrb.mxu2 %v9973_v44  ;;  %v10165_v18 = vor.u32 %v11322_v25, %v10164_v29 }
 0xfe3   :  { %v4700_v33 = vpop.f32.mrf.mxu3 }
 0xfe4   :  { %v4701_v37 = vadd.f32 %v4700_v33, %v4677_v52  ;;  %v11298_v52 = vld [vmem:[%s15316_s3 + $0x34c] sm:$0xf0]  ;;  %5612 = vmatpush.bf16.msra.mxu0 %v10165_v18 }
 0xfe5   :  { %v4746_v36 = vpop.f32.mrf.mxu1  ;;  %v4679_v3 = vpop.f32.mrf.mxu2  ;;  %v10069_v59 = vor.u32 %v11298_v52, %v10068_v63 }
 0xfe6   :  { %v4724_v4 = vadd.f32 %v4723_v19, %v4701_v37  ;;  %v4725_v5 = vpop.f32.mrf.mxu0  ;;  %5567 = vmatpush.bf16.msrb.mxu2 %v9961_v20 }
 0xfe7   :  { %5589 = vmatpush.bf16.msrb.mxu3 %v10069_v59 }
 0xfe8   :  { %v13717_v41 = vadd.f32 %v4746_v36, %v4724_v4  ;;  %10253 = vmatmul.msk.bf16.vlgmr.msra.gmra.mxu1 %vm3360_vm3, %v13299_v8  ;;  %5613 = vmatpush.bf16.msra.mxu0 %v10153_v35 }
 0xfe9   :  { %10298 = vmatpush.msk.msra.mxu1 %vm226_vm0, %v4660_v17 }
 0xfea   :  { %5481 = vmatmul.bf16.gmra.mxu2 %v13384_v12 }
 0xfeb   :  { %5879 = vmatpush.msra.mxu1 %v4657_v54  ;;  %v4702_v11 = vpop.f32.mrf.mxu3  ;;  %5590 = vmatpush.bf16.msrb.mxu3 %v10057_v38  ;;  %v13808_v38 = vld [vmem:[%s15328_s14] sm:$0xff] }
 0xfec   :  { %v4703_v19 = vadd.f32 %v4702_v11, %v4679_v3 }
 0xfed   :  { %5880 = vmatpush.msra.mxu1 %v4655_v10  ;;  %v4748_v56 = vpop.f32.mrf.mxu1  ;;  %v4682_v46 = vpop.f32.mrf.mxu2 }
 0xfee   :  { %v4726_v13 = vadd.f32 %v4725_v5, %v4703_v19  ;;  %v4728_v58 = vpop.f32.mrf.mxu0 }
 0xfef   :  { %5881 = vmatpush.msra.mxu1 %v13598_v40 }
 0xff0   :  { %v13736_v48 = vadd.f32 %v4748_v56, %v4726_v13  ;;  %5504 = vmatmul.bf16.gmra.mxu3 %v13388_v28 }
 0xff1   :  { %5882 = vmatpush.msra.mxu1 %v13575_v6  ;;  %5527 = vmatmul.bf16.gmra.mxu0 %v13406_v15 }
 0xff3   :  { %v4705_v1 = vpop.f32.mrf.mxu3 }
 0xff4   :  { %v4706_v14 = vadd.f32 %v4705_v1, %v4682_v46 }
 0xff5   :  { %v4751_v33 = vpop.f32.mrf.mxu1  ;;  %v4684_v2 = vpop.f32.mrf.mxu2 }
 0xff6   :  { %v4729_v49 = vadd.f32 %v4728_v58, %v4706_v14  ;;  %v4730_v40 = vpop.f32.mrf.mxu0 }
 0xff7   :  { %v10612_v40 = vld [vmem:[%s15316_s3 + $0x630] sm:$0xf] }
 0xff8   :  { %v13741_v37 = vadd.f32 %v4751_v33, %v4729_v49  ;;  %10254 = vmatmul.msk.bf16.gmra.mxu1 %vm3360_vm3, %v13366_v53  ;;  %v13813_v33 = vld [vmem:[%s15328_s14 + $0x8] sm:$0xff] }
 0xff9   :  { %15329 = vst [vmem:[#allocation23_spill] sm:$0xff] %v13813_v33 }
 0xffa   :  { %5486 = vmatmul.bf16.gmra.mxu2 %v13421_v42 }
 0xffb   :  { %v4707_v21 = vpop.f32.mrf.mxu3 }
 0xffc   :  { %v11390_v21 = vld [vmem:[%s15316_s3 + $0x638] sm:$0xf0] }
 0xffd   :  { %v4753_v31 = vpop.f32.mrf.mxu1  ;;  %v13746_v6 = vpop.f32.mrf.mxu2 }
 0xffe   :  { %v13748_v62 = vpop.f32.mrf.mxu0  ;;  %v10613_v31 = vor.u32 %v11390_v21, %v10612_v40  ;;  %v11375_v40 = vld [vmem:[%s15316_s3 + $0x5c0] sm:$0xf0] }
0x1000   :  { %5509 = vmatmul.bf16.gmra.mxu3 %v13423_v39 }
0x1001   :  { %5532 = vmatmul.bf16.gmra.mxu0 %v13439_v55 }
0x1003   :  { %v13752_v24 = vpop.f32.mrf.mxu3 }
0x1005   :  { %v13754_v36 = vpop.f32.mrf.mxu1  ;;  %v13756_v44 = vpop.f32.mrf.mxu2 }
0x1006   :  { %v13758_v3 = vpop.f32.mrf.mxu0 }
0x1008   :  { %10255 = vmatmul.msk.bf16.gmra.mxu1 %vm3360_vm3, %v13410_v60 }
0x100a   :  { %5568 = vmatmul.bf16.vlgmr.msrb.gmra.mxu2 %v13319_v50 }
0x100b   :  { %v13763_v4 = vpop.f32.mrf.mxu3 }
0x100d   :  { %v13765_v43 = vpop.f32.mrf.mxu1  ;;  %v13767_v7 = vpop.f32.mrf.mxu2 }
0x100e   :  { %v13769_v27 = vpop.f32.mrf.mxu0 }
0x1010   :  { %5591 = vmatmul.bf16.vlgmr.msrb.gmra.mxu3 %v13331_v34 }
0x1011   :  { %5614 = vmatmul.bf16.vlgmr.msra.gmra.mxu0 %v13359_v61 }
0x1013   :  { %v13773_v47 = vpop.f32.mrf.mxu3 }
0x1015   :  { %v13775_v17 = vpop.f32.mrf.mxu1  ;;  %v13777_v5 = vpop.f32.mrf.mxu2 }
0x1016   :  { %v13779_v16 = vpop.f32.mrf.mxu0 }
0x1018   :  { %10256 = vmatmul.msk.bf16.vlgmr.msrb.gmra.mxu1 %vm3360_vm3, %v13299_v8 }
0x1019   :  { %6542 = vmatpush.bf16.msrb.mxu1 %v10613_v31 }
0x101a   :  { %5573 = vmatmul.bf16.gmra.mxu2 %v13384_v12 }
0x101b   :  { %v13784_v32 = vpop.f32.mrf.mxu3 }
0x101d   :  { %v13786_v57 = vpop.f32.mrf.mxu1  ;;  %v13788_v51 = vpop.f32.mrf.mxu2 }
0x101e   :  { %v13790_v30 = vpop.f32.mrf.mxu0 }
0x1020   :  { %5596 = vmatmul.bf16.gmra.mxu3 %v13388_v28 }
0x1021   :  { %5619 = vmatmul.bf16.gmra.mxu0 %v13406_v15  ;;  %v13820_v15 = vld [vmem:[%s15328_s14 + $0x10] sm:$0xff] }
0x1023   :  { %v13794_v63 = vpop.f32.mrf.mxu3 }
0x1025   :  { %v13796_v54 = vpop.f32.mrf.mxu1  ;;  %v4776_v20 = vpop.f32.mrf.mxu2 }
0x1026   :  { %v4822_v52 = vpop.f32.mrf.mxu0 }
0x1028   :  { %10257 = vmatmul.msk.bf16.gmra.mxu1 %vm3360_vm3, %v13366_v53  ;;  %v11387_v53 = vld [vmem:[%s15316_s3 + $0x620] sm:$0xf0] }
0x102a   :  { %5578 = vmatmul.bf16.gmra.mxu2 %v13421_v42 }
0x102b   :  { %v4799_v29 = vpop.f32.mrf.mxu3 }
0x102d   :  { %v4845_v25 = vpop.f32.mrf.mxu1  ;;  %v5385_v59 = vpop.f32.mrf.mxu2 }
0x102e   :  { %v5431_v10 = vpop.f32.mrf.mxu0 }
0x1030   :  { %5601 = vmatmul.bf16.gmra.mxu3 %v13423_v39 }
0x1031   :  { %5624 = vmatmul.bf16.gmra.mxu0 %v13439_v55 }
0x1033   :  { %v5408_v11 = vpop.f32.mrf.mxu3 }
0x1034   :  { %v5409_v39 = vadd.f32 %v5408_v11, %v5385_v59  ;;  %v10576_v11 = vld [vmem:[%s15316_s3 + $0x5e8] sm:$0xf] }
0x1035   :  { %v13803_v19 = vpop.f32.mrf.mxu1  ;;  %v5387_v18 = vpop.f32.mrf.mxu2 }
0x1036   :  { %v5433_v56 = vpop.f32.mrf.mxu0 }
0x1038   :  { %10258 = vmatmul.msk.bf16.gmra.mxu1 %vm3360_vm3, %v13410_v60  ;;  %v10600_v60 = vld [vmem:[%s15316_s3 + $0x618] sm:$0xf] }
0x103b   :  { %v5410_v46 = vpop.f32.mrf.mxu3 }
0x103c   :  { %v5411_v61 = vadd.f32 %v5410_v46, %v5387_v18 }
0x103d   :  { %v5456_v13 = vpop.f32.mrf.mxu1  ;;  %v5390_v22 = vpop.f32.mrf.mxu2 }
0x103e   :  { %v5436_v26 = vpop.f32.mrf.mxu0  ;;  %v5434_v46 = vadd.f32 %v5433_v56, %v5411_v61  ;;  %v11381_v61 = vld [vmem:[%s15316_s3 + $0x5f0] sm:$0xf0] }
0x103f   :  { %v10577_v56 = vor.u32 %v11381_v61, %v10576_v11  ;;  %v13893_v11 = vld [vmem:[%s15328_s14 + $0x38] sm:$0xff] }
0x1040   :  { %15331 = vst [vmem:[#allocation24_spill] sm:$0xff] %v13893_v11 }
0x1043   :  { %v5413_v23 = vpop.f32.mrf.mxu3 }
0x1044   :  { %v5414_v29 = vadd.f32 %v5413_v23, %v5390_v22  ;;  %v10588_v22 = vld [vmem:[%s15316_s3 + $0x600] sm:$0xf]  ;;  %v11384_v23 = vld [vmem:[%s15316_s3 + $0x608] sm:$0xf0] }
0x1045   :  { %v5459_v58 = vpop.f32.mrf.mxu1  ;;  %v5392_v45 = vpop.f32.mrf.mxu2  ;;  %v10589_v18 = vor.u32 %v11384_v23, %v10588_v22  ;;  %v11369_v22 = vld [vmem:[%s15316_s3 + $0x590] sm:$0xf0] }
0x1046   :  { %v5438_v35 = vpop.f32.mrf.mxu0 }
0x1048   :  { %10299 = vmatmul.msk.f32.vlgmr.msra.gmra.mxu1 %vm5662_vm8, %v13808_v38 }
0x104b   :  { %v5415_v1 = vpop.f32.mrf.mxu3 }
0x104c   :  { %v5416_v20 = vadd.f32 %v5415_v1, %v5392_v45  ;;  %v5437_v45 = vadd.f32 %v5436_v26, %v5414_v29  ;;  %v11378_v26 = vld [vmem:[%s15316_s3 + $0x5d8] sm:$0xf0] }
0x104d   :  { %v5461_v14 = vpop.f32.mrf.mxu1  ;;  %v5395_v2 = vpop.f32.mrf.mxu2 }
0x104e   :  { %v5441_v49 = vpop.f32.mrf.mxu0  ;;  %v5439_v42 = vadd.f32 %v5438_v35, %v5416_v20  ;;  %v10540_v20 = vld [vmem:[%s15316_s3 + $0x5a0] sm:$0xf] }
0x1050   :  { %10300 = vmatmul.msk.f32.gmra.mxu1 %vm5662_vm8, %v13813_v33  ;;  %v10601_v33 = vor.u32 %v11387_v53, %v10600_v60  ;;  %v5460_v53 = vadd.f32 %v5459_v58, %v5437_v45  ;;  %v13830_v60 = vld [vmem:[%s15328_s14 + $0x18] sm:$0xff] }
0x1052   :  { %6543 = vmatpush.bf16.msrb.mxu1 %v10601_v33  ;;  %v13853_v33 = vld [vmem:[%s15328_s14 + $0x20] sm:$0xff] }
0x1053   :  { %v5418_v52 = vpop.f32.mrf.mxu3 }
0x1054   :  { %v5419_v25 = vadd.f32 %v5418_v52, %v5395_v2  ;;  %v11372_v52 = vld [vmem:[%s15316_s3 + $0x5a8] sm:$0xf0] }
0x1055   :  { %v5464_v55 = vpop.f32.mrf.mxu1  ;;  %v5397_v12 = vpop.f32.mrf.mxu2  ;;  %v10541_v29 = vor.u32 %v11372_v52, %v10540_v20 }
0x1056   :  { %v5442_v50 = vadd.f32 %v5441_v49, %v5419_v25  ;;  %v5443_v8 = vpop.f32.mrf.mxu0  ;;  %v5462_v12 = vadd.f32 %v5461_v14, %v5439_v42  ;;  %6544 = vmatpush.bf16.msrb.mxu1 %v10589_v18  ;;  %v10552_v49 = vld [vmem:[%s15316_s3 + $0x5b8] sm:$0xf]  ;;  %v13871_v25 = vld [vmem:[%s15328_s14 + $0x28] sm:$0xff] }
0x1057   :  { %v5432_v8 = vadd.f32 %v5431_v10, %v5409_v39  ;;  %v13842_v10 = vld [vmem:[%s15328_s14 + $0x48] sm:$0xff]  ;;  %v10553_v31 = vor.u32 %v11375_v40, %v10552_v49 }
0x1058   :  { %v5465_v1 = vadd.f32 %v5464_v55, %v5442_v50  ;;  %10301 = vmatmul.msk.f32.gmra.mxu1 %vm5662_vm8, %v13820_v15  ;;  %v5457_v55 = vadd.f32 %v5456_v13, %v5434_v46  ;;  %v10564_v13 = vld [vmem:[%s15316_s3 + $0x5d0] sm:$0xf] }
0x1059   :  { %v5455_v39 = vadd.f32 %v13803_v19, %v5432_v8  ;;  %v10565_v58 = vor.u32 %v11378_v26, %v10564_v13 }
0x105a   :  { %10268 = vmatpush.msk.msra.mxu2 %vm226_vm0, %v5465_v1  ;;  %6545 = vmatpush.bf16.msrb.mxu1 %v10577_v56  ;;  %v10528_v1 = vld [vmem:[%s15316_s3 + $0x588] sm:$0xf] }
0x105b   :  { %v5420_v35 = vpop.f32.mrf.mxu3  ;;  %v10529_v18 = vor.u32 %v11369_v22, %v10528_v1 }
0x105c   :  { %5711 = vmatpush.msra.mxu2 %v5462_v12  ;;  %v13883_v12 = vld [vmem:[%s15328_s14 + $0x30] sm:$0xff] }
0x105d   :  { %v5466_v50 = vpop.f32.mrf.mxu1  ;;  %v13832_v59 = vpop.f32.mrf.mxu2  ;;  %15330 = vst [vmem:[#allocation25_spill] sm:$0xff] %v13883_v12 }
0x105e   :  { %5712 = vmatpush.msra.mxu2 %v5460_v53  ;;  %v13836_v42 = vpop.f32.mrf.mxu0  ;;  %6546 = vmatpush.bf16.msrb.mxu1 %v10565_v58  ;;  %v13888_v53 = vld [vmem:[%s15328_s14 + $0x60] sm:$0xff] }
0x1060   :  { %5713 = vmatpush.msra.mxu2 %v5457_v55  ;;  %10302 = vmatmul.msk.f32.gmra.mxu1 %vm5662_vm8, %v13830_v60 }
0x1062   :  { %5714 = vmatpush.msra.mxu2 %v5455_v39  ;;  %6547 = vmatpush.bf16.msrb.mxu1 %v10553_v31  ;;  %v13898_v39 = vld [vmem:[%s15328_s14 + $0x68] sm:$0xff]  ;;  %v13903_v31 = vld [vmem:[%s15328_s14 + $0x40] sm:$0x3] }
0x1063   :  { %v5500_v14 = vpop.f32.mrf.mxu3  ;;  %10269 = vmatmul.msk.f32.vlgmr.msra.gmra.mxu2 %vm5662_vm8, %v13842_v10 }
0x1064   :  { %10308 = vmatpush.msk.msrb.mxu2 %vm226_vm0, %v13741_v37  ;;  %v13862_v37 = vld [vmem:[%s15328_s14 + $0x50] sm:$0xff] }
0x1065   :  { %v13850_v19 = vpop.f32.mrf.mxu1  ;;  %v5479_v2 = vpop.f32.mrf.mxu2 }
0x1066   :  { %5923 = vmatpush.msrb.mxu2 %v13736_v48  ;;  %v5525_v21 = vpop.f32.mrf.mxu0  ;;  %6548 = vmatpush.bf16.msrb.mxu1 %v10541_v29 }
0x1068   :  { %5924 = vmatpush.msrb.mxu2 %v13717_v41  ;;  %10303 = vmatmul.msk.f32.gmra.mxu1 %vm5662_vm8, %v13853_v33 }
0x106a   :  { %5925 = vmatpush.msrb.mxu2 %v13695_v9  ;;  %v13878_v9 = vld [vmem:[%s15328_s14 + $0x58] sm:$0xff]  ;;  %6549 = vmatpush.bf16.msrb.mxu1 %v10529_v18  ;;  %v5501_v18 = vadd.f32 %v5500_v14, %v13832_v59  ;;  %v4795_v59 = vadd.f32 %v13784_v32, %v13777_v5  ;;  %v4790_v5 = vadd.f32 %v13763_v4, %v13756_v44 }
0x106b   :  { %v5502_v48 = vpop.f32.mrf.mxu3  ;;  %10270 = vmatmul.msk.f32.gmra.mxu2 %vm5662_vm8, %v13862_v37 }
0x106c   :  { %5926 = vmatpush.msrb.mxu2 %v13674_v0  ;;  %v5503_v20 = vadd.f32 %v5502_v48, %v5479_v2  ;;  %v5524_v14 = vadd.f32 %v13836_v42, %v5501_v18  ;;  %v4818_v32 = vadd.f32 %v13779_v16, %v4795_v59  ;;  %v4813_v4 = vadd.f32 %v13758_v3, %v4790_v5  ;;  %v13956_v3 = vld [vmem:[%s15328_s14 + $0x80] sm:$0xff]  ;;  %v15333_v59 = vld [vmem:[#allocation23_spill] sm:$0xff] }
0x106d   :  { %v5548_v41 = vpop.f32.mrf.mxu1  ;;  %v5482_v45 = vpop.f32.mrf.mxu2  ;;  %v11362_v5 = vld [vmem:[%s15316_s3 + $0x55c] sm:$0xf] }
0x106e   :  { %v5528_v23 = vpop.f32.mrf.mxu0  ;;  %v5547_v42 = vadd.f32 %v13850_v19, %v5524_v14  ;;  %v4841_v16 = vadd.f32 %v13786_v57, %v4818_v32  ;;  %v10506_v32 = vld [vmem:[%s15316_s3 + $0x564] sm:$0xf0] }
0x1070   :  { %10304 = vmatmul.msk.f32.gmra.mxu1 %vm5662_vm8, %v13871_v25 }
0x1073   :  { %v5505_v46 = vpop.f32.mrf.mxu3  ;;  %10271 = vmatmul.msk.f32.gmra.mxu2 %vm5662_vm8, %v13878_v9 }
0x1074   :  { %v5506_v58 = vadd.f32 %v5505_v46, %v5482_v45  ;;  %v4798_v45 = vadd.f32 %v13794_v63, %v13788_v51  ;;  %v5526_v46 = vadd.f32 %v5525_v21, %v5503_v20  ;;  %v4793_v51 = vadd.f32 %v13773_v47, %v13767_v7 }
0x1075   :  { %v5551_v0 = vpop.f32.mrf.mxu1  ;;  %v5484_v35 = vpop.f32.mrf.mxu2  ;;  %v4788_v7 = vadd.f32 %v13752_v24, %v13746_v6 }
0x1076   :  { %v5530_v8 = vpop.f32.mrf.mxu0  ;;  %v4821_v63 = vadd.f32 %v13790_v30, %v4798_v45  ;;  %v5549_v21 = vadd.f32 %v5548_v41, %v5526_v46  ;;  %v4816_v47 = vadd.f32 %v13769_v27, %v4793_v51  ;;  %v13952_v41 = vld [vmem:[%s15316_s3 + $0x720] sm:$0xff]  ;;  %v15332_v46 = vld [vmem:[#allocation22_spill] sm:$0xff] }
0x1077   :  { %v4811_v24 = vadd.f32 %v13748_v62, %v4788_v7  ;;  %v6354_v57 = vunpack.c.l.b16 %v13952_v41  ;;  %v10518_v51 = vld [vmem:[%s15316_s3 + $0x57c] sm:$0xf0] }
0x1078   :  { %10305 = vmatmul.msk.f32.gmra.mxu1 %vm5662_vm8, %v13883_v12  ;;  %v4844_v30 = vadd.f32 %v13796_v54, %v4821_v63  ;;  %v4839_v27 = vadd.f32 %v13775_v17, %v4816_v47 }
0x1079   :  { %v6432_v62 = vpack.c.b16 %v6354_v57, %v6354_v57 }
0x107b   :  { %v5507_v50 = vpop.f32.mrf.mxu3  ;;  %10272 = vmatmul.msk.f32.gmra.mxu2 %vm5662_vm8, %v13888_v53 }
0x107c   :  { %v5508_v13 = vadd.f32 %v5507_v50, %v5484_v35  ;;  %v13909_v35 = vld [vmem:[%s15328_s14 + $0x70] sm:$0xff] }
0x107d   :  { %v5553_v55 = vpop.f32.mrf.mxu1  ;;  %v5487_v61 = vpop.f32.mrf.mxu2 }
0x107e   :  { %v5533_v56 = vpop.f32.mrf.mxu0  ;;  %v5531_v52 = vadd.f32 %v5530_v8, %v5508_v13  ;;  %v11417_v13 = vld [vmem:[%s15316_s3 + $0x710] sm:$0xf0] }
0x1080   :  { %10306 = vmatmul.msk.f32.gmra.mxu1 %vm5662_vm8, %v13893_v11  ;;  %v5529_v11 = vadd.f32 %v5528_v23, %v5506_v58  ;;  %v5554_v50 = vadd.f32 %v5553_v55, %v5531_v52  ;;  %v4836_v55 = vadd.f32 %v13765_v43, %v4813_v4  ;;  %v6511_v43 = vsel %vm1017_vm9, %v6432_v62, 0 }
0x1081   :  { %6594 = vmatpush.bf16.msra.mxu1 %v6511_v43 }
0x1082   :  { %v5552_v48 = vadd.f32 %v5551_v0, %v5529_v11  ;;  %v13932_v0 = vld [vmem:[%s15328_s14 + $0x78] sm:$0xff]  ;;  %v4834_v11 = vadd.f32 %v13754_v36, %v4811_v24 }
0x1083   :  { %v5510_v26 = vpop.f32.mrf.mxu3  ;;  %10273 = vmatmul.msk.f32.gmra.mxu2 %vm5662_vm8, %v13898_v39 }
0x1084   :  { %v5511_v49 = vadd.f32 %v5510_v26, %v5487_v61 }
0x1085   :  { %v5556_v40 = vpop.f32.mrf.mxu1  ;;  %v5489_v29 = vpop.f32.mrf.mxu2 }
0x1086   :  { %v5534_v1 = vadd.f32 %v5533_v56, %v5511_v49  ;;  %v5535_v22 = vpop.f32.mrf.mxu0  ;;  %v10720_v56 = vld [vmem:[%s15316_s3 + $0x708] sm:$0xf] }
0x1087   :  { %v10721_v58 = vor.u32 %v11417_v13, %v10720_v56  ;;  %v13969_v49 = vld [vmem:[%s15328_s14 + $0x88] sm:$0x3] }
0x1088   :  { %v5557_v12 = vadd.f32 %v5556_v40, %v5534_v1  ;;  %10307 = vmatmul.msk.f32.gmra.mxu1 %vm5662_vm8, %v13903_v31 }
0x1089   :  { %6595 = vmatpush.bf16.msra.mxu1 %v10721_v58  ;;  %v10482_v58 = vld [vmem:[%s15316_s3 + $0x534] sm:$0xf0] }
0x108a   :  { %10278 = vmatpush.msk.msra.mxu3 %vm226_vm0, %v5557_v12 }
0x108b   :  { %v5512_v2 = vpop.f32.mrf.mxu3  ;;  %10274 = vmatmul.msk.f32.gmra.mxu2 %vm5662_vm8, %v13909_v35 }
0x108c   :  { %5755 = vmatpush.msra.mxu3 %v5554_v50 }
0x108d   :  { %v5558_v23 = vpop.f32.mrf.mxu1  ;;  %v13922_v12 = vpop.f32.mrf.mxu2 }
0x108e   :  { %5756 = vmatpush.msra.mxu3 %v5552_v48  ;;  %v13924_v8 = vpop.f32.mrf.mxu0  ;;  %v11365_v23 = vld [vmem:[%s15316_s3 + $0x574] sm:$0xf] }
0x1090   :  { %5757 = vmatpush.msra.mxu3 %v5549_v21  ;;  %6550 = vmatmul.bf16.vlgmr.msrb.gmra.mxu1 %v13331_v34  ;;  %v10521_v21 = vor.u32 %v11365_v23, %v10518_v51  ;;  %v11416_v23 = vld [vmem:[%s15316_s3 + $0x70c] sm:$0xf] }
0x1092   :  { %5758 = vmatpush.msra.mxu3 %v5547_v42  ;;  %6611 = vmatpush.bf16.msra.mxu2 %v10521_v21  ;;  %v10504_v21 = vld [vmem:[%s15316_s3 + $0x558] sm:$0xf] }
0x1093   :  { %v13938_v44 = vpop.f32.mrf.mxu3  ;;  %10275 = vmatmul.msk.f32.gmra.mxu2 %vm5662_vm8, %v13932_v0  ;;  %10279 = vmatmul.msk.f32.vlgmr.msra.gmra.mxu3 %vm5662_vm8, %v13842_v10 }
0x1094   :  { %10318 = vmatpush.msk.msrb.mxu3 %vm226_vm0, %v4844_v30 }
0x1095   :  { %v13947_v6 = vpop.f32.mrf.mxu1  ;;  %v5571_v54 = vpop.f32.mrf.mxu2 }
0x1096   :  { %5967 = vmatpush.msrb.mxu3 %v4841_v16  ;;  %v5617_v19 = vpop.f32.mrf.mxu0  ;;  %v5593_v16 = vadd.f32 %v13938_v44, %v13922_v12  ;;  %v11359_v12 = vld [vmem:[%s15316_s3 + $0x544] sm:$0xf]  ;;  %v10494_v44 = vld [vmem:[%s15316_s3 + $0x54c] sm:$0xf0] }
0x1097   :  { %v10497_v43 = vor.u32 %v11359_v12, %v10494_v44  ;;  %v10456_v44 = vld [vmem:[%s15316_s3 + $0x4f8] sm:$0xf] }
0x1098   :  { %5968 = vmatpush.msrb.mxu3 %v4839_v27 }
0x109a   :  { %5969 = vmatpush.msrb.mxu3 %v4836_v55  ;;  %v10509_v55 = vor.u32 %v11362_v5, %v10506_v32  ;;  %v11363_v5 = vld [vmem:[%s15316_s3 + $0x560] sm:$0xf0]  ;;  %v11344_v32 = vld [vmem:[%s15316_s3 + $0x4cc] sm:$0xf] }
0x109b   :  { %v5594_v17 = vpop.f32.mrf.mxu3  ;;  %10276 = vmatmul.msk.f32.gmra.mxu2 %vm5662_vm8, %v13956_v3  ;;  %10280 = vmatmul.msk.f32.gmra.mxu3 %vm5662_vm8, %v13862_v37 }
0x109c   :  { %5970 = vmatpush.msrb.mxu3 %v4834_v11  ;;  %v5595_v42 = vadd.f32 %v5594_v17, %v5571_v54  ;;  %v5616_v54 = vadd.f32 %v13924_v8, %v5593_v16  ;;  %6612 = vmatpush.bf16.msra.mxu2 %v10509_v55  ;;  %v11356_v8 = vld [vmem:[%s15316_s3 + $0x52c] sm:$0xf]  ;;  %v10480_v55 = vld [vmem:[%s15316_s3 + $0x528] sm:$0xf] }
0x109d   :  { %v5640_v61 = vpop.f32.mrf.mxu1  ;;  %v5574_v26 = vpop.f32.mrf.mxu2  ;;  %v11360_v16 = vld [vmem:[%s15316_s3 + $0x548] sm:$0xf0] }
0x109e   :  { %v5620_v36 = vpop.f32.mrf.mxu0  ;;  %v5618_v57 = vadd.f32 %v5617_v19, %v5595_v42  ;;  %v5639_v13 = vadd.f32 %v13947_v6, %v5616_v54  ;;  %v11353_v6 = vld [vmem:[%s15316_s3 + $0x514] sm:$0xf]  ;;  %v15335_v42 = vld [vmem:[#allocation28_spill] sm:$0xff]  ;;  %v15336_v54 = vld [vmem:[#allocation25_spill] sm:$0xff] }
0x10a0   :  { %6555 = vmatmul.bf16.gmra.mxu1 %v13388_v28  ;;  %v5641_v56 = vadd.f32 %v5640_v61, %v5618_v57  ;;  %6613 = vmatpush.bf16.msra.mxu2 %v10497_v43  ;;  %v10470_v61 = vld [vmem:[%s15316_s3 + $0x51c] sm:$0xf0]  ;;  %v11357_v57 = vld [vmem:[%s15316_s3 + $0x530] sm:$0xf0] }
0x10a1   :  { %v15338_v43 = vld [vmem:[#allocation24_spill] sm:$0xff] }
0x10a3   :  { %v5597_v40 = vpop.f32.mrf.mxu3  ;;  %10277 = vmatmul.msk.f32.gmra.mxu2 %vm5662_vm8, %v13969_v49  ;;  %10281 = vmatmul.msk.f32.gmra.mxu3 %vm5662_vm8, %v13878_v9 }
0x10a4   :  { %v5598_v14 = vadd.f32 %v5597_v40, %v5574_v26  ;;  %v15334_v26 = vld [vmem:[#allocation20_spill] sm:$0xff] }
0x10a5   :  { %v5643_v20 = vpop.f32.mrf.mxu1  ;;  %v5576_v52 = vpop.f32.mrf.mxu2 }
0x10a6   :  { %v5622_v29 = vpop.f32.mrf.mxu0  ;;  %v5621_v24 = vadd.f32 %v5620_v36, %v5598_v14  ;;  %v10485_v36 = vor.u32 %v11356_v8, %v10482_v58  ;;  %v11389_v8 = vld [vmem:[%s15316_s3 + $0x634] sm:$0xf] }
0x10a8   :  { %v5644_v17 = vadd.f32 %v5643_v20, %v5621_v24  ;;  %6614 = vmatpush.bf16.msra.mxu2 %v10485_v36  ;;  %v10473_v20 = vor.u32 %v11353_v6, %v10470_v61  ;;  %v10524_v6 = vld [vmem:[%s15316_s3 + $0x578] sm:$0xf]  ;;  %v11367_v61 = vld [vmem:[%s15316_s3 + $0x580] sm:$0xf0] }
0x10ab   :  { %v5599_v1 = vpop.f32.mrf.mxu3  ;;  %10282 = vmatmul.msk.f32.gmra.mxu3 %vm5662_vm8, %v13888_v53  ;;  %10309 = vmatmul.msk.f32.vlgmr.msrb.gmra.mxu2 %vm5662_vm8, %v13808_v38 }
0x10ac   :  { %v5600_v50 = vadd.f32 %v5599_v1, %v5576_v52  ;;  %v11350_v52 = vld [vmem:[%s15316_s3 + $0x4fc] sm:$0xf]  ;;  %v6355_v1 = vunpack.c.h.b16 %v13952_v41  ;;  %6615 = vmatpush.bf16.msra.mxu2 %v10473_v20  ;;  %v10516_v41 = vld [vmem:[%s15316_s3 + $0x570] sm:$0xf] }
0x10ad   :  { %v5645_v22 = vpop.f32.mrf.mxu1  ;;  %v5579_v18 = vpop.f32.mrf.mxu2 }
0x10ae   :  { %v5625_v45 = vpop.f32.mrf.mxu0  ;;  %v5623_v7 = vadd.f32 %v5622_v29, %v5600_v50  ;;  %v10458_v29 = vld [vmem:[%s15316_s3 + $0x504] sm:$0xf0]  ;;  %v11347_v50 = vld [vmem:[%s15316_s3 + $0x4e4] sm:$0xf] }
0x10b0   :  { %6560 = vmatmul.bf16.gmra.mxu1 %v15332_v46  ;;  %v5646_v11 = vadd.f32 %v5645_v22, %v5623_v7  ;;  %v6433_v22 = vpack.c.b16 %v6355_v1, %v6355_v1  ;;  %v10505_v7 = vor.u32 %v11363_v5, %v10504_v21  ;;  %v10432_v1 = vld [vmem:[%s15316_s3 + $0x4c8] sm:$0xf] }
0x10b3   :  { %v5602_v2 = vpop.f32.mrf.mxu3  ;;  %10283 = vmatmul.msk.f32.gmra.mxu3 %vm5662_vm8, %v13898_v39  ;;  %10310 = vmatmul.msk.f32.gmra.mxu2 %vm5662_vm8, %v15333_v59 }
0x10b4   :  { %v5603_v48 = vadd.f32 %v5602_v2, %v5579_v18  ;;  %v6514_v18 = vsel %vm1017_vm9, %v6433_v22, 0  ;;  %v11386_v22 = vld [vmem:[%s15316_s3 + $0x61c] sm:$0xf] }
0x10b5   :  { %v5648_v63 = vpop.f32.mrf.mxu1  ;;  %v5581_v30 = vpop.f32.mrf.mxu2  ;;  %6686 = vmatpush.bf16.msrb.mxu1 %v6514_v18 }
0x10b6   :  { %v5626_v47 = vadd.f32 %v5625_v45, %v5603_v48  ;;  %v5627_v4 = vpop.f32.mrf.mxu0  ;;  %v11366_v45 = vld [vmem:[%s15316_s3 + $0x578] sm:$0xf0]  ;;  %v10446_v48 = vld [vmem:[%s15316_s3 + $0x4ec] sm:$0xf0] }
0x10b7   :  { %v10517_v14 = vor.u32 %v11366_v45, %v10516_v41  ;;  %v10449_v51 = vor.u32 %v11347_v50, %v10446_v48  ;;  %v10492_v4 = vld [vmem:[%s15316_s3 + $0x540] sm:$0xf]  ;;  %v10602_v41 = vld [vmem:[%s15316_s3 + $0x624] sm:$0xf0]  ;;  %v11364_v50 = vld [vmem:[%s15316_s3 + $0x568] sm:$0xf0] }
0x10b8   :  { %v5649_v27 = vadd.f32 %v5648_v63, %v5626_v47  ;;  %v10434_v47 = vld [vmem:[%s15316_s3 + $0x4d4] sm:$0xf0]  ;;  %v10512_v45 = vld [vmem:[%s15316_s3 + $0x560] sm:$0xf] }
0x10b9   :  { %v10437_v30 = vor.u32 %v11344_v32, %v10434_v47  ;;  %v10513_v48 = vor.u32 %v11364_v50, %v10512_v45  ;;  %v11380_v32 = vld [vmem:[%s15316_s3 + $0x5ec] sm:$0xf]  ;;  %v10488_v47 = vld [vmem:[%s15316_s3 + $0x530] sm:$0xf]  ;;  %v11418_v45 = vld [vmem:[%s15316_s3 + $0x718] sm:$0xf0] }
0x10ba   :  { %10288 = vmatpush.msk.msrb.mxu0 %vm226_vm0, %v5649_v27  ;;  %v10493_v27 = vor.u32 %v11360_v16, %v10492_v4 }
0x10bb   :  { %v5604_v62 = vpop.f32.mrf.mxu3  ;;  %10284 = vmatmul.msk.f32.gmra.mxu3 %vm5662_vm8, %v13909_v35  ;;  %10311 = vmatmul.msk.f32.gmra.mxu2 %vm5662_vm8, %v13820_v15 }
0x10bc   :  { %5799 = vmatpush.msrb.mxu0 %v5646_v11  ;;  %v10481_v11 = vor.u32 %v11357_v57, %v10480_v55  ;;  %v11354_v62 = vld [vmem:[%s15316_s3 + $0x518] sm:$0xf0]  ;;  %v10566_v55 = vld [vmem:[%s15316_s3 + $0x5dc] sm:$0xf0]  ;;  %v10476_v57 = vld [vmem:[%s15316_s3 + $0x518] sm:$0xf] }
0x10bd   :  { %v5650_v19 = vpop.f32.mrf.mxu1 }
0x10be   :  { %5800 = vmatpush.msrb.mxu0 %v5644_v17  ;;  %v15337_v19 = vld [vmem:[#allocation31_spill] sm:$0xff] }
0x10c0   :  { %5801 = vmatpush.msrb.mxu0 %v5641_v56  ;;  %10730 = vmatmul.msk.bf16.vlgmr.msra.gmra.mxu1 %vm3360_vm3, %v15334_v26  ;;  %v10444_v56 = vld [vmem:[%s15316_s3 + $0x4e0] sm:$0xf] }
0x10c2   :  { %5802 = vmatpush.msrb.mxu0 %v5639_v13  ;;  %v11348_v13 = vld [vmem:[%s15316_s3 + $0x4e8] sm:$0xf0] }
0x10c3   :  { %10285 = vmatmul.msk.f32.gmra.mxu3 %vm5662_vm8, %v13932_v0  ;;  %10289 = vmatmul.msk.f32.vlgmr.msrb.gmra.mxu0 %vm5662_vm8, %v13842_v10  ;;  %v10461_v10 = vor.u32 %v11350_v52, %v10458_v29  ;;  %v10445_v36 = vor.u32 %v11348_v13, %v10444_v56  ;;  %v10525_v52 = vor.u32 %v11367_v61, %v10524_v6  ;;  %v11352_v56 = vld [vmem:[%s15316_s3 + $0x508] sm:$0xf0]  ;;  %v10429_v13 = vld [vmem:[%s15316_s3 + $0x728] sm:$0xf]  ;;  %v10708_v6 = vld [vmem:[%s15316_s3 + $0x6f0] sm:$0xf] }
0x10c4   :  { %10312 = vmatmul.msk.f32.gmra.mxu2 %vm5662_vm8, %v13830_v60  ;;  %6519 = vmatpush.bf16.msra.mxu0 %v10517_v14  ;;  %v10605_v14 = vor.u32 %v11386_v22, %v10602_v41  ;;  %v11414_v61 = vld [vmem:[%s15316_s3 + $0x6f8] sm:$0xf0]  ;;  %v10728_v41 = vld [vmem:[%s15316_s3 + $0x710] sm:$0xf] }
0x10c5   :  { %v14011_v40 = vpop.f32.mrf.mxu1  ;;  %6616 = vmatpush.bf16.msra.mxu2 %v10461_v10  ;;  %v11345_v10 = vld [vmem:[%s15316_s3 + $0x4d0] sm:$0xf0] }
0x10c6   :  { %v10433_v18 = vor.u32 %v11345_v10, %v10432_v1  ;;  %v10452_v1 = vld [vmem:[%s15316_s3 + $0x4e8] sm:$0xf]  ;;  %v11349_v10 = vld [vmem:[%s15316_s3 + $0x4f0] sm:$0xf0] }
0x10c8   :  { %6520 = vmatpush.bf16.msra.mxu0 %v10505_v7  ;;  %v10578_v7 = vld [vmem:[%s15316_s3 + $0x5f4] sm:$0xf0] }
0x10c9   :  { %6617 = vmatpush.bf16.msra.mxu2 %v10449_v51  ;;  %v11361_v51 = vld [vmem:[%s15316_s3 + $0x550] sm:$0xf0]  ;;  %v10581_v4 = vor.u32 %v11380_v32, %v10578_v7 }
0x10cb   :  { %10286 = vmatmul.msk.f32.gmra.mxu3 %vm5662_vm8, %v13956_v3  ;;  %10290 = vmatmul.msk.f32.gmra.mxu0 %vm5662_vm8, %v13862_v37  ;;  %v10722_v37 = vld [vmem:[%s15316_s3 + $0x714] sm:$0xf0] }
0x10cc   :  { %10313 = vmatmul.msk.f32.gmra.mxu2 %vm5662_vm8, %v13853_v33  ;;  %v10725_v63 = vor.u32 %v11416_v23, %v10722_v37  ;;  %6521 = vmatpush.bf16.msra.mxu0 %v10493_v27  ;;  %v10590_v23 = vld [vmem:[%s15316_s3 + $0x60c] sm:$0xf0]  ;;  %v10500_v37 = vld [vmem:[%s15316_s3 + $0x548] sm:$0xf]  ;;  %v11377_v27 = vld [vmem:[%s15316_s3 + $0x5d4] sm:$0xf] }
0x10cd   :  { %v14026_v2 = vpop.f32.mrf.mxu1  ;;  %6618 = vmatpush.bf16.msra.mxu2 %v10437_v30  ;;  %v11358_v30 = vld [vmem:[%s15316_s3 + $0x538] sm:$0xf0] }
0x10ce   :  { %6687 = vmatpush.bf16.msrb.mxu1 %v10725_v63  ;;  %v10489_v16 = vor.u32 %v11358_v30, %v10488_v47  ;;  %v10684_v47 = vld [vmem:[%s15316_s3 + $0x6c0] sm:$0xf]  ;;  %v11408_v30 = vld [vmem:[%s15316_s3 + $0x6c8] sm:$0xf0] }
0x10d0   :  { %10731 = vmatmul.msk.bf16.gmra.mxu1 %vm3360_vm3, %v15335_v42  ;;  %6522 = vmatpush.bf16.msra.mxu0 %v10481_v11 }
0x10d1   :  { %6703 = vmatpush.bf16.msrb.mxu2 %v10525_v52  ;;  %v10542_v52 = vld [vmem:[%s15316_s3 + $0x5ac] sm:$0xf0] }
0x10d3   :  { %10287 = vmatmul.msk.f32.gmra.mxu3 %vm5662_vm8, %v13969_v49  ;;  %10291 = vmatmul.msk.f32.gmra.mxu0 %vm5662_vm8, %v13878_v9  ;;  %v10468_v9 = vld [vmem:[%s15316_s3 + $0x510] sm:$0xf] }
0x10d4   :  { %10314 = vmatmul.msk.f32.gmra.mxu2 %vm5662_vm8, %v13871_v25  ;;  %v10469_v17 = vor.u32 %v11354_v62, %v10468_v9  ;;  %v10569_v9 = vor.u32 %v11377_v27, %v10566_v55  ;;  %v11355_v62 = vld [vmem:[%s15316_s3 + $0x520] sm:$0xf0] }
0x10d5   :  { %v14045_v24 = vpop.f32.mrf.mxu1  ;;  %6704 = vmatpush.bf16.msrb.mxu2 %v10513_v48 }
0x10d6   :  { %6523 = vmatpush.bf16.msra.mxu0 %v10469_v17 }
0x10db   :  { %10292 = vmatmul.msk.f32.gmra.mxu0 %vm5662_vm8, %v13888_v53  ;;  %10319 = vmatmul.msk.f32.vlgmr.msrb.gmra.mxu3 %vm5662_vm8, %v13808_v38  ;;  %v11351_v53 = vld [vmem:[%s15316_s3 + $0x500] sm:$0xf0] }
0x10dc   :  { %10315 = vmatmul.msk.f32.gmra.mxu2 %vm5662_vm8, %v15336_v54  ;;  %v10457_v38 = vor.u32 %v11351_v53, %v10456_v44  ;;  %v10554_v53 = vld [vmem:[%s15316_s3 + $0x5c4] sm:$0xf0] }
0x10dd   :  { %v14057_v12 = vpop.f32.mrf.mxu1 }
0x10de   :  { %6524 = vmatpush.bf16.msra.mxu0 %v10457_v38  ;;  %v10464_v38 = vld [vmem:[%s15316_s3 + $0x500] sm:$0xf] }
0x10e0   :  { %10732 = vmatmul.msk.bf16.gmra.mxu1 %vm3360_vm3, %v15337_v19 }
0x10e2   :  { %6525 = vmatpush.bf16.msra.mxu0 %v10445_v36  ;;  %v10465_v36 = vor.u32 %v11352_v56, %v10464_v38  ;;  %v11399_v38 = vld [vmem:[%s15316_s3 + $0x680] sm:$0xf0] }
0x10e3   :  { %10293 = vmatmul.msk.f32.gmra.mxu0 %vm5662_vm8, %v13898_v39  ;;  %10320 = vmatmul.msk.f32.gmra.mxu3 %vm5662_vm8, %v15333_v59  ;;  %v10614_v39 = vld [vmem:[%s15316_s3 + $0x63c] sm:$0xf0] }
0x10e4   :  { %10316 = vmatmul.msk.f32.gmra.mxu2 %vm5662_vm8, %v15338_v43  ;;  %v10617_v59 = vor.u32 %v11389_v8, %v10614_v39  ;;  %v6356_v39 = vunpack.c.l.b16 %v10429_v13  ;;  %v15342_v56 = vld [vmem:[#allocation32_spill] sm:$0xff] }
0x10e5   :  { %v14072_v58 = vpop.f32.mrf.mxu1  ;;  %v10636_v13 = vld [vmem:[%s15316_s3 + $0x660] sm:$0xf] }
0x10e6   :  { %v5716_v20 = vpop.f32.mrf.mxu2  ;;  %6634 = vmatpush.bf16.msra.mxu3 %v10617_v59  ;;  %6526 = vmatpush.bf16.msra.mxu0 %v10433_v18  ;;  %v10709_v59 = vor.u32 %v11414_v61, %v10708_v6  ;;  %v10453_v18 = vor.u32 %v11349_v10, %v10452_v1  ;;  %v11388_v10 = vld [vmem:[%s15316_s3 + $0x628] sm:$0xf0] }
0x10e7   :  { %v14078_v29 = vadd.f32 %v14011_v40, %v5716_v20  ;;  %v11383_v40 = vld [vmem:[%s15316_s3 + $0x604] sm:$0xf] }
0x10e8   :  { %v10593_v21 = vor.u32 %v11383_v40, %v10590_v23  ;;  %v11371_v20 = vld [vmem:[%s15316_s3 + $0x5a4] sm:$0xf]  ;;  %v10696_v40 = vld [vmem:[%s15316_s3 + $0x6d8] sm:$0xf] }
0x10e9   :  { %v11411_v23 = vld [vmem:[%s15316_s3 + $0x6e0] sm:$0xf0] }
0x10ea   :  { %6635 = vmatpush.bf16.msra.mxu3 %v10605_v14  ;;  %6565 = vmatpush.bf16.msrb.mxu0 %v10709_v59  ;;  %v10729_v14 = vor.u32 %v11418_v45, %v10728_v41  ;;  %v10624_v59 = vld [vmem:[%s15316_s3 + $0x648] sm:$0xf] }
0x10eb   :  { %10294 = vmatmul.msk.f32.gmra.mxu0 %vm5662_vm8, %v13909_v35  ;;  %10321 = vmatmul.msk.f32.gmra.mxu3 %vm5662_vm8, %v13820_v15  ;;  %v10501_v35 = vor.u32 %v11361_v51, %v10500_v37  ;;  %v11368_v37 = vld [vmem:[%s15316_s3 + $0x58c] sm:$0xf]  ;;  %v10697_v51 = vor.u32 %v11411_v23, %v10696_v40  ;;  %v11382_v40 = vld [vmem:[%s15316_s3 + $0x5f8] sm:$0xf0] }
0x10ec   :  { %10317 = vmatmul.msk.f32.gmra.mxu2 %vm5662_vm8, %v13903_v31 }
0x10ed   :  { %v14096_v63 = vpop.f32.mrf.mxu1  ;;  %6705 = vmatpush.bf16.msrb.mxu2 %v10501_v35  ;;  %v10440_v35 = vld [vmem:[%s15316_s3 + $0x4d0] sm:$0xf] }
0x10ee   :  { %v5719_v5 = vpop.f32.mrf.mxu2  ;;  %6636 = vmatpush.bf16.msra.mxu3 %v10593_v21  ;;  %v10530_v21 = vld [vmem:[%s15316_s3 + $0x594] sm:$0xf0]  ;;  %6566 = vmatpush.bf16.msrb.mxu0 %v10697_v51  ;;  %v11379_v51 = vld [vmem:[%s15316_s3 + $0x5e0] sm:$0xf0] }
0x10ef   :  { %v14099_v15 = vadd.f32 %v14026_v2, %v5719_v5  ;;  %v15339_v2 = vld [vmem:[#allocation26_spill] sm:$0xff]  ;;  %v11346_v5 = vld [vmem:[%s15316_s3 + $0x4d8] sm:$0xf0]  ;;  %v10533_v32 = vor.u32 %v11368_v37, %v10530_v21  ;;  %v10572_v37 = vld [vmem:[%s15316_s3 + $0x5d8] sm:$0xf] }
0x10f0   :  { %10733 = vmatmul.msk.bf16.vlgmr.msrb.gmra.mxu1 %vm3360_vm3, %v15334_v26  ;;  %v10441_v7 = vor.u32 %v11346_v5, %v10440_v35  ;;  %v10573_v35 = vor.u32 %v11379_v51, %v10572_v37  ;;  %v11395_v51 = vld [vmem:[%s15316_s3 + $0x664] sm:$0xf] }
0x10f1   :  { %6706 = vmatpush.bf16.msrb.mxu2 %v10489_v16  ;;  %v10685_v16 = vor.u32 %v11408_v30, %v10684_v47  ;;  %v10710_v30 = vld [vmem:[%s15316_s3 + $0x6fc] sm:$0xf0] }
0x10f2   :  { %6637 = vmatpush.bf16.msra.mxu3 %v10581_v4 }
0x10f3   :  { %10295 = vmatmul.msk.f32.gmra.mxu0 %vm5662_vm8, %v13932_v0  ;;  %10322 = vmatmul.msk.f32.gmra.mxu3 %vm5662_vm8, %v13830_v60  ;;  %v10477_v0 = vor.u32 %v11355_v62, %v10476_v57  ;;  %v11374_v60 = vld [vmem:[%s15316_s3 + $0x5bc] sm:$0xf] }
0x10f4   :  { %6619 = vmatmul.bf16.vlgmr.msra.gmra.mxu2 %v15339_v2  ;;  %v10557_v8 = vor.u32 %v11374_v60, %v10554_v53  ;;  %6567 = vmatpush.bf16.msrb.mxu0 %v10685_v16  ;;  %v11402_v62 = vld [vmem:[%s15316_s3 + $0x698] sm:$0xf0]  ;;  %v10648_v53 = vld [vmem:[%s15316_s3 + $0x678] sm:$0xf]  ;;  %v10548_v16 = vld [vmem:[%s15316_s3 + $0x5a8] sm:$0xf] }
0x10f5   :  { %v14115_v11 = vpop.f32.mrf.mxu1  ;;  %6707 = vmatpush.bf16.msrb.mxu2 %v10477_v0 }
0x10f6   :  { %v5722_v17 = vpop.f32.mrf.mxu2  ;;  %6638 = vmatpush.bf16.msra.mxu3 %v10569_v9  ;;  %v10660_v9 = vld [vmem:[%s15316_s3 + $0x690] sm:$0xf] }
0x10f7   :  { %v14119_v44 = vadd.f32 %v14045_v24, %v5722_v17  ;;  %v6434_v24 = vpack.c.b16 %v6356_v39, %v6356_v39  ;;  %v10661_v17 = vor.u32 %v11402_v62, %v10660_v9 }
0x10f9   :  { %6708 = vmatpush.bf16.msrb.mxu2 %v10465_v36 }
0x10fa   :  { %6639 = vmatpush.bf16.msra.mxu3 %v10557_v8  ;;  %v10620_v8 = vld [vmem:[%s15316_s3 + $0x638] sm:$0xf] }
0x10fb   :  { %10296 = vmatmul.msk.f32.gmra.mxu0 %vm5662_vm8, %v13956_v3  ;;  %10323 = vmatmul.msk.f32.gmra.mxu3 %vm5662_vm8, %v13853_v33  ;;  %v6517_v3 = vsel %vm1017_vm9, %v6434_v24, 0  ;;  %v10545_v33 = vor.u32 %v11371_v20, %v10542_v52  ;;  %v11391_v24 = vld [vmem:[%s15316_s3 + $0x640] sm:$0xf0]  ;;  %v10608_v52 = vld [vmem:[%s15316_s3 + $0x620] sm:$0xf] }
0x10fc   :  { %6778 = vmatpush.bf16.msra.mxu1 %v6517_v3  ;;  %v10621_v20 = vor.u32 %v11391_v24, %v10620_v8  ;;  %v10609_v3 = vor.u32 %v11388_v10, %v10608_v52  ;;  %v10686_v8 = vld [vmem:[%s15316_s3 + $0x6cc] sm:$0xf0]  ;;  %v11401_v10 = vld [vmem:[%s15316_s3 + $0x694] sm:$0xf] }
0x10fd   :  { %v14136_v22 = vpop.f32.mrf.mxu1  ;;  %6709 = vmatpush.bf16.msrb.mxu2 %v10453_v18  ;;  %v11385_v18 = vld [vmem:[%s15316_s3 + $0x610] sm:$0xf0] }
0x10fe   :  { %v5725_v50 = vpop.f32.mrf.mxu2  ;;  %6640 = vmatpush.bf16.msra.mxu3 %v10545_v33  ;;  %v10596_v33 = vld [vmem:[%s15316_s3 + $0x608] sm:$0xf] }
0x10ff   :  { %v14142_v48 = vadd.f32 %v14057_v12, %v5725_v50  ;;  %v15340_v12 = vld [vmem:[#allocation29_spill] sm:$0xff]  ;;  %v10597_v41 = vor.u32 %v11385_v18, %v10596_v33 }
0x1100   :  { %10734 = vmatmul.msk.bf16.gmra.mxu1 %vm3360_vm3, %v15335_v42 }
0x1101   :  { %6779 = vmatpush.bf16.msra.mxu1 %v10729_v14  ;;  %6710 = vmatpush.bf16.msrb.mxu2 %v10441_v7  ;;  %v11376_v7 = vld [vmem:[%s15316_s3 + $0x5c8] sm:$0xf0] }
0x1102   :  { %6641 = vmatpush.bf16.msra.mxu3 %v10533_v32  ;;  %v10560_v32 = vld [vmem:[%s15316_s3 + $0x5c0] sm:$0xf] }
0x1103   :  { %10297 = vmatmul.msk.f32.gmra.mxu0 %vm5662_vm8, %v13969_v49  ;;  %10324 = vmatmul.msk.f32.gmra.mxu3 %vm5662_vm8, %v13871_v25  ;;  %v10672_v49 = vld [vmem:[%s15316_s3 + $0x6a8] sm:$0xf]  ;;  %v11405_v25 = vld [vmem:[%s15316_s3 + $0x6b0] sm:$0xf0]  ;;  %v10561_v47 = vor.u32 %v11376_v7, %v10560_v32 }
0x1104   :  { %6624 = vmatmul.bf16.gmra.mxu2 %v15340_v12  ;;  %v10673_v57 = vor.u32 %v11405_v25, %v10672_v49  ;;  %v11373_v49 = vld [vmem:[%s15316_s3 + $0x5b0] sm:$0xf0] }
0x1105   :  { %v14159_v4 = vpop.f32.mrf.mxu1 }
0x1106   :  { %15341 = vst [vmem:[#allocation22_spill] sm:$0xff] %v14159_v4  ;;  %v5728_v27 = vpop.f32.mrf.mxu2  ;;  %6568 = vmatpush.bf16.msrb.mxu0 %v10673_v57  ;;  %6726 = vmatpush.bf16.msrb.mxu3 %v10621_v20  ;;  %v10549_v57 = vor.u32 %v11373_v49, %v10548_v16  ;;  %v10626_v16 = vld [vmem:[%s15316_s3 + $0x654] sm:$0xf0]  ;;  %v15358_v49 = vld [vmem:[#allocation30_spill] sm:$0xff] }
0x1107   :  { %v14162_v55 = vadd.f32 %v14072_v58, %v5728_v27 }
0x110a   :  { %6569 = vmatpush.bf16.msrb.mxu0 %v10661_v17  ;;  %6727 = vmatpush.bf16.msrb.mxu3 %v10609_v3  ;;  %v11410_v17 = vld [vmem:[%s15316_s3 + $0x6dc] sm:$0xf]  ;;  %v10662_v3 = vld [vmem:[%s15316_s3 + $0x69c] sm:$0xf0] }
0x110b   :  { %10325 = vmatmul.msk.f32.gmra.mxu3 %vm5662_vm8, %v15336_v54  ;;  %6527 = vmatmul.bf16.vlgmr.msra.gmra.mxu0 %v15339_v2  ;;  %v10649_v54 = vor.u32 %v11399_v38, %v10648_v53  ;;  %v10536_v53 = vld [vmem:[%s15316_s3 + $0x590] sm:$0xf] }
0x110d   :  { %v14171_v0 = vpop.f32.mrf.mxu1 }
0x110e   :  { %v5731_v58 = vpop.f32.mrf.mxu2  ;;  %6570 = vmatpush.bf16.msrb.mxu0 %v10649_v54  ;;  %6728 = vmatpush.bf16.msrb.mxu3 %v10597_v41  ;;  %v11370_v54 = vld [vmem:[%s15316_s3 + $0x598] sm:$0xf0] }
0x110f   :  { %v14174_v60 = vadd.f32 %v14096_v63, %v5731_v58  ;;  %v11396_v63 = vld [vmem:[%s15316_s3 + $0x668] sm:$0xf0]  ;;  %v10698_v58 = vld [vmem:[%s15316_s3 + $0x6e4] sm:$0xf0] }
0x1110   :  { %10735 = vmatmul.msk.bf16.gmra.mxu1 %vm3360_vm3, %v15337_v19  ;;  %v10637_v39 = vor.u32 %v11396_v63, %v10636_v13  ;;  %v10701_v38 = vor.u32 %v11410_v17, %v10698_v58  ;;  %v10537_v13 = vor.u32 %v11370_v54, %v10536_v53  ;;  %v11407_v63 = vld [vmem:[%s15316_s3 + $0x6c4] sm:$0xf] }
0x1112   :  { %6571 = vmatpush.bf16.msrb.mxu0 %v10637_v39 }
0x1113   :  { %10326 = vmatmul.msk.f32.gmra.mxu3 %vm5662_vm8, %v15338_v43  ;;  %v11393_v43 = vld [vmem:[%s15316_s3 + $0x650] sm:$0xf0] }
0x1114   :  { %6629 = vmatmul.bf16.gmra.mxu2 %v15342_v56  ;;  %v10625_v1 = vor.u32 %v11393_v43, %v10624_v59  ;;  %v11404_v59 = vld [vmem:[%s15316_s3 + $0x6ac] sm:$0xf]  ;;  %v10674_v43 = vld [vmem:[%s15316_s3 + $0x6b4] sm:$0xf0] }
0x1115   :  { %v14186_v36 = vpop.f32.mrf.mxu1  ;;  %v10677_v52 = vor.u32 %v11404_v59, %v10674_v43 }
0x1116   :  { %v14189_v6 = vpop.f32.mrf.mxu2  ;;  %v14191_v61 = vpop.f32.mrf.mxu3  ;;  %6572 = vmatpush.bf16.msrb.mxu0 %v10625_v1  ;;  %v15351_v1 = vld [vmem:[#allocation27_spill] sm:$0xff] }
0x1117   :  { %15343 = vst [vmem:[#allocation23_spill] sm:$0xff] %v14191_v61 }
0x111b   :  { %10327 = vmatmul.msk.f32.gmra.mxu3 %vm5662_vm8, %v13903_v31  ;;  %6532 = vmatmul.bf16.gmra.mxu0 %v15340_v12  ;;  %v10584_v31 = vld [vmem:[%s15316_s3 + $0x5f0] sm:$0xf] }
0x111c   :  { %v10585_v23 = vor.u32 %v11382_v40, %v10584_v31  ;;  %v11398_v40 = vld [vmem:[%s15316_s3 + $0x67c] sm:$0xf] }
0x111d   :  { %v14202_v45 = vpop.f32.mrf.mxu1 }
0x111e   :  { %v14204_v50 = vpop.f32.mrf.mxu2  ;;  %v14206_v14 = vpop.f32.mrf.mxu3  ;;  %6729 = vmatpush.bf16.msrb.mxu3 %v10585_v23  ;;  %v10650_v23 = vld [vmem:[%s15316_s3 + $0x684] sm:$0xf0] }
0x111f   :  { %15344 = vst [vmem:[#allocation20_spill] sm:$0xff] %v14206_v14  ;;  %v10653_v37 = vor.u32 %v11398_v40, %v10650_v23  ;;  %v11409_v23 = vld [vmem:[%s15316_s3 + $0x6d0] sm:$0xf0] }
0x1120   :  { %10736 = vmatmul.msk.bf16.vlgmr.msra.gmra.mxu1 %vm3360_vm3, %v15334_v26 }
0x1122   :  { %6730 = vmatpush.bf16.msrb.mxu3 %v10573_v35  ;;  %v10638_v35 = vld [vmem:[%s15316_s3 + $0x66c] sm:$0xf0] }
0x1123   :  { %6642 = vmatmul.bf16.vlgmr.msra.gmra.mxu3 %v13331_v34  ;;  %v10641_v32 = vor.u32 %v11395_v51, %v10638_v35 }
0x1124   :  { %6711 = vmatmul.bf16.vlgmr.msrb.gmra.mxu2 %v15339_v2  ;;  %v11413_v2 = vld [vmem:[%s15316_s3 + $0x6f4] sm:$0xf] }
0x1125   :  { %v14216_v21 = vpop.f32.mrf.mxu1  ;;  %v10713_v27 = vor.u32 %v11413_v2, %v10710_v30  ;;  %v11392_v30 = vld [vmem:[%s15316_s3 + $0x64c] sm:$0xf] }
0x1126   :  { %v14218_v26 = vpop.f32.mrf.mxu2  ;;  %v14220_v5 = vpop.f32.mrf.mxu3  ;;  %6731 = vmatpush.bf16.msrb.mxu3 %v10561_v47 }
0x1127   :  { %15345 = vst [vmem:[#allocation28_spill] sm:$0xff] %v14218_v26  ;;  %6657 = vmatpush.bf16.msra.mxu0 %v10713_v27  ;;  %v10629_v27 = vor.u32 %v11392_v30, %v10626_v16  ;;  %v10680_v16 = vld [vmem:[%s15316_s3 + $0x6b0] sm:$0xf] }
0x1128   :  { %15346 = vst [vmem:[#allocation25_spill] sm:$0xff] %v14220_v5 }
0x112a   :  { %6732 = vmatpush.bf16.msrb.mxu3 %v10549_v57 }
0x112b   :  { %6537 = vmatmul.bf16.gmra.mxu0 %v15342_v56 }
0x112c   :  { %6658 = vmatpush.bf16.msra.mxu0 %v10701_v38 }
0x112d   :  { %v14229_v25 = vpop.f32.mrf.mxu1 }
0x112e   :  { %v14231_v9 = vpop.f32.mrf.mxu3  ;;  %v14233_v62 = vpop.f32.mrf.mxu2  ;;  %6733 = vmatpush.bf16.msrb.mxu3 %v10537_v13 }
0x112f   :  { %15347 = vst [vmem:[#allocation31_spill] sm:$0xff] %v14231_v9 }
0x1130   :  { %15348 = vst [vmem:[#allocation24_spill] sm:$0xff] %v14233_v62  ;;  %10737 = vmatmul.msk.bf16.gmra.mxu1 %vm3360_vm3, %v15335_v42  ;;  %v10689_v42 = vor.u32 %v11407_v63, %v10686_v8  ;;  %v15365_v63 = vld [vmem:[#allocation21_spill] sm:$0xff]  ;;  %v10716_v8 = vld [vmem:[%s15316_s3 + $0x6f8] sm:$0xf] }
0x1132   :  { %6659 = vmatpush.bf16.msra.mxu0 %v10689_v42  ;;  %v11415_v42 = vld [vmem:[%s15316_s3 + $0x700] sm:$0xf0] }
0x1133   :  { %6647 = vmatmul.bf16.gmra.mxu3 %v13388_v28 }
0x1134   :  { %6716 = vmatmul.bf16.gmra.mxu2 %v15340_v12  ;;  %v10665_v12 = vor.u32 %v11401_v10, %v10662_v3  ;;  %v10704_v10 = vld [vmem:[%s15316_s3 + $0x6e0] sm:$0xf]  ;;  %v11412_v3 = vld [vmem:[%s15316_s3 + $0x6e8] sm:$0xf0] }
0x1135   :  { %v6563_v39 = vpop.f32.mrf.mxu1  ;;  %v10705_v40 = vor.u32 %v11412_v3, %v10704_v10 }
0x1136   :  { %v14245_v24 = vpop.f32.mrf.mxu3  ;;  %v14247_v20 = vpop.f32.mrf.mxu2  ;;  %6660 = vmatpush.bf16.msra.mxu0 %v10677_v52  ;;  %v10717_v39 = vor.u32 %v11415_v42, %v10716_v8  ;;  %v11403_v42 = vld [vmem:[%s15316_s3 + $0x6a0] sm:$0xf0] }
0x1137   :  { %15349 = vst [vmem:[#allocation26_spill] sm:$0xff] %v14245_v24 }
0x1138   :  { %15350 = vst [vmem:[#allocation29_spill] sm:$0xff] %v14247_v20 }
0x113a   :  { %6661 = vmatpush.bf16.msra.mxu0 %v10665_v12  ;;  %v10692_v12 = vld [vmem:[%s15316_s3 + $0x6c8] sm:$0xf] }
0x113b   :  { %6573 = vmatmul.bf16.vlgmr.msrb.gmra.mxu0 %v15351_v1 }
0x113d   :  { %v14254_v33 = vpop.f32.mrf.mxu1 }
0x113e   :  { %v14256_v18 = vpop.f32.mrf.mxu3  ;;  %v14258_v41 = vpop.f32.mrf.mxu2  ;;  %6662 = vmatpush.bf16.msra.mxu0 %v10653_v37  ;;  %v10693_v37 = vor.u32 %v11409_v23, %v10692_v12  ;;  %v10656_v23 = vld [vmem:[%s15316_s3 + $0x680] sm:$0xf] }
0x113f   :  { %15352 = vst [vmem:[#allocation32_spill] sm:$0xff] %v14256_v18 }
0x1140   :  { %15353 = vst [vmem:[#allocation27_spill] sm:$0xff] %v14258_v41  ;;  %v14260_v31 = vpop.f32.mrf.mxu0  ;;  %10738 = vmatmul.msk.bf16.gmra.mxu1 %vm3360_vm3, %v15337_v19 }
0x1141   :  { %15354 = vst [vmem:[#allocation33_spill] sm:$0xff] %v14260_v31 }
0x1142   :  { %6663 = vmatpush.bf16.msra.mxu0 %v10641_v32 }
0x1143   :  { %6652 = vmatmul.bf16.gmra.mxu3 %v15332_v46 }
0x1144   :  { %6721 = vmatmul.bf16.gmra.mxu2 %v15342_v56 }
0x1145   :  { %v14270_v7 = vpop.f32.mrf.mxu1 }
0x1146   :  { %v14272_v47 = vpop.f32.mrf.mxu3  ;;  %6664 = vmatpush.bf16.msra.mxu0 %v10629_v27  ;;  %v11406_v27 = vld [vmem:[%s15316_s3 + $0x6b8] sm:$0xf0] }
0x1147   :  { %15355 = vst [vmem:[#allocation34_spill] sm:$0xff] %v14272_v47  ;;  %v14274_v2 = vpop.f32.mrf.mxu2  ;;  %v10681_v8 = vor.u32 %v11406_v27, %v10680_v16  ;;  %v11397_v27 = vld [vmem:[%s15316_s3 + $0x670] sm:$0xf0] }
0x1148   :  { %15356 = vst [vmem:[#allocation35_spill] sm:$0xff] %v14274_v2  ;;  %v14276_v19 = vpop.f32.mrf.mxu0 }
0x1149   :  { %15357 = vst [vmem:[#allocation36_spill] sm:$0xff] %v14276_v19 }
0x114a   :  { %6749 = vmatpush.bf16.msrb.mxu0 %v10717_v39 }
0x114b   :  { %6578 = vmatmul.bf16.gmra.mxu0 %v15358_v49 }
0x114d   :  { %v14281_v56 = vpop.f32.mrf.mxu1 }
0x114e   :  { %v14283_v57 = vpop.f32.mrf.mxu3  ;;  %6750 = vmatpush.bf16.msrb.mxu0 %v10705_v40 }
0x114f   :  { %15359 = vst [vmem:[#allocation30_spill] sm:$0xff] %v14283_v57  ;;  %v14285_v17 = vpop.f32.mrf.mxu2 }
0x1150   :  { %15360 = vst [vmem:[#allocation37_spill] sm:$0xff] %v14285_v17  ;;  %v14287_v58 = vpop.f32.mrf.mxu0 }
0x1151   :  { %15361 = vst [vmem:[#allocation38_spill] sm:$0xff] %v14287_v58 }
0x1152   :  { %6751 = vmatpush.bf16.msrb.mxu0 %v10693_v37  ;;  %v11400_v37 = vld [vmem:[%s15316_s3 + $0x688] sm:$0xf0] }
0x1153   :  { %6734 = vmatmul.bf16.vlgmr.msrb.gmra.mxu3 %v13331_v34  ;;  %v10657_v16 = vor.u32 %v11400_v37, %v10656_v23 }
0x1155   :  { %v14290_v53 = vpop.f32.mrf.mxu1 }
0x1156   :  { %v14292_v38 = vpop.f32.mrf.mxu3  ;;  %6752 = vmatpush.bf16.msrb.mxu0 %v10681_v8 }
0x1157   :  { %15362 = vst [vmem:[#allocation39_spill] sm:$0xff] %v14292_v38  ;;  %v14294_v54 = vpop.f32.mrf.mxu2 }
0x1158   :  { %15363 = vst [vmem:[#allocation40_spill] sm:$0xff] %v14294_v54  ;;  %v14296_v13 = vpop.f32.mrf.mxu0 }
0x1159   :  { %15364 = vst [vmem:[#allocation41_spill] sm:$0xff] %v14296_v13  ;;  %v11394_v13 = vld [vmem:[%s15316_s3 + $0x658] sm:$0xf0] }
0x115b   :  { %6583 = vmatmul.bf16.gmra.mxu0 %v15365_v63 }
0x115d   :  { %v14301_v59 = vpop.f32.mrf.mxu1 }
0x115e   :  { %v14303_v43 = vpop.f32.mrf.mxu3 }
0x115f   :  { %15366 = vst [vmem:[#allocation21_spill] sm:$0xff] %v14303_v43  ;;  %v14305_v34 = vpop.f32.mrf.mxu2 }
0x1160   :  { %15367 = vst [vmem:[#allocation42_spill] sm:$0xff] %v14305_v34  ;;  %v14307_v52 = vpop.f32.mrf.mxu0 }
0x1161   :  { %15368 = vst [vmem:[#allocation43_spill] sm:$0xff] %v14307_v52 }
0x1163   :  { %6739 = vmatmul.bf16.gmra.mxu3 %v13388_v28  ;;  %v10668_v28 = vld [vmem:[%s15316_s3 + $0x698] sm:$0xf] }
0x1164   :  { %v10669_v39 = vor.u32 %v11403_v42, %v10668_v28 }
0x1165   :  { %v6609_v51 = vpop.f32.mrf.mxu1 }
0x1166   :  { %v14314_v35 = vpop.f32.mrf.mxu3  ;;  %6753 = vmatpush.bf16.msrb.mxu0 %v10669_v39  ;;  %v10644_v51 = vld [vmem:[%s15316_s3 + $0x668] sm:$0xf] }
0x1167   :  { %15369 = vst [vmem:[#allocation44_spill] sm:$0xff] %v14314_v35  ;;  %v14316_v32 = vpop.f32.mrf.mxu2  ;;  %v10645_v8 = vor.u32 %v11397_v27, %v10644_v51 }
0x1168   :  { %15370 = vst [vmem:[#allocation45_spill] sm:$0xff] %v14316_v32  ;;  %v14318_v30 = vpop.f32.mrf.mxu0 }
0x1169   :  { %15371 = vst [vmem:[#allocation46_spill] sm:$0xff] %v14318_v30 }
0x116a   :  { %6754 = vmatpush.bf16.msrb.mxu0 %v10657_v16 }
0x116b   :  { %6665 = vmatmul.bf16.vlgmr.msra.gmra.mxu0 %v15351_v1 }
0x116d   :  { %v14325_v10 = vpop.f32.mrf.mxu1 }
0x116e   :  { %v14327_v3 = vpop.f32.mrf.mxu3  ;;  %6755 = vmatpush.bf16.msrb.mxu0 %v10645_v8 }
0x116f   :  { %15372 = vst [vmem:[#allocation47_spill] sm:$0xff] %v14327_v3  ;;  %v14329_v12 = vpop.f32.mrf.mxu2 }
0x1170   :  { %15373 = vst [vmem:[#allocation48_spill] sm:$0xff] %v14329_v12  ;;  %v14331_v40 = vpop.f32.mrf.mxu0 }
0x1171   :  { %15374 = vst [vmem:[#allocation49_spill] sm:$0xff] %v14331_v40  ;;  %v10632_v40 = vld [vmem:[%s15316_s3 + $0x650] sm:$0xf] }
0x1172   :  { %v10633_v39 = vor.u32 %v11394_v13, %v10632_v40 }
0x1173   :  { %6744 = vmatmul.bf16.gmra.mxu3 %v15332_v46 }
0x1174   :  { %6756 = vmatpush.bf16.msrb.mxu0 %v10633_v39 }
0x1175   :  { %v14338_v28 = vpop.f32.mrf.mxu1 }
0x1176   :  { %v14340_v42 = vpop.f32.mrf.mxu3 }
0x1177   :  { %15375 = vst [vmem:[#allocation50_spill] sm:$0xff] %v14340_v42  ;;  %v6620_v30 = vpop.f32.mrf.mxu2 }
0x1178   :  { %v14342_v52 = vpop.f32.mrf.mxu0 }
0x1179   :  { %15376 = vst [vmem:[#allocation51_spill] sm:$0xff] %v14342_v52 }
0x117b   :  { %6670 = vmatmul.bf16.gmra.mxu0 %v15358_v49 }
0x117d   :  { %v14347_v23 = vpop.f32.mrf.mxu1 }
0x117e   :  { %v14349_v37 = vpop.f32.mrf.mxu3 }
0x117f   :  { %15377 = vst [vmem:[#allocation52_spill] sm:$0xff] %v14349_v37  ;;  %v14351_v46 = vpop.f32.mrf.mxu2 }
0x1180   :  { %v14353_v51 = vpop.f32.mrf.mxu0 }
0x1181   :  { %15378 = vst [vmem:[#allocation53_spill] sm:$0xff] %v14353_v51 }
0x1185   :  { %v14355_v16 = vpop.f32.mrf.mxu1 }
0x1186   :  { %v14357_v27 = vpop.f32.mrf.mxu3 }
0x1187   :  { %15379 = vst [vmem:[#allocation54_spill] sm:$0xff] %v14357_v27  ;;  %v6625_v52 = vpop.f32.mrf.mxu2 }
0x1188   :  { %v6528_v8 = vpop.f32.mrf.mxu0 }
0x118b   :  { %6675 = vmatmul.bf16.gmra.mxu0 %v15365_v63 }
0x118d   :  { %v14360_v13 = vpop.f32.mrf.mxu1 }
0x118e   :  { %v14362_v40 = vpop.f32.mrf.mxu3 }
0x118f   :  { %15380 = vst [vmem:[#allocation55_spill] sm:$0xff] %v14362_v40  ;;  %v14364_v39 = vpop.f32.mrf.mxu2 }
0x1190   :  { %v6530_v42 = vpop.f32.mrf.mxu0 }
0x1195   :  { %v6701_v37 = vpop.f32.mrf.mxu1 }
0x1196   :  { %v14366_v3 = vpop.f32.mrf.mxu3 }
0x1197   :  { %15381 = vst [vmem:[#allocation56_spill] sm:$0xff] %v14366_v3  ;;  %v6630_v58 = vpop.f32.mrf.mxu2 }
0x1198   :  { %v6533_v51 = vpop.f32.mrf.mxu0 }
0x1199   :  { %v6557_v14 = vadd.f32 %v14202_v45, %v6533_v51 }
0x119b   :  { %6757 = vmatmul.bf16.vlgmr.msrb.gmra.mxu0 %v15351_v1 }
0x119d   :  { %v14369_v43 = vpop.f32.mrf.mxu1 }
0x119e   :  { %v14371_v27 = vpop.f32.mrf.mxu3 }
0x119f   :  { %15382 = vst [vmem:[#allocation57_spill] sm:$0xff] %v14371_v27  ;;  %v6632_v31 = vpop.f32.mrf.mxu2 }
0x11a0   :  { %v6535_v35 = vpop.f32.mrf.mxu0 }
0x11a1   :  { %v6559_v62 = vadd.f32 %v14216_v21, %v6535_v35 }
0x11a5   :  { %v14373_v19 = vpop.f32.mrf.mxu1 }
0x11a6   :  { %v6643_v12 = vpop.f32.mrf.mxu3 }
0x11a7   :  { %v14375_v40 = vadd.f32 %v6643_v12, %v6620_v30  ;;  %v6712_v38 = vpop.f32.mrf.mxu2 }
0x11a8   :  { %v6538_v32 = vpop.f32.mrf.mxu0 }
0x11ab   :  { %6762 = vmatmul.bf16.gmra.mxu0 %v15358_v49 }
0x11ad   :  { %v14378_v37 = vpop.f32.mrf.mxu1 }
0x11ae   :  { %v14380_v3 = vpop.f32.mrf.mxu3 }
0x11af   :  { %v14382_v1 = vpop.f32.mrf.mxu2 }
0x11b0   :  { %v6540_v57 = vpop.f32.mrf.mxu0 }
0x11b5   :  { %v14384_v34 = vpop.f32.mrf.mxu1 }
0x11b6   :  { %v6648_v31 = vpop.f32.mrf.mxu3 }
0x11b7   :  { %v14386_v27 = vadd.f32 %v6648_v31, %v6625_v52  ;;  %v6717_v47 = vpop.f32.mrf.mxu2 }
0x11b8   :  { %v6574_v54 = vpop.f32.mrf.mxu0 }
0x11bb   :  { %6767 = vmatmul.bf16.gmra.mxu0 %v15365_v63  ;;  %v6562_v63 = vadd.f32 %v14229_v25, %v6538_v32  ;;  %v14431_v32 = vld [vmem:[%s15328_s14 + $0xb0] sm:$0xff] }
0x11bd   :  { %v14389_v30 = vpop.f32.mrf.mxu1 }
0x11be   :  { %v6650_v12 = vpop.f32.mrf.mxu3 }
0x11bf   :  { %v14391_v49 = vpop.f32.mrf.mxu2 }
0x11c0   :  { %v6576_v18 = vpop.f32.mrf.mxu0 }
0x11c5   :  { %v6793_v17 = vpop.f32.mrf.mxu1 }
0x11c6   :  { %v6653_v24 = vpop.f32.mrf.mxu3 }
0x11c7   :  { %v6654_v2 = vadd.f32 %v6653_v24, %v6630_v58  ;;  %v14393_v9 = vpop.f32.mrf.mxu2  ;;  %v6554_v24 = vadd.f32 %v14186_v36, %v6530_v42  ;;  %v6651_v42 = vadd.f32 %v6650_v12, %v14364_v39 }
0x11c8   :  { %v6579_v57 = vpop.f32.mrf.mxu0 }
0x11c9   :  { %v6580_v58 = vadd.f32 %v6579_v57, %v6557_v14  ;;  %v6577_v26 = vadd.f32 %v6576_v18, %v6554_v24 }
0x11cb   :  { %v6603_v45 = vadd.f32 %v14281_v56, %v6580_v58  ;;  %v6600_v14 = vadd.f32 %v14270_v7, %v6577_v26  ;;  %v14416_v56 = vld [vmem:[%s15328_s14 + $0x98] sm:$0xff] }
0x11ce   :  { %v6655_v41 = vpop.f32.mrf.mxu3 }
0x11cf   :  { %v6724_v5 = vpop.f32.mrf.mxu2 }
0x11d0   :  { %v6581_v52 = vpop.f32.mrf.mxu0  ;;  %v6552_v5 = vadd.f32 %v14171_v0, %v6528_v8  ;;  %v14411_v0 = vld [vmem:[%s15328_s14 + $0x90] sm:$0xff] }
0x11d1   :  { %v6582_v4 = vadd.f32 %v6581_v52, %v6559_v62  ;;  %v6646_v52 = vadd.f32 %v14380_v3, %v14351_v46 }
0x11d3   :  { %v6605_v21 = vadd.f32 %v14290_v53, %v6582_v4 }
0x11d6   :  { %v6735_v31 = vpop.f32.mrf.mxu3 }
0x11d7   :  { %v14397_v61 = vadd.f32 %v6735_v31, %v6712_v38  ;;  %v6575_v38 = vadd.f32 %v6574_v54, %v6552_v5 }
0x11d8   :  { %v6584_v20 = vpop.f32.mrf.mxu0 }
0x11d9   :  { %v6585_v17 = vadd.f32 %v6584_v20, %v6562_v63  ;;  %v6598_v62 = vadd.f32 %v14254_v33, %v6575_v38  ;;  %v14421_v33 = vld [vmem:[%s15328_s14 + $0xa0] sm:$0xff] }
0x11db   :  { %v6608_v41 = vadd.f32 %v14301_v59, %v6585_v17  ;;  %v14426_v59 = vld [vmem:[%s15328_s14 + $0xa8] sm:$0xff]  ;;  %v10744_v17 = vld [vmem:[%s15328_s14 + $0xb8] sm:$0xff] }
0x11dd   :  { %10748 = vmatpush.msk.msra.mxu2 %vm226_vm0, %v6608_v41 }
0x11de   :  { %v14405_v25 = vpop.f32.mrf.mxu3 }
0x11df   :  { %6853 = vmatpush.msra.mxu2 %v6605_v21 }
0x11e0   :  { %v6586_v36 = vpop.f32.mrf.mxu0 }
0x11e1   :  { %6854 = vmatpush.msra.mxu2 %v6603_v45  ;;  %v6738_v36 = vadd.f32 %v14405_v25, %v14382_v1 }
0x11e3   :  { %6855 = vmatpush.msra.mxu2 %v6600_v14 }
0x11e5   :  { %6856 = vmatpush.msra.mxu2 %v6598_v62 }
0x11e6   :  { %v6740_v4 = vpop.f32.mrf.mxu3  ;;  %10749 = vmatmul.msk.f32.vlgmr.msra.gmra.mxu2 %vm5662_vm8, %v14411_v0 }
0x11e7   :  { %v6741_v20 = vadd.f32 %v6740_v4, %v6717_v47 }
0x11e8   :  { %v6666_v18 = vpop.f32.mrf.mxu0 }
0x11e9   :  { %v6667_v39 = vadd.f32 %v6666_v18, %v14375_v40  ;;  %v10746_v40 = vld [vmem:[%s15328_s14 + $0xc8] sm:$0xff] }
0x11ee   :  { %v6742_v53 = vpop.f32.mrf.mxu3  ;;  %10750 = vmatmul.msk.f32.gmra.mxu2 %vm5662_vm8, %v14416_v56 }
0x11ef   :  { %v6743_v41 = vadd.f32 %v6742_v53, %v14391_v49 }
0x11f0   :  { %v6668_v26 = vpop.f32.mrf.mxu0 }
0x11f1   :  { %v6669_v24 = vadd.f32 %v6668_v26, %v6646_v52  ;;  %v7056_v52 = vld [vmem:[%s11729_s30 + $0x10] sm:$0xff] }
0x11f3   :  { %v6692_v46 = vadd.f32 %v14338_v28, %v6669_v24  ;;  %v10747_v28 = vld [vmem:[%s15328_s14 + $0xd0] sm:$0x3] }
0x11f6   :  { %v6745_v7 = vpop.f32.mrf.mxu3  ;;  %10751 = vmatmul.msk.f32.gmra.mxu2 %vm5662_vm8, %v14421_v33 }
0x11f7   :  { %v6746_v5 = vadd.f32 %v6745_v7, %v14393_v9 }
0x11f8   :  { %v6671_v54 = vpop.f32.mrf.mxu0 }
0x11f9   :  { %v6672_v31 = vadd.f32 %v6671_v54, %v14386_v27  ;;  %v6690_v27 = vadd.f32 %v14325_v10, %v6667_v39  ;;  %v7062_v54 = vld [vmem:[%s11729_s30 + $0x40] sm:$0xff] }
0x11fe   :  { %v6747_v35 = vpop.f32.mrf.mxu3  ;;  %10752 = vmatmul.msk.f32.gmra.mxu2 %vm5662_vm8, %v14426_v59 }
0x1200   :  { %v6673_v47 = vpop.f32.mrf.mxu0 }
0x1201   :  { %v6674_v8 = vadd.f32 %v6673_v47, %v6651_v42  ;;  %v7060_v47 = vld [vmem:[%s11729_s30 + $0x30] sm:$0xff]  ;;  %v7058_v42 = vld [vmem:[%s11729_s30 + $0x20] sm:$0xff] }
0x1203   :  { %v6697_v58 = vadd.f32 %v14355_v16, %v6674_v8 }
0x1206   :  { %10753 = vmatmul.msk.f32.gmra.mxu2 %vm5662_vm8, %v14431_v32 }
0x1208   :  { %v6676_v51 = vpop.f32.mrf.mxu0 }
0x1209   :  { %v6677_v57 = vadd.f32 %v6676_v51, %v6654_v2  ;;  %v6695_v2 = vadd.f32 %v14347_v23, %v6672_v31  ;;  %v7057_v51 = vld [vmem:[%s11729_s30 + $0x18] sm:$0xff]  ;;  %v7055_v31 = vld [vmem:[%s11729_s30 + $0x8] sm:$0xff] }
0x120b   :  { %v6700_v63 = vadd.f32 %v14360_v13, %v6677_v57  ;;  %v10745_v13 = vld [vmem:[%s15328_s14 + $0xc0] sm:$0xff] }
0x120d   :  { %10758 = vmatpush.msk.msra.mxu3 %vm226_vm0, %v6700_v63 }
0x120e   :  { %10754 = vmatmul.msk.f32.gmra.mxu2 %vm5662_vm8, %v10744_v17 }
0x120f   :  { %6897 = vmatpush.msra.mxu3 %v6697_v58 }
0x1210   :  { %v6678_v3 = vpop.f32.mrf.mxu0 }
0x1211   :  { %6898 = vmatpush.msra.mxu3 %v6695_v2 }
0x1213   :  { %6899 = vmatpush.msra.mxu3 %v6692_v46 }
0x1215   :  { %6900 = vmatpush.msra.mxu3 %v6690_v27 }
0x1216   :  { %10755 = vmatmul.msk.f32.gmra.mxu2 %vm5662_vm8, %v10745_v13  ;;  %10759 = vmatmul.msk.f32.vlgmr.msra.gmra.mxu3 %vm5662_vm8, %v14411_v0 }
0x1218   :  { %v6758_v16 = vpop.f32.mrf.mxu0 }
0x1219   :  { %v6759_v49 = vadd.f32 %v6758_v16, %v14397_v61 }
0x121b   :  { %v6782_v1 = vadd.f32 %v14369_v43, %v6759_v49 }
0x121e   :  { %10756 = vmatmul.msk.f32.gmra.mxu2 %vm5662_vm8, %v10746_v40  ;;  %10760 = vmatmul.msk.f32.gmra.mxu3 %vm5662_vm8, %v14416_v56 }
0x1220   :  { %v6760_v23 = vpop.f32.mrf.mxu0 }
0x1221   :  { %v6761_v4 = vadd.f32 %v6760_v23, %v6738_v36 }
0x1223   :  { %v6784_v26 = vadd.f32 %v14373_v19, %v6761_v4 }
0x1226   :  { %10757 = vmatmul.msk.f32.gmra.mxu2 %vm5662_vm8, %v10747_v28  ;;  %10761 = vmatmul.msk.f32.gmra.mxu3 %vm5662_vm8, %v14421_v33 }
0x1228   :  { %v6763_v10 = vpop.f32.mrf.mxu0 }
0x1229   :  { %v6764_v14 = vadd.f32 %v6763_v10, %v6741_v20  ;;  %v7065_v20 = vld [vmem:[%s11729_s30 + $0x58] sm:$0xff] }
0x122b   :  { %v6787_v9 = vadd.f32 %v14378_v37, %v6764_v14  ;;  %v7068_v37 = vld [vmem:[%s11729_s30 + $0x70] sm:$0xff] }
0x122e   :  { %10762 = vmatmul.msk.f32.gmra.mxu3 %vm5662_vm8, %v14426_v59 }
0x1230   :  { %v6765_v12 = vpop.f32.mrf.mxu0 }
0x1231   :  { %v6766_v38 = vadd.f32 %v6765_v12, %v6743_v41 }
0x1233   :  { %v6789_v18 = vadd.f32 %v14384_v34, %v6766_v38  ;;  %v7069_v34 = vld [vmem:[%s11729_s30 + $0x78] sm:$0xff] }
0x1234   :  { %7090 = vmatpush.msrb.mxu1 %v7069_v34  ;;  %7330 = vmatpush.msrb.mxu3 %v7069_v34  ;;  %v7085_v38 = vld [vmem:[%s11729_s30 + $0xf8] sm:$0xff] }
0x1235   :  { %7110 = vmatpush.msrb.mxu2 %v7085_v38  ;;  %v7077_v34 = vld [vmem:[%s11729_s30 + $0xb8] sm:$0xff] }
0x1236   :  { %10763 = vmatmul.msk.f32.gmra.mxu3 %vm5662_vm8, %v14431_v32  ;;  %7091 = vmatpush.msrb.mxu1 %v7068_v37 }
0x1237   :  { %7331 = vmatpush.msrb.mxu3 %v7068_v37 }
0x1238   :  { %v6768_v21 = vpop.f32.mrf.mxu0 }
0x1239   :  { %v6769_v45 = vadd.f32 %v6768_v21, %v6746_v5 }
0x123b   :  { %v6792_v62 = vadd.f32 %v14389_v30, %v6769_v45  ;;  %v7067_v30 = vld [vmem:[%s11729_s30 + $0x68] sm:$0xff]  ;;  %v7084_v45 = vld [vmem:[%s11729_s30 + $0xf0] sm:$0xff] }
0x123c   :  { %7092 = vmatpush.msrb.mxu1 %v7067_v30  ;;  %7332 = vmatpush.msrb.mxu3 %v7067_v30  ;;  %v7076_v30 = vld [vmem:[%s11729_s30 + $0xb0] sm:$0xff] }
0x123d   :  { %10768 = vmatpush.msk.msra.mxu0 %vm226_vm0, %v6792_v62  ;;  %v7083_v62 = vld [vmem:[%s11729_s30 + $0xe8] sm:$0xff]  ;;  %7111 = vmatpush.msrb.mxu2 %v7084_v45 }
0x123e   :  { %10764 = vmatmul.msk.f32.gmra.mxu3 %vm5662_vm8, %v10744_v17 }
0x123f   :  { %6941 = vmatpush.msra.mxu0 %v6789_v18  ;;  %7112 = vmatpush.msrb.mxu2 %v7083_v62  ;;  %v7082_v18 = vld [vmem:[%s11729_s30 + $0xe0] sm:$0xff] }
0x1240   :  { %v6770_v53 = vpop.f32.mrf.mxu0 }
0x1241   :  { %6942 = vmatpush.msra.mxu0 %v6787_v9  ;;  %7113 = vmatpush.msrb.mxu2 %v7082_v18  ;;  %v7081_v53 = vld [vmem:[%s11729_s30 + $0xd8] sm:$0xff] }
0x1243   :  { %6943 = vmatpush.msra.mxu0 %v6784_v26  ;;  %v7080_v26 = vld [vmem:[%s11729_s30 + $0xd0] sm:$0xff]  ;;  %7114 = vmatpush.msrb.mxu2 %v7081_v53 }
0x1245   :  { %6944 = vmatpush.msra.mxu0 %v6782_v1  ;;  %7115 = vmatpush.msrb.mxu2 %v7080_v26 }
0x1246   :  { %10765 = vmatmul.msk.f32.gmra.mxu3 %vm5662_vm8, %v10745_v13  ;;  %10769 = vmatmul.msk.f32.vlgmr.msra.gmra.mxu0 %vm5662_vm8, %v14411_v0  ;;  %v7066_v0 = vld [vmem:[%s11729_s30 + $0x60] sm:$0xff] }
0x1247   :  { %7093 = vmatpush.msrb.mxu1 %v7066_v0  ;;  %7333 = vmatpush.msrb.mxu3 %v7066_v0  ;;  %v7075_v0 = vld [vmem:[%s11729_s30 + $0xa8] sm:$0xff] }
0x1249   :  { %7094 = vmatpush.msrb.mxu1 %v7065_v20  ;;  %7334 = vmatpush.msrb.mxu3 %v7065_v20  ;;  %v7074_v20 = vld [vmem:[%s11729_s30 + $0xa0] sm:$0xff] }
0x124e   :  { %10766 = vmatmul.msk.f32.gmra.mxu3 %vm5662_vm8, %v10746_v40  ;;  %10770 = vmatmul.msk.f32.gmra.mxu0 %vm5662_vm8, %v14416_v56  ;;  %v7064_v56 = vld [vmem:[%s11729_s30 + $0x50] sm:$0xff] }
0x124f   :  { %7095 = vmatpush.msrb.mxu1 %v7064_v56  ;;  %7335 = vmatpush.msrb.mxu3 %v7064_v56  ;;  %v7073_v56 = vld [vmem:[%s11729_s30 + $0x98] sm:$0xff] }
0x1256   :  { %10767 = vmatmul.msk.f32.gmra.mxu3 %vm5662_vm8, %v10747_v28  ;;  %10771 = vmatmul.msk.f32.gmra.mxu0 %vm5662_vm8, %v14421_v33  ;;  %v7063_v33 = vld [vmem:[%s11729_s30 + $0x48] sm:$0xff] }
0x1257   :  { %7096 = vmatpush.msrb.mxu1 %v7063_v33  ;;  %7336 = vmatpush.msrb.mxu3 %v7063_v33  ;;  %v15385_v33 = vld [vmem:[#allocation20_spill] sm:$0xff] }
0x1259   :  { %7097 = vmatpush.msrb.mxu1 %v7062_v54  ;;  %7337 = vmatpush.msrb.mxu3 %v7062_v54 }
0x125e   :  { %10772 = vmatmul.msk.f32.gmra.mxu0 %vm5662_vm8, %v14426_v59  ;;  %v7061_v59 = vld [vmem:[%s11729_s30 + $0x38] sm:$0xff] }
0x125f   :  { %7098 = vmatpush.msrb.mxu1 %v7061_v59  ;;  %7338 = vmatpush.msrb.mxu3 %v7061_v59 }
0x1261   :  { %7099 = vmatpush.msrb.mxu1 %v7060_v47  ;;  %7339 = vmatpush.msrb.mxu3 %v7060_v47  ;;  %v7071_v47 = vld [vmem:[%s11729_s30 + $0x88] sm:$0xff] }
0x1266   :  { %10773 = vmatmul.msk.f32.gmra.mxu0 %vm5662_vm8, %v14431_v32  ;;  %v7059_v32 = vld [vmem:[%s11729_s30 + $0x28] sm:$0xff] }
0x1267   :  { %7100 = vmatpush.msrb.mxu1 %v7059_v32  ;;  %7340 = vmatpush.msrb.mxu3 %v7059_v32  ;;  %v15387_v32 = vld [vmem:[#allocation23_spill] sm:$0xff] }
0x1269   :  { %v6858_v61 = vpop.f32.mrf.mxu2  ;;  %7101 = vmatpush.msrb.mxu1 %v7058_v42  ;;  %7341 = vmatpush.msrb.mxu3 %v7058_v42  ;;  %v15388_v42 = vld [vmem:[#allocation24_spill] sm:$0xff] }
0x126a   :  { %v14515_v24 = vadd.f32 %v6858_v61, %v14078_v29  ;;  %v5903_v29 = vadd.f32 %v14115_v11, %v14189_v6  ;;  %v15383_v11 = vld [vmem:[#allocation28_spill] sm:$0xff]  ;;  %v15384_v6 = vld [vmem:[#allocation22_spill] sm:$0xff] }
0x126b   :  { %7102 = vmatpush.msrb.mxu1 %v7057_v51  ;;  %7342 = vmatpush.msrb.mxu3 %v7057_v51  ;;  %v5929_v51 = vadd.f32 %v15388_v42, %v15387_v32  ;;  %v15402_v32 = vld [vmem:[#allocation48_spill] sm:$0xff] }
0x126d   :  { %7103 = vmatpush.msrb.mxu1 %v7056_v52  ;;  %7343 = vmatpush.msrb.mxu3 %v7056_v52  ;;  %v15390_v52 = vld [vmem:[#allocation27_spill] sm:$0xff] }
0x126e   :  { %10774 = vmatmul.msk.f32.gmra.mxu0 %vm5662_vm8, %v10744_v17  ;;  %v7054_v17 = vld [vmem:[%s11729_s30] sm:$0xff] }
0x126f   :  { %7104 = vmatpush.msrb.mxu1 %v7055_v31  ;;  %7344 = vmatpush.msrb.mxu3 %v7055_v31 }
0x1271   :  { %v6861_v19 = vpop.f32.mrf.mxu2  ;;  %7105 = vmatpush.msrb.mxu1 %v7054_v17  ;;  %7345 = vmatpush.msrb.mxu3 %v7054_v17 }
0x1272   :  { %v14511_v63 = vadd.f32 %v6861_v19, %v14099_v15  ;;  %v7079_v19 = vld [vmem:[%s11729_s30 + $0xc8] sm:$0xff] }
0x1273   :  { %7116 = vmatpush.msrb.mxu2 %v7079_v19 }
0x1274   :  { %v7000_v39 = vadd.f32 %v14511_v63, %v14515_v24 }
0x1276   :  { %10775 = vmatmul.msk.f32.gmra.mxu0 %vm5662_vm8, %v10745_v13 }
0x1279   :  { %v6864_v43 = vpop.f32.mrf.mxu2 }
0x127a   :  { %v14518_v58 = vadd.f32 %v6864_v43, %v14119_v44  ;;  %v7078_v43 = vld [vmem:[%s11729_s30 + $0xc0] sm:$0xff] }
0x127b   :  { %7117 = vmatpush.msrb.mxu2 %v7078_v43 }
0x127c   :  { %v7001_v15 = vadd.f32 %v7000_v39, %v14518_v58 }
0x127d   :  { %7118 = vmatpush.msrb.mxu2 %v7077_v34 }
0x127e   :  { %10776 = vmatmul.msk.f32.gmra.mxu0 %vm5662_vm8, %v10746_v40 }
0x127f   :  { %7119 = vmatpush.msrb.mxu2 %v7076_v30 }
0x1281   :  { %v6867_v25 = vpop.f32.mrf.mxu2  ;;  %7120 = vmatpush.msrb.mxu2 %v7075_v0 }
0x1282   :  { %v14523_v2 = vadd.f32 %v6867_v25, %v14142_v48  ;;  %v5906_v48 = vadd.f32 %v14136_v22, %v14204_v50 }
0x1283   :  { %7121 = vmatpush.msrb.mxu2 %v7074_v20 }
0x1284   :  { %v7002_v44 = vadd.f32 %v7001_v15, %v14523_v2  ;;  %v7070_v15 = vld [vmem:[%s11729_s30 + $0x80] sm:$0xff] }
0x1285   :  { %7122 = vmatpush.msrb.mxu2 %v7073_v56 }
0x1286   :  { %10777 = vmatmul.msk.f32.gmra.mxu0 %vm5662_vm8, %v10747_v28  ;;  %v5909_v28 = vadd.f32 %v15384_v6, %v15383_v11  ;;  %v15394_v11 = vld [vmem:[#allocation37_spill] sm:$0xff] }
0x1289   :  { %v6870_v7 = vpop.f32.mrf.mxu2 }
0x128a   :  { %v14527_v3 = vadd.f32 %v6870_v7, %v14162_v55  ;;  %v15386_v7 = vld [vmem:[#allocation29_spill] sm:$0xff] }
0x128b   :  { %v5932_v54 = vadd.f32 %v15386_v7, %v15385_v33 }
0x128c   :  { %v7003_v16 = vadd.f32 %v7002_v44, %v14527_v3 }
0x1291   :  { %v6873_v35 = vpop.f32.mrf.mxu2 }
0x1292   :  { %v14533_v13 = vadd.f32 %v6873_v35, %v14174_v60  ;;  %v7072_v35 = vld [vmem:[%s11729_s30 + $0x90] sm:$0xff] }
0x1293   :  { %7123 = vmatpush.msrb.mxu2 %v7072_v35 }
0x1294   :  { %v7004_v55 = vadd.f32 %v7003_v16, %v14533_v13 }
0x1295   :  { %7124 = vmatpush.msrb.mxu2 %v7071_v47 }
0x1297   :  { %7125 = vmatpush.msrb.mxu2 %v7070_v15 }
0x1299   :  { %v6876_v8 = vpop.f32.mrf.mxu2  ;;  %v14506_v57 = vpop.f32.mrf.mxu3  ;;  %7350 = vmatpush.msra.mxu2 %v7085_v38  ;;  %v15400_v38 = vld [vmem:[#allocation45_spill] sm:$0xff] }
0x129a   :  { %v14538_v40 = vadd.f32 %v6876_v8, %v5903_v29  ;;  %v15389_v8 = vld [vmem:[#allocation25_spill] sm:$0xff]  ;;  %v15392_v29 = vld [vmem:[#allocation35_spill] sm:$0xff] }
0x129b   :  { %v5935_v31 = vadd.f32 %v15390_v52, %v15389_v8  ;;  %7351 = vmatpush.msra.mxu2 %v7084_v45 }
0x129c   :  { %v7005_v10 = vadd.f32 %v7004_v55, %v14538_v40  ;;  %v15393_v55 = vld [vmem:[#allocation26_spill] sm:$0xff] }
0x129d   :  { %v5941_v6 = vadd.f32 %v15394_v11, %v15393_v55  ;;  %7352 = vmatpush.msra.mxu2 %v7083_v62  ;;  %v15403_v11 = vld [vmem:[#allocation36_spill] sm:$0xff] }
0x129f   :  { %7353 = vmatpush.msra.mxu2 %v7082_v18 }
0x12a1   :  { %v6879_v46 = vpop.f32.mrf.mxu2  ;;  %v6905_v27 = vpop.f32.mrf.mxu3  ;;  %7354 = vmatpush.msra.mxu2 %v7081_v53 }
0x12a2   :  { %v14541_v23 = vadd.f32 %v6879_v46, %v5906_v48  ;;  %v14574_v17 = vadd.f32 %v6905_v27, %v5932_v54  ;;  %v15391_v46 = vld [vmem:[#allocation31_spill] sm:$0xff]  ;;  %v14580_v48 = vadd.f32 %v14506_v57, %v5929_v51 }
0x12a3   :  { %v5938_v44 = vadd.f32 %v15392_v29, %v15391_v46  ;;  %v15401_v54 = vld [vmem:[#allocation39_spill] sm:$0xff]  ;;  %7355 = vmatpush.msra.mxu2 %v7080_v26 }
0x12a4   :  { %v7006_v22 = vadd.f32 %v7005_v10, %v14541_v23  ;;  %v15395_v10 = vld [vmem:[#allocation32_spill] sm:$0xff]  ;;  %v5953_v42 = vadd.f32 %v15402_v32, %v15401_v54  ;;  %v15415_v54 = vld [vmem:[#allocation49_spill] sm:$0xff]  ;;  %v15416_v32 = vld [vmem:[#allocation55_spill] sm:$0xff] }
0x12a5   :  { %7356 = vmatpush.msra.mxu2 %v7079_v19 }
0x12a7   :  { %7357 = vmatpush.msra.mxu2 %v7078_v43  ;;  %v15404_v43 = vld [vmem:[#allocation44_spill] sm:$0xff] }
0x12a9   :  { %v6882_v60 = vpop.f32.mrf.mxu2  ;;  %v6908_v12 = vpop.f32.mrf.mxu3  ;;  %7358 = vmatpush.msra.mxu2 %v7077_v34  ;;  %v15405_v34 = vld [vmem:[#allocation33_spill] sm:$0xff] }
0x12aa   :  { %v14546_v41 = vadd.f32 %v6882_v60, %v5909_v28  ;;  %v14582_v16 = vadd.f32 %v6908_v12, %v5935_v31  ;;  %v7015_v28 = vadd.f32 %v14574_v17, %v14580_v48  ;;  %v15396_v60 = vld [vmem:[#allocation40_spill] sm:$0xff]  ;;  %v15397_v12 = vld [vmem:[#allocation34_spill] sm:$0xff] }
0x12ab   :  { %7359 = vmatpush.msra.mxu2 %v7076_v30 }
0x12ac   :  { %v7007_v50 = vsel %vm226_vm0, %v14546_v41, 0.0 }
0x12ad   :  { %v7008_v5 = vadd.f32 %v7007_v50, %v7006_v22  ;;  %v5944_v22 = vadd.f32 %v15396_v60, %v15395_v10  ;;  %v7016_v50 = vadd.f32 %v7015_v28, %v14582_v16  ;;  %7360 = vmatpush.msra.mxu2 %v7075_v0  ;;  %v15406_v28 = vld [vmem:[#allocation21_spill] sm:$0xff]  ;;  %v15407_v10 = vld [vmem:[#allocation38_spill] sm:$0xff]  ;;  %v15408_v60 = vld [vmem:[#allocation47_spill] sm:$0xff] }
0x12ae   :  { %v5973_v30 = vadd.f32 %v15406_v28, %v15405_v34  ;;  %v5979_v0 = vadd.f32 %v15408_v60, %v15407_v10 }
0x12af   :  { %v7009_v21 = vrot.slane %v7008_v5, 4  ;;  %7361 = vmatpush.msra.mxu2 %v7074_v20 }
0x12b1   :  { %v7010_v36 = vadd.f32 %v7009_v21, %v7008_v5  ;;  %v6911_v14 = vpop.f32.mrf.mxu3  ;;  %v15398_v21 = vld [vmem:[#allocation42_spill] sm:$0xff]  ;;  %7362 = vmatpush.msra.mxu2 %v7073_v56  ;;  %v15409_v56 = vld [vmem:[#allocation41_spill] sm:$0xff] }
0x12b2   :  { %v14588_v27 = vadd.f32 %v6911_v14, %v5938_v44  ;;  %v15399_v14 = vld [vmem:[#allocation30_spill] sm:$0xff] }
0x12b3   :  { %v7011_v4 = vrot.slane %v7010_v36, 2  ;;  %7363 = vmatpush.msra.mxu2 %v7072_v35 }
0x12b5   :  { %v7012_v49 = vadd.f32 %v7011_v4, %v7010_v36  ;;  %v5947_v36 = vadd.f32 %v15398_v21, %v15397_v12  ;;  %v7017_v4 = vadd.f32 %v7016_v50, %v14588_v27  ;;  %7364 = vmatpush.msra.mxu2 %v7071_v47  ;;  %v7086_v50 = vld [vmem:[%s11729_s30 + $0x100] sm:$0xff]  ;;  %s15422_s30 = sld [smem:[#allocation10_spill]] }
0x12b6   :  { %7145 = vmatpush.msra.mxu1 %v7086_v50  ;;  %v15412_v21 = vld [vmem:[#allocation52_spill] sm:$0xff] }
0x12b7   :  { %v7013_v9 = vrot.slane %v7012_v49, 1  ;;  %7365 = vmatpush.msra.mxu2 %v7070_v15  ;;  %v15411_v15 = vld [vmem:[#allocation43_spill] sm:$0xff] }
0x12b9   :  { %v7014_v1 = vadd.f32 %v7013_v9, %v7012_v49  ;;  %v6914_v61 = vpop.f32.mrf.mxu3 }
0x12ba   :  { %v14593_v5 = vadd.f32 %v6914_v61, %v5941_v6  ;;  %v5976_v6 = vadd.f32 %v15404_v43, %v15403_v11  ;;  %v15419_v43 = vld [vmem:[#allocation53_spill] sm:$0xff] }
0x12bb   :  { %7106 = vmatmul.f32.vlgmr.msrb.gmra.mxu1 %v7014_v1  ;;  %v5950_v1 = vadd.f32 %v15400_v38, %v15399_v14  ;;  %v15414_v38 = vld [vmem:[#allocation54_spill] sm:$0xff] }
0x12bc   :  { %v7018_v33 = vadd.f32 %v7017_v4, %v14593_v5 }
0x12c1   :  { %v6917_v37 = vpop.f32.mrf.mxu3 }
0x12c2   :  { %v14598_v49 = vadd.f32 %v6917_v37, %v5944_v22 }
0x12c3   :  { %v14561_v25 = vpop.f32.mrf.mxu0 }
0x12c4   :  { %v7019_v61 = vadd.f32 %v7018_v33, %v14598_v49  ;;  %v14628_v12 = vadd.f32 %v14561_v25, %v5973_v30 }
0x12c6   :  { %v7030_v33 = vsel %vm260_vm2, %v14628_v12, 0.0 }
0x12c9   :  { %v6920_v59 = vpop.f32.mrf.mxu3 }
0x12ca   :  { %v14603_v7 = vadd.f32 %v6920_v59, %v5947_v36  ;;  %v5985_v36 = vadd.f32 %v15412_v21, %v15411_v15 }
0x12cb   :  { %v6949_v39 = vpop.f32.mrf.mxu0 }
0x12cc   :  { %v7020_v37 = vadd.f32 %v7019_v61, %v14603_v7  ;;  %v14622_v22 = vadd.f32 %v6949_v39, %v5976_v6  ;;  %v15413_v39 = vld [vmem:[#allocation46_spill] sm:$0xff]  ;;  %v15420_v6 = vld [vmem:[#allocation57_spill] sm:$0xff] }
0x12cd   :  { %v5997_v34 = vadd.f32 %v15420_v6, %v15419_v43 }
0x12ce   :  { %v7031_v4 = vsel %vm260_vm2, %v14622_v22, 0.0 }
0x12cf   :  { %v7032_v61 = vadd.f32 %v7031_v4, %v7030_v33 }
0x12d1   :  { %v6923_v57 = vpop.f32.mrf.mxu3 }
0x12d2   :  { %v14606_v45 = vadd.f32 %v6923_v57, %v5950_v1  ;;  %v15410_v57 = vld [vmem:[#allocation50_spill] sm:$0xff]  ;;  %v5988_v1 = vadd.f32 %v15414_v38, %v15413_v39  ;;  %v14674_v39 = vld [vmem:[%s11724_s24] sm:$0xff]  ;;  %v14678_v38 = vld [vmem:[%s11724_s24 + $0x8] sm:$0xff] }
0x12d3   :  { %v6952_v9 = vpop.f32.mrf.mxu0  ;;  %v5982_v35 = vadd.f32 %v15410_v57, %v15409_v56  ;;  %7172 = vmatpush.msrb.mxu1 %v14674_v39  ;;  %7442 = vmatpush.msra.mxu3 %v14678_v38 }
0x12d4   :  { %v7021_v8 = vadd.f32 %v7020_v37, %v14606_v45  ;;  %v14630_v47 = vadd.f32 %v6952_v9, %v5979_v0 }
0x12d6   :  { %v7033_v25 = vsel %vm260_vm2, %v14630_v47, 0.0 }
0x12d9   :  { %v6926_v51 = vpop.f32.mrf.mxu3 }
0x12da   :  { %v14611_v62 = vadd.f32 %v6926_v51, %v5953_v42  ;;  %v5991_v42 = vadd.f32 %v15416_v32, %v15415_v54 }
0x12db   :  { %v6955_v52 = vpop.f32.mrf.mxu0 }
0x12dc   :  { %v7022_v18 = vsel %vm226_vm0, %v14611_v62, 0.0  ;;  %v14636_v14 = vadd.f32 %v6955_v52, %v5982_v35 }
0x12dd   :  { %v7023_v59 = vadd.f32 %v7022_v18, %v7021_v8  ;;  %v7034_v8 = vadd.f32 %v7033_v25, %v7032_v61  ;;  %v15417_v18 = vld [vmem:[#allocation51_spill] sm:$0xff] }
0x12de   :  { %v7035_v37 = vsel %vm260_vm2, %v14636_v14, 0.0 }
0x12df   :  { %v7024_v31 = vrot.slane %v7023_v59, 4 }
0x12e1   :  { %v7025_v53 = vadd.f32 %v7024_v31, %v7023_v59  ;;  %v15418_v59 = vld [vmem:[#allocation56_spill] sm:$0xff] }
0x12e2   :  { %v5994_v31 = vadd.f32 %v15418_v59, %v15417_v18 }
0x12e3   :  { %v7026_v46 = vrot.slane %v7025_v53, 2  ;;  %v6958_v29 = vpop.f32.mrf.mxu0 }
0x12e4   :  { %v14644_v9 = vadd.f32 %v6958_v29, %v5985_v36  ;;  %v7036_v29 = vadd.f32 %v7035_v37, %v7034_v8 }
0x12e5   :  { %v7027_v26 = vadd.f32 %v7026_v46, %v7025_v53 }
0x12e6   :  { %v7037_v53 = vsel %vm260_vm2, %v14644_v9, 0.0 }
0x12e7   :  { %v7028_v44 = vrot.slane %v7027_v26, 1 }
0x12e9   :  { %v7029_v55 = vadd.f32 %v7028_v44, %v7027_v26 }
0x12eb   :  { %v6961_v19 = vpop.f32.mrf.mxu0  ;;  %7126 = vmatmul.f32.vlgmr.msrb.gmra.mxu2 %v7029_v55  ;;  %v7038_v55 = vadd.f32 %v7037_v53, %v7036_v29 }
0x12ec   :  { %v14650_v51 = vadd.f32 %v6961_v19, %v5988_v1  ;;  %v14683_v1 = vld [vmem:[%s11724_s24 + $0x10] sm:$0xff]  ;;  %s15421_s24 = sld [smem:[#allocation19_spill]] }
0x12ed   :  { %7556 = vmatpush.msrb.mxu2 %v14683_v1 }
0x12ee   :  { %v7039_v26 = vsel %vm260_vm2, %v14650_v51, 0.0 }
0x12ef   :  { %v7040_v11 = vadd.f32 %v7039_v26, %v7038_v55 }
0x12f3   :  { %v6964_v20 = vpop.f32.mrf.mxu0 }
0x12f4   :  { %v14656_v46 = vadd.f32 %v6964_v20, %v5991_v42 }
0x12f6   :  { %v7041_v19 = vsel %vm260_vm2, %v14656_v46, 0.0 }
0x12f7   :  { %v7042_v30 = vadd.f32 %v7041_v19, %v7040_v11 }
0x12fb   :  { %v6967_v52 = vpop.f32.mrf.mxu0 }
0x12fc   :  { %v14660_v44 = vadd.f32 %v6967_v52, %v5994_v31 }
0x12fe   :  { %v7043_v28 = vsel %vm260_vm2, %v14660_v44, 0.0 }
0x12ff   :  { %v7044_v0 = vadd.f32 %v7043_v28, %v7042_v30 }
0x1303   :  { %v6970_v10 = vpop.f32.mrf.mxu0 }
0x1304   :  { %v14668_v60 = vadd.f32 %v6970_v10, %v5997_v34 }
0x1306   :  { %v7046_v20 = vsel %vm7045_vm10, %v14668_v60, 0.0 }
0x1307   :  { %v7047_v56 = vadd.f32 %v7046_v20, %v7044_v0 }
0x1309   :  { %v7048_v57 = vrot.slane %v7047_v56, 4 }
0x130b   :  { %v7049_v35 = vadd.f32 %v7048_v57, %v7047_v56 }
0x130d   :  { %v7050_v15 = vrot.slane %v7049_v35, 2 }
0x130f   :  { %v7051_v21 = vadd.f32 %v7050_v15, %v7049_v35 }
0x1311   :  { %v7052_v36 = vrot.slane %v7051_v21, 1 }
0x1313   :  { %v7053_v4 = vadd.f32 %v7052_v36, %v7051_v21 }
0x1315   :  { %10778 = vmatmul.msk.f32.vlgmr.msra.gmra.mxu1 %vm260_vm2, %v7053_v4 }
0x1316   :  { %7192 = vmatpush.msra.mxu1 %v14678_v38 }
0x1338   :  { %v7107_v33 = vpop.f32.mrf.mxu1 }
0x136e   :  { %v7127_v25 = vpop.f32.mrf.mxu2 }
0x136f   :  { %v7128_v61 = vadd.f32 %v7127_v25, %v7107_v33 }
0x1392   :  { %v7147_v54 = vpop.f32.mrf.mxu1 }
0x1393   :  { %v7148_v32 = vadd.f32 %v7147_v54, %v7128_v61 }
0x1395   :  { %v7150_v42 = vmul.f32 0.00045913682, %v7148_v32 }
0x1397   :  { %10779 = vmatmul.msk.f32.vlgmr.msrb.gmra.mxu1 %vm260_vm2, %v7150_v42 }
0x1398   :  { %7212 = vmatpush.msrb.mxu1 %v14683_v1 }
0x139f   :  { %10780 = vmatmul.msk.f32.vlgmr.msra.gmra.mxu1 %vm260_vm2, %v7150_v42 }
0x13a0   :  { %7385 = vmatpush.msra.mxu1 %v7086_v50 }
0x13a7   :  { %10781 = vmatmul.msk.f32.vlgmr.msrb.gmra.mxu1 %vm260_vm2, %v7150_v42 }
0x13a8   :  { %7422 = vmatpush.msrb.mxu1 %v14674_v39 }
0x1414   :  { %v7174_v37 = vpop.f32.mrf.mxu1 }
0x1415   :  { %v7217_v8 = vperm.slane %v7174_v37, 0 }
0x1417   :  { %v14692_v52 = vsub.f32 %v14515_v24, %v7217_v8  ;;  %v14695_v18 = vsub.f32 %v14511_v63, %v7217_v8  ;;  %v14698_v59 = vsub.f32 %v14518_v58, %v7217_v8  ;;  %v14701_v31 = vsub.f32 %v14523_v2, %v7217_v8 }
0x1418   :  { %v14708_v29 = vsub.f32 %v14527_v3, %v7217_v8  ;;  %v14713_v58 = vsub.f32 %v14533_v13, %v7217_v8  ;;  %v14718_v11 = vsub.f32 %v14538_v40, %v7217_v8  ;;  %v14721_v43 = vsub.f32 %v14546_v41, %v7217_v8 }
0x1419   :  { %v7247_v50 = vmul.f32 %v14692_v52, %v14692_v52  ;;  %v7250_v53 = vmul.f32 %v14695_v18, %v14695_v18  ;;  %v7253_v24 = vmul.f32 %v14698_v59, %v14698_v59  ;;  %v7256_v2 = vmul.f32 %v14701_v31, %v14701_v31 }
0x141a   :  { %v7259_v3 = vmul.f32 %v14708_v29, %v14708_v29  ;;  %v14735_v30 = vsub.f32 %v14541_v23, %v7217_v8  ;;  %v7262_v40 = vmul.f32 %v14713_v58, %v14713_v58  ;;  %v7265_v23 = vmul.f32 %v14718_v11, %v14718_v11 }
0x141b   :  { %v7274_v63 = vadd.f32 %v7250_v53, %v7247_v50 }
0x141c   :  { %v7194_v26 = vpop.f32.mrf.mxu1 }
0x141d   :  { %v7218_v55 = vperm.slane %v7194_v26, 0  ;;  %v7275_v19 = vadd.f32 %v7274_v63, %v7253_v24 }
0x141f   :  { %v7276_v6 = vadd.f32 %v7275_v19, %v7256_v2  ;;  %v14726_v34 = vsub.f32 %v14580_v48, %v7218_v55  ;;  %v14729_v13 = vsub.f32 %v14574_v17, %v7218_v55  ;;  %v14732_v28 = vsub.f32 %v14582_v16, %v7218_v55 }
0x1420   :  { %v7271_v48 = vmul.f32 %v14721_v43, %v14721_v43  ;;  %v14744_v0 = vsub.f32 %v14588_v27, %v7218_v55  ;;  %v14751_v56 = vsub.f32 %v14593_v5, %v7218_v55  ;;  %v7268_v27 = vmul.f32 %v14735_v30, %v14735_v30 }
0x1421   :  { %v7277_v41 = vadd.f32 %v7276_v6, %v7259_v3  ;;  %v7248_v10 = vmul.f32 %v14726_v34, %v14726_v34  ;;  %v7251_v17 = vmul.f32 %v14729_v13, %v14729_v13  ;;  %v7254_v57 = vmul.f32 %v14732_v28, %v14732_v28 }
0x1422   :  { %v7281_v36 = vsel %vm226_vm0, %v7271_v48, 0.0  ;;  %v14759_v4 = vsub.f32 %v14598_v49, %v7218_v55  ;;  %v7257_v33 = vmul.f32 %v14744_v0, %v14744_v0  ;;  %v14773_v42 = vsub.f32 %v14603_v7, %v7218_v55 }
0x1423   :  { %v7278_v16 = vadd.f32 %v7277_v41, %v7262_v40  ;;  %v7289_v35 = vadd.f32 %v7251_v17, %v7248_v10  ;;  %v14776_v49 = vsub.f32 %v14611_v62, %v7218_v55  ;;  %v7260_v37 = vmul.f32 %v14751_v56, %v14751_v56 }
0x1424   :  { %v7214_v20 = vpop.f32.mrf.mxu1 }
0x1425   :  { %v7219_v15 = vperm.slane %v7214_v20, 0  ;;  %v7279_v21 = vadd.f32 %v7278_v16, %v7265_v23  ;;  %v7290_v25 = vadd.f32 %v7289_v35, %v7254_v57  ;;  %v7272_v26 = vmul.f32 %v14776_v49, %v14776_v49 }
0x1427   :  { %v14764_v5 = vsub.f32 %v14628_v12, %v7219_v15  ;;  %v14767_v61 = vsub.f32 %v14622_v22, %v7219_v15  ;;  %v7280_v54 = vadd.f32 %v7279_v21, %v7268_v27  ;;  %v14770_v32 = vsub.f32 %v14630_v47, %v7219_v15 }
0x1428   :  { %v7291_v8 = vadd.f32 %v7290_v25, %v7257_v33  ;;  %v14781_v12 = vsub.f32 %v14606_v45, %v7218_v55  ;;  %v14784_v22 = vsub.f32 %v14636_v14, %v7219_v15  ;;  %v7263_v47 = vmul.f32 %v14759_v4, %v14759_v4 }
0x1429   :  { %v7282_v50 = vadd.f32 %v7281_v36, %v7280_v54  ;;  %v7249_v7 = vmul.f32 %v14764_v5, %v14764_v5  ;;  %v7252_v62 = vmul.f32 %v14767_v61, %v14767_v61  ;;  %v14793_v63 = vsub.f32 %v14644_v9, %v7219_v15 }
0x142a   :  { %v7292_v53 = vadd.f32 %v7291_v8, %v7260_v37  ;;  %v7255_v45 = vmul.f32 %v14770_v32, %v14770_v32  ;;  %v7266_v14 = vmul.f32 %v14773_v42, %v14773_v42  ;;  %v14802_v2 = vsub.f32 %v14650_v51, %v7219_v15 }
0x142b   :  { %v7283_v24 = vrot.slane %v7282_v50, 4  ;;  %v7258_v3 = vmul.f32 %v14784_v22, %v14784_v22  ;;  %v7304_v9 = vsel %vm260_vm2, %v7249_v7, 0.0  ;;  %v7305_v6 = vsel %vm260_vm2, %v7252_v62, 0.0 }
0x142c   :  { %v7293_v55 = vadd.f32 %v7292_v53, %v7263_v47  ;;  %v7269_v40 = vmul.f32 %v14781_v12, %v14781_v12  ;;  %v7306_v10 = vadd.f32 %v7305_v6, %v7304_v9  ;;  %v14811_v17 = vsub.f32 %v14656_v46, %v7219_v15 }
0x142d   :  { %v7284_v19 = vadd.f32 %v7283_v24, %v7282_v50  ;;  %v7261_v51 = vmul.f32 %v14793_v63, %v14793_v63  ;;  %v7307_v23 = vsel %vm260_vm2, %v7255_v45, 0.0  ;;  %v7296_v20 = vsel %vm226_vm0, %v7272_v26, 0.0 }
0x142e   :  { %v7294_v41 = vadd.f32 %v7293_v55, %v7266_v14  ;;  %v7308_v57 = vadd.f32 %v7307_v23, %v7306_v10  ;;  %v14818_v27 = vsub.f32 %v14660_v44, %v7219_v15  ;;  %v7264_v21 = vmul.f32 %v14802_v2, %v14802_v2 }
0x142f   :  { %v7285_v48 = vrot.slane %v7284_v19, 2  ;;  %v7309_v36 = vsel %vm260_vm2, %v7258_v3, 0.0  ;;  %v14824_v54 = vsub.f32 %v14668_v60, %v7219_v15  ;;  %v7267_v37 = vmul.f32 %v14811_v17, %v14811_v17 }
0x1430   :  { %v7295_v16 = vadd.f32 %v7294_v41, %v7269_v40  ;;  %v7310_v33 = vadd.f32 %v7309_v36, %v7308_v57  ;;  %v7311_v8 = vsel %vm260_vm2, %v7261_v51, 0.0  ;;  %v7270_v53 = vmul.f32 %v14818_v27, %v14818_v27 }
0x1431   :  { %v7286_v35 = vadd.f32 %v7285_v48, %v7284_v19  ;;  %v7313_v7 = vsel %vm260_vm2, %v7264_v21, 0.0  ;;  %v7273_v60 = vmul.f32 %v14824_v54, %v14824_v54  ;;  %v7315_v15 = vsel %vm260_vm2, %v7267_v37, 0.0  ;;  %v11442_v37 = vld [vmem:[%s15422_s30 + $0xbc] sm:$0xff] }
0x1432   :  { %v7297_v46 = vadd.f32 %v7296_v20, %v7295_v16  ;;  %v7312_v47 = vadd.f32 %v7311_v8, %v7310_v33  ;;  %v7317_v26 = vsel %vm260_vm2, %v7270_v53, 0.0 }
0x1433   :  { %v7287_v25 = vrot.slane %v7286_v35, 1  ;;  %v7319_v3 = vsel %vm7045_vm10, %v7273_v60, 0.0 }
0x1434   :  { %v7298_v50 = vrot.slane %v7297_v46, 4  ;;  %v7314_v24 = vadd.f32 %v7313_v7, %v7312_v47 }
0x1435   :  { %v7288_v44 = vadd.f32 %v7287_v25, %v7286_v35  ;;  %v11426_v25 = vld [vmem:[%s15422_s30 + $0x38] sm:$0xff] }
0x1436   :  { %v7299_v62 = vadd.f32 %v7298_v50, %v7297_v46  ;;  %v7316_v14 = vadd.f32 %v7315_v15, %v7314_v24  ;;  %7783 = vmatpush.bf16.msrb.mxu0 %v11426_v25  ;;  %v11441_v50 = vld [vmem:[%s15422_s30 + $0xb4] sm:$0xff] }
0x1437   :  { %7346 = vmatmul.f32.vlgmr.msrb.gmra.mxu3 %v7288_v44  ;;  %v11434_v15 = vld [vmem:[%s15422_s30 + $0x78] sm:$0xff] }
0x1438   :  { %v7300_v45 = vrot.slane %v7299_v62, 2  ;;  %7516 = vmatpush.msrb.mxu3 %v14674_v39  ;;  %v7318_v19 = vadd.f32 %v7317_v26, %v7316_v14  ;;  %v7497_v39 = vld [vmem:[%s15421_s24] sm:$0x1]  ;;  %v11433_v14 = vld [vmem:[%s15422_s30 + $0x70] sm:$0xff]  ;;  %v11424_v26 = vld [vmem:[%s15422_s30 + $0x28] sm:$0xff] }
0x143a   :  { %v7301_v55 = vadd.f32 %v7300_v45, %v7299_v62  ;;  %v7320_v6 = vadd.f32 %v7319_v3, %v7318_v19  ;;  %v7391_v62 = vld [vmem:[%s15423_s6] sm:$0x1]  ;;  %v11432_v19 = vld [vmem:[%s15422_s30 + $0x68] sm:$0xff] }
0x143b   :  { %v11439_v3 = vld [vmem:[%s15422_s30 + $0xa4] sm:$0xff] }
0x143c   :  { %v7302_v9 = vrot.slane %v7301_v55, 1  ;;  %v7321_v41 = vrot.slane %v7320_v6, 4 }
0x143e   :  { %v7303_v40 = vadd.f32 %v7302_v9, %v7301_v55  ;;  %v7322_v10 = vadd.f32 %v7321_v41, %v7320_v6  ;;  %v11440_v55 = vld [vmem:[%s15422_s30 + $0xac] sm:$0xff]  ;;  %v11431_v9 = vld [vmem:[%s15422_s30 + $0x60] sm:$0xff]  ;;  %v11422_v6 = vld [vmem:[%s15422_s30 + $0x18] sm:$0xff] }
0x143f   :  { %v11430_v41 = vld [vmem:[%s15422_s30 + $0x58] sm:$0xff] }
0x1440   :  { %7366 = vmatmul.f32.vlgmr.msra.gmra.mxu2 %v7303_v40  ;;  %v7323_v48 = vrot.slane %v7322_v10, 2  ;;  %v11438_v40 = vld [vmem:[%s15422_s30 + $0x9c] sm:$0xff] }
0x1441   :  { %8026 = vmatpush.bf16.msra.mxu2 %v11442_v37 }
0x1442   :  { %v7324_v51 = vadd.f32 %v7323_v48, %v7322_v10  ;;  %v11421_v10 = vld [vmem:[%s15422_s30 + $0x10] sm:$0xff] }
0x1443   :  { %v11437_v48 = vld [vmem:[%s15422_s30 + $0x94] sm:$0xff] }
0x1444   :  { %v7325_v23 = vrot.slane %v7324_v51, 1 }
0x1445   :  { %8027 = vmatpush.bf16.msra.mxu2 %v11441_v50 }
0x1446   :  { %v7326_v16 = vadd.f32 %v7325_v23, %v7324_v51  ;;  %v7665_v51 = vld [vmem:[%s15422_s30 + $0x80] sm:$0xf] }
0x1447   :  { %v7731_v23 = vunpack.c.l.b16 %v7665_v51 }
0x1448   :  { %10782 = vmatmul.msk.f32.vlgmr.msra.gmra.mxu1 %vm260_vm2, %v7326_v16  ;;  %10788 = vmatmul.msk.f32.vlgmr.msrb.gmra.mxu2 %vm260_vm2, %v7497_v39  ;;  %v11429_v16 = vld [vmem:[%s15422_s30 + $0x50] sm:$0xff] }
0x1449   :  { %7462 = vmatpush.msra.mxu1 %v14683_v1  ;;  %v11425_v1 = vld [vmem:[%s15422_s30 + $0x30] sm:$0xff]  ;;  %8028 = vmatpush.bf16.msra.mxu2 %v11440_v55 }
0x144a   :  { %7784 = vmatpush.bf16.msrb.mxu0 %v11425_v1 }
0x144d   :  { %8029 = vmatpush.bf16.msra.mxu2 %v11439_v3 }
0x144e   :  { %7785 = vmatpush.bf16.msrb.mxu0 %v11424_v26 }
0x1451   :  { %8030 = vmatpush.bf16.msra.mxu2 %v11438_v40 }
0x1455   :  { %8031 = vmatpush.bf16.msra.mxu2 %v11437_v48 }
0x14ba   :  { %v7347_v20 = vpop.f32.mrf.mxu3 }
0x14c3   :  { %v7367_v57 = vpop.f32.mrf.mxu2 }
0x14c4   :  { %v7368_v35 = vadd.f32 %v7367_v57, %v7347_v20  ;;  %v11420_v20 = vld [vmem:[%s15422_s30 + $0x8] sm:$0xff] }
0x14c5   :  { %v7387_v21 = vpop.f32.mrf.mxu1  ;;  %v11436_v57 = vld [vmem:[%s15422_s30 + $0x8c] sm:$0xff] }
0x14c6   :  { %v7388_v36 = vadd.f32 %v7387_v21, %v7368_v35  ;;  %v11428_v35 = vld [vmem:[%s15422_s30 + $0x48] sm:$0xff]  ;;  %8032 = vmatpush.bf16.msra.mxu2 %v11436_v57 }
0x14c8   :  { %v7390_v46 = vmul.f32 0.00045913682, %v7388_v36  ;;  %v11419_v36 = vld [vmem:[%s15422_s30] sm:$0xff] }
0x14ca   :  { %v7392_v33 = vadd.f32 1e-05, %v7390_v46  ;;  %v11435_v46 = vld [vmem:[%s15422_s30 + $0x84] sm:$0xff] }
0x14cb   :  { %8033 = vmatpush.bf16.msra.mxu2 %v11435_v46 }
0x14cc   :  { %11492 = vrsqrt.f32 %v7392_v33  ;;  %vm7399_vm12 = vweird.f32 %v7392_v33 }
0x14d2   :  { %v11493_v8 = vpop.eup %11492 }
0x14d3   :  { %v7394_v47 = vmul.f32 %v11493_v8, %v7392_v33  ;;  %vm7400_vm11 = vweird.f32 %v11493_v8  ;;  %v11427_v33 = vld [vmem:[%s15422_s30 + $0x40] sm:$0xff] }
0x14d4   :  { %vm7401_vm13 = vmor %vm7399_vm12, %vm7400_vm11 }
0x14d5   :  { %v7395_v44 = vmul.f32 %v11493_v8, %v7394_v47 }
0x14d7   :  { %v7396_v53 = vmul.f32 0.5, %v7395_v44 }
0x14d9   :  { %v7397_v7 = vsub.f32 1.5, %v7396_v53 }
0x14db   :  { %v7398_v24 = vmul.f32 %v11493_v8, %v7397_v7 }
0x14dd   :  { %v7402_v60 = vsel %vm7401_vm13, %v11493_v8, %v7398_v24  ;;  %v7558_v8 = vpop.f32.mrf.mxu2 }
0x14de   :  { %v7403_v45 = vmul.f32 %v7402_v60, %v7391_v62  ;;  %v14877_v47 = vperm.slane %v7558_v8, 0 }
0x14e0   :  { %10783 = vmatmul.msk.f32.vlgmr.msrb.gmra.mxu1 %vm260_vm2, %v7403_v45  ;;  %10784 = vmatmul.msk.f32.vlgmr.msra.gmra.mxu3 %vm260_vm2, %v7403_v45 }
0x14e1   :  { %7536 = vmatpush.msrb.mxu1 %v14678_v38  ;;  %7816 = vmatpush.bf16.msra.mxu3 %v11434_v15  ;;  %v11423_v38 = vld [vmem:[%s15422_s30 + $0x20] sm:$0xff] }
0x14e2   :  { %7786 = vmatpush.bf16.msrb.mxu0 %v11423_v38 }
0x14e5   :  { %7817 = vmatpush.bf16.msra.mxu3 %v11433_v14 }
0x14e6   :  { %7787 = vmatpush.bf16.msrb.mxu0 %v11422_v6 }
0x14e8   :  { %10785 = vmatmul.msk.f32.vlgmr.msra.gmra.mxu1 %vm260_vm2, %v7403_v45  ;;  %10786 = vmatmul.msk.f32.vlgmr.msrb.gmra.mxu3 %vm260_vm2, %v7497_v39 }
0x14e9   :  { %7818 = vmatpush.bf16.msra.mxu3 %v11432_v19 }
0x14ea   :  { %7788 = vmatpush.bf16.msrb.mxu0 %v11421_v10 }
0x14ed   :  { %7819 = vmatpush.bf16.msra.mxu3 %v11431_v9 }
0x14ee   :  { %7789 = vmatpush.bf16.msrb.mxu0 %v11420_v20 }
0x14f0   :  { %10787 = vmatmul.msk.f32.vlgmr.msrb.gmra.mxu1 %vm260_vm2, %v7497_v39  ;;  %v7748_v39 = vpack.c.b16 %v7731_v23, %v7731_v23 }
0x14f1   :  { %7820 = vmatpush.bf16.msra.mxu3 %v11430_v41 }
0x14f2   :  { %v7781_v21 = vsel %vm1017_vm9, %v7748_v39, 0  ;;  %7790 = vmatpush.bf16.msrb.mxu0 %v11419_v36 }
0x14f3   :  { %7856 = vmatpush.bf16.msra.mxu1 %v7781_v21 }
0x14f5   :  { %7821 = vmatpush.bf16.msra.mxu3 %v11429_v16 }
0x14f9   :  { %7822 = vmatpush.bf16.msra.mxu3 %v11428_v35 }
0x14fd   :  { %7823 = vmatpush.bf16.msra.mxu3 %v11427_v33 }
0x155d   :  { %v7424_v25 = vpop.f32.mrf.mxu1 }
0x155e   :  { %v14879_v44 = vperm.slane %v7424_v25, 0 }
0x1560   :  { %v7470_v45 = vmul.f32 %v14879_v44, %v14692_v52  ;;  %v7494_v57 = vmul.f32 %v14879_v44, %v14721_v43  ;;  %v7479_v35 = vmul.f32 %v14879_v44, %v14701_v31 }
0x1563   :  { %v7444_v37 = vpop.f32.mrf.mxu3 }
0x1564   :  { %v14885_v62 = vperm.slane %v7444_v37, 0 }
0x1565   :  { %v7464_v1 = vpop.f32.mrf.mxu1 }
0x1566   :  { %v14875_v50 = vperm.slane %v7464_v1, 0  ;;  %v7474_v38 = vmul.f32 %v14885_v62, %v14729_v13  ;;  %v7480_v46 = vmul.f32 %v14885_v62, %v14744_v0  ;;  %v7495_v43 = vmul.f32 %v14885_v62, %v14776_v49 }
0x1568   :  { %v7472_v53 = vmul.f32 %v14875_v50, %v14764_v5  ;;  %v7475_v7 = vmul.f32 %v14875_v50, %v14767_v61  ;;  %v7473_v5 = vmul.f32 %v14879_v44, %v14695_v18  ;;  %v7471_v61 = vmul.f32 %v14885_v62, %v14726_v34 }
0x1569   :  { %v7478_v13 = vmul.f32 %v14875_v50, %v14770_v32  ;;  %v7481_v23 = vmul.f32 %v14875_v50, %v14784_v22  ;;  %v7476_v32 = vmul.f32 %v14879_v44, %v14698_v59  ;;  %v7477_v22 = vmul.f32 %v14885_v62, %v14732_v28 }
0x156a   :  { %v7566_v24 = vadd.f32 %v14877_v47, %v7472_v53  ;;  %v7569_v60 = vadd.f32 %v14877_v47, %v7475_v7  ;;  %v7496_v21 = vmul.f32 %v14875_v50, %v14824_v54 }
0x156b   :  { %v7518_v15 = vpop.f32.mrf.mxu3  ;;  %v7572_v39 = vadd.f32 %v14877_v47, %v7478_v13  ;;  %v7575_v20 = vadd.f32 %v14877_v47, %v7481_v23 }
0x156c   :  { %v14891_v14 = vperm.slane %v7518_v15, 0  ;;  %v7593_v26 = vmax.f32 %v7566_v24, 0.0  ;;  %v7596_v55 = vmax.f32 %v7569_v60, 0.0  ;;  %v14938_v28 = vadd.f32 %v14877_v47, %v7496_v21 }
0x156d   :  { %v7538_v19 = vpop.f32.mrf.mxu1  ;;  %v7599_v36 = vmax.f32 %v7572_v39, 0.0  ;;  %v7602_v59 = vmax.f32 %v7575_v20, 0.0  ;;  %v7484_v60 = vmul.f32 %v14875_v50, %v14793_v63  ;;  %v7487_v15 = vmul.f32 %v14875_v50, %v14802_v2 }
0x156e   :  { %v14899_v3 = vperm.slane %v7538_v19, 0  ;;  %v14901_v9 = vpack.c.bf16 %v7596_v55, %v7593_v26  ;;  %v7564_v52 = vadd.f32 %v14891_v14, %v7470_v45  ;;  %v7567_v6 = vadd.f32 %v14891_v14, %v7473_v5  ;;  %v11450_v26 = vld [vmem:[%s15422_s30 + $0xfc] sm:$0xff]  ;;  %v11449_v19 = vld [vmem:[%s15422_s30 + $0xf4] sm:$0xff] }
0x156f   :  { %v14931_v33 = vadd.f32 %v14891_v14, %v7494_v57  ;;  %v7570_v25 = vadd.f32 %v14891_v14, %v7476_v32  ;;  %v7573_v31 = vadd.f32 %v14891_v14, %v7479_v35  ;;  %v14945_v8 = vpack.c.bf16 %v7602_v59, %v7599_v36  ;;  %8059 = vmatpush.bf16.msra.mxu0 %v11450_v26  ;;  %v11446_v57 = vld [vmem:[%s15422_s30 + $0xdc] sm:$0xff]  ;;  %v10890_v32 = vld [vmem:[%s15422_s30 + $0x104] sm:$0xf]  ;;  %v11445_v36 = vld [vmem:[%s15422_s30 + $0xd4] sm:$0xff] }
0x1570   :  { %10853 = vmatmul.msk.bf16.vlgmr.msra.gmra.mxu1 %vm260_vm2, %v14901_v9  ;;  %v7591_v40 = vmax.f32 %v7564_v52, 0.0  ;;  %v7594_v18 = vmax.f32 %v7567_v6, 0.0  ;;  %v7565_v41 = vadd.f32 %v14899_v3, %v7471_v61  ;;  %v7568_v34 = vadd.f32 %v14899_v3, %v7474_v38 }
0x1571   :  { %v14941_v54 = vadd.f32 %v14899_v3, %v7495_v43  ;;  %v7571_v0 = vadd.f32 %v14899_v3, %v7477_v22  ;;  %v7574_v37 = vadd.f32 %v14899_v3, %v7480_v46  ;;  %v7597_v1 = vmax.f32 %v7570_v25, 0.0 }
0x1572   :  { %v7618_v10 = vpack.c.bf16 %v7594_v18, %v7591_v40  ;;  %v7592_v48 = vmax.f32 %v7565_v41, 0.0  ;;  %v7595_v51 = vmax.f32 %v7568_v34, 0.0  ;;  %v7600_v49 = vmax.f32 %v7573_v31, 0.0  ;;  %v11448_v41 = vld [vmem:[%s15422_s30 + $0xec] sm:$0xff] }
0x1573   :  { %v7598_v53 = vmax.f32 %v7571_v0, 0.0  ;;  %v7601_v7 = vmax.f32 %v7574_v37, 0.0  ;;  %v7578_v55 = vadd.f32 %v14877_v47, %v7484_v60  ;;  %v7581_v5 = vadd.f32 %v14877_v47, %v7487_v15  ;;  %8060 = vmatpush.bf16.msra.mxu0 %v11449_v19 }
0x1574   :  { %7791 = vmatmul.bf16.vlgmr.msrb.gmra.mxu0 %v7618_v10  ;;  %8034 = vmatmul.bf16.vlgmr.msra.gmra.mxu2 %v7618_v10  ;;  %v14913_v16 = vpack.c.bf16 %v7595_v51, %v7592_v48  ;;  %v7621_v24 = vpack.c.bf16 %v7600_v49, %v7597_v1  ;;  %v7482_v63 = vmul.f32 %v14879_v44, %v14708_v29  ;;  %v11447_v48 = vld [vmem:[%s15422_s30 + $0xe4] sm:$0xff]  ;;  %v7989_v22 = vunpack.c.l.b16 %v10890_v32 }
0x1575   :  { %v14953_v45 = vpack.c.bf16 %v7601_v7, %v7598_v53  ;;  %v7485_v2 = vmul.f32 %v14879_v44, %v14713_v58  ;;  %v7483_v61 = vmul.f32 %v14885_v62, %v14751_v56  ;;  %v7486_v38 = vmul.f32 %v14885_v62, %v14759_v4  ;;  %v11443_v7 = vld [vmem:[%s15422_s30 + $0xc4] sm:$0xff] }
0x1576   :  { %7824 = vmatmul.bf16.vlgmr.msra.gmra.mxu3 %v14913_v16  ;;  %v7605_v52 = vmax.f32 %v7578_v55, 0.0  ;;  %v7608_v6 = vmax.f32 %v7581_v5, 0.0  ;;  %v7576_v40 = vadd.f32 %v14891_v14, %v7482_v63  ;;  %v7490_v51 = vmul.f32 %v14875_v50, %v14811_v17 }
0x1577   :  { %v7579_v18 = vadd.f32 %v14891_v14, %v7485_v2  ;;  %v7577_v29 = vadd.f32 %v14899_v3, %v7483_v61  ;;  %v7580_v34 = vadd.f32 %v14899_v3, %v7486_v38  ;;  %8061 = vmatpush.bf16.msra.mxu0 %v11448_v41  ;;  %v7493_v39 = vmul.f32 %v14875_v50, %v14818_v27 }
0x1578   :  { %v14973_v58 = vpack.c.bf16 %v7608_v6, %v7605_v52  ;;  %v7603_v56 = vmax.f32 %v7576_v40, 0.0  ;;  %v7584_v35 = vadd.f32 %v14877_v47, %v7490_v51  ;;  %v8006_v17 = vpack.c.b16 %v7989_v22, %v7989_v22 }
0x1579   :  { %v7606_v13 = vmax.f32 %v7579_v18, 0.0  ;;  %v7604_v4 = vmax.f32 %v7577_v29, 0.0  ;;  %v7607_v10 = vmax.f32 %v7580_v34, 0.0  ;;  %v7587_v21 = vadd.f32 %v14877_v47, %v7493_v39 }
0x157a   :  { %v7488_v46 = vmul.f32 %v14879_v44, %v14718_v11  ;;  %v7491_v27 = vmul.f32 %v14879_v44, %v14735_v30  ;;  %v7611_v50 = vmax.f32 %v7584_v35, 0.0  ;;  %v7489_v43 = vmul.f32 %v14885_v62, %v14773_v42  ;;  %v11444_v11 = vld [vmem:[%s15422_s30 + $0xcc] sm:$0xff] }
0x157b   :  { %v7624_v23 = vpack.c.bf16 %v7606_v13, %v7603_v56  ;;  %8062 = vmatpush.bf16.msra.mxu0 %v11447_v48  ;;  %v7625_v20 = vpack.c.bf16 %v7607_v10, %v7604_v4  ;;  %v8024_v59 = vsel %vm1017_vm9, %v8006_v17, 0  ;;  %v7614_v25 = vmax.f32 %v7587_v21, 0.0 }
0x157c   :  { %v7582_v31 = vadd.f32 %v14891_v14, %v7488_v46  ;;  %v7585_v47 = vadd.f32 %v14891_v14, %v7491_v27  ;;  %v7492_v0 = vmul.f32 %v14885_v62, %v14781_v12  ;;  %8099 = vmatpush.bf16.msrb.mxu1 %v8024_v59  ;;  %v7583_v30 = vadd.f32 %v14899_v3, %v7489_v43 }
0x157d   :  { %v7629_v37 = vpack.c.bf16 %v7614_v25, %v7611_v50  ;;  %v7617_v62 = vmax.f32 %v14938_v28, 0.0  ;;  %v7616_v60 = vmax.f32 %v14941_v54, 0.0  ;;  %vm8333_vm9 = vcmask 261120  }
0x157e   :  { %v7586_v44 = vadd.f32 %v14899_v3, %v7492_v0  ;;  %v7609_v42 = vmax.f32 %v7582_v31, 0.0  ;;  %v7612_v1 = vmax.f32 %v7585_v47, 0.0  ;;  %v7610_v49 = vmax.f32 %v7583_v30, 0.0 }
0x157f   :  { %8063 = vmatpush.bf16.msra.mxu0 %v11446_v57  ;;  %v7615_v3 = vmax.f32 %v14931_v33, 0.0  ;;  %v7631_v26 = vpack.c.bf16 %v7616_v60, %v7616_v60 }
0x1580   :  { %10854 = vmatmul.msk.bf16.gmra.mxu1 %vm260_vm2, %v14945_v8  ;;  %v7613_v53 = vmax.f32 %v7586_v44, 0.0  ;;  %v7627_v14 = vpack.c.bf16 %v7612_v1, %v7609_v42 }
0x1581   :  { %v7630_v15 = vpack.c.bf16 %v7615_v3, %v7615_v3 }
0x1582   :  { %v7628_v12 = vpack.c.bf16 %v7613_v53, %v7610_v49 }
0x1583   :  { %8064 = vmatpush.bf16.msra.mxu0 %v11445_v36 }
0x1584   :  { %7796 = vmatmul.bf16.gmra.mxu0 %v7621_v24  ;;  %8039 = vmatmul.bf16.gmra.mxu2 %v7621_v24  ;;  %v7632_v24 = vpack.c.bf16 %v7617_v62, %v7617_v62 }
0x1586   :  { %7829 = vmatmul.bf16.gmra.mxu3 %v14953_v45 }
0x1587   :  { %8065 = vmatpush.bf16.msra.mxu0 %v11444_v11 }
0x158b   :  { %8066 = vmatpush.bf16.msra.mxu0 %v11443_v7 }
0x1590   :  { %10855 = vmatmul.msk.bf16.gmra.mxu1 %vm260_vm2, %v14973_v58 }
0x1594   :  { %7801 = vmatmul.bf16.gmra.mxu0 %v7624_v23  ;;  %8044 = vmatmul.bf16.gmra.mxu2 %v7624_v23 }
0x1596   :  { %7834 = vmatmul.bf16.gmra.mxu3 %v7625_v20 }
0x15a0   :  { %10856 = vmatmul.msk.bf16.gmra.mxu1 %vm260_vm2, %v7629_v37 }
0x15a4   :  { %7806 = vmatmul.bf16.gmra.mxu0 %v7627_v14  ;;  %8049 = vmatmul.bf16.gmra.mxu2 %v7627_v14 }
0x15a6   :  { %7839 = vmatmul.bf16.gmra.mxu3 %v7628_v12 }
0x15b0   :  { %10857 = vmatmul.msk.bf16.gmra.mxu1 %vm260_vm2, %v7632_v24 }
0x15b4   :  { %7811 = vmatmul.bf16.gmra.mxu0 %v7630_v15  ;;  %8054 = vmatmul.bf16.gmra.mxu2 %v7630_v15 }
0x15b6   :  { %7844 = vmatmul.bf16.gmra.mxu3 %v7631_v26 }
0x15c0   :  { %10955 = vmatmul.msk.bf16.vlgmr.msrb.gmra.mxu1 %vm260_vm2, %v14901_v9 }
0x15c4   :  { %8067 = vmatmul.bf16.vlgmr.msra.gmra.mxu0 %v14913_v16 }
0x15d0   :  { %10956 = vmatmul.msk.bf16.gmra.mxu1 %vm260_vm2, %v14945_v8 }
0x15d4   :  { %8072 = vmatmul.bf16.gmra.mxu0 %v14953_v45 }
0x15e0   :  { %10957 = vmatmul.msk.bf16.gmra.mxu1 %vm260_vm2, %v14973_v58 }
0x15e4   :  { %8077 = vmatmul.bf16.gmra.mxu0 %v7625_v20 }
0x15ed   :  { %v15015_v33 = vpop.f32.mrf.mxu1 }
0x15f0   :  { %10958 = vmatmul.msk.bf16.gmra.mxu1 %vm260_vm2, %v7629_v37 }
0x15f1   :  { %v15018_v28 = vpop.f32.mrf.mxu0 }
0x15f4   :  { %8082 = vmatmul.bf16.gmra.mxu0 %v7628_v12 }
0x15f5   :  { %v15020_v54 = vpop.f32.mrf.mxu1 }
0x15f7   :  { %v8035_v9 = vpop.f32.mrf.mxu2 }
0x15f9   :  { %v7794_v16 = vpop.f32.mrf.mxu0  ;;  %v7825_v55 = vpop.f32.mrf.mxu3 }
0x15fd   :  { %v7863_v5 = vpop.f32.mrf.mxu1 }
0x15ff   :  { %v15022_v8 = vpop.f32.mrf.mxu2 }
0x1600   :  { %10959 = vmatmul.msk.bf16.gmra.mxu1 %vm260_vm2, %v7632_v24  ;;  %v7826_v24 = vadd.f32 %v7825_v55, %v15018_v28  ;;  %vm8134_vm2 = vcmask 539648  }
0x1601   :  { %v7797_v45 = vpop.f32.mrf.mxu0  ;;  %v7827_v19 = vpop.f32.mrf.mxu3 }
0x1602   :  { %v7828_v12 = vadd.f32 %v7827_v19, %v7794_v16 }
0x1604   :  { %8087 = vmatmul.bf16.gmra.mxu0 %v7631_v26  ;;  %v7861_v15 = vadd.f32 %v15020_v54, %v7828_v12  ;;  %v8285_v12 = vld [vmem:[%s11734_s12 + $0x30] sm:$0xff] }
0x1605   :  { %v7865_v63 = vpop.f32.mrf.mxu1 }
0x1607   :  { %v15025_v2 = vpop.f32.mrf.mxu2 }
0x1609   :  { %v7799_v61 = vpop.f32.mrf.mxu0  ;;  %v7830_v38 = vpop.f32.mrf.mxu3 }
0x160a   :  { %v7831_v49 = vadd.f32 %v7830_v38, %v7797_v45 }
0x160c   :  { %v7864_v3 = vadd.f32 %v7863_v5, %v7831_v49  ;;  %v15096_v49 = vld [vmem:[%s11734_s12 + $0x118] sm:$0xff] }
0x160d   :  { %v7868_v52 = vpop.f32.mrf.mxu1 }
0x160f   :  { %v15027_v6 = vpop.f32.mrf.mxu2 }
0x1611   :  { %v7802_v40 = vpop.f32.mrf.mxu0  ;;  %v7832_v18 = vpop.f32.mrf.mxu3 }
0x1612   :  { %v7833_v37 = vadd.f32 %v7832_v18, %v7799_v61 }
0x1614   :  { %v7866_v62 = vadd.f32 %v7865_v63, %v7833_v37  ;;  %v8287_v37 = vld [vmem:[%s11734_s12 + $0x40] sm:$0xff] }
0x1615   :  { %v7870_v41 = vpop.f32.mrf.mxu1 }
0x1617   :  { %v15029_v29 = vpop.f32.mrf.mxu2 }
0x1619   :  { %v7804_v34 = vpop.f32.mrf.mxu0  ;;  %v7835_v58 = vpop.f32.mrf.mxu3 }
0x161a   :  { %v7836_v0 = vadd.f32 %v7835_v58, %v7802_v40 }
0x161c   :  { %v7869_v53 = vadd.f32 %v7868_v52, %v7836_v0  ;;  %v8289_v0 = vld [vmem:[%s11734_s12 + $0x50] sm:$0xff] }
0x161d   :  { %v7873_v56 = vpop.f32.mrf.mxu1 }
0x161f   :  { %v15031_v13 = vpop.f32.mrf.mxu2 }
0x1621   :  { %v7807_v4 = vpop.f32.mrf.mxu0  ;;  %v7837_v10 = vpop.f32.mrf.mxu3 }
0x1622   :  { %v7838_v25 = vadd.f32 %v7837_v10, %v7804_v34 }
0x1624   :  { %v7871_v42 = vadd.f32 %v7870_v41, %v7838_v25  ;;  %v7883_v41 = vld [vmem:[%s15424_s20 + $0x8] sm:$0xff]  ;;  %v7889_v25 = vld [vmem:[%s15424_s20 + $0x38] sm:$0xff] }
0x1625   :  { %v7875_v48 = vpop.f32.mrf.mxu1 }
0x1627   :  { %v15033_v51 = vpop.f32.mrf.mxu2 }
0x1629   :  { %v7809_v23 = vpop.f32.mrf.mxu0  ;;  %v7840_v39 = vpop.f32.mrf.mxu3 }
0x162a   :  { %v7841_v50 = vadd.f32 %v7840_v39, %v7807_v4 }
0x162c   :  { %v7874_v11 = vadd.f32 %v7873_v56, %v7841_v50  ;;  %v10962_v50 = vld [vmem:[%s15424_s20 + $0x50] sm:$0xff] }
0x162d   :  { %v7878_v20 = vpop.f32.mrf.mxu1 }
0x162f   :  { %v15035_v57 = vpop.f32.mrf.mxu2 }
0x1631   :  { %v7812_v32 = vpop.f32.mrf.mxu0  ;;  %v7842_v35 = vpop.f32.mrf.mxu3 }
0x1632   :  { %v7843_v46 = vadd.f32 %v7842_v35, %v7809_v23 }
0x1634   :  { %v7876_v31 = vadd.f32 %v7875_v48, %v7843_v46  ;;  %v10961_v46 = vld [vmem:[%s15424_s20 + $0x48] sm:$0xff] }
0x1635   :  { %v7880_v22 = vpop.f32.mrf.mxu1 }
0x1637   :  { %v8055_v21 = vpop.f32.mrf.mxu2 }
0x1639   :  { %v7814_v36 = vpop.f32.mrf.mxu0  ;;  %v7845_v17 = vpop.f32.mrf.mxu3 }
0x163a   :  { %v7846_v27 = vadd.f32 %v7845_v17, %v7812_v32 }
0x163c   :  { %v7879_v43 = vadd.f32 %v7878_v20, %v7846_v27  ;;  %v7884_v20 = vld [vmem:[%s15424_s20 + $0x10] sm:$0xff]  ;;  %v7887_v27 = vld [vmem:[%s15424_s20 + $0x28] sm:$0xff] }
0x163d   :  { %v8101_v59 = vpop.f32.mrf.mxu1 }
0x163e   :  { %10977 = vmatpush.msk.msrb.mxu2 %vm226_vm0, %v7879_v43  ;;  %v7888_v43 = vld [vmem:[%s15424_s20 + $0x30] sm:$0xff] }
0x163f   :  { %v8057_v47 = vpop.f32.mrf.mxu2 }
0x1640   :  { %8238 = vmatpush.msrb.mxu2 %v7876_v31  ;;  %v8290_v31 = vld [vmem:[%s11734_s12 + $0x58] sm:$0xff] }
0x1641   :  { %v7847_v30 = vpop.f32.mrf.mxu3  ;;  %v8068_v44 = vpop.f32.mrf.mxu0  ;;  %v15077_v47 = vld [vmem:[%s11734_s12 + $0xb8] sm:$0xff]  ;;  %8308 = vmatpush.msrb.mxu0 %v8290_v31 }
0x1642   :  { %v8069_v1 = vadd.f32 %v8068_v44, %v8035_v9  ;;  %8239 = vmatpush.msrb.mxu2 %v7874_v11  ;;  %v7859_v9 = vadd.f32 %v15015_v33, %v7826_v24  ;;  %v15082_v11 = vld [vmem:[%s11734_s12 + $0xb0] sm:$0xff]  ;;  %8355 = vmatpush.msra.mxu1 %v15077_v47  ;;  %v8288_v30 = vld [vmem:[%s11734_s12 + $0x48] sm:$0xff] }
0x1643   :  { %8309 = vmatpush.msrb.mxu0 %v8289_v0  ;;  %v15087_v44 = vld [vmem:[%s11734_s12 + $0xa8] sm:$0xff]  ;;  %v15114_v24 = vld [vmem:[%s11734_s12 + $0x90] sm:$0xff] }
0x1644   :  { %v15038_v7 = vadd.f32 %v8101_v59, %v8069_v1  ;;  %8240 = vmatpush.msrb.mxu2 %v7871_v42  ;;  %v10963_v59 = vld [vmem:[%s15424_s20 + $0x58] sm:$0xff]  ;;  %8356 = vmatpush.msra.mxu1 %v15082_v11  ;;  %v10964_v42 = vld [vmem:[%s15424_s20 + $0x60] sm:$0xff] }
0x1645   :  { %v8103_v14 = vpop.f32.mrf.mxu1  ;;  %8310 = vmatpush.msrb.mxu0 %v8288_v30  ;;  %v15093_v1 = vld [vmem:[%s11734_s12 + $0xa0] sm:$0xff] }
0x1646   :  { %8241 = vmatpush.msrb.mxu2 %v7869_v53  ;;  %8357 = vmatpush.msra.mxu1 %v15087_v44  ;;  %v8286_v53 = vld [vmem:[%s11734_s12 + $0x38] sm:$0xff] }
0x1647   :  { %8311 = vmatpush.msrb.mxu0 %v8287_v37 }
0x1648   :  { %8242 = vmatpush.msrb.mxu2 %v7866_v62  ;;  %8358 = vmatpush.msra.mxu1 %v15093_v1  ;;  %v15111_v62 = vld [vmem:[%s11734_s12 + $0x108] sm:$0xff] }
0x1649   :  { %v8070_v60 = vpop.f32.mrf.mxu0  ;;  %8312 = vmatpush.msrb.mxu0 %v8286_v53 }
0x164a   :  { %v8071_v26 = vadd.f32 %v8070_v60, %v15022_v8  ;;  %8243 = vmatpush.msrb.mxu2 %v7864_v3  ;;  %v7882_v8 = vld [vmem:[%s15424_s20] sm:$0xff]  ;;  %v8284_v3 = vld [vmem:[%s11734_s12 + $0x28] sm:$0xff] }
0x164b   :  { %v15120_v60 = vld [vmem:[%s11734_s12 + $0x100] sm:$0xff]  ;;  %8313 = vmatpush.msrb.mxu0 %v8285_v12 }
0x164c   :  { %v8104_v45 = vadd.f32 %v8103_v14, %v8071_v26  ;;  %8244 = vmatpush.msrb.mxu2 %v7861_v15  ;;  %v15105_v14 = vld [vmem:[%s11734_s12 + $0x98] sm:$0xff]  ;;  %v15123_v15 = vld [vmem:[%s11734_s12 + $0x88] sm:$0xff]  ;;  %v8283_v26 = vld [vmem:[%s11734_s12 + $0x20] sm:$0xff] }
0x164d   :  { %v8106_v61 = vpop.f32.mrf.mxu1  ;;  %8359 = vmatpush.msra.mxu1 %v15105_v14  ;;  %8314 = vmatpush.msrb.mxu0 %v8284_v3 }
0x164e   :  { %8245 = vmatpush.msrb.mxu2 %v7859_v9  ;;  %v11013_v9 = vld [vmem:[%s11734_s12 + $0xf8] sm:$0xff] }
0x164f   :  { %10978 = vmatmul.msk.f32.vlgmr.msrb.gmra.mxu2 %vm8134_vm2, %v7882_v8  ;;  %8360 = vmatpush.msra.mxu1 %v15114_v24  ;;  %v10991_v8 = vld [vmem:[%s11734_s12 + $0x68] sm:$0xff] }
0x1650   :  { %8460 = vmatpush.msra.mxu2 %v8290_v31  ;;  %8315 = vmatpush.msrb.mxu0 %v8283_v26 }
0x1651   :  { %v8073_v16 = vpop.f32.mrf.mxu0  ;;  %8361 = vmatpush.msra.mxu1 %v15123_v15 }
0x1652   :  { %8461 = vmatpush.msra.mxu2 %v8289_v0 }
0x1654   :  { %8462 = vmatpush.msra.mxu2 %v8288_v30 }
0x1655   :  { %v8108_v19 = vpop.f32.mrf.mxu1 }
0x1656   :  { %8463 = vmatpush.msra.mxu2 %v8287_v37 }
0x1657   :  { %10979 = vmatmul.msk.f32.gmra.mxu2 %vm8134_vm2, %v7883_v41  ;;  %v11007_v41 = vld [vmem:[%s11734_s12 + $0xc8] sm:$0xff] }
0x1658   :  { %8464 = vmatpush.msra.mxu2 %v8286_v53 }
0x1659   :  { %v8075_v63 = vpop.f32.mrf.mxu0 }
0x165a   :  { %v8076_v22 = vadd.f32 %v8075_v63, %v15027_v6  ;;  %v10960_v6 = vld [vmem:[%s15424_s20 + $0x40] sm:$0xff]  ;;  %8465 = vmatpush.msra.mxu2 %v8285_v12  ;;  %v10993_v63 = vld [vmem:[%s11734_s12 + $0x78] sm:$0xff] }
0x165c   :  { %v8109_v36 = vadd.f32 %v8108_v19, %v8076_v22  ;;  %v11012_v19 = vld [vmem:[%s11734_s12 + $0xf0] sm:$0xff]  ;;  %8466 = vmatpush.msra.mxu2 %v8284_v3 }
0x165d   :  { %v8111_v28 = vpop.f32.mrf.mxu1 }
0x165e   :  { %8467 = vmatpush.msra.mxu2 %v8283_v26 }
0x165f   :  { %10980 = vmatmul.msk.f32.gmra.mxu2 %vm8134_vm2, %v7884_v20 }
0x1661   :  { %v8078_v55 = vpop.f32.mrf.mxu0 }
0x1662   :  { %v8079_v32 = vadd.f32 %v8078_v55, %v15029_v29  ;;  %v7885_v29 = vld [vmem:[%s15424_s20 + $0x18] sm:$0xff]  ;;  %v11011_v55 = vld [vmem:[%s11734_s12 + $0xe8] sm:$0xff] }
0x1665   :  { %v8113_v5 = vpop.f32.mrf.mxu1 }
0x1667   :  { %10981 = vmatmul.msk.f32.gmra.mxu2 %vm8134_vm2, %v7885_v29 }
0x1669   :  { %v8080_v38 = vpop.f32.mrf.mxu0 }
0x166a   :  { %v8081_v23 = vadd.f32 %v8080_v38, %v15031_v13  ;;  %v8074_v13 = vadd.f32 %v8073_v16, %v15025_v2  ;;  %v7886_v2 = vld [vmem:[%s15424_s20 + $0x20] sm:$0xff]  ;;  %v8282_v16 = vld [vmem:[%s11734_s12 + $0x18] sm:$0xff]  ;;  %v10966_v38 = vld [vmem:[%s15424_s20 + $0x70] sm:$0xff] }
0x166b   :  { %8316 = vmatpush.msrb.mxu0 %v8282_v16  ;;  %8468 = vmatpush.msra.mxu2 %v8282_v16 }
0x166c   :  { %v8107_v17 = vadd.f32 %v8106_v61, %v8074_v13  ;;  %v15131_v61 = vld [vmem:[%s11734_s12 + $0x80] sm:$0xff] }
0x166d   :  { %v8116_v52 = vpop.f32.mrf.mxu1  ;;  %8362 = vmatpush.msra.mxu1 %v15131_v61 }
0x166f   :  { %10982 = vmatmul.msk.f32.gmra.mxu2 %vm8134_vm2, %v7886_v2  ;;  %8363 = vmatpush.msra.mxu1 %v10993_v63 }
0x1671   :  { %v8083_v54 = vpop.f32.mrf.mxu0 }
0x1672   :  { %v8084_v4 = vadd.f32 %v8083_v54, %v15033_v51  ;;  %v8114_v51 = vadd.f32 %v8113_v5, %v8081_v23  ;;  %v10992_v5 = vld [vmem:[%s11734_s12 + $0x70] sm:$0xff]  ;;  %v11010_v54 = vld [vmem:[%s11734_s12 + $0xe0] sm:$0xff] }
0x1673   :  { %8364 = vmatpush.msra.mxu1 %v10992_v5 }
0x1674   :  { %v8117_v35 = vadd.f32 %v8116_v52, %v8084_v4  ;;  %v10967_v52 = vld [vmem:[%s15424_s20 + $0x78] sm:$0xff] }
0x1675   :  { %v8118_v40 = vpop.f32.mrf.mxu1  ;;  %8365 = vmatpush.msra.mxu1 %v10991_v8 }
0x1677   :  { %10983 = vmatmul.msk.f32.gmra.mxu2 %vm8134_vm2, %v7887_v27 }
0x1679   :  { %v8085_v33 = vpop.f32.mrf.mxu0 }
0x167a   :  { %v8086_v58 = vadd.f32 %v8085_v33, %v15035_v57  ;;  %v11009_v33 = vld [vmem:[%s11734_s12 + $0xd8] sm:$0xff] }
0x167c   :  { %v8119_v39 = vadd.f32 %v8118_v40, %v8086_v58  ;;  %v8280_v40 = vld [vmem:[%s11734_s12 + $0x8] sm:$0xff]  ;;  %v10990_v58 = vld [vmem:[%s11734_s12 + $0x60] sm:$0xff] }
0x167d   :  { %v8121_v18 = vpop.f32.mrf.mxu1  ;;  %8366 = vmatpush.msra.mxu1 %v10990_v58 }
0x167f   :  { %10984 = vmatmul.msk.f32.gmra.mxu2 %vm8134_vm2, %v7888_v43  ;;  %8552 = vmatpush.msrb.mxu1 %v15096_v49 }
0x1681   :  { %v8088_v34 = vpop.f32.mrf.mxu0 }
0x1682   :  { %v8089_v56 = vadd.f32 %v8088_v34, %v8055_v21  ;;  %v8112_v21 = vadd.f32 %v8111_v28, %v8079_v32  ;;  %v8281_v28 = vld [vmem:[%s11734_s12 + $0x10] sm:$0xff]  ;;  %v8279_v34 = vld [vmem:[%s11734_s12] sm:$0xff] }
0x1683   :  { %8317 = vmatpush.msrb.mxu0 %v8281_v28  ;;  %8469 = vmatpush.msra.mxu2 %v8281_v28 }
0x1684   :  { %v8122_v10 = vadd.f32 %v8121_v18, %v8089_v56  ;;  %v11008_v18 = vld [vmem:[%s11734_s12 + $0xd0] sm:$0xff]  ;;  %v11006_v56 = vld [vmem:[%s11734_s12 + $0xc0] sm:$0xff] }
0x1685   :  { %v8123_v48 = vpop.f32.mrf.mxu1  ;;  %8318 = vmatpush.msrb.mxu0 %v8280_v40  ;;  %8470 = vmatpush.msra.mxu2 %v8280_v40 }
0x1686   :  { %10968 = vmatpush.msk.msrb.mxu3 %vm226_vm0, %v8122_v10  ;;  %vm8291_vm0 = vcmask 785408  }
0x1687   :  { %10985 = vmatmul.msk.f32.gmra.mxu2 %vm8134_vm2, %v7889_v25  ;;  %8319 = vmatpush.msrb.mxu0 %v8279_v34 }
0x1688   :  { %8170 = vmatpush.msrb.mxu3 %v8119_v39  ;;  %8471 = vmatpush.msra.mxu2 %v8279_v34 }
0x1689   :  { %v8090_v57 = vpop.f32.mrf.mxu0  ;;  %8506 = vmatpush.msra.mxu0 %v15077_v47 }
0x168a   :  { %8171 = vmatpush.msrb.mxu3 %v8117_v35 }
0x168b   :  { %8507 = vmatpush.msra.mxu0 %v15082_v11 }
0x168c   :  { %8172 = vmatpush.msrb.mxu3 %v8114_v51 }
0x168d   :  { %8508 = vmatpush.msra.mxu0 %v15087_v44 }
0x168e   :  { %8173 = vmatpush.msrb.mxu3 %v8112_v21 }
0x168f   :  { %8509 = vmatpush.msra.mxu0 %v15093_v1 }
0x1690   :  { %8174 = vmatpush.msrb.mxu3 %v8109_v36 }
0x1691   :  { %8510 = vmatpush.msra.mxu0 %v15105_v14 }
0x1692   :  { %8175 = vmatpush.msrb.mxu3 %v8107_v17 }
0x1693   :  { %8511 = vmatpush.msra.mxu0 %v15114_v24 }
0x1694   :  { %8176 = vmatpush.msrb.mxu3 %v8104_v45  ;;  %v10965_v45 = vld [vmem:[%s15424_s20 + $0x68] sm:$0xff] }
0x1695   :  { %8512 = vmatpush.msra.mxu0 %v15123_v15 }
0x1696   :  { %8177 = vmatpush.msrb.mxu3 %v15038_v7  ;;  %v15102_v7 = vld [vmem:[%s11734_s12 + $0x110] sm:$0xff]  ;;  %s11568_s12 = smov [#allocation2]  }
0x1697   :  { %10969 = vmatmul.msk.f32.vlgmr.msrb.gmra.mxu3 %vm8134_vm2, %v10960_v6  ;;  %8553 = vmatpush.msrb.mxu1 %v15102_v7  ;;  %s8586_s27 = sshll.u32 %s11568_s12, 4  ;;  %s8587_s27 = int_to_ptr.vmem [resolvable:$true] %s8586_s27 }
0x1698   :  { %8402 = vmatpush.msra.mxu3 %v15096_v49  ;;  %8513 = vmatpush.msra.mxu0 %v15131_v61 }
0x1699   :  { %8554 = vmatpush.msrb.mxu1 %v15111_v62 }
0x169a   :  { %8403 = vmatpush.msra.mxu3 %v15102_v7  ;;  %8514 = vmatpush.msra.mxu0 %v10993_v63 }
0x169b   :  { %8555 = vmatpush.msrb.mxu1 %v15120_v60 }
0x169c   :  { %8404 = vmatpush.msra.mxu3 %v15111_v62  ;;  %8515 = vmatpush.msra.mxu0 %v10992_v5 }
0x169d   :  { %8556 = vmatpush.msrb.mxu1 %v11013_v9 }
0x169e   :  { %8405 = vmatpush.msra.mxu3 %v15120_v60  ;;  %8516 = vmatpush.msra.mxu0 %v10991_v8 }
0x169f   :  { %10970 = vmatmul.msk.f32.gmra.mxu3 %vm8134_vm2, %v10961_v46  ;;  %8557 = vmatpush.msrb.mxu1 %v11012_v19 }
0x16a0   :  { %8406 = vmatpush.msra.mxu3 %v11013_v9  ;;  %8517 = vmatpush.msra.mxu0 %v10990_v58 }
0x16a1   :  { %8558 = vmatpush.msrb.mxu1 %v11011_v55 }
0x16a2   :  { %8407 = vmatpush.msra.mxu3 %v11012_v19 }
0x16a3   :  { %8559 = vmatpush.msrb.mxu1 %v11010_v54 }
0x16a4   :  { %8408 = vmatpush.msra.mxu3 %v11011_v55 }
0x16a5   :  { %8560 = vmatpush.msrb.mxu1 %v11009_v33 }
0x16a6   :  { %8409 = vmatpush.msra.mxu3 %v11010_v54 }
0x16a7   :  { %10971 = vmatmul.msk.f32.gmra.mxu3 %vm8134_vm2, %v10962_v50  ;;  %8561 = vmatpush.msrb.mxu1 %v11008_v18 }
0x16a8   :  { %8410 = vmatpush.msra.mxu3 %v11009_v33 }
0x16a9   :  { %8562 = vmatpush.msrb.mxu1 %v11007_v41 }
0x16aa   :  { %8411 = vmatpush.msra.mxu3 %v11008_v18 }
0x16ab   :  { %8563 = vmatpush.msrb.mxu1 %v11006_v56 }
0x16ac   :  { %8412 = vmatpush.msra.mxu3 %v11007_v41 }
0x16ae   :  { %8413 = vmatpush.msra.mxu3 %v11006_v56 }
0x16af   :  { %10972 = vmatmul.msk.f32.gmra.mxu3 %vm8134_vm2, %v10963_v59 }
0x16b7   :  { %10973 = vmatmul.msk.f32.gmra.mxu3 %vm8134_vm2, %v10964_v42 }
0x16bf   :  { %10974 = vmatmul.msk.f32.gmra.mxu3 %vm8134_vm2, %v10965_v45 }
0x16c7   :  { %10975 = vmatmul.msk.f32.gmra.mxu3 %vm8134_vm2, %v10966_v38 }
0x16cf   :  { %10976 = vmatmul.msk.f32.gmra.mxu3 %vm8134_vm2, %v10967_v52 }
0x16d2   :  { %v8247_v4 = vpop.f32.mrf.mxu2 }
0x16da   :  { %v8250_v10 = vpop.f32.mrf.mxu2 }
0x16e2   :  { %v8253_v39 = vpop.f32.mrf.mxu2 }
0x16ea   :  { %v8256_v57 = vpop.f32.mrf.mxu2 }
0x16f2   :  { %v8259_v36 = vpop.f32.mrf.mxu2 }
0x16fa   :  { %v8262_v27 = vpop.f32.mrf.mxu2 }
0x1702   :  { %v8265_v25 = vpop.f32.mrf.mxu2 }
0x170a   :  { %v8268_v11 = vpop.f32.mrf.mxu2 }
0x171a   :  { %v8179_v48 = vpop.f32.mrf.mxu3 }
0x171b   :  { %v8248_v23 = vadd.f32 %v8247_v4, %v8179_v48 }
0x171d   :  { %11494 = vtanh.f32 %v8248_v23 }
0x1722   :  { %v8182_v20 = vpop.f32.mrf.mxu3 }
0x1723   :  { %v11495_v32 = vpop.eup %11494  ;;  %v8251_v35 = vadd.f32 %v8250_v10, %v8182_v20 }
0x1724   :  { %10986 = vmatmul.msk.f32.vlgmr.msrb.gmra.mxu0 %vm8291_vm0, %v11495_v32  ;;  %11002 = vmatmul.msk.f32.vlgmr.msra.gmra.mxu1 %vm8291_vm0, %v11495_v32 }
0x1725   :  { %11496 = vtanh.f32 %v8251_v35  ;;  %11018 = vmatmul.msk.f32.vlgmr.msra.gmra.mxu3 %vm8291_vm0, %v11495_v32 }
0x172a   :  { %v8185_v22 = vpop.f32.mrf.mxu3 }
0x172b   :  { %v11497_v51 = vpop.eup %11496  ;;  %v8254_v13 = vadd.f32 %v8253_v39, %v8185_v22 }
0x172c   :  { %10987 = vmatmul.msk.f32.gmra.mxu0 %vm8291_vm0, %v11497_v51  ;;  %11003 = vmatmul.msk.f32.gmra.mxu1 %vm8291_vm0, %v11497_v51 }
0x172d   :  { %11498 = vtanh.f32 %v8254_v13  ;;  %11019 = vmatmul.msk.f32.gmra.mxu3 %vm8291_vm0, %v11497_v51 }
0x1732   :  { %v8188_v21 = vpop.f32.mrf.mxu3 }
0x1733   :  { %v11499_v29 = vpop.eup %11498  ;;  %v8257_v17 = vadd.f32 %v8256_v57, %v8188_v21 }
0x1734   :  { %10988 = vmatmul.msk.f32.gmra.mxu0 %vm8291_vm0, %v11499_v29  ;;  %11004 = vmatmul.msk.f32.gmra.mxu1 %vm8291_vm0, %v11499_v29 }
0x1735   :  { %11500 = vtanh.f32 %v8257_v17  ;;  %11020 = vmatmul.msk.f32.gmra.mxu3 %vm8291_vm0, %v11499_v29 }
0x173a   :  { %v8191_v6 = vpop.f32.mrf.mxu3 }
0x173b   :  { %v11501_v2 = vpop.eup %11500  ;;  %v8260_v46 = vadd.f32 %v8259_v36, %v8191_v6 }
0x173c   :  { %10989 = vmatmul.msk.f32.gmra.mxu0 %vm8291_vm0, %v11501_v2  ;;  %11005 = vmatmul.msk.f32.gmra.mxu1 %vm8291_vm0, %v11501_v2 }
0x173d   :  { %11502 = vtanh.f32 %v8260_v46  ;;  %11021 = vmatmul.msk.f32.gmra.mxu3 %vm8291_vm0, %v11501_v2 }
0x1742   :  { %v8194_v50 = vpop.f32.mrf.mxu3 }
0x1743   :  { %v11503_v43 = vpop.eup %11502  ;;  %v8263_v59 = vadd.f32 %v8262_v27, %v8194_v50 }
0x1744   :  { %11022 = vmatmul.msk.f32.vlgmr.msra.gmra.mxu2 %vm8291_vm0, %v11503_v43  ;;  %11038 = vmatmul.msk.f32.vlgmr.msra.gmra.mxu0 %vm8291_vm0, %v11503_v43 }
0x1745   :  { %11504 = vtanh.f32 %v8263_v59  ;;  %11054 = vmatmul.msk.f32.vlgmr.msrb.gmra.mxu1 %vm8291_vm0, %v11503_v43 }
0x174a   :  { %v8197_v31 = vpop.f32.mrf.mxu3 }
0x174b   :  { %v11505_v47 = vpop.eup %11504  ;;  %v8266_v0 = vadd.f32 %v8265_v25, %v8197_v31 }
0x174c   :  { %11023 = vmatmul.msk.f32.gmra.mxu2 %vm8291_vm0, %v11505_v47  ;;  %11039 = vmatmul.msk.f32.gmra.mxu0 %vm8291_vm0, %v11505_v47 }
0x174d   :  { %11506 = vtanh.f32 %v8266_v0  ;;  %11055 = vmatmul.msk.f32.gmra.mxu1 %vm8291_vm0, %v11505_v47 }
0x1752   :  { %v8200_v30 = vpop.f32.mrf.mxu3 }
0x1753   :  { %v11507_v44 = vpop.eup %11506  ;;  %v8269_v37 = vadd.f32 %v8268_v11, %v8200_v30 }
0x1754   :  { %11024 = vmatmul.msk.f32.gmra.mxu2 %vm8291_vm0, %v11507_v44  ;;  %11040 = vmatmul.msk.f32.gmra.mxu0 %vm8291_vm0, %v11507_v44 }
0x1755   :  { %11508 = vtanh.f32 %v8269_v37  ;;  %11056 = vmatmul.msk.f32.gmra.mxu1 %vm8291_vm0, %v11507_v44 }
0x175b   :  { %v11509_v42 = vpop.eup %11508 }
0x175c   :  { %11025 = vmatmul.msk.f32.gmra.mxu2 %vm8291_vm0, %v11509_v42  ;;  %11041 = vmatmul.msk.f32.gmra.mxu0 %vm8291_vm0, %v11509_v42 }
0x175d   :  { %11057 = vmatmul.msk.f32.gmra.mxu1 %vm8291_vm0, %v11509_v42 }
0x17a1   :  { %v8321_v1 = vpop.f32.mrf.mxu0  ;;  %v8368_v49 = vpop.f32.mrf.mxu1 }
0x17a2   :  { %8334 = vst.msk [vmem:[#allocation2] sm:$0xff] %vm8333_vm9, %v8321_v1 }
0x17a3   :  { %8381 = vst.msk [vmem:[#allocation2 + $0x20] sm:$0xff] %vm8333_vm9, %v8368_v49 }
0x17a8   :  { %v8415_v53 = vpop.f32.mrf.mxu3 }
0x17a9   :  { %8428 = vst.msk [vmem:[#allocation2 + $0x40] sm:$0xff] %vm8333_vm9, %v8415_v53  ;;  %v8324_v7 = vpop.f32.mrf.mxu0  ;;  %v8371_v14 = vpop.f32.mrf.mxu1 }
0x17aa   :  { %8335 = vst.msk [vmem:[#allocation2 + $0x8] sm:$0xff] %vm8333_vm9, %v8324_v7 }
0x17ab   :  { %8382 = vst.msk [vmem:[#allocation2 + $0x28] sm:$0xff] %vm8333_vm9, %v8371_v14 }
0x17b0   :  { %v8418_v12 = vpop.f32.mrf.mxu3 }
0x17b1   :  { %8429 = vst.msk [vmem:[#allocation2 + $0x48] sm:$0xff] %vm8333_vm9, %v8418_v12  ;;  %v8327_v62 = vpop.f32.mrf.mxu0  ;;  %v8374_v24 = vpop.f32.mrf.mxu1 }
0x17b2   :  { %8336 = vst.msk [vmem:[#allocation2 + $0x10] sm:$0xff] %vm8333_vm9, %v8327_v62 }
0x17b3   :  { %8383 = vst.msk [vmem:[#allocation2 + $0x30] sm:$0xff] %vm8333_vm9, %v8374_v24 }
0x17b8   :  { %v8421_v3 = vpop.f32.mrf.mxu3 }
0x17b9   :  { %8430 = vst.msk [vmem:[#allocation2 + $0x50] sm:$0xff] %vm8333_vm9, %v8421_v3  ;;  %v8330_v60 = vpop.f32.mrf.mxu0  ;;  %v8377_v15 = vpop.f32.mrf.mxu1 }
0x17ba   :  { %8337 = vst.msk [vmem:[#allocation2 + $0x18] sm:$0xff] %vm8333_vm9, %v8330_v60 }
0x17bb   :  { %8384 = vst.msk [vmem:[#allocation2 + $0x38] sm:$0xff] %vm8333_vm9, %v8377_v15 }
0x17c0   :  { %v8424_v26 = vpop.f32.mrf.mxu3 }
0x17c1   :  { %8431 = vst.msk [vmem:[#allocation2 + $0x58] sm:$0xff] %vm8333_vm9, %v8424_v26  ;;  %v8519_v9 = vpop.f32.mrf.mxu0 }
0x17c2   :  { %8532 = vst.msk [vmem:[#allocation2 + $0x80] sm:$0xff] %vm8333_vm9, %v8519_v9  ;;  %v8565_v45 = vpop.f32.mrf.mxu1 }
0x17c3   :  { %8578 = vst.msk [vmem:[#allocation2 + $0xa0] sm:$0xff] %vm8333_vm9, %v8565_v45 }
0x17c7   :  { %v8473_v61 = vpop.f32.mrf.mxu2 }
0x17c8   :  { %8486 = vst.msk [vmem:[#allocation2 + $0x60] sm:$0xff] %vm8333_vm9, %v8473_v61 }
0x17c9   :  { %v8522_v16 = vpop.f32.mrf.mxu0 }
0x17ca   :  { %8533 = vst.msk [vmem:[#allocation2 + $0x88] sm:$0xff] %vm8333_vm9, %v8522_v16  ;;  %v8568_v19 = vpop.f32.mrf.mxu1 }
0x17cb   :  { %8579 = vst.msk [vmem:[#allocation2 + $0xa8] sm:$0xff] %vm8333_vm9, %v8568_v19 }
0x17cf   :  { %v8476_v63 = vpop.f32.mrf.mxu2 }
0x17d0   :  { %8487 = vst.msk [vmem:[#allocation2 + $0x68] sm:$0xff] %vm8333_vm9, %v8476_v63 }
0x17d1   :  { %v8525_v28 = vpop.f32.mrf.mxu0 }
0x17d2   :  { %8534 = vst.msk [vmem:[#allocation2 + $0x90] sm:$0xff] %vm8333_vm9, %v8525_v28  ;;  %v8571_v55 = vpop.f32.mrf.mxu1 }
0x17d3   :  { %8580 = vst.msk [vmem:[#allocation2 + $0xb0] sm:$0xff] %vm8333_vm9, %v8571_v55 }
0x17d7   :  { %v8479_v5 = vpop.f32.mrf.mxu2 }
0x17d8   :  { %8488 = vst.msk [vmem:[#allocation2 + $0x70] sm:$0xff] %vm8333_vm9, %v8479_v5 }
0x17d9   :  { %v8528_v38 = vpop.f32.mrf.mxu0 }
0x17da   :  { %8535 = vst.msk [vmem:[#allocation2 + $0x98] sm:$0xff] %vm8333_vm9, %v8528_v38  ;;  %v8574_v52 = vpop.f32.mrf.mxu1 }
0x17db   :  { %8581 = vst.msk [vmem:[#allocation2 + $0xb8] sm:$0xff] %vm8333_vm9, %v8574_v52 }
0x17df   :  { %v8482_v54 = vpop.f32.mrf.mxu2 }
0x17e0   :  { %8489 = vst.msk [vmem:[#allocation2 + $0x78] sm:$0xff] %vm8333_vm9, %v8482_v54 }
0x17e1   :  { %11533 = shalt.err (!%p11530_p4)
}
0x17e2   :  { %s11569_s7 = smov 128   ;;  %s11570_s10 = smov 8  }
0x17e3   :  { %8594 = dma.vmem_to_hbm [thread:$0]  %s8587_s27, 3072, %s8589_s4, [#allocation3], %s11569_s7, %s11569_s7, %s11570_s10  }
0x17e4   :  { %11534 = dma.done.wait [#allocation3], 3072  }
0x17e5   :  { %11535 = vsyncadd [#allocation3], 4294964224 }
0x17e6   :  { %8599 = vsyncpa [#allocation3], 1 }

</bundles_post_ra>
